<compile_context>
chip_gen: v7x
topology: tpu7x:2x2x1
jax: 0.10.0
libtpu: 0.0.40
codegen_flags: <defaults>
</compile_context>

<pallas_src>
import functools

import jax
import jax.numpy as jnp
from jax.experimental import pallas as pl
from jax.experimental.pallas import tpu as pltpu

# bf16 matmul operands / inter-layer activations (f32 accumulation and f32
# elementwise math).  Set to jnp.float32 for exact parity with PyTorch f32.
COMPUTE_DTYPE = jnp.bfloat16


# ----------------------------------------------------------------------------
# Generation-aware sizing (v5e/v6e: 128 MiB VMEM, v7x: 64 MiB per TensorCore).
# ----------------------------------------------------------------------------
def _tpu_vmem_capacity_bytes():
    try:
        info = pltpu.get_tpu_info()
        for name in ("vmem_capacity_bytes", "vmem_bytes", "vmem_size_bytes"):
            cap = getattr(info, name, None)
            if cap:
                return int(cap)
    except Exception:
        pass
    return 64 * 1024 * 1024  # conservative default (v7x-sized)


_VMEM_CAP = _tpu_vmem_capacity_bytes()
_VMEM_LIMIT = int(min(_VMEM_CAP * 3 // 4, 100 * 1024 * 1024))
_BIG_VMEM = _VMEM_CAP >= 100 * 1024 * 1024
_CONV_BT_CAP = 32 if _BIG_VMEM else 16     # images per conv grid step
_MLP_BT_CAP = 512 if _BIG_VMEM else 128    # images per MLP grid step


def _batch_tile(b, cap, *, align=1):
    """Largest multiple-of-`align` divisor of b that is <= cap, keeping >= 2
    grid steps whenever b >= 2 (feeds both v7x TensorCores).  Falls back to b
    itself (single step, block == full array) if no aligned divisor fits."""
    if b >= 2:
        cap = max(1, min(cap, b // 2))
        cands = [t for t in range(align, cap + 1, align) if b % t == 0]
        if cands:
            return cands[-1]
        if align == 1:
            return 1
    return b


def _const_spec(shape):
    """BlockSpec for operands whose block index never changes (weights/bias):
    single-buffered so they are not pointlessly double-buffered in VMEM."""
    index_map = lambda i: (0,) * len(shape)
    try:
        return pl.BlockSpec(shape, index_map, pipeline_mode=pl.Buffered(1))
    except TypeError:  # older BlockSpec without pipeline_mode
        return pl.BlockSpec(shape, index_map)


# ----------------------------------------------------------------------------
# Kernels
# ----------------------------------------------------------------------------
def _conv_relu_pool_kernel(p_ref, w_ref, b_ref, o_ref):
    # p_ref: (4, R, K)  pre-im2col patches; leading axis = 2x2 pooling-window
    #                   position, rows ordered (b, h_out, w_out), features
    #                   ordered (dy, dx, cin).
    # w_ref: (K, Cout)  conv weight, rows ordered (dy, dx, cin).
    # b_ref: (1, Cout)  f32 bias.
    # o_ref: (R, Cout)  pooled activation, rows ordered (b, h_out, w_out).
    w = w_ref[...]
    acc = jnp.dot(p_ref[0], w, preferred_element_type=jnp.float32)
    for q in range(1, 4):  # 2x2 max pool == elementwise max over window taps
        acc = jnp.maximum(acc,
                          jnp.dot(p_ref[q], w, preferred_element_type=jnp.float32))
    # relu(maxpool(y) + b) == maxpool(relu(y + b)) for a per-channel bias.
    o_ref[...] = jnp.maximum(acc + b_ref[...], 0.0).astype(o_ref.dtype)


def _mlp_kernel(x_ref, fw1_ref, fb1_ref, fw2_ref, fb2_ref, o_ref):
    # x_ref: (Bt, D)  flattened pooled features in (h, w, c) order.
    # fw2/fb2 are zero-padded to 128 lane-dense output columns.
    h1 = jnp.dot(x_ref[...], fw1_ref[...], preferred_element_type=jnp.float32)
    h1 = jnp.maximum(h1 + fb1_ref[...], 0.0)
    # TODO(synk): nn.Dropout(0.5) is identity in eval mode; training-mode
    # stochastic masking (pltpu.prng_seed / prng_random_bits) is not implemented.
    out = jnp.dot(h1.astype(fw2_ref.dtype), fw2_ref[...],
                  preferred_element_type=jnp.float32)
    o_ref[...] = (out + fb2_ref[...]).astype(o_ref.dtype)


# ----------------------------------------------------------------------------
# Wrappers (all layout / relayout work stays in XLA, out of the kernels)
# ----------------------------------------------------------------------------
def _conv_patches_pooled(x_nhwc):
    """3x3/pad-1 im2col + 2x2-window row grouping (wrapper-side, plain XLA).
    Returns (4, B*(H//2)*(W//2), 9*C): leading axis = window position (hi, wi),
    rows ordered (b, h_out, w_out), features ordered (dy, dx, c)."""
    b, h, w, c = x_nhwc.shape
    xp = jnp.pad(x_nhwc, ((0, 0), (1, 1), (1, 1), (0, 0)))
    taps = [xp[:, dy:dy + h, dx:dx + w, :] for dy in range(3) for dx in range(3)]
    p = jnp.concatenate(taps, axis=-1)                 # (B, H, W, 9C)
    p = p.reshape(b, h // 2, 2, w // 2, 2, 9 * c)      # (b, h2, hi, w2, wi, f)
    p = p.transpose(2, 4, 0, 1, 3, 5)                  # (hi, wi, b, h2, w2, f)
    return p.reshape(4, b * (h // 2) * (w // 2), 9 * c)


def conv_relu_pool(x_nhwc, wmat, bias):
    """Fused conv2d(3x3, pad=1) + bias + ReLU + maxpool(2,2) as one pallas_call."""
    b, h, w, c = x_nhwc.shape
    cout = wmat.shape[1]
    ho, wo = h // 2, w // 2
    patches = _conv_patches_pooled(x_nhwc)             # (4, B*ho*wo, 9c)
    bt = _batch_tile(b, _CONV_BT_CAP)
    rows = bt * ho * wo
    out = pl.pallas_call(
        _conv_relu_pool_kernel,
        out_shape=jax.ShapeDtypeStruct((b * ho * wo, cout), COMPUTE_DTYPE),
        grid=(b // bt,),
        in_specs=[
            pl.BlockSpec((4, rows, 9 * c), lambda i: (0, i, 0)),
            _const_spec((9 * c, cout)),
            _const_spec((1, cout)),
        ],
        out_specs=pl.BlockSpec((rows, cout), lambda i: (i, 0)),
        compiler_params=pltpu.CompilerParams(
            dimension_semantics=("parallel",),
            vmem_limit_bytes=_VMEM_LIMIT),
    )(patches, wmat, bias)
    return out.reshape(b, ho, wo, cout)


def mlp_head(flat, fw1, fb1, fw2, fb2):
    """Fused fc1 + ReLU + (eval-mode dropout) + fc2 (output padded to 128 cols)."""
    b, d_in = flat.shape
    d_hid = fw1.shape[1]
    d_out = fw2.shape[1]
    bt = _batch_tile(b, _MLP_BT_CAP, align=8)  # keep (8,128)-aligned row blocks
    out = pl.pallas_call(
        _mlp_kernel,
        out_shape=jax.ShapeDtypeStruct((b, d_out), jnp.float32),
        grid=(b // bt,),
        in_specs=[
            pl.BlockSpec((bt, d_in), lambda i: (i, 0)),
            _const_spec((d_in, d_hid)),
            _const_spec((1, d_hid)),
            _const_spec((d_hid, d_out)),
            _const_spec((1, d_out)),
        ],
        out_specs=pl.BlockSpec((bt, d_out), lambda i: (i, 0)),
        compiler_params=pltpu.CompilerParams(
            dimension_semantics=("parallel",),
            vmem_limit_bytes=_VMEM_LIMIT),
    )(flat, fw1, fb1, fw2, fb2)
    return out


def simple_cnn_forward(x_nchw, params):
    b = x_nchw.shape[0]
    # NCHW -> NHWC once; bf16 matmul operands / activations.
    x = jnp.transpose(x_nchw, (0, 2, 3, 1)).astype(COMPUTE_DTYPE)  # (B,32,32,3)
    y1 = conv_relu_pool(x, params["w1"], params["b1"])             # (B,16,16,32)
    y2 = conv_relu_pool(y1, params["w2"], params["b2"])            # (B,8,8,64)
    # Flatten in (h, w, c) order -- fw1 rows are stored in the matching
    # permutation of the PyTorch weight, so no runtime transpose is needed.
    flat = y2.reshape(b, 8 * 8 * 64)                               # (B, 4096)
    logits = mlp_head(flat, params["fw1"], params["fb1"],
                      params["fw2"], params["fb2"])                # (B, 128)
    return logits[:, :10]                                          # (B, 10)


# ----------------------------------------------------------------------------
# Parameters
# ----------------------------------------------------------------------------
def init_params(key):
    ks = jax.random.split(key, 8)
    s = 0.05
    return {
        "w1": s * jax.random.normal(ks[0], (3, 3, 3, 32), jnp.float32),   # HWIO
        "b1": s * jax.random.normal(ks[1], (32,), jnp.float32),
        "w2": s * jax.random.normal(ks[2], (3, 3, 32, 64), jnp.float32),  # HWIO
        "b2": s * jax.random.normal(ks[3], (64,), jnp.float32),
        # fc1 weight as (in, out) with the 4096 rows in (h, w, c) order
        # (see header for converting a PyTorch (c, h, w)-ordered fc1.weight).
        "fw1": s * jax.random.normal(ks[4], (8 * 8 * 64, 128), jnp.float32),
        "fb1": s * jax.random.normal(ks[5], (128,), jnp.float32),
        "fw2": s * jax.random.normal(ks[6], (128, 10), jnp.float32),
        "fb2": s * jax.random.normal(ks[7], (10,), jnp.float32),
    }


def prepare_params(raw):
    """Pack weights into kernel-ready arrays: conv weights as (9*Cin, Cout)
    matmul RHS, fc2 zero-padded to 128 lane-dense columns, matmul operands in
    COMPUTE_DTYPE, biases kept in f32."""
    fw2 = jnp.zeros((128, 128), jnp.float32).at[:, :10].set(raw["fw2"])
    fb2 = jnp.zeros((1, 128), jnp.float32).at[0, :10].set(raw["fb2"])
    return {
        "w1": raw["w1"].reshape(9 * 3, 32).astype(COMPUTE_DTYPE),
        "b1": raw["b1"].reshape(1, 32).astype(jnp.float32),
        "w2": raw["w2"].reshape(9 * 32, 64).astype(COMPUTE_DTYPE),
        "b2": raw["b2"].reshape(1, 64).astype(jnp.float32),
        "fw1": raw["fw1"].astype(COMPUTE_DTYPE),
        "fb1": raw["fb1"].reshape(1, 128).astype(jnp.float32),
        "fw2": fw2.astype(COMPUTE_DTYPE),
        "fb2": fb2,
    }


if __name__ == "__main__":
    key = jax.random.PRNGKey(0)
    k_param, k_x = jax.random.split(key)
    params = prepare_params(init_params(k_param))
    # fc1 expects 64*8*8 features, which implies 3x32x32 spatial input.
    x = jax.random.normal(k_x, (8, 3, 32, 32), jnp.float32)

    fwd = jax.jit(simple_cnn_forward)
    out = fwd(x, params)
    jax.block_until_ready(out)
    assert out.shape == (8, 10) and out.dtype == jnp.float32
    assert bool(jnp.all(jnp.isfinite(out)))
    print("KERNEL_OK")
</pallas_src>

<mosaic_0001>
module attributes {stable_mosaic.version = 11 : i64} {
  func.func @_conv_relu_pool_kernel(%arg0: i32, %arg1: memref<4x1024x27xbf16, #tpu.memory_space<vmem>>, %arg2: memref<27x32xbf16, #tpu.memory_space<vmem>>, %arg3: memref<1x32xf32, #tpu.memory_space<vmem>>, %arg4: memref<1024x32xbf16, #tpu.memory_space<vmem>>) attributes {dimension_semantics = [#tpu.dimension_semantics<parallel>], iteration_bounds = array<i64: 2>, scalar_prefetch = 0 : i64, scratch_operands = 0 : i64, tpu.core_type = #tpu.core_type<tc>, window_params = [{transform_indices = @transform_0, window_bounds = array<i64: 4, 1024, 27>}, {pipeline_mode = #tpu.pipeline_mode<synchronous>, transform_indices = @transform_1, window_bounds = array<i64: 27, 32>}, {pipeline_mode = #tpu.pipeline_mode<synchronous>, transform_indices = @transform_2, window_bounds = array<i64: 1, 32>}, {transform_indices = @transform_3, window_bounds = array<i64: 1024, 32>}]} {
    %c0 = arith.constant 0 : index
    %c0_0 = arith.constant 0 : index
    %0 = vector.load %arg2[%c0, %c0_0] : memref<27x32xbf16, #tpu.memory_space<vmem>>, vector<27x32xbf16>
    %c0_1 = arith.constant 0 : index
    %c0_2 = arith.constant 0 : index
    %c0_3 = arith.constant 0 : index
    %1 = vector.load %arg1[%c0_1, %c0_2, %c0_3] : memref<4x1024x27xbf16, #tpu.memory_space<vmem>>, vector<1x1024x27xbf16>
    %2 = vector.shape_cast %1 : vector<1x1024x27xbf16> to vector<1024x27xbf16>
    %cst = arith.constant dense<0.000000e+00> : vector<1024x32xf32>
    %3 = tpu.matmul %2, %0, %cst {dimension_numbers = #tpu.dot_dimension_numbers<[1], [0], [0], [1], [0, 0, 1, 1], [], []>} : vector<1024x27xbf16>, vector<27x32xbf16>, vector<1024x32xf32> -> vector<1024x32xf32>
    %c1 = arith.constant 1 : index
    %c0_4 = arith.constant 0 : index
    %c0_5 = arith.constant 0 : index
    %4 = vector.load %arg1[%c1, %c0_4, %c0_5] : memref<4x1024x27xbf16, #tpu.memory_space<vmem>>, vector<1x1024x27xbf16>
    %5 = vector.shape_cast %4 : vector<1x1024x27xbf16> to vector<1024x27xbf16>
    %cst_6 = arith.constant dense<0.000000e+00> : vector<1024x32xf32>
    %6 = tpu.matmul %5, %0, %cst_6 {dimension_numbers = #tpu.dot_dimension_numbers<[1], [0], [0], [1], [0, 0, 1, 1], [], []>} : vector<1024x27xbf16>, vector<27x32xbf16>, vector<1024x32xf32> -> vector<1024x32xf32>
    %7 = arith.maximumf %3, %6 : vector<1024x32xf32>
    %c2 = arith.constant 2 : index
    %c0_7 = arith.constant 0 : index
    %c0_8 = arith.constant 0 : index
    %8 = vector.load %arg1[%c2, %c0_7, %c0_8] : memref<4x1024x27xbf16, #tpu.memory_space<vmem>>, vector<1x1024x27xbf16>
    %9 = vector.shape_cast %8 : vector<1x1024x27xbf16> to vector<1024x27xbf16>
    %cst_9 = arith.constant dense<0.000000e+00> : vector<1024x32xf32>
    %10 = tpu.matmul %9, %0, %cst_9 {dimension_numbers = #tpu.dot_dimension_numbers<[1], [0], [0], [1], [0, 0, 1, 1], [], []>} : vector<1024x27xbf16>, vector<27x32xbf16>, vector<1024x32xf32> -> vector<1024x32xf32>
    %11 = arith.maximumf %7, %10 : vector<1024x32xf32>
    %c3 = arith.constant 3 : index
    %c0_10 = arith.constant 0 : index
    %c0_11 = arith.constant 0 : index
    %12 = vector.load %arg1[%c3, %c0_10, %c0_11] : memref<4x1024x27xbf16, #tpu.memory_space<vmem>>, vector<1x1024x27xbf16>
    %13 = vector.shape_cast %12 : vector<1x1024x27xbf16> to vector<1024x27xbf16>
    %cst_12 = arith.constant dense<0.000000e+00> : vector<1024x32xf32>
    %14 = tpu.matmul %13, %0, %cst_12 {dimension_numbers = #tpu.dot_dimension_numbers<[1], [0], [0], [1], [0, 0, 1, 1], [], []>} : vector<1024x27xbf16>, vector<27x32xbf16>, vector<1024x32xf32> -> vector<1024x32xf32>
    %15 = arith.maximumf %11, %14 : vector<1024x32xf32>
    %c0_13 = arith.constant 0 : index
    %c0_14 = arith.constant 0 : index
    %16 = vector.load %arg3[%c0_13, %c0_14] : memref<1x32xf32, #tpu.memory_space<vmem>>, vector<1x32xf32>
    %17 = vector.broadcast %16 : vector<1x32xf32> to vector<1024x32xf32>
    %18 = arith.addf %15, %17 : vector<1024x32xf32>
    %cst_15 = arith.constant 0.000000e+00 : f32
    %19 = vector.broadcast %cst_15 : f32 to vector<1024x32xf32>
    %20 = arith.maximumf %18, %19 : vector<1024x32xf32>
    %21 = arith.truncf %20 : vector<1024x32xf32> to vector<1024x32xbf16>
    %c0_16 = arith.constant 0 : index
    %c0_17 = arith.constant 0 : index
    %22 = vector.load %arg4[%c0_16, %c0_17] : memref<1024x32xbf16, #tpu.memory_space<vmem>>, vector<1024x32xbf16>
    tpu.vector_store %arg4[%c0_16, %c0_17], %21 {strides = array<i32>} : memref<1024x32xbf16, #tpu.memory_space<vmem>>, vector<1024x32xbf16>,
    return
  }
  func.func @transform_0(%arg0: i32) -> (i32, i32, i32) {
    %c0_i32 = arith.constant 0 : i32
    %c0_i32_0 = arith.constant 0 : i32
    %c0_i32_1 = arith.constant 0 : i32
    return %c0_i32, %arg0, %c0_i32_0 : i32, i32, i32
  }
  func.func @transform_1(%arg0: i32) -> (i32, i32) {
    %c0_i32 = arith.constant 0 : i32
    %c0_i32_0 = arith.constant 0 : i32
    %c0_i32_1 = arith.constant 0 : i32
    return %c0_i32, %c0_i32_0 : i32, i32
  }
  func.func @transform_2(%arg0: i32) -> (i32, i32) {
    %c0_i32 = arith.constant 0 : i32
    %c0_i32_0 = arith.constant 0 : i32
    %c0_i32_1 = arith.constant 0 : i32
    return %c0_i32, %c0_i32_0 : i32, i32
  }
  func.func @transform_3(%arg0: i32) -> (i32, i32) {
    %c0_i32 = arith.constant 0 : i32
    %c0_i32_0 = arith.constant 0 : i32
    return %arg0, %c0_i32 : i32, i32
  }
}

module attributes {stable_mosaic.version = 11 : i64} {
  func.func @_conv_relu_pool_kernel(%arg0: i32, %arg1: memref<4x256x288xbf16, #tpu.memory_space<vmem>>, %arg2: memref<288x64xbf16, #tpu.memory_space<vmem>>, %arg3: memref<1x64xf32, #tpu.memory_space<vmem>>, %arg4: memref<256x64xbf16, #tpu.memory_space<vmem>>) attributes {dimension_semantics = [#tpu.dimension_semantics<parallel>], iteration_bounds = array<i64: 2>, scalar_prefetch = 0 : i64, scratch_operands = 0 : i64, tpu.core_type = #tpu.core_type<tc>, window_params = [{transform_indices = @transform_0, window_bounds = array<i64: 4, 256, 288>}, {pipeline_mode = #tpu.pipeline_mode<synchronous>, transform_indices = @transform_1, window_bounds = array<i64: 288, 64>}, {pipeline_mode = #tpu.pipeline_mode<synchronous>, transform_indices = @transform_2, window_bounds = array<i64: 1, 64>}, {transform_indices = @transform_3, window_bounds = array<i64: 256, 64>}]} {
    %c0 = arith.constant 0 : index
    %c0_0 = arith.constant 0 : index
    %0 = vector.load %arg2[%c0, %c0_0] : memref<288x64xbf16, #tpu.memory_space<vmem>>, vector<288x64xbf16>
    %c0_1 = arith.constant 0 : index
    %c0_2 = arith.constant 0 : index
    %c0_3 = arith.constant 0 : index
    %1 = vector.load %arg1[%c0_1, %c0_2, %c0_3] : memref<4x256x288xbf16, #tpu.memory_space<vmem>>, vector<1x256x288xbf16>
    %2 = vector.shape_cast %1 : vector<1x256x288xbf16> to vector<256x288xbf16>
    %cst = arith.constant dense<0.000000e+00> : vector<256x64xf32>
    %3 = tpu.matmul %2, %0, %cst {dimension_numbers = #tpu.dot_dimension_numbers<[1], [0], [0], [1], [0, 0, 1, 1], [], []>} : vector<256x288xbf16>, vector<288x64xbf16>, vector<256x64xf32> -> vector<256x64xf32>
    %c1 = arith.constant 1 : index
    %c0_4 = arith.constant 0 : index
    %c0_5 = arith.constant 0 : index
    %4 = vector.load %arg1[%c1, %c0_4, %c0_5] : memref<4x256x288xbf16, #tpu.memory_space<vmem>>, vector<1x256x288xbf16>
    %5 = vector.shape_cast %4 : vector<1x256x288xbf16> to vector<256x288xbf16>
    %cst_6 = arith.constant dense<0.000000e+00> : vector<256x64xf32>
    %6 = tpu.matmul %5, %0, %cst_6 {dimension_numbers = #tpu.dot_dimension_numbers<[1], [0], [0], [1], [0, 0, 1, 1], [], []>} : vector<256x288xbf16>, vector<288x64xbf16>, vector<256x64xf32> -> vector<256x64xf32>
    %7 = arith.maximumf %3, %6 : vector<256x64xf32>
    %c2 = arith.constant 2 : index
    %c0_7 = arith.constant 0 : index
    %c0_8 = arith.constant 0 : index
    %8 = vector.load %arg1[%c2, %c0_7, %c0_8] : memref<4x256x288xbf16, #tpu.memory_space<vmem>>, vector<1x256x288xbf16>
    %9 = vector.shape_cast %8 : vector<1x256x288xbf16> to vector<256x288xbf16>
    %cst_9 = arith.constant dense<0.000000e+00> : vector<256x64xf32>
    %10 = tpu.matmul %9, %0, %cst_9 {dimension_numbers = #tpu.dot_dimension_numbers<[1], [0], [0], [1], [0, 0, 1, 1], [], []>} : vector<256x288xbf16>, vector<288x64xbf16>, vector<256x64xf32> -> vector<256x64xf32>
    %11 = arith.maximumf %7, %10 : vector<256x64xf32>
    %c3 = arith.constant 3 : index
    %c0_10 = arith.constant 0 : index
    %c0_11 = arith.constant 0 : index
    %12 = vector.load %arg1[%c3, %c0_10, %c0_11] : memref<4x256x288xbf16, #tpu.memory_space<vmem>>, vector<1x256x288xbf16>
    %13 = vector.shape_cast %12 : vector<1x256x288xbf16> to vector<256x288xbf16>
    %cst_12 = arith.constant dense<0.000000e+00> : vector<256x64xf32>
    %14 = tpu.matmul %13, %0, %cst_12 {dimension_numbers = #tpu.dot_dimension_numbers<[1], [0], [0], [1], [0, 0, 1, 1], [], []>} : vector<256x288xbf16>, vector<288x64xbf16>, vector<256x64xf32> -> vector<256x64xf32>
    %15 = arith.maximumf %11, %14 : vector<256x64xf32>
    %c0_13 = arith.constant 0 : index
    %c0_14 = arith.constant 0 : index
    %16 = vector.load %arg3[%c0_13, %c0_14] : memref<1x64xf32, #tpu.memory_space<vmem>>, vector<1x64xf32>
    %17 = vector.broadcast %16 : vector<1x64xf32> to vector<256x64xf32>
    %18 = arith.addf %15, %17 : vector<256x64xf32>
    %cst_15 = arith.constant 0.000000e+00 : f32
    %19 = vector.broadcast %cst_15 : f32 to vector<256x64xf32>
    %20 = arith.maximumf %18, %19 : vector<256x64xf32>
    %21 = arith.truncf %20 : vector<256x64xf32> to vector<256x64xbf16>
    %c0_16 = arith.constant 0 : index
    %c0_17 = arith.constant 0 : index
    %22 = vector.load %arg4[%c0_16, %c0_17] : memref<256x64xbf16, #tpu.memory_space<vmem>>, vector<256x64xbf16>
    tpu.vector_store %arg4[%c0_16, %c0_17], %21 {strides = array<i32>} : memref<256x64xbf16, #tpu.memory_space<vmem>>, vector<256x64xbf16>,
    return
  }
  func.func @transform_0(%arg0: i32) -> (i32, i32, i32) {
    %c0_i32 = arith.constant 0 : i32
    %c0_i32_0 = arith.constant 0 : i32
    %c0_i32_1 = arith.constant 0 : i32
    return %c0_i32, %arg0, %c0_i32_0 : i32, i32, i32
  }
  func.func @transform_1(%arg0: i32) -> (i32, i32) {
    %c0_i32 = arith.constant 0 : i32
    %c0_i32_0 = arith.constant 0 : i32
    %c0_i32_1 = arith.constant 0 : i32
    return %c0_i32, %c0_i32_0 : i32, i32
  }
  func.func @transform_2(%arg0: i32) -> (i32, i32) {
    %c0_i32 = arith.constant 0 : i32
    %c0_i32_0 = arith.constant 0 : i32
    %c0_i32_1 = arith.constant 0 : i32
    return %c0_i32, %c0_i32_0 : i32, i32
  }
  func.func @transform_3(%arg0: i32) -> (i32, i32) {
    %c0_i32 = arith.constant 0 : i32
    %c0_i32_0 = arith.constant 0 : i32
    return %arg0, %c0_i32 : i32, i32
  }
}

module attributes {stable_mosaic.version = 11 : i64} {
  func.func @_mlp_kernel(%arg0: i32, %arg1: memref<8x4096xbf16, #tpu.memory_space<vmem>>, %arg2: memref<4096x128xbf16, #tpu.memory_space<vmem>>, %arg3: memref<1x128xf32, #tpu.memory_space<vmem>>, %arg4: memref<128x128xbf16, #tpu.memory_space<vmem>>, %arg5: memref<1x128xf32, #tpu.memory_space<vmem>>, %arg6: memref<8x128xf32, #tpu.memory_space<vmem>>) attributes {dimension_semantics = [#tpu.dimension_semantics<parallel>], iteration_bounds = array<i64: 1>, scalar_prefetch = 0 : i64, scratch_operands = 0 : i64, tpu.core_type = #tpu.core_type<tc>, window_params = [{transform_indices = @transform_0, window_bounds = array<i64: 8, 4096>}, {pipeline_mode = #tpu.pipeline_mode<synchronous>, transform_indices = @transform_1, window_bounds = array<i64: 4096, 128>}, {pipeline_mode = #tpu.pipeline_mode<synchronous>, transform_indices = @transform_2, window_bounds = array<i64: 1, 128>}, {pipeline_mode = #tpu.pipeline_mode<synchronous>, transform_indices = @transform_3, window_bounds = array<i64: 128, 128>}, {pipeline_mode = #tpu.pipeline_mode<synchronous>, transform_indices = @transform_4, window_bounds = array<i64: 1, 128>}, {transform_indices = @transform_5, window_bounds = array<i64: 8, 128>}]} {
    %c0 = arith.constant 0 : index
    %c0_0 = arith.constant 0 : index
    %0 = vector.load %arg1[%c0, %c0_0] : memref<8x4096xbf16, #tpu.memory_space<vmem>>, vector<8x4096xbf16>
    %c0_1 = arith.constant 0 : index
    %c0_2 = arith.constant 0 : index
    %1 = vector.load %arg2[%c0_1, %c0_2] : memref<4096x128xbf16, #tpu.memory_space<vmem>>, vector<4096x128xbf16>
    %cst = arith.constant dense<0.000000e+00> : vector<8x128xf32>
    %2 = tpu.matmul %0, %1, %cst {dimension_numbers = #tpu.dot_dimension_numbers<[1], [0], [0], [1], [0, 0, 1, 1], [], []>} : vector<8x4096xbf16>, vector<4096x128xbf16>, vector<8x128xf32> -> vector<8x128xf32>
    %c0_3 = arith.constant 0 : index
    %c0_4 = arith.constant 0 : index
    %3 = vector.load %arg3[%c0_3, %c0_4] : memref<1x128xf32, #tpu.memory_space<vmem>>, vector<1x128xf32>
    %4 = vector.broadcast %3 : vector<1x128xf32> to vector<8x128xf32>
    %5 = arith.addf %2, %4 : vector<8x128xf32>
    %cst_5 = arith.constant 0.000000e+00 : f32
    %6 = vector.broadcast %cst_5 : f32 to vector<8x128xf32>
    %7 = arith.maximumf %5, %6 : vector<8x128xf32>
    %8 = arith.truncf %7 : vector<8x128xf32> to vector<8x128xbf16>
    %c0_6 = arith.constant 0 : index
    %c0_7 = arith.constant 0 : index
    %9 = vector.load %arg4[%c0_6, %c0_7] : memref<128x128xbf16, #tpu.memory_space<vmem>>, vector<128x128xbf16>
    %cst_8 = arith.constant dense<0.000000e+00> : vector<8x128xf32>
    %10 = tpu.matmul %8, %9, %cst_8 {dimension_numbers = #tpu.dot_dimension_numbers<[1], [0], [0], [1], [0, 0, 1, 1], [], []>} : vector<8x128xbf16>, vector<128x128xbf16>, vector<8x128xf32> -> vector<8x128xf32>
    %c0_9 = arith.constant 0 : index
    %c0_10 = arith.constant 0 : index
    %11 = vector.load %arg5[%c0_9, %c0_10] : memref<1x128xf32, #tpu.memory_space<vmem>>, vector<1x128xf32>
    %12 = vector.broadcast %11 : vector<1x128xf32> to vector<8x128xf32>
    %13 = arith.addf %10, %12 : vector<8x128xf32>
    %c0_11 = arith.constant 0 : index
    %c0_12 = arith.constant 0 : index
    %14 = vector.load %arg6[%c0_11, %c0_12] : memref<8x128xf32, #tpu.memory_space<vmem>>, vector<8x128xf32>
    tpu.vector_store %arg6[%c0_11, %c0_12], %13 {strides = array<i32>} : memref<8x128xf32, #tpu.memory_space<vmem>>, vector<8x128xf32>,
    return
  }
  func.func @transform_0(%arg0: i32) -> (i32, i32) {
    %c0_i32 = arith.constant 0 : i32
    %c0_i32_0 = arith.constant 0 : i32
    return %arg0, %c0_i32 : i32, i32
  }
  func.func @transform_1(%arg0: i32) -> (i32, i32) {
    %c0_i32 = arith.constant 0 : i32
    %c0_i32_0 = arith.constant 0 : i32
    %c0_i32_1 = arith.constant 0 : i32
    return %c0_i32, %c0_i32_0 : i32, i32
  }
  func.func @transform_2(%arg0: i32) -> (i32, i32) {
    %c0_i32 = arith.constant 0 : i32
    %c0_i32_0 = arith.constant 0 : i32
    %c0_i32_1 = arith.constant 0 : i32
    return %c0_i32, %c0_i32_0 : i32, i32
  }
  func.func @transform_3(%arg0: i32) -> (i32, i32) {
    %c0_i32 = arith.constant 0 : i32
    %c0_i32_0 = arith.constant 0 : i32
    %c0_i32_1 = arith.constant 0 : i32
    return %c0_i32, %c0_i32_0 : i32, i32
  }
  func.func @transform_4(%arg0: i32) -> (i32, i32) {
    %c0_i32 = arith.constant 0 : i32
    %c0_i32_0 = arith.constant 0 : i32
    %c0_i32_1 = arith.constant 0 : i32
    return %c0_i32, %c0_i32_0 : i32, i32
  }
  func.func @transform_5(%arg0: i32) -> (i32, i32) {
    %c0_i32 = arith.constant 0 : i32
    %c0_i32_0 = arith.constant 0 : i32
    return %arg0, %c0_i32 : i32, i32
  }
}

</mosaic_0001>

<bundles_post_ra>
// kernel: simple_cnn_forward.3
= control target key start
LH: loop header
LB: loop body
LE: loop exit
PB: predicated region body
PF: predicated region fallthrough
CT: control target
= control target key end

     0   :  { %s12753_s12 = smov 0   ;;  %s12755_s13 = smov 0   ;;  %s15391_s0 = inlined_call_operand.vmem [shape: bf16[4,2048,27], index: 0, kind: input, shape index: {}]   ;;  %s15392_s1 = inlined_call_operand.vmem [shape: bf16[27,32], index: 1, kind: input, shape index: {}]   ;;  %s15393_s2 = inlined_call_operand.vmem [shape: f32[1,32], index: 2, kind: input, shape index: {}]   ;;  %s15394_s3 = inlined_call_operand.vmem [shape: bf16[2048,32], index: 3, kind: output, shape index: {}]  }
   0x1   :  { %s12757_s14 = smov 0  }
   0x2 LB: > { %s10462_s15 = sadd.s32 4294967295, %s12730_s14   ;;  %s12770_s16 = sadd.s32 1, %s12730_s14   ;;  %s12730_s14 = sphi %s12757_s14, %s16158_s14   ;;  %s12726_s13 = sphi %s12755_s13, %s16157_s13   ;;  %s12722_s12 = sphi %s12753_s12, %s16156_s12  }
   0x3   : > { %s17_s17 = ssub.s32 %s12730_s14, %s12770_s16  ;;  %s20_s18 = sadd.s32 1, %s12726_s13 }
   0x4   : > { %p18_p0 = scmp.eq.s32.totalorder %s17_s17, 0  ;;  %p27_p1 = scmp.ne.s32.totalorder %s12726_s13, %s12722_s12 }
   0x5   : > { %p28_p2 = scmp.eq.s32.totalorder %s12730_s14, 0  ;;  %p10465_p4 = scmp.ge.s32.totalorder %s12730_s14, 2 }
   0x6   : > { %s12779_s19 = scalar_select %p18_p0, %s12726_s13, %s20_s18  }
   0x7   : > { %p29_p3 = por %p28_p2, %p27_p1  ;;  %127 = sbr.rel (%p10465_p4) target bundleno = 146 (0x92), region = 24 }
   0xe   : > { %130 = sbr.rel (!%p29_p3) target bundleno = 146 (0x92), region = 28  ;;  %s132_s20 = sand.u32 (%p29_p3), 1, %s12726_s13  }
   0xf   : > { %s11502_s21 = sshll.u32 (%p29_p3), %s12730_s14, 9  ;;  %s10466_s22 = sshll.u32 (%p29_p3), %s132_s20, 11 }
  0x10   : > { %s12787_s25 = scalar_lea.vmem (%p29_p3), %s15391_s0, %s11502_s21  ;;  %s12792_s26 = scalar_lea.vmem (%p29_p3), [#allocation2], %s10466_s22 }
  0x11   : > { %v153_v0 = vld [vmem:[%s12787_s25] sm:$0xff] (%p29_p3)   ;;  %v157_v1 = vld [vmem:[%s12787_s25 + $0x8] sm:$0xff] (%p29_p3)   ;;  %v161_v2 = vld [vmem:[%s12787_s25 + $0x10] sm:$0xff] (%p29_p3)  }
  0x12   : > { %154 = vst [vmem:[%s12792_s26] sm:$0xff] (%p29_p3), %v153_v0   ;;  %158 = vst [vmem:[%s12792_s26 + $0x8] sm:$0xff] (%p29_p3), %v157_v1   ;;  %v165_v3 = vld [vmem:[%s12787_s25 + $0x18] sm:$0xff] (%p29_p3)   ;;  %v169_v4 = vld [vmem:[%s12787_s25 + $0x20] sm:$0xff] (%p29_p3)  }
  0x13   : > { %162 = vst [vmem:[%s12792_s26 + $0x10] sm:$0xff] (%p29_p3), %v161_v2   ;;  %v173_v5 = vld [vmem:[%s12787_s25 + $0x28] sm:$0xff] (%p29_p3)   ;;  %166 = vst [vmem:[%s12792_s26 + $0x18] sm:$0xff] (%p29_p3), %v165_v3   ;;  %v177_v6 = vld [vmem:[%s12787_s25 + $0x30] sm:$0xff] (%p29_p3)  }
  0x14   : > { %170 = vst [vmem:[%s12792_s26 + $0x20] sm:$0xff] (%p29_p3), %v169_v4   ;;  %174 = vst [vmem:[%s12792_s26 + $0x28] sm:$0xff] (%p29_p3), %v173_v5   ;;  %v181_v7 = vld [vmem:[%s12787_s25 + $0x38] sm:$0xff] (%p29_p3)   ;;  %v185_v8 = vld [vmem:[%s12787_s25 + $0x40] sm:$0xff] (%p29_p3)  }
  0x15   : > { %178 = vst [vmem:[%s12792_s26 + $0x30] sm:$0xff] %v177_v6   ;;  %182 = vst [vmem:[%s12792_s26 + $0x38] sm:$0xff] %v181_v7   ;;  %v189_v9 = vld [vmem:[%s12787_s25 + $0x48] sm:$0xff]   ;;  %v193_v10 = vld [vmem:[%s12787_s25 + $0x50] sm:$0xff]  }
  0x16   : > { %186 = vst [vmem:[%s12792_s26 + $0x40] sm:$0xff] %v185_v8   ;;  %v197_v11 = vld [vmem:[%s12787_s25 + $0x58] sm:$0xff]   ;;  %190 = vst [vmem:[%s12792_s26 + $0x48] sm:$0xff] %v189_v9   ;;  %v201_v12 = vld [vmem:[%s12787_s25 + $0x60] sm:$0xff]  }
  0x17   : > { %194 = vst [vmem:[%s12792_s26 + $0x50] sm:$0xff] %v193_v10   ;;  %198 = vst [vmem:[%s12792_s26 + $0x58] sm:$0xff] %v197_v11   ;;  %v205_v13 = vld [vmem:[%s12787_s25 + $0x68] sm:$0xff]   ;;  %v209_v14 = vld [vmem:[%s12787_s25 + $0x70] sm:$0xff]  }
  0x18   : > { %202 = vst [vmem:[%s12792_s26 + $0x60] sm:$0xff] %v201_v12   ;;  %206 = vst [vmem:[%s12792_s26 + $0x68] sm:$0xff] %v205_v13   ;;  %v213_v15 = vld [vmem:[%s12787_s25 + $0x78] sm:$0xff]   ;;  %v217_v16 = vld [vmem:[%s12787_s25 + $0x80] sm:$0xff]  }
  0x19   : > { %210 = vst [vmem:[%s12792_s26 + $0x70] sm:$0xff] %v209_v14   ;;  %v221_v17 = vld [vmem:[%s12787_s25 + $0x88] sm:$0xff]   ;;  %214 = vst [vmem:[%s12792_s26 + $0x78] sm:$0xff] %v213_v15   ;;  %v225_v18 = vld [vmem:[%s12787_s25 + $0x90] sm:$0xff]  }
  0x1a   : > { %218 = vst [vmem:[%s12792_s26 + $0x80] sm:$0xff] %v217_v16   ;;  %222 = vst [vmem:[%s12792_s26 + $0x88] sm:$0xff] %v221_v17   ;;  %v229_v19 = vld [vmem:[%s12787_s25 + $0x98] sm:$0xff]   ;;  %v233_v20 = vld [vmem:[%s12787_s25 + $0xa0] sm:$0xff]  }
  0x1b   : > { %226 = vst [vmem:[%s12792_s26 + $0x90] sm:$0xff] %v225_v18   ;;  %230 = vst [vmem:[%s12792_s26 + $0x98] sm:$0xff] %v229_v19   ;;  %v237_v21 = vld [vmem:[%s12787_s25 + $0xa8] sm:$0xff]   ;;  %v241_v22 = vld [vmem:[%s12787_s25 + $0xb0] sm:$0xff]  }
  0x1c   : > { %234 = vst [vmem:[%s12792_s26 + $0xa0] sm:$0xff] %v233_v20   ;;  %v245_v23 = vld [vmem:[%s12787_s25 + $0xb8] sm:$0xff]   ;;  %238 = vst [vmem:[%s12792_s26 + $0xa8] sm:$0xff] %v237_v21   ;;  %v249_v24 = vld [vmem:[%s12787_s25 + $0xc0] sm:$0xff]  }
  0x1d   : > { %242 = vst [vmem:[%s12792_s26 + $0xb0] sm:$0xff] %v241_v22   ;;  %246 = vst [vmem:[%s12792_s26 + $0xb8] sm:$0xff] %v245_v23   ;;  %v253_v25 = vld [vmem:[%s12787_s25 + $0xc8] sm:$0xff]   ;;  %v257_v26 = vld [vmem:[%s12787_s25 + $0xd0] sm:$0xff]  }
  0x1e   : > { %250 = vst [vmem:[%s12792_s26 + $0xc0] sm:$0xff] %v249_v24   ;;  %254 = vst [vmem:[%s12792_s26 + $0xc8] sm:$0xff] %v253_v25   ;;  %v261_v27 = vld [vmem:[%s12787_s25 + $0xd8] sm:$0xff]   ;;  %v265_v28 = vld [vmem:[%s12787_s25 + $0xe0] sm:$0xff]  }
  0x1f   : > { %258 = vst [vmem:[%s12792_s26 + $0xd0] sm:$0xff] %v257_v26   ;;  %v269_v29 = vld [vmem:[%s12787_s25 + $0xe8] sm:$0xff]   ;;  %262 = vst [vmem:[%s12792_s26 + $0xd8] sm:$0xff] %v261_v27   ;;  %v273_v30 = vld [vmem:[%s12787_s25 + $0xf0] sm:$0xff]  }
  0x20   : > { %266 = vst [vmem:[%s12792_s26 + $0xe0] sm:$0xff] %v265_v28   ;;  %270 = vst [vmem:[%s12792_s26 + $0xe8] sm:$0xff] %v269_v29   ;;  %v277_v31 = vld [vmem:[%s12787_s25 + $0xf8] sm:$0xff]   ;;  %v281_v32 = vld [vmem:[%s12787_s25 + $0x100] sm:$0xff]  }
  0x21   : > { %274 = vst [vmem:[%s12792_s26 + $0xf0] sm:$0xff] %v273_v30   ;;  %278 = vst [vmem:[%s12792_s26 + $0xf8] sm:$0xff] %v277_v31   ;;  %v285_v33 = vld [vmem:[%s12787_s25 + $0x108] sm:$0xff]   ;;  %v289_v34 = vld [vmem:[%s12787_s25 + $0x110] sm:$0xff]  }
  0x22   : > { %282 = vst [vmem:[%s12792_s26 + $0x100] sm:$0xff] %v281_v32   ;;  %v293_v35 = vld [vmem:[%s12787_s25 + $0x118] sm:$0xff]   ;;  %286 = vst [vmem:[%s12792_s26 + $0x108] sm:$0xff] %v285_v33   ;;  %v297_v36 = vld [vmem:[%s12787_s25 + $0x120] sm:$0xff]  }
  0x23   : > { %290 = vst [vmem:[%s12792_s26 + $0x110] sm:$0xff] %v289_v34   ;;  %294 = vst [vmem:[%s12792_s26 + $0x118] sm:$0xff] %v293_v35   ;;  %v301_v37 = vld [vmem:[%s12787_s25 + $0x128] sm:$0xff]   ;;  %v305_v38 = vld [vmem:[%s12787_s25 + $0x130] sm:$0xff]  }
  0x24   : > { %298 = vst [vmem:[%s12792_s26 + $0x120] sm:$0xff] %v297_v36   ;;  %302 = vst [vmem:[%s12792_s26 + $0x128] sm:$0xff] %v301_v37   ;;  %v309_v39 = vld [vmem:[%s12787_s25 + $0x138] sm:$0xff]   ;;  %v313_v40 = vld [vmem:[%s12787_s25 + $0x140] sm:$0xff]  }
  0x25   : > { %306 = vst [vmem:[%s12792_s26 + $0x130] sm:$0xff] %v305_v38   ;;  %v317_v41 = vld [vmem:[%s12787_s25 + $0x148] sm:$0xff]   ;;  %310 = vst [vmem:[%s12792_s26 + $0x138] sm:$0xff] %v309_v39   ;;  %v321_v42 = vld [vmem:[%s12787_s25 + $0x150] sm:$0xff]  }
  0x26   : > { %314 = vst [vmem:[%s12792_s26 + $0x140] sm:$0xff] %v313_v40   ;;  %318 = vst [vmem:[%s12792_s26 + $0x148] sm:$0xff] %v317_v41   ;;  %v325_v43 = vld [vmem:[%s12787_s25 + $0x158] sm:$0xff]   ;;  %v329_v44 = vld [vmem:[%s12787_s25 + $0x160] sm:$0xff]  }
  0x27   : > { %322 = vst [vmem:[%s12792_s26 + $0x150] sm:$0xff] %v321_v42   ;;  %326 = vst [vmem:[%s12792_s26 + $0x158] sm:$0xff] %v325_v43   ;;  %v333_v45 = vld [vmem:[%s12787_s25 + $0x168] sm:$0xff]   ;;  %v337_v46 = vld [vmem:[%s12787_s25 + $0x170] sm:$0xff]  }
  0x28   : > { %330 = vst [vmem:[%s12792_s26 + $0x160] sm:$0xff] %v329_v44   ;;  %v341_v47 = vld [vmem:[%s12787_s25 + $0x178] sm:$0xff]   ;;  %334 = vst [vmem:[%s12792_s26 + $0x168] sm:$0xff] %v333_v45   ;;  %v345_v48 = vld [vmem:[%s12787_s25 + $0x180] sm:$0xff]  }
  0x29   : > { %338 = vst [vmem:[%s12792_s26 + $0x170] sm:$0xff] %v337_v46   ;;  %342 = vst [vmem:[%s12792_s26 + $0x178] sm:$0xff] %v341_v47   ;;  %v349_v49 = vld [vmem:[%s12787_s25 + $0x188] sm:$0xff]   ;;  %v353_v50 = vld [vmem:[%s12787_s25 + $0x190] sm:$0xff]  }
  0x2a   : > { %346 = vst [vmem:[%s12792_s26 + $0x180] sm:$0xff] %v345_v48   ;;  %350 = vst [vmem:[%s12792_s26 + $0x188] sm:$0xff] %v349_v49   ;;  %v357_v51 = vld [vmem:[%s12787_s25 + $0x198] sm:$0xff]   ;;  %v361_v52 = vld [vmem:[%s12787_s25 + $0x1a0] sm:$0xff]  }
  0x2b   : > { %354 = vst [vmem:[%s12792_s26 + $0x190] sm:$0xff] %v353_v50   ;;  %v365_v53 = vld [vmem:[%s12787_s25 + $0x1a8] sm:$0xff]   ;;  %358 = vst [vmem:[%s12792_s26 + $0x198] sm:$0xff] %v357_v51   ;;  %v369_v54 = vld [vmem:[%s12787_s25 + $0x1b0] sm:$0xff]  }
  0x2c   : > { %362 = vst [vmem:[%s12792_s26 + $0x1a0] sm:$0xff] %v361_v52   ;;  %366 = vst [vmem:[%s12792_s26 + $0x1a8] sm:$0xff] %v365_v53   ;;  %v373_v55 = vld [vmem:[%s12787_s25 + $0x1b8] sm:$0xff]   ;;  %v377_v56 = vld [vmem:[%s12787_s25 + $0x1c0] sm:$0xff]  }
  0x2d   : > { %370 = vst [vmem:[%s12792_s26 + $0x1b0] sm:$0xff] %v369_v54   ;;  %374 = vst [vmem:[%s12792_s26 + $0x1b8] sm:$0xff] %v373_v55   ;;  %v381_v57 = vld [vmem:[%s12787_s25 + $0x1c8] sm:$0xff]   ;;  %v385_v58 = vld [vmem:[%s12787_s25 + $0x1d0] sm:$0xff]  }
  0x2e   : > { %378 = vst [vmem:[%s12792_s26 + $0x1c0] sm:$0xff] %v377_v56   ;;  %v389_v59 = vld [vmem:[%s12787_s25 + $0x1d8] sm:$0xff]   ;;  %382 = vst [vmem:[%s12792_s26 + $0x1c8] sm:$0xff] %v381_v57   ;;  %v393_v60 = vld [vmem:[%s12787_s25 + $0x1e0] sm:$0xff]  }
  0x2f   : > { %386 = vst [vmem:[%s12792_s26 + $0x1d0] sm:$0xff] %v385_v58   ;;  %390 = vst [vmem:[%s12792_s26 + $0x1d8] sm:$0xff] %v389_v59   ;;  %v397_v61 = vld [vmem:[%s12787_s25 + $0x1e8] sm:$0xff]   ;;  %v401_v62 = vld [vmem:[%s12787_s25 + $0x1f0] sm:$0xff]  }
  0x30   : > { %394 = vst [vmem:[%s12792_s26 + $0x1e0] sm:$0xff] %v393_v60   ;;  %398 = vst [vmem:[%s12792_s26 + $0x1e8] sm:$0xff] %v397_v61   ;;  %v405_v63 = vld [vmem:[%s12787_s25 + $0x1f8] sm:$0xff]   ;;  %v409_v0 = vld [vmem:[%s12787_s25 + $0x400] sm:$0xff]  }
  0x31   : > { %402 = vst [vmem:[%s12792_s26 + $0x1f0] sm:$0xff] %v401_v62   ;;  %v413_v1 = vld [vmem:[%s12787_s25 + $0x408] sm:$0xff]   ;;  %406 = vst [vmem:[%s12792_s26 + $0x1f8] sm:$0xff] %v405_v63   ;;  %v417_v2 = vld [vmem:[%s12787_s25 + $0x410] sm:$0xff]  }
  0x32   : > { %410 = vst [vmem:[%s12792_s26 + $0x200] sm:$0xff] %v409_v0   ;;  %414 = vst [vmem:[%s12792_s26 + $0x208] sm:$0xff] %v413_v1   ;;  %v421_v3 = vld [vmem:[%s12787_s25 + $0x418] sm:$0xff]   ;;  %v425_v4 = vld [vmem:[%s12787_s25 + $0x420] sm:$0xff]  }
  0x33   : > { %418 = vst [vmem:[%s12792_s26 + $0x210] sm:$0xff] %v417_v2   ;;  %422 = vst [vmem:[%s12792_s26 + $0x218] sm:$0xff] %v421_v3   ;;  %v429_v5 = vld [vmem:[%s12787_s25 + $0x428] sm:$0xff]   ;;  %v433_v6 = vld [vmem:[%s12787_s25 + $0x430] sm:$0xff]  }
  0x34   : > { %426 = vst [vmem:[%s12792_s26 + $0x220] sm:$0xff] %v425_v4   ;;  %v437_v7 = vld [vmem:[%s12787_s25 + $0x438] sm:$0xff]   ;;  %430 = vst [vmem:[%s12792_s26 + $0x228] sm:$0xff] %v429_v5   ;;  %v441_v8 = vld [vmem:[%s12787_s25 + $0x440] sm:$0xff]  }
  0x35   : > { %434 = vst [vmem:[%s12792_s26 + $0x230] sm:$0xff] %v433_v6   ;;  %438 = vst [vmem:[%s12792_s26 + $0x238] sm:$0xff] %v437_v7   ;;  %v445_v9 = vld [vmem:[%s12787_s25 + $0x448] sm:$0xff]   ;;  %v449_v10 = vld [vmem:[%s12787_s25 + $0x450] sm:$0xff]  }
  0x36   : > { %442 = vst [vmem:[%s12792_s26 + $0x240] sm:$0xff] %v441_v8   ;;  %446 = vst [vmem:[%s12792_s26 + $0x248] sm:$0xff] %v445_v9   ;;  %v453_v11 = vld [vmem:[%s12787_s25 + $0x458] sm:$0xff]   ;;  %v457_v12 = vld [vmem:[%s12787_s25 + $0x460] sm:$0xff]  }
  0x37   : > { %450 = vst [vmem:[%s12792_s26 + $0x250] sm:$0xff] %v449_v10   ;;  %v461_v13 = vld [vmem:[%s12787_s25 + $0x468] sm:$0xff]   ;;  %454 = vst [vmem:[%s12792_s26 + $0x258] sm:$0xff] %v453_v11   ;;  %v465_v14 = vld [vmem:[%s12787_s25 + $0x470] sm:$0xff]  }
  0x38   : > { %458 = vst [vmem:[%s12792_s26 + $0x260] sm:$0xff] %v457_v12   ;;  %462 = vst [vmem:[%s12792_s26 + $0x268] sm:$0xff] %v461_v13   ;;  %v469_v15 = vld [vmem:[%s12787_s25 + $0x478] sm:$0xff]   ;;  %v473_v16 = vld [vmem:[%s12787_s25 + $0x480] sm:$0xff]  }
  0x39   : > { %466 = vst [vmem:[%s12792_s26 + $0x270] sm:$0xff] %v465_v14   ;;  %470 = vst [vmem:[%s12792_s26 + $0x278] sm:$0xff] %v469_v15   ;;  %v477_v17 = vld [vmem:[%s12787_s25 + $0x488] sm:$0xff]   ;;  %v481_v18 = vld [vmem:[%s12787_s25 + $0x490] sm:$0xff]  }
  0x3a   : > { %474 = vst [vmem:[%s12792_s26 + $0x280] sm:$0xff] %v473_v16   ;;  %v485_v19 = vld [vmem:[%s12787_s25 + $0x498] sm:$0xff]   ;;  %478 = vst [vmem:[%s12792_s26 + $0x288] sm:$0xff] %v477_v17   ;;  %v489_v20 = vld [vmem:[%s12787_s25 + $0x4a0] sm:$0xff]  }
  0x3b   : > { %482 = vst [vmem:[%s12792_s26 + $0x290] sm:$0xff] %v481_v18   ;;  %486 = vst [vmem:[%s12792_s26 + $0x298] sm:$0xff] %v485_v19   ;;  %v493_v21 = vld [vmem:[%s12787_s25 + $0x4a8] sm:$0xff]   ;;  %v497_v22 = vld [vmem:[%s12787_s25 + $0x4b0] sm:$0xff]  }
  0x3c   : > { %490 = vst [vmem:[%s12792_s26 + $0x2a0] sm:$0xff] %v489_v20   ;;  %494 = vst [vmem:[%s12792_s26 + $0x2a8] sm:$0xff] %v493_v21   ;;  %v501_v23 = vld [vmem:[%s12787_s25 + $0x4b8] sm:$0xff]   ;;  %v505_v24 = vld [vmem:[%s12787_s25 + $0x4c0] sm:$0xff]  }
  0x3d   : > { %498 = vst [vmem:[%s12792_s26 + $0x2b0] sm:$0xff] %v497_v22   ;;  %v509_v25 = vld [vmem:[%s12787_s25 + $0x4c8] sm:$0xff]   ;;  %502 = vst [vmem:[%s12792_s26 + $0x2b8] sm:$0xff] %v501_v23   ;;  %v513_v26 = vld [vmem:[%s12787_s25 + $0x4d0] sm:$0xff]  }
  0x3e   : > { %506 = vst [vmem:[%s12792_s26 + $0x2c0] sm:$0xff] %v505_v24   ;;  %510 = vst [vmem:[%s12792_s26 + $0x2c8] sm:$0xff] %v509_v25   ;;  %v517_v27 = vld [vmem:[%s12787_s25 + $0x4d8] sm:$0xff]   ;;  %v521_v28 = vld [vmem:[%s12787_s25 + $0x4e0] sm:$0xff]  }
  0x3f   : > { %514 = vst [vmem:[%s12792_s26 + $0x2d0] sm:$0xff] %v513_v26   ;;  %518 = vst [vmem:[%s12792_s26 + $0x2d8] sm:$0xff] %v517_v27   ;;  %v525_v29 = vld [vmem:[%s12787_s25 + $0x4e8] sm:$0xff]   ;;  %v529_v30 = vld [vmem:[%s12787_s25 + $0x4f0] sm:$0xff]  }
  0x40   : > { %522 = vst [vmem:[%s12792_s26 + $0x2e0] sm:$0xff] %v521_v28   ;;  %v533_v31 = vld [vmem:[%s12787_s25 + $0x4f8] sm:$0xff]   ;;  %526 = vst [vmem:[%s12792_s26 + $0x2e8] sm:$0xff] %v525_v29   ;;  %v537_v32 = vld [vmem:[%s12787_s25 + $0x500] sm:$0xff]  }
  0x41   : > { %530 = vst [vmem:[%s12792_s26 + $0x2f0] sm:$0xff] %v529_v30   ;;  %534 = vst [vmem:[%s12792_s26 + $0x2f8] sm:$0xff] %v533_v31   ;;  %v541_v33 = vld [vmem:[%s12787_s25 + $0x508] sm:$0xff]   ;;  %v545_v34 = vld [vmem:[%s12787_s25 + $0x510] sm:$0xff]  }
  0x42   : > { %538 = vst [vmem:[%s12792_s26 + $0x300] sm:$0xff] %v537_v32   ;;  %542 = vst [vmem:[%s12792_s26 + $0x308] sm:$0xff] %v541_v33   ;;  %v549_v35 = vld [vmem:[%s12787_s25 + $0x518] sm:$0xff]   ;;  %v553_v36 = vld [vmem:[%s12787_s25 + $0x520] sm:$0xff]  }
  0x43   : > { %546 = vst [vmem:[%s12792_s26 + $0x310] sm:$0xff] %v545_v34   ;;  %v557_v37 = vld [vmem:[%s12787_s25 + $0x528] sm:$0xff]   ;;  %550 = vst [vmem:[%s12792_s26 + $0x318] sm:$0xff] %v549_v35   ;;  %v561_v38 = vld [vmem:[%s12787_s25 + $0x530] sm:$0xff]  }
  0x44   : > { %554 = vst [vmem:[%s12792_s26 + $0x320] sm:$0xff] %v553_v36   ;;  %558 = vst [vmem:[%s12792_s26 + $0x328] sm:$0xff] %v557_v37   ;;  %v565_v39 = vld [vmem:[%s12787_s25 + $0x538] sm:$0xff]   ;;  %v569_v40 = vld [vmem:[%s12787_s25 + $0x540] sm:$0xff]  }
  0x45   : > { %562 = vst [vmem:[%s12792_s26 + $0x330] sm:$0xff] %v561_v38   ;;  %566 = vst [vmem:[%s12792_s26 + $0x338] sm:$0xff] %v565_v39   ;;  %v573_v41 = vld [vmem:[%s12787_s25 + $0x548] sm:$0xff]   ;;  %v577_v42 = vld [vmem:[%s12787_s25 + $0x550] sm:$0xff]  }
  0x46   : > { %570 = vst [vmem:[%s12792_s26 + $0x340] sm:$0xff] %v569_v40   ;;  %v581_v43 = vld [vmem:[%s12787_s25 + $0x558] sm:$0xff]   ;;  %574 = vst [vmem:[%s12792_s26 + $0x348] sm:$0xff] %v573_v41   ;;  %v585_v44 = vld [vmem:[%s12787_s25 + $0x560] sm:$0xff]  }
  0x47   : > { %578 = vst [vmem:[%s12792_s26 + $0x350] sm:$0xff] %v577_v42   ;;  %582 = vst [vmem:[%s12792_s26 + $0x358] sm:$0xff] %v581_v43   ;;  %v589_v45 = vld [vmem:[%s12787_s25 + $0x568] sm:$0xff]   ;;  %v593_v46 = vld [vmem:[%s12787_s25 + $0x570] sm:$0xff]  }
  0x48   : > { %586 = vst [vmem:[%s12792_s26 + $0x360] sm:$0xff] %v585_v44   ;;  %590 = vst [vmem:[%s12792_s26 + $0x368] sm:$0xff] %v589_v45   ;;  %v597_v47 = vld [vmem:[%s12787_s25 + $0x578] sm:$0xff]   ;;  %v601_v48 = vld [vmem:[%s12787_s25 + $0x580] sm:$0xff]  }
  0x49   : > { %594 = vst [vmem:[%s12792_s26 + $0x370] sm:$0xff] %v593_v46   ;;  %v605_v49 = vld [vmem:[%s12787_s25 + $0x588] sm:$0xff]   ;;  %598 = vst [vmem:[%s12792_s26 + $0x378] sm:$0xff] %v597_v47   ;;  %v609_v50 = vld [vmem:[%s12787_s25 + $0x590] sm:$0xff]  }
  0x4a   : > { %602 = vst [vmem:[%s12792_s26 + $0x380] sm:$0xff] %v601_v48   ;;  %606 = vst [vmem:[%s12792_s26 + $0x388] sm:$0xff] %v605_v49   ;;  %v613_v51 = vld [vmem:[%s12787_s25 + $0x598] sm:$0xff]   ;;  %v617_v52 = vld [vmem:[%s12787_s25 + $0x5a0] sm:$0xff]  }
  0x4b   : > { %610 = vst [vmem:[%s12792_s26 + $0x390] sm:$0xff] %v609_v50   ;;  %614 = vst [vmem:[%s12792_s26 + $0x398] sm:$0xff] %v613_v51   ;;  %v621_v53 = vld [vmem:[%s12787_s25 + $0x5a8] sm:$0xff]   ;;  %v625_v54 = vld [vmem:[%s12787_s25 + $0x5b0] sm:$0xff]  }
  0x4c   : > { %618 = vst [vmem:[%s12792_s26 + $0x3a0] sm:$0xff] %v617_v52   ;;  %v629_v55 = vld [vmem:[%s12787_s25 + $0x5b8] sm:$0xff]   ;;  %622 = vst [vmem:[%s12792_s26 + $0x3a8] sm:$0xff] %v621_v53   ;;  %v633_v56 = vld [vmem:[%s12787_s25 + $0x5c0] sm:$0xff]  }
  0x4d   : > { %626 = vst [vmem:[%s12792_s26 + $0x3b0] sm:$0xff] %v625_v54   ;;  %630 = vst [vmem:[%s12792_s26 + $0x3b8] sm:$0xff] %v629_v55   ;;  %v637_v57 = vld [vmem:[%s12787_s25 + $0x5c8] sm:$0xff]   ;;  %v641_v58 = vld [vmem:[%s12787_s25 + $0x5d0] sm:$0xff]  }
  0x4e   : > { %634 = vst [vmem:[%s12792_s26 + $0x3c0] sm:$0xff] %v633_v56   ;;  %638 = vst [vmem:[%s12792_s26 + $0x3c8] sm:$0xff] %v637_v57   ;;  %v645_v59 = vld [vmem:[%s12787_s25 + $0x5d8] sm:$0xff]   ;;  %v649_v60 = vld [vmem:[%s12787_s25 + $0x5e0] sm:$0xff]  }
  0x4f   : > { %642 = vst [vmem:[%s12792_s26 + $0x3d0] sm:$0xff] %v641_v58   ;;  %v653_v61 = vld [vmem:[%s12787_s25 + $0x5e8] sm:$0xff]   ;;  %646 = vst [vmem:[%s12792_s26 + $0x3d8] sm:$0xff] %v645_v59   ;;  %v657_v62 = vld [vmem:[%s12787_s25 + $0x5f0] sm:$0xff]  }
  0x50   : > { %650 = vst [vmem:[%s12792_s26 + $0x3e0] sm:$0xff] %v649_v60   ;;  %654 = vst [vmem:[%s12792_s26 + $0x3e8] sm:$0xff] %v653_v61   ;;  %v661_v63 = vld [vmem:[%s12787_s25 + $0x5f8] sm:$0xff]   ;;  %v665_v0 = vld [vmem:[%s12787_s25 + $0x800] sm:$0xff]  }
  0x51   : > { %658 = vst [vmem:[%s12792_s26 + $0x3f0] sm:$0xff] %v657_v62   ;;  %662 = vst [vmem:[%s12792_s26 + $0x3f8] sm:$0xff] %v661_v63   ;;  %v669_v1 = vld [vmem:[%s12787_s25 + $0x808] sm:$0xff]   ;;  %v673_v2 = vld [vmem:[%s12787_s25 + $0x810] sm:$0xff]  }
  0x52   : > { %666 = vst [vmem:[%s12792_s26 + $0x400] sm:$0xff] %v665_v0   ;;  %v677_v3 = vld [vmem:[%s12787_s25 + $0x818] sm:$0xff]   ;;  %670 = vst [vmem:[%s12792_s26 + $0x408] sm:$0xff] %v669_v1   ;;  %v681_v4 = vld [vmem:[%s12787_s25 + $0x820] sm:$0xff]  }
  0x53   : > { %674 = vst [vmem:[%s12792_s26 + $0x410] sm:$0xff] %v673_v2   ;;  %678 = vst [vmem:[%s12792_s26 + $0x418] sm:$0xff] %v677_v3   ;;  %v685_v5 = vld [vmem:[%s12787_s25 + $0x828] sm:$0xff]   ;;  %v689_v6 = vld [vmem:[%s12787_s25 + $0x830] sm:$0xff]  }
  0x54   : > { %682 = vst [vmem:[%s12792_s26 + $0x420] sm:$0xff] %v681_v4   ;;  %686 = vst [vmem:[%s12792_s26 + $0x428] sm:$0xff] %v685_v5   ;;  %v693_v7 = vld [vmem:[%s12787_s25 + $0x838] sm:$0xff]   ;;  %v697_v8 = vld [vmem:[%s12787_s25 + $0x840] sm:$0xff]  }
  0x55   : > { %690 = vst [vmem:[%s12792_s26 + $0x430] sm:$0xff] %v689_v6   ;;  %v701_v9 = vld [vmem:[%s12787_s25 + $0x848] sm:$0xff]   ;;  %694 = vst [vmem:[%s12792_s26 + $0x438] sm:$0xff] %v693_v7   ;;  %v705_v10 = vld [vmem:[%s12787_s25 + $0x850] sm:$0xff]  }
  0x56   : > { %698 = vst [vmem:[%s12792_s26 + $0x440] sm:$0xff] %v697_v8   ;;  %702 = vst [vmem:[%s12792_s26 + $0x448] sm:$0xff] %v701_v9   ;;  %v709_v11 = vld [vmem:[%s12787_s25 + $0x858] sm:$0xff]   ;;  %v713_v12 = vld [vmem:[%s12787_s25 + $0x860] sm:$0xff]  }
  0x57   : > { %706 = vst [vmem:[%s12792_s26 + $0x450] sm:$0xff] %v705_v10   ;;  %710 = vst [vmem:[%s12792_s26 + $0x458] sm:$0xff] %v709_v11   ;;  %v717_v13 = vld [vmem:[%s12787_s25 + $0x868] sm:$0xff]   ;;  %v721_v14 = vld [vmem:[%s12787_s25 + $0x870] sm:$0xff]  }
  0x58   : > { %714 = vst [vmem:[%s12792_s26 + $0x460] sm:$0xff] %v713_v12   ;;  %v725_v15 = vld [vmem:[%s12787_s25 + $0x878] sm:$0xff]   ;;  %718 = vst [vmem:[%s12792_s26 + $0x468] sm:$0xff] %v717_v13   ;;  %v729_v16 = vld [vmem:[%s12787_s25 + $0x880] sm:$0xff]  }
  0x59   : > { %722 = vst [vmem:[%s12792_s26 + $0x470] sm:$0xff] %v721_v14   ;;  %726 = vst [vmem:[%s12792_s26 + $0x478] sm:$0xff] %v725_v15   ;;  %v733_v17 = vld [vmem:[%s12787_s25 + $0x888] sm:$0xff]   ;;  %v737_v18 = vld [vmem:[%s12787_s25 + $0x890] sm:$0xff]  }
  0x5a   : > { %730 = vst [vmem:[%s12792_s26 + $0x480] sm:$0xff] %v729_v16   ;;  %734 = vst [vmem:[%s12792_s26 + $0x488] sm:$0xff] %v733_v17   ;;  %v741_v19 = vld [vmem:[%s12787_s25 + $0x898] sm:$0xff]   ;;  %v745_v20 = vld [vmem:[%s12787_s25 + $0x8a0] sm:$0xff]  }
  0x5b   : > { %738 = vst [vmem:[%s12792_s26 + $0x490] sm:$0xff] %v737_v18   ;;  %v749_v21 = vld [vmem:[%s12787_s25 + $0x8a8] sm:$0xff]   ;;  %742 = vst [vmem:[%s12792_s26 + $0x498] sm:$0xff] %v741_v19   ;;  %v753_v22 = vld [vmem:[%s12787_s25 + $0x8b0] sm:$0xff]  }
  0x5c   : > { %746 = vst [vmem:[%s12792_s26 + $0x4a0] sm:$0xff] %v745_v20   ;;  %750 = vst [vmem:[%s12792_s26 + $0x4a8] sm:$0xff] %v749_v21   ;;  %v757_v23 = vld [vmem:[%s12787_s25 + $0x8b8] sm:$0xff]   ;;  %v761_v24 = vld [vmem:[%s12787_s25 + $0x8c0] sm:$0xff]  }
  0x5d   : > { %754 = vst [vmem:[%s12792_s26 + $0x4b0] sm:$0xff] %v753_v22   ;;  %758 = vst [vmem:[%s12792_s26 + $0x4b8] sm:$0xff] %v757_v23   ;;  %v765_v25 = vld [vmem:[%s12787_s25 + $0x8c8] sm:$0xff]   ;;  %v769_v26 = vld [vmem:[%s12787_s25 + $0x8d0] sm:$0xff]  }
  0x5e   : > { %762 = vst [vmem:[%s12792_s26 + $0x4c0] sm:$0xff] %v761_v24   ;;  %v773_v27 = vld [vmem:[%s12787_s25 + $0x8d8] sm:$0xff]   ;;  %766 = vst [vmem:[%s12792_s26 + $0x4c8] sm:$0xff] %v765_v25   ;;  %v777_v28 = vld [vmem:[%s12787_s25 + $0x8e0] sm:$0xff]  }
  0x5f   : > { %770 = vst [vmem:[%s12792_s26 + $0x4d0] sm:$0xff] %v769_v26   ;;  %774 = vst [vmem:[%s12792_s26 + $0x4d8] sm:$0xff] %v773_v27   ;;  %v781_v29 = vld [vmem:[%s12787_s25 + $0x8e8] sm:$0xff]   ;;  %v785_v30 = vld [vmem:[%s12787_s25 + $0x8f0] sm:$0xff]  }
  0x60   : > { %778 = vst [vmem:[%s12792_s26 + $0x4e0] sm:$0xff] %v777_v28   ;;  %782 = vst [vmem:[%s12792_s26 + $0x4e8] sm:$0xff] %v781_v29   ;;  %v789_v31 = vld [vmem:[%s12787_s25 + $0x8f8] sm:$0xff]   ;;  %v793_v32 = vld [vmem:[%s12787_s25 + $0x900] sm:$0xff]  }
  0x61   : > { %786 = vst [vmem:[%s12792_s26 + $0x4f0] sm:$0xff] %v785_v30   ;;  %v797_v33 = vld [vmem:[%s12787_s25 + $0x908] sm:$0xff]   ;;  %790 = vst [vmem:[%s12792_s26 + $0x4f8] sm:$0xff] %v789_v31   ;;  %v801_v34 = vld [vmem:[%s12787_s25 + $0x910] sm:$0xff]  }
  0x62   : > { %794 = vst [vmem:[%s12792_s26 + $0x500] sm:$0xff] %v793_v32   ;;  %798 = vst [vmem:[%s12792_s26 + $0x508] sm:$0xff] %v797_v33   ;;  %v805_v35 = vld [vmem:[%s12787_s25 + $0x918] sm:$0xff]   ;;  %v809_v36 = vld [vmem:[%s12787_s25 + $0x920] sm:$0xff]  }
  0x63   : > { %802 = vst [vmem:[%s12792_s26 + $0x510] sm:$0xff] %v801_v34   ;;  %806 = vst [vmem:[%s12792_s26 + $0x518] sm:$0xff] %v805_v35   ;;  %v813_v37 = vld [vmem:[%s12787_s25 + $0x928] sm:$0xff]   ;;  %v817_v38 = vld [vmem:[%s12787_s25 + $0x930] sm:$0xff]  }
  0x64   : > { %810 = vst [vmem:[%s12792_s26 + $0x520] sm:$0xff] %v809_v36   ;;  %v821_v39 = vld [vmem:[%s12787_s25 + $0x938] sm:$0xff]   ;;  %814 = vst [vmem:[%s12792_s26 + $0x528] sm:$0xff] %v813_v37   ;;  %v825_v40 = vld [vmem:[%s12787_s25 + $0x940] sm:$0xff]  }
  0x65   : > { %818 = vst [vmem:[%s12792_s26 + $0x530] sm:$0xff] %v817_v38   ;;  %822 = vst [vmem:[%s12792_s26 + $0x538] sm:$0xff] %v821_v39   ;;  %v829_v41 = vld [vmem:[%s12787_s25 + $0x948] sm:$0xff]   ;;  %v833_v42 = vld [vmem:[%s12787_s25 + $0x950] sm:$0xff]  }
  0x66   : > { %826 = vst [vmem:[%s12792_s26 + $0x540] sm:$0xff] %v825_v40   ;;  %830 = vst [vmem:[%s12792_s26 + $0x548] sm:$0xff] %v829_v41   ;;  %v837_v43 = vld [vmem:[%s12787_s25 + $0x958] sm:$0xff]   ;;  %v841_v44 = vld [vmem:[%s12787_s25 + $0x960] sm:$0xff]  }
  0x67   : > { %834 = vst [vmem:[%s12792_s26 + $0x550] sm:$0xff] %v833_v42   ;;  %v845_v45 = vld [vmem:[%s12787_s25 + $0x968] sm:$0xff]   ;;  %838 = vst [vmem:[%s12792_s26 + $0x558] sm:$0xff] %v837_v43   ;;  %v849_v46 = vld [vmem:[%s12787_s25 + $0x970] sm:$0xff]  }
  0x68   : > { %842 = vst [vmem:[%s12792_s26 + $0x560] sm:$0xff] %v841_v44   ;;  %846 = vst [vmem:[%s12792_s26 + $0x568] sm:$0xff] %v845_v45   ;;  %v853_v47 = vld [vmem:[%s12787_s25 + $0x978] sm:$0xff]   ;;  %v857_v48 = vld [vmem:[%s12787_s25 + $0x980] sm:$0xff]  }
  0x69   : > { %850 = vst [vmem:[%s12792_s26 + $0x570] sm:$0xff] %v849_v46   ;;  %854 = vst [vmem:[%s12792_s26 + $0x578] sm:$0xff] %v853_v47   ;;  %v861_v49 = vld [vmem:[%s12787_s25 + $0x988] sm:$0xff]   ;;  %v865_v50 = vld [vmem:[%s12787_s25 + $0x990] sm:$0xff]  }
  0x6a   : > { %858 = vst [vmem:[%s12792_s26 + $0x580] sm:$0xff] %v857_v48   ;;  %v869_v51 = vld [vmem:[%s12787_s25 + $0x998] sm:$0xff]   ;;  %862 = vst [vmem:[%s12792_s26 + $0x588] sm:$0xff] %v861_v49   ;;  %v873_v52 = vld [vmem:[%s12787_s25 + $0x9a0] sm:$0xff]  }
  0x6b   : > { %866 = vst [vmem:[%s12792_s26 + $0x590] sm:$0xff] %v865_v50   ;;  %870 = vst [vmem:[%s12792_s26 + $0x598] sm:$0xff] %v869_v51   ;;  %v877_v53 = vld [vmem:[%s12787_s25 + $0x9a8] sm:$0xff]   ;;  %v881_v54 = vld [vmem:[%s12787_s25 + $0x9b0] sm:$0xff]  }
  0x6c   : > { %874 = vst [vmem:[%s12792_s26 + $0x5a0] sm:$0xff] %v873_v52   ;;  %878 = vst [vmem:[%s12792_s26 + $0x5a8] sm:$0xff] %v877_v53   ;;  %v885_v55 = vld [vmem:[%s12787_s25 + $0x9b8] sm:$0xff]   ;;  %v889_v56 = vld [vmem:[%s12787_s25 + $0x9c0] sm:$0xff]  }
  0x6d   : > { %882 = vst [vmem:[%s12792_s26 + $0x5b0] sm:$0xff] %v881_v54   ;;  %v893_v57 = vld [vmem:[%s12787_s25 + $0x9c8] sm:$0xff]   ;;  %886 = vst [vmem:[%s12792_s26 + $0x5b8] sm:$0xff] %v885_v55   ;;  %v897_v58 = vld [vmem:[%s12787_s25 + $0x9d0] sm:$0xff]  }
  0x6e   : > { %890 = vst [vmem:[%s12792_s26 + $0x5c0] sm:$0xff] %v889_v56   ;;  %894 = vst [vmem:[%s12792_s26 + $0x5c8] sm:$0xff] %v893_v57   ;;  %v901_v59 = vld [vmem:[%s12787_s25 + $0x9d8] sm:$0xff]   ;;  %v905_v60 = vld [vmem:[%s12787_s25 + $0x9e0] sm:$0xff]  }
  0x6f   : > { %898 = vst [vmem:[%s12792_s26 + $0x5d0] sm:$0xff] %v897_v58   ;;  %902 = vst [vmem:[%s12792_s26 + $0x5d8] sm:$0xff] %v901_v59   ;;  %v909_v61 = vld [vmem:[%s12787_s25 + $0x9e8] sm:$0xff]   ;;  %v913_v62 = vld [vmem:[%s12787_s25 + $0x9f0] sm:$0xff]  }
  0x70   : > { %906 = vst [vmem:[%s12792_s26 + $0x5e0] sm:$0xff] %v905_v60   ;;  %v917_v63 = vld [vmem:[%s12787_s25 + $0x9f8] sm:$0xff]   ;;  %910 = vst [vmem:[%s12792_s26 + $0x5e8] sm:$0xff] %v909_v61   ;;  %v921_v0 = vld [vmem:[%s12787_s25 + $0xc00] sm:$0xff]  }
  0x71   : > { %914 = vst [vmem:[%s12792_s26 + $0x5f0] sm:$0xff] %v913_v62   ;;  %918 = vst [vmem:[%s12792_s26 + $0x5f8] sm:$0xff] %v917_v63   ;;  %v925_v1 = vld [vmem:[%s12787_s25 + $0xc08] sm:$0xff]   ;;  %v929_v2 = vld [vmem:[%s12787_s25 + $0xc10] sm:$0xff]  }
  0x72   : > { %922 = vst [vmem:[%s12792_s26 + $0x600] sm:$0xff] %v921_v0   ;;  %926 = vst [vmem:[%s12792_s26 + $0x608] sm:$0xff] %v925_v1   ;;  %v933_v3 = vld [vmem:[%s12787_s25 + $0xc18] sm:$0xff]   ;;  %v937_v4 = vld [vmem:[%s12787_s25 + $0xc20] sm:$0xff]  }
  0x73   : > { %930 = vst [vmem:[%s12792_s26 + $0x610] sm:$0xff] %v929_v2   ;;  %v941_v5 = vld [vmem:[%s12787_s25 + $0xc28] sm:$0xff]   ;;  %934 = vst [vmem:[%s12792_s26 + $0x618] sm:$0xff] %v933_v3   ;;  %v945_v6 = vld [vmem:[%s12787_s25 + $0xc30] sm:$0xff]  }
  0x74   : > { %938 = vst [vmem:[%s12792_s26 + $0x620] sm:$0xff] %v937_v4   ;;  %942 = vst [vmem:[%s12792_s26 + $0x628] sm:$0xff] %v941_v5   ;;  %v949_v7 = vld [vmem:[%s12787_s25 + $0xc38] sm:$0xff]   ;;  %v953_v8 = vld [vmem:[%s12787_s25 + $0xc40] sm:$0xff]  }
  0x75   : > { %946 = vst [vmem:[%s12792_s26 + $0x630] sm:$0xff] %v945_v6   ;;  %950 = vst [vmem:[%s12792_s26 + $0x638] sm:$0xff] %v949_v7   ;;  %v957_v9 = vld [vmem:[%s12787_s25 + $0xc48] sm:$0xff]   ;;  %v961_v10 = vld [vmem:[%s12787_s25 + $0xc50] sm:$0xff]  }
  0x76   : > { %954 = vst [vmem:[%s12792_s26 + $0x640] sm:$0xff] %v953_v8   ;;  %v965_v11 = vld [vmem:[%s12787_s25 + $0xc58] sm:$0xff]   ;;  %958 = vst [vmem:[%s12792_s26 + $0x648] sm:$0xff] %v957_v9   ;;  %v969_v12 = vld [vmem:[%s12787_s25 + $0xc60] sm:$0xff]  }
  0x77   : > { %962 = vst [vmem:[%s12792_s26 + $0x650] sm:$0xff] %v961_v10   ;;  %966 = vst [vmem:[%s12792_s26 + $0x658] sm:$0xff] %v965_v11   ;;  %v973_v13 = vld [vmem:[%s12787_s25 + $0xc68] sm:$0xff]   ;;  %v977_v14 = vld [vmem:[%s12787_s25 + $0xc70] sm:$0xff]  }
  0x78   : > { %970 = vst [vmem:[%s12792_s26 + $0x660] sm:$0xff] %v969_v12   ;;  %974 = vst [vmem:[%s12792_s26 + $0x668] sm:$0xff] %v973_v13   ;;  %v981_v15 = vld [vmem:[%s12787_s25 + $0xc78] sm:$0xff]   ;;  %v985_v16 = vld [vmem:[%s12787_s25 + $0xc80] sm:$0xff]  }
  0x79   : > { %978 = vst [vmem:[%s12792_s26 + $0x670] sm:$0xff] %v977_v14   ;;  %v989_v17 = vld [vmem:[%s12787_s25 + $0xc88] sm:$0xff]   ;;  %982 = vst [vmem:[%s12792_s26 + $0x678] sm:$0xff] %v981_v15   ;;  %v993_v18 = vld [vmem:[%s12787_s25 + $0xc90] sm:$0xff]  }
  0x7a   : > { %986 = vst [vmem:[%s12792_s26 + $0x680] sm:$0xff] %v985_v16   ;;  %990 = vst [vmem:[%s12792_s26 + $0x688] sm:$0xff] %v989_v17   ;;  %v997_v19 = vld [vmem:[%s12787_s25 + $0xc98] sm:$0xff]   ;;  %v1001_v20 = vld [vmem:[%s12787_s25 + $0xca0] sm:$0xff]  }
  0x7b   : > { %994 = vst [vmem:[%s12792_s26 + $0x690] sm:$0xff] %v993_v18   ;;  %998 = vst [vmem:[%s12792_s26 + $0x698] sm:$0xff] %v997_v19   ;;  %v1005_v21 = vld [vmem:[%s12787_s25 + $0xca8] sm:$0xff]   ;;  %v1009_v22 = vld [vmem:[%s12787_s25 + $0xcb0] sm:$0xff]  }
  0x7c   : > { %1002 = vst [vmem:[%s12792_s26 + $0x6a0] sm:$0xff] %v1001_v20   ;;  %v1013_v23 = vld [vmem:[%s12787_s25 + $0xcb8] sm:$0xff]   ;;  %1006 = vst [vmem:[%s12792_s26 + $0x6a8] sm:$0xff] %v1005_v21   ;;  %v1017_v24 = vld [vmem:[%s12787_s25 + $0xcc0] sm:$0xff]  }
  0x7d   : > { %1010 = vst [vmem:[%s12792_s26 + $0x6b0] sm:$0xff] %v1009_v22   ;;  %1014 = vst [vmem:[%s12792_s26 + $0x6b8] sm:$0xff] %v1013_v23   ;;  %v1021_v25 = vld [vmem:[%s12787_s25 + $0xcc8] sm:$0xff]   ;;  %v1025_v26 = vld [vmem:[%s12787_s25 + $0xcd0] sm:$0xff]  }
  0x7e   : > { %1018 = vst [vmem:[%s12792_s26 + $0x6c0] sm:$0xff] %v1017_v24   ;;  %1022 = vst [vmem:[%s12792_s26 + $0x6c8] sm:$0xff] %v1021_v25   ;;  %v1029_v27 = vld [vmem:[%s12787_s25 + $0xcd8] sm:$0xff]   ;;  %v1033_v28 = vld [vmem:[%s12787_s25 + $0xce0] sm:$0xff]  }
  0x7f   : > { %1026 = vst [vmem:[%s12792_s26 + $0x6d0] sm:$0xff] %v1025_v26   ;;  %v1037_v29 = vld [vmem:[%s12787_s25 + $0xce8] sm:$0xff]   ;;  %1030 = vst [vmem:[%s12792_s26 + $0x6d8] sm:$0xff] %v1029_v27   ;;  %v1041_v30 = vld [vmem:[%s12787_s25 + $0xcf0] sm:$0xff]  }
  0x80   : > { %1034 = vst [vmem:[%s12792_s26 + $0x6e0] sm:$0xff] %v1033_v28   ;;  %1038 = vst [vmem:[%s12792_s26 + $0x6e8] sm:$0xff] %v1037_v29   ;;  %v1045_v31 = vld [vmem:[%s12787_s25 + $0xcf8] sm:$0xff]   ;;  %v1049_v32 = vld [vmem:[%s12787_s25 + $0xd00] sm:$0xff]  }
  0x81   : > { %1042 = vst [vmem:[%s12792_s26 + $0x6f0] sm:$0xff] %v1041_v30   ;;  %1046 = vst [vmem:[%s12792_s26 + $0x6f8] sm:$0xff] %v1045_v31   ;;  %v1053_v33 = vld [vmem:[%s12787_s25 + $0xd08] sm:$0xff]   ;;  %v1057_v34 = vld [vmem:[%s12787_s25 + $0xd10] sm:$0xff]  }
  0x82   : > { %1050 = vst [vmem:[%s12792_s26 + $0x700] sm:$0xff] %v1049_v32   ;;  %v1061_v35 = vld [vmem:[%s12787_s25 + $0xd18] sm:$0xff]   ;;  %1054 = vst [vmem:[%s12792_s26 + $0x708] sm:$0xff] %v1053_v33   ;;  %v1065_v36 = vld [vmem:[%s12787_s25 + $0xd20] sm:$0xff]  }
  0x83   : > { %1058 = vst [vmem:[%s12792_s26 + $0x710] sm:$0xff] %v1057_v34   ;;  %1062 = vst [vmem:[%s12792_s26 + $0x718] sm:$0xff] %v1061_v35   ;;  %v1069_v37 = vld [vmem:[%s12787_s25 + $0xd28] sm:$0xff]   ;;  %v1073_v38 = vld [vmem:[%s12787_s25 + $0xd30] sm:$0xff]  }
  0x84   : > { %1066 = vst [vmem:[%s12792_s26 + $0x720] sm:$0xff] %v1065_v36   ;;  %1070 = vst [vmem:[%s12792_s26 + $0x728] sm:$0xff] %v1069_v37   ;;  %v1077_v39 = vld [vmem:[%s12787_s25 + $0xd38] sm:$0xff]   ;;  %v1081_v40 = vld [vmem:[%s12787_s25 + $0xd40] sm:$0xff]  }
  0x85   : > { %1074 = vst [vmem:[%s12792_s26 + $0x730] sm:$0xff] %v1073_v38   ;;  %v1085_v41 = vld [vmem:[%s12787_s25 + $0xd48] sm:$0xff]   ;;  %1078 = vst [vmem:[%s12792_s26 + $0x738] sm:$0xff] %v1077_v39   ;;  %v1089_v42 = vld [vmem:[%s12787_s25 + $0xd50] sm:$0xff]  }
  0x86   : > { %1082 = vst [vmem:[%s12792_s26 + $0x740] sm:$0xff] %v1081_v40   ;;  %1086 = vst [vmem:[%s12792_s26 + $0x748] sm:$0xff] %v1085_v41   ;;  %v1093_v43 = vld [vmem:[%s12787_s25 + $0xd58] sm:$0xff]   ;;  %v1097_v44 = vld [vmem:[%s12787_s25 + $0xd60] sm:$0xff]  }
  0x87   : > { %1090 = vst [vmem:[%s12792_s26 + $0x750] sm:$0xff] %v1089_v42   ;;  %1094 = vst [vmem:[%s12792_s26 + $0x758] sm:$0xff] %v1093_v43   ;;  %v1101_v45 = vld [vmem:[%s12787_s25 + $0xd68] sm:$0xff]   ;;  %v1105_v46 = vld [vmem:[%s12787_s25 + $0xd70] sm:$0xff]  }
  0x88   : > { %1098 = vst [vmem:[%s12792_s26 + $0x760] sm:$0xff] %v1097_v44   ;;  %v1109_v47 = vld [vmem:[%s12787_s25 + $0xd78] sm:$0xff]   ;;  %1102 = vst [vmem:[%s12792_s26 + $0x768] sm:$0xff] %v1101_v45   ;;  %v1113_v48 = vld [vmem:[%s12787_s25 + $0xd80] sm:$0xff]  }
  0x89   : > { %1106 = vst [vmem:[%s12792_s26 + $0x770] sm:$0xff] %v1105_v46   ;;  %1110 = vst [vmem:[%s12792_s26 + $0x778] sm:$0xff] %v1109_v47   ;;  %v1117_v49 = vld [vmem:[%s12787_s25 + $0xd88] sm:$0xff]   ;;  %v1121_v50 = vld [vmem:[%s12787_s25 + $0xd90] sm:$0xff]  }
  0x8a   : > { %1114 = vst [vmem:[%s12792_s26 + $0x780] sm:$0xff] %v1113_v48   ;;  %1118 = vst [vmem:[%s12792_s26 + $0x788] sm:$0xff] %v1117_v49   ;;  %v1125_v51 = vld [vmem:[%s12787_s25 + $0xd98] sm:$0xff]   ;;  %v1129_v52 = vld [vmem:[%s12787_s25 + $0xda0] sm:$0xff]  }
  0x8b   : > { %1122 = vst [vmem:[%s12792_s26 + $0x790] sm:$0xff] %v1121_v50   ;;  %v1133_v53 = vld [vmem:[%s12787_s25 + $0xda8] sm:$0xff]   ;;  %1126 = vst [vmem:[%s12792_s26 + $0x798] sm:$0xff] %v1125_v51   ;;  %v1137_v54 = vld [vmem:[%s12787_s25 + $0xdb0] sm:$0xff]  }
  0x8c   : > { %1130 = vst [vmem:[%s12792_s26 + $0x7a0] sm:$0xff] %v1129_v52   ;;  %1134 = vst [vmem:[%s12792_s26 + $0x7a8] sm:$0xff] %v1133_v53   ;;  %v1141_v55 = vld [vmem:[%s12787_s25 + $0xdb8] sm:$0xff]   ;;  %v1145_v56 = vld [vmem:[%s12787_s25 + $0xdc0] sm:$0xff]  }
  0x8d   : > { %1138 = vst [vmem:[%s12792_s26 + $0x7b0] sm:$0xff] %v1137_v54   ;;  %1142 = vst [vmem:[%s12792_s26 + $0x7b8] sm:$0xff] %v1141_v55   ;;  %v1149_v57 = vld [vmem:[%s12787_s25 + $0xdc8] sm:$0xff]   ;;  %v1153_v58 = vld [vmem:[%s12787_s25 + $0xdd0] sm:$0xff]  }
  0x8e   : > { %1146 = vst [vmem:[%s12792_s26 + $0x7c0] sm:$0xff] %v1145_v56   ;;  %v1157_v59 = vld [vmem:[%s12787_s25 + $0xdd8] sm:$0xff]   ;;  %1150 = vst [vmem:[%s12792_s26 + $0x7c8] sm:$0xff] %v1149_v57   ;;  %v1161_v60 = vld [vmem:[%s12787_s25 + $0xde0] sm:$0xff]  }
  0x8f   : > { %1154 = vst [vmem:[%s12792_s26 + $0x7d0] sm:$0xff] %v1153_v58   ;;  %1158 = vst [vmem:[%s12792_s26 + $0x7d8] sm:$0xff] %v1157_v59   ;;  %v1165_v61 = vld [vmem:[%s12787_s25 + $0xde8] sm:$0xff]   ;;  %v1169_v62 = vld [vmem:[%s12787_s25 + $0xdf0] sm:$0xff]  }
  0x90   : > { %1162 = vst [vmem:[%s12792_s26 + $0x7e0] sm:$0xff] %v1161_v60   ;;  %1166 = vst [vmem:[%s12792_s26 + $0x7e8] sm:$0xff] %v1165_v61   ;;  %v1173_v63 = vld [vmem:[%s12787_s25 + $0xdf8] sm:$0xff]  }
  0x91   : > { %1170 = vst [vmem:[%s12792_s26 + $0x7f0] sm:$0xff] %v1169_v62   ;;  %1174 = vst [vmem:[%s12792_s26 + $0x7f8] sm:$0xff] %v1173_v63  }
  0x92 PF: > { %p10469_p5 = scmp.ge.s32.totalorder %s12730_s14, 1  ;;  %p4300_p6 = scmp.lt.s32.totalorder %s12730_s14, 3 }
  0x94   : > { %p4301_p7 = pnand %p10469_p5, %p4300_p6 }
  0x96   : > { %4304 = sbr.rel (%p4301_p7) target bundleno = 897 (0x381), region = 80 }
  0x9d   : > { %v12448_v0 = vld [vmem:[%s15392_s1] sm:$0xff]   ;;  %vm4994_vm0 = vcmask 1044480   ;;  %v12449_v1 = vld [vmem:[%s15392_s1 + $0x8] sm:$0x3f]   ;;  %vm4995_vm1 = vcmask 1045504   ;;  %s4307_s4 = sand.u32 1, %s12722_s12  }
  0x9e   : > { %11895 = vmatprep.subr.bf16.mxu0 %v12448_v0  ;;  %12027 = vmatprep.subr.bf16.mxu1 %v12448_v0  ;;  %v12732_v2 = vmov 65535   ;;  %s10470_s5 = sshll.u32 %s4307_s4, 11  ;;  %vm4801_vm2 = vcmask 220160   ;;  %s10471_s7 = sshll.u32 %s10462_s15, 7  ;;  %vm10263_vm3 = vcmask 257024  }
  0x9f   : > { %11896 = vmatpush3.bf16.msra.mxu0 %v12448_v0  ;;  %12028 = vmatpush3.bf16.msra.mxu1 %v12448_v0  ;;  %v4996_v3 = vsel %vm4994_vm0, 4294967295, %v12732_v2  ;;  %s13312_s6 = scalar_lea.vmem [#allocation2], %s10470_s5  ;;  %p4332_p8 = scmp.lt.s32.totalorder %s10471_s7, 255 }
  0xa0   : > { %v4997_v4 = vsel %vm4995_vm1, %v4996_v3, 0  ;;  %v12450_v6 = vld [vmem:[%s13312_s6] sm:$0xff]   ;;  %v12452_v8 = vld [vmem:[%s13312_s6 + $0x8] sm:$0xff]   ;;  %v12454_v10 = vld [vmem:[%s13312_s6 + $0x10] sm:$0xff]  }
  0xa1   : > { %v4999_v5 = vand.u32 %v12449_v1, %v4997_v4  ;;  %v12451_v7 = vld [vmem:[%s13312_s6 + $0x200] sm:$0xff]   ;;  %v12453_v9 = vld [vmem:[%s13312_s6 + $0x208] sm:$0xff]   ;;  %11899 = vmatprep.mubr.msk.bf16.mxu0 %vm4801_vm2, %v12450_v6  ;;  %v12455_v11 = vld [vmem:[%s13312_s6 + $0x210] sm:$0xff]   ;;  %s16160_s7 = smov (!%p4332_p8, %s10471_s7), 255 }
  0xa2   : > { %12031 = vmatprep.mubr.msk.bf16.mxu1 %vm4801_vm2, %v12451_v7  ;;  %v12456_v12 = vld [vmem:[%s13312_s6 + $0x18] sm:$0xff]   ;;  %v12458_v14 = vld [vmem:[%s13312_s6 + $0x20] sm:$0xff]   ;;  %v12460_v16 = vld [vmem:[%s13312_s6 + $0x28] sm:$0xff]   ;;  %s10472_s10 = sshll.u32 %s16160_s7, 2 }
  0xa3   : > { %11897 = vmatprep.subr.bf16.mxu0 %v4999_v5  ;;  %12029 = vmatprep.subr.bf16.mxu1 %v4999_v5  ;;  %v12457_v13 = vld [vmem:[%s13312_s6 + $0x218] sm:$0xff]   ;;  %v12459_v15 = vld [vmem:[%s13312_s6 + $0x220] sm:$0xff]   ;;  %v12461_v17 = vld [vmem:[%s13312_s6 + $0x228] sm:$0xff]   ;;  %s14594_s14 = scalar_lea.vmem %s15394_s3, %s10472_s10 }
  0xa4   : > { %11898 = vmatpush3.bf16.msra.mxu0 %v4999_v5  ;;  %12030 = vmatpush3.bf16.msra.mxu1 %v4999_v5  ;;  %v12462_v18 = vld [vmem:[%s13312_s6 + $0x30] sm:$0xff]   ;;  %v12464_v20 = vld [vmem:[%s13312_s6 + $0x38] sm:$0xff]   ;;  %v12466_v22 = vld [vmem:[%s13312_s6 + $0x40] sm:$0xff]  }
  0xa5   : > { %12159 = vmatprep.subr.bf16.mxu0 %v12448_v0  ;;  %12291 = vmatprep.subr.bf16.mxu1 %v12448_v0  ;;  %v12463_v19 = vld [vmem:[%s13312_s6 + $0x230] sm:$0xff]   ;;  %v12465_v21 = vld [vmem:[%s13312_s6 + $0x238] sm:$0xff]   ;;  %v12467_v23 = vld [vmem:[%s13312_s6 + $0x240] sm:$0xff]  }
  0xa6   : > { %v12468_v24 = vld [vmem:[%s13312_s6 + $0x48] sm:$0xff]   ;;  %v12470_v26 = vld [vmem:[%s13312_s6 + $0x50] sm:$0xff]   ;;  %v12472_v28 = vld [vmem:[%s13312_s6 + $0x58] sm:$0xff]  }
  0xa7   : > { %11900 = vmatmul.mubr.msk.bf16.vlgmr.msra.gmra.mrb[0].mxu0 %vm4801_vm2, %v12452_v8  ;;  %12032 = vmatmul.mubr.msk.bf16.vlgmr.msra.gmra.mrb[0].mxu1 %vm4801_vm2, %v12453_v9  ;;  %v12469_v25 = vld [vmem:[%s13312_s6 + $0x248] sm:$0xff]   ;;  %v12471_v27 = vld [vmem:[%s13312_s6 + $0x250] sm:$0xff]   ;;  %v12473_v29 = vld [vmem:[%s13312_s6 + $0x258] sm:$0xff]  }
  0xa8   : > { %12160 = vmatpush3.bf16.msra.mxu0 %v12448_v0  ;;  %12292 = vmatpush3.bf16.msra.mxu1 %v12448_v0  ;;  %v12474_v30 = vld [vmem:[%s13312_s6 + $0x60] sm:$0xff]   ;;  %v12476_v32 = vld [vmem:[%s13312_s6 + $0x68] sm:$0xff]   ;;  %v12478_v34 = vld [vmem:[%s13312_s6 + $0x70] sm:$0xff]  }
  0xa9   : > { %11903 = vmatprep.mubr.msk.bf16.mxu0 %vm4801_vm2, %v12454_v10  ;;  %12035 = vmatprep.mubr.msk.bf16.mxu1 %vm4801_vm2, %v12455_v11  ;;  %v12475_v31 = vld [vmem:[%s13312_s6 + $0x260] sm:$0xff]   ;;  %v12477_v33 = vld [vmem:[%s13312_s6 + $0x268] sm:$0xff]   ;;  %v12479_v35 = vld [vmem:[%s13312_s6 + $0x270] sm:$0xff]  }
  0xaa   : > { %12161 = vmatprep.subr.bf16.mxu0 %v4999_v5  ;;  %12293 = vmatprep.subr.bf16.mxu1 %v4999_v5  ;;  %v12480_v36 = vld [vmem:[%s13312_s6 + $0x78] sm:$0xff]   ;;  %v12482_v38 = vld [vmem:[%s13312_s6 + $0x80] sm:$0xff]   ;;  %v12484_v40 = vld [vmem:[%s13312_s6 + $0x88] sm:$0xff]  }
  0xab   : > { %v12481_v37 = vld [vmem:[%s13312_s6 + $0x278] sm:$0xff]   ;;  %v12483_v39 = vld [vmem:[%s13312_s6 + $0x280] sm:$0xff]   ;;  %v12485_v41 = vld [vmem:[%s13312_s6 + $0x288] sm:$0xff]  }
  0xac   : > { %12162 = vmatpush3.bf16.msra.mxu0 %v4999_v5  ;;  %12294 = vmatpush3.bf16.msra.mxu1 %v4999_v5  ;;  %v12486_v42 = vld [vmem:[%s13312_s6 + $0x90] sm:$0xff]   ;;  %v12488_v44 = vld [vmem:[%s13312_s6 + $0x98] sm:$0xff]   ;;  %v12490_v46 = vld [vmem:[%s13312_s6 + $0xa0] sm:$0xff]  }
  0xad   : > { %v12487_v43 = vld [vmem:[%s13312_s6 + $0x290] sm:$0xff]   ;;  %v12489_v45 = vld [vmem:[%s13312_s6 + $0x298] sm:$0xff]   ;;  %v12491_v47 = vld [vmem:[%s13312_s6 + $0x2a0] sm:$0xff]  }
  0xae   : > { %v12492_v48 = vld [vmem:[%s13312_s6 + $0xa8] sm:$0xff]   ;;  %v12494_v50 = vld [vmem:[%s13312_s6 + $0xb0] sm:$0xff]   ;;  %v12496_v52 = vld [vmem:[%s13312_s6 + $0xb8] sm:$0xff]  }
  0xaf   : > { %11904 = vmatmul.mubr.msk.bf16.gmra.mrb[4].mxu0 %vm4801_vm2, %v12456_v12  ;;  %12036 = vmatmul.mubr.msk.bf16.gmra.mrb[4].mxu1 %vm4801_vm2, %v12457_v13  ;;  %v12493_v49 = vld [vmem:[%s13312_s6 + $0x2a8] sm:$0xff]   ;;  %v12495_v51 = vld [vmem:[%s13312_s6 + $0x2b0] sm:$0xff]   ;;  %v12497_v53 = vld [vmem:[%s13312_s6 + $0x2b8] sm:$0xff]  }
  0xb0   : > { %11907 = vmatprep.mubr.msk.bf16.mxu0 %vm4801_vm2, %v12458_v14  ;;  %12039 = vmatprep.mubr.msk.bf16.mxu1 %vm4801_vm2, %v12459_v15  ;;  %v12498_v54 = vld [vmem:[%s13312_s6 + $0xc0] sm:$0xff]   ;;  %v12500_v56 = vld [vmem:[%s13312_s6 + $0xc8] sm:$0xff]   ;;  %v12502_v58 = vld [vmem:[%s13312_s6 + $0xd0] sm:$0xff]  }
  0xb1   : > { %v12499_v55 = vld [vmem:[%s13312_s6 + $0x2c0] sm:$0xff]   ;;  %v12501_v57 = vld [vmem:[%s13312_s6 + $0x2c8] sm:$0xff]   ;;  %v12503_v59 = vld [vmem:[%s13312_s6 + $0x2d0] sm:$0xff]  }
  0xb2   : > { %v12504_v60 = vld [vmem:[%s13312_s6 + $0xd8] sm:$0xff]   ;;  %v12506_v62 = vld [vmem:[%s13312_s6 + $0xe0] sm:$0xff]   ;;  %v12508_v0 = vld [vmem:[%s13312_s6 + $0xe8] sm:$0xff]  }
  0xb3   : > { %v12505_v61 = vld [vmem:[%s13312_s6 + $0x2d8] sm:$0xff]   ;;  %v12507_v63 = vld [vmem:[%s13312_s6 + $0x2e0] sm:$0xff]   ;;  %v12509_v1 = vld [vmem:[%s13312_s6 + $0x2e8] sm:$0xff]  }
  0xb4   : > { %v12510_v2 = vld [vmem:[%s13312_s6 + $0xf0] sm:$0xff]   ;;  %v12512_v4 = vld [vmem:[%s13312_s6 + $0xf8] sm:$0xff]   ;;  %v12514_v6 = vld [vmem:[%s13312_s6 + $0x100] sm:$0xff]  }
  0xb5   : > { %v12511_v3 = vld [vmem:[%s13312_s6 + $0x2f0] sm:$0xff]   ;;  %v12513_v5 = vld [vmem:[%s13312_s6 + $0x2f8] sm:$0xff]   ;;  %v12515_v7 = vld [vmem:[%s13312_s6 + $0x300] sm:$0xff]  }
  0xb6   : > { %v12516_v8 = vld [vmem:[%s13312_s6 + $0x108] sm:$0xff]   ;;  %v12518_v10 = vld [vmem:[%s13312_s6 + $0x110] sm:$0xff]   ;;  %v12520_v12 = vld [vmem:[%s13312_s6 + $0x118] sm:$0xff]  }
  0xb7   : > { %11908 = vmatmul.mubr.msk.bf16.gmra.mrb[8].mxu0 %vm4801_vm2, %v12460_v16  ;;  %12040 = vmatmul.mubr.msk.bf16.gmra.mrb[8].mxu1 %vm4801_vm2, %v12461_v17  ;;  %v12517_v9 = vld [vmem:[%s13312_s6 + $0x308] sm:$0xff]   ;;  %v12519_v11 = vld [vmem:[%s13312_s6 + $0x310] sm:$0xff]   ;;  %v12521_v13 = vld [vmem:[%s13312_s6 + $0x318] sm:$0xff]  }
  0xb8   : > { %11911 = vmatprep.mubr.msk.bf16.mxu0 %vm4801_vm2, %v12462_v18  ;;  %12043 = vmatprep.mubr.msk.bf16.mxu1 %vm4801_vm2, %v12463_v19  ;;  %v12522_v14 = vld [vmem:[%s13312_s6 + $0x120] sm:$0xff]   ;;  %v12524_v16 = vld [vmem:[%s13312_s6 + $0x128] sm:$0xff]   ;;  %v12526_v18 = vld [vmem:[%s13312_s6 + $0x130] sm:$0xff]  }
  0xb9   : > { %v12523_v15 = vld [vmem:[%s13312_s6 + $0x320] sm:$0xff]   ;;  %v12525_v17 = vld [vmem:[%s13312_s6 + $0x328] sm:$0xff]   ;;  %v12527_v19 = vld [vmem:[%s13312_s6 + $0x330] sm:$0xff]  }
  0xbf   : > { %11912 = vmatmul.mubr.msk.bf16.gmra.mrb[12].mxu0 %vm4801_vm2, %v12464_v20  ;;  %12044 = vmatmul.mubr.msk.bf16.gmra.mrb[12].mxu1 %vm4801_vm2, %v12465_v21  ;;  %v12528_v20 = vld [vmem:[%s13312_s6 + $0x138] sm:$0xff]  }
  0xc0   : > { %11915 = vmatprep.mubr.msk.bf16.mxu0 %vm4801_vm2, %v12466_v22  ;;  %12047 = vmatprep.mubr.msk.bf16.mxu1 %vm4801_vm2, %v12467_v23  ;;  %v12529_v21 = vld [vmem:[%s13312_s6 + $0x338] sm:$0xff]   ;;  %v12530_v22 = vld [vmem:[%s13312_s6 + $0x140] sm:$0xff]  }
  0xc1   : > { %v12531_v23 = vld [vmem:[%s13312_s6 + $0x340] sm:$0xff]  }
  0xc7   : > { %11916 = vmatmul.mubr.msk.bf16.gmra.mrb[16].mxu0 %vm4801_vm2, %v12468_v24  ;;  %12048 = vmatmul.mubr.msk.bf16.gmra.mrb[16].mxu1 %vm4801_vm2, %v12469_v25  ;;  %v12532_v24 = vld [vmem:[%s13312_s6 + $0x148] sm:$0xff]  }
  0xc8   : > { %11919 = vmatprep.mubr.msk.bf16.mxu0 %vm4801_vm2, %v12470_v26  ;;  %12051 = vmatprep.mubr.msk.bf16.mxu1 %vm4801_vm2, %v12471_v27  ;;  %v12533_v25 = vld [vmem:[%s13312_s6 + $0x348] sm:$0xff]   ;;  %v12534_v26 = vld [vmem:[%s13312_s6 + $0x150] sm:$0xff]  }
  0xc9   : > { %v12535_v27 = vld [vmem:[%s13312_s6 + $0x350] sm:$0xff]  }
  0xcf   : > { %11920 = vmatmul.mubr.msk.bf16.gmra.mrb[20].mxu0 %vm4801_vm2, %v12472_v28  ;;  %12052 = vmatmul.mubr.msk.bf16.gmra.mrb[20].mxu1 %vm4801_vm2, %v12473_v29  ;;  %v12536_v28 = vld [vmem:[%s13312_s6 + $0x158] sm:$0xff]  }
  0xd0   : > { %11923 = vmatprep.mubr.msk.bf16.mxu0 %vm4801_vm2, %v12474_v30  ;;  %12055 = vmatprep.mubr.msk.bf16.mxu1 %vm4801_vm2, %v12475_v31  ;;  %v12537_v29 = vld [vmem:[%s13312_s6 + $0x358] sm:$0xff]   ;;  %v12538_v30 = vld [vmem:[%s13312_s6 + $0x160] sm:$0xff]  }
  0xd1   : > { %v12539_v31 = vld [vmem:[%s13312_s6 + $0x360] sm:$0xff]  }
  0xd7   : > { %11924 = vmatmul.mubr.msk.bf16.gmra.mrb[24].mxu0 %vm4801_vm2, %v12476_v32  ;;  %12056 = vmatmul.mubr.msk.bf16.gmra.mrb[24].mxu1 %vm4801_vm2, %v12477_v33  ;;  %v12540_v32 = vld [vmem:[%s13312_s6 + $0x168] sm:$0xff]  }
  0xd8   : > { %11927 = vmatprep.mubr.msk.bf16.mxu0 %vm4801_vm2, %v12478_v34  ;;  %12059 = vmatprep.mubr.msk.bf16.mxu1 %vm4801_vm2, %v12479_v35  ;;  %v12541_v33 = vld [vmem:[%s13312_s6 + $0x368] sm:$0xff]   ;;  %v12542_v34 = vld [vmem:[%s13312_s6 + $0x170] sm:$0xff]  }
  0xd9   : > { %v12543_v35 = vld [vmem:[%s13312_s6 + $0x370] sm:$0xff]  }
  0xdf   : > { %11928 = vmatmul.mubr.msk.bf16.gmra.mrb[28].mxu0 %vm4801_vm2, %v12480_v36  ;;  %12060 = vmatmul.mubr.msk.bf16.gmra.mrb[28].mxu1 %vm4801_vm2, %v12481_v37  ;;  %v12544_v36 = vld [vmem:[%s13312_s6 + $0x178] sm:$0xff]  }
  0xe0   : > { %11931 = vmatprep.mubr.msk.bf16.mxu0 %vm4801_vm2, %v12482_v38  ;;  %12063 = vmatprep.mubr.msk.bf16.mxu1 %vm4801_vm2, %v12483_v39  ;;  %v12545_v37 = vld [vmem:[%s13312_s6 + $0x378] sm:$0xff]   ;;  %v12546_v38 = vld [vmem:[%s13312_s6 + $0x180] sm:$0xff]  }
  0xe1   : > { %v12547_v39 = vld [vmem:[%s13312_s6 + $0x380] sm:$0xff]  }
  0xe7   : > { %11932 = vmatmul.mubr.msk.bf16.gmra.mrb[32].mxu0 %vm4801_vm2, %v12484_v40  ;;  %12064 = vmatmul.mubr.msk.bf16.gmra.mrb[32].mxu1 %vm4801_vm2, %v12485_v41  ;;  %v12548_v40 = vld [vmem:[%s13312_s6 + $0x188] sm:$0xff]  }
  0xe8   : > { %11935 = vmatprep.mubr.msk.bf16.mxu0 %vm4801_vm2, %v12486_v42  ;;  %12067 = vmatprep.mubr.msk.bf16.mxu1 %vm4801_vm2, %v12487_v43  ;;  %v12549_v41 = vld [vmem:[%s13312_s6 + $0x388] sm:$0xff]   ;;  %v12550_v42 = vld [vmem:[%s13312_s6 + $0x190] sm:$0xff]  }
  0xe9   : > { %v12551_v43 = vld [vmem:[%s13312_s6 + $0x390] sm:$0xff]  }
  0xef   : > { %11936 = vmatmul.mubr.msk.bf16.gmra.mrb[36].mxu0 %vm4801_vm2, %v12488_v44  ;;  %12068 = vmatmul.mubr.msk.bf16.gmra.mrb[36].mxu1 %vm4801_vm2, %v12489_v45  ;;  %v12552_v44 = vld [vmem:[%s13312_s6 + $0x198] sm:$0xff]  }
  0xf0   : > { %11939 = vmatprep.mubr.msk.bf16.mxu0 %vm4801_vm2, %v12490_v46  ;;  %12071 = vmatprep.mubr.msk.bf16.mxu1 %vm4801_vm2, %v12491_v47  ;;  %v12553_v45 = vld [vmem:[%s13312_s6 + $0x398] sm:$0xff]   ;;  %v12554_v46 = vld [vmem:[%s13312_s6 + $0x1a0] sm:$0xff]  }
  0xf1   : > { %v12555_v47 = vld [vmem:[%s13312_s6 + $0x3a0] sm:$0xff]  }
  0xf7   : > { %11940 = vmatmul.mubr.msk.bf16.gmra.mrb[40].mxu0 %vm4801_vm2, %v12492_v48  ;;  %12072 = vmatmul.mubr.msk.bf16.gmra.mrb[40].mxu1 %vm4801_vm2, %v12493_v49  ;;  %v12556_v48 = vld [vmem:[%s13312_s6 + $0x1a8] sm:$0xff]  }
  0xf8   : > { %11943 = vmatprep.mubr.msk.bf16.mxu0 %vm4801_vm2, %v12494_v50  ;;  %12075 = vmatprep.mubr.msk.bf16.mxu1 %vm4801_vm2, %v12495_v51  ;;  %v12557_v49 = vld [vmem:[%s13312_s6 + $0x3a8] sm:$0xff]   ;;  %v12558_v50 = vld [vmem:[%s13312_s6 + $0x1b0] sm:$0xff]  }
  0xf9   : > { %v12559_v51 = vld [vmem:[%s13312_s6 + $0x3b0] sm:$0xff]  }
  0xff   : > { %11944 = vmatmul.mubr.msk.bf16.gmra.mrb[44].mxu0 %vm4801_vm2, %v12496_v52  ;;  %12076 = vmatmul.mubr.msk.bf16.gmra.mrb[44].mxu1 %vm4801_vm2, %v12497_v53  ;;  %v12560_v52 = vld [vmem:[%s13312_s6 + $0x1b8] sm:$0xff]  }
 0x100   : > { %11947 = vmatprep.mubr.msk.bf16.mxu0 %vm4801_vm2, %v12498_v54  ;;  %12079 = vmatprep.mubr.msk.bf16.mxu1 %vm4801_vm2, %v12499_v55  ;;  %v12561_v53 = vld [vmem:[%s13312_s6 + $0x3b8] sm:$0xff]  }
 0x107   : > { %11948 = vmatmul.mubr.msk.bf16.gmra.mrb[48].mxu0 %vm4801_vm2, %v12500_v56  ;;  %12080 = vmatmul.mubr.msk.bf16.gmra.mrb[48].mxu1 %vm4801_vm2, %v12501_v57 }
 0x108   : > { %11951 = vmatprep.mubr.msk.bf16.mxu0 %vm4801_vm2, %v12502_v58  ;;  %12083 = vmatprep.mubr.msk.bf16.mxu1 %vm4801_vm2, %v12503_v59  ;;  %v12588_v59 = vld [vmem:[%s13312_s6 + $0x428] sm:$0xff]  }
 0x10f   : > { %11952 = vmatmul.mubr.msk.bf16.gmra.mrb[52].mxu0 %vm4801_vm2, %v12504_v60  ;;  %12084 = vmatmul.mubr.msk.bf16.gmra.mrb[52].mxu1 %vm4801_vm2, %v12505_v61 }
 0x110   : > { %11955 = vmatprep.mubr.msk.bf16.mxu0 %vm4801_vm2, %v12506_v62  ;;  %12087 = vmatprep.mubr.msk.bf16.mxu1 %vm4801_vm2, %v12507_v63  ;;  %v12562_v62 = vld [vmem:[%s13312_s6 + $0x1c0] sm:$0xff]  }
 0x111   : > { %v12563_v63 = vld [vmem:[%s13312_s6 + $0x3c0] sm:$0xff]  }
 0x117   : > { %11956 = vmatmul.mubr.msk.bf16.gmra.mrb[56].mxu0 %vm4801_vm2, %v12508_v0  ;;  %12088 = vmatmul.mubr.msk.bf16.gmra.mrb[56].mxu1 %vm4801_vm2, %v12509_v1 }
 0x118   : > { %11959 = vmatprep.mubr.msk.bf16.mxu0 %vm4801_vm2, %v12510_v2  ;;  %12091 = vmatprep.mubr.msk.bf16.mxu1 %vm4801_vm2, %v12511_v3 }
 0x11f   : > { %11960 = vmatmul.mubr.msk.bf16.gmra.mrb[60].mxu0 %vm4801_vm2, %v12512_v4  ;;  %12092 = vmatmul.mubr.msk.bf16.gmra.mrb[60].mxu1 %vm4801_vm2, %v12513_v5  ;;  %v12564_v4 = vld [vmem:[%s13312_s6 + $0x1c8] sm:$0xff]  }
 0x120   : > { %11963 = vmatprep.mubr.msk.bf16.mxu0 %vm4801_vm2, %v12514_v6  ;;  %12095 = vmatprep.mubr.msk.bf16.mxu1 %vm4801_vm2, %v12515_v7  ;;  %v12565_v5 = vld [vmem:[%s13312_s6 + $0x3c8] sm:$0xff]  }
 0x127   : > { %11964 = vmatmul.mubr.msk.bf16.gmra.mrb[64].mxu0 %vm4801_vm2, %v12516_v8  ;;  %12096 = vmatmul.mubr.msk.bf16.gmra.mrb[64].mxu1 %vm4801_vm2, %v12517_v9  ;;  %v12587_v8 = vld [vmem:[%s13312_s6 + $0x620] sm:$0xff]  }
 0x128   : > { %11967 = vmatprep.mubr.msk.bf16.mxu0 %vm4801_vm2, %v12518_v10  ;;  %12099 = vmatprep.mubr.msk.bf16.mxu1 %vm4801_vm2, %v12519_v11  ;;  %v12585_v11 = vld [vmem:[%s13312_s6 + $0x618] sm:$0xff]  }
 0x12f   : > { %11968 = vmatmul.mubr.msk.bf16.gmra.mrb[68].mxu0 %vm4801_vm2, %v12520_v12  ;;  %12100 = vmatmul.mubr.msk.bf16.gmra.mrb[68].mxu1 %vm4801_vm2, %v12521_v13 }
 0x130   : > { %11971 = vmatprep.mubr.msk.bf16.mxu0 %vm4801_vm2, %v12522_v14  ;;  %12103 = vmatprep.mubr.msk.bf16.mxu1 %vm4801_vm2, %v12523_v15  ;;  %v12566_v14 = vld [vmem:[%s13312_s6 + $0x1d0] sm:$0xff]  }
 0x131   : > { %v12567_v15 = vld [vmem:[%s13312_s6 + $0x3d0] sm:$0xff]  }
 0x137   : > { %11972 = vmatmul.mubr.msk.bf16.gmra.mrb[72].mxu0 %vm4801_vm2, %v12524_v16  ;;  %12104 = vmatmul.mubr.msk.bf16.gmra.mrb[72].mxu1 %vm4801_vm2, %v12525_v17 }
 0x138   : > { %11975 = vmatprep.mubr.msk.bf16.mxu0 %vm4801_vm2, %v12526_v18  ;;  %12107 = vmatprep.mubr.msk.bf16.mxu1 %vm4801_vm2, %v12527_v19 }
 0x13f   : > { %11976 = vmatmul.mubr.msk.bf16.gmra.mrb[76].mxu0 %vm4801_vm2, %v12528_v20  ;;  %12108 = vmatmul.mubr.msk.bf16.gmra.mrb[76].mxu1 %vm4801_vm2, %v12529_v21 }
 0x140   : > { %11979 = vmatprep.mubr.msk.bf16.mxu0 %vm4801_vm2, %v12530_v22  ;;  %12111 = vmatprep.mubr.msk.bf16.mxu1 %vm4801_vm2, %v12531_v23 }
 0x147   : > { %11980 = vmatmul.mubr.msk.bf16.gmra.mrb[80].mxu0 %vm4801_vm2, %v12532_v24  ;;  %12112 = vmatmul.mubr.msk.bf16.gmra.mrb[80].mxu1 %vm4801_vm2, %v12533_v25  ;;  %v12568_v25 = vld [vmem:[%s13312_s6 + $0x1d8] sm:$0xff]  }
 0x148   : > { %11983 = vmatprep.mubr.msk.bf16.mxu0 %vm4801_vm2, %v12534_v26  ;;  %12115 = vmatprep.mubr.msk.bf16.mxu1 %vm4801_vm2, %v12535_v27  ;;  %v12569_v26 = vld [vmem:[%s13312_s6 + $0x3d8] sm:$0xff]  }
 0x149   : > { %v12584_v27 = vld [vmem:[%s13312_s6 + $0x418] sm:$0xff]  }
 0x14f   : > { %11984 = vmatmul.mubr.msk.bf16.gmra.mrb[84].mxu0 %vm4801_vm2, %v12536_v28  ;;  %12116 = vmatmul.mubr.msk.bf16.gmra.mrb[84].mxu1 %vm4801_vm2, %v12537_v29 }
 0x150   : > { %11987 = vmatprep.mubr.msk.bf16.mxu0 %vm4801_vm2, %v12538_v30  ;;  %12119 = vmatprep.mubr.msk.bf16.mxu1 %vm4801_vm2, %v12539_v31  ;;  %v12570_v30 = vld [vmem:[%s13312_s6 + $0x1e0] sm:$0xff]  }
 0x151   : > { %v12571_v31 = vld [vmem:[%s13312_s6 + $0x3e0] sm:$0xff]  }
 0x157   : > { %11988 = vmatmul.mubr.msk.bf16.gmra.mrb[88].mxu0 %vm4801_vm2, %v12540_v32  ;;  %12120 = vmatmul.mubr.msk.bf16.gmra.mrb[88].mxu1 %vm4801_vm2, %v12541_v33 }
 0x158   : > { %11991 = vmatprep.mubr.msk.bf16.mxu0 %vm4801_vm2, %v12542_v34  ;;  %12123 = vmatprep.mubr.msk.bf16.mxu1 %vm4801_vm2, %v12543_v35 }
 0x15f   : > { %11992 = vmatmul.mubr.msk.bf16.gmra.mrb[92].mxu0 %vm4801_vm2, %v12544_v36  ;;  %12124 = vmatmul.mubr.msk.bf16.gmra.mrb[92].mxu1 %vm4801_vm2, %v12545_v37 }
 0x160   : > { %11995 = vmatprep.mubr.msk.bf16.mxu0 %vm4801_vm2, %v12546_v38  ;;  %12127 = vmatprep.mubr.msk.bf16.mxu1 %vm4801_vm2, %v12547_v39  ;;  %v12583_v38 = vld [vmem:[%s13312_s6 + $0x610] sm:$0xff]  }
 0x167   : > { %11996 = vmatmul.mubr.msk.bf16.gmra.mrb[96].mxu0 %vm4801_vm2, %v12548_v40  ;;  %12128 = vmatmul.mubr.msk.bf16.gmra.mrb[96].mxu1 %vm4801_vm2, %v12549_v41  ;;  %v12572_v41 = vld [vmem:[%s13312_s6 + $0x1e8] sm:$0xff]  }
 0x168   : > { %11999 = vmatprep.mubr.msk.bf16.mxu0 %vm4801_vm2, %v12550_v42  ;;  %12131 = vmatprep.mubr.msk.bf16.mxu1 %vm4801_vm2, %v12551_v43  ;;  %v12573_v42 = vld [vmem:[%s13312_s6 + $0x3e8] sm:$0xff]  }
 0x169   : > { %v12581_v43 = vld [vmem:[%s13312_s6 + $0x608] sm:$0xff]  }
 0x16f   : > { %12000 = vmatmul.mubr.msk.bf16.gmra.mrb[100].mxu0 %vm4801_vm2, %v12552_v44  ;;  %12132 = vmatmul.mubr.msk.bf16.gmra.mrb[100].mxu1 %vm4801_vm2, %v12553_v45 }
 0x170   : > { %12003 = vmatprep.mubr.msk.bf16.mxu0 %vm4801_vm2, %v12554_v46  ;;  %12135 = vmatprep.mubr.msk.bf16.mxu1 %vm4801_vm2, %v12555_v47  ;;  %v12574_v46 = vld [vmem:[%s13312_s6 + $0x1f0] sm:$0xff]  }
 0x171   : > { %v12575_v47 = vld [vmem:[%s13312_s6 + $0x3f0] sm:$0xff]  }
 0x177   : > { %12004 = vmatmul.mubr.msk.bf16.gmra.mrb[104].mxu0 %vm4801_vm2, %v12556_v48  ;;  %12136 = vmatmul.mubr.msk.bf16.gmra.mrb[104].mxu1 %vm4801_vm2, %v12557_v49 }
 0x178   : > { %12007 = vmatprep.mubr.msk.bf16.mxu0 %vm4801_vm2, %v12558_v50  ;;  %12139 = vmatprep.mubr.msk.bf16.mxu1 %vm4801_vm2, %v12559_v51 }
 0x17a   : > { %v13536_v54 = vpop.f32.mrb[0].mxu0  ;;  %v13538_v55 = vpop.f32.mrb[0].mxu1 }
 0x17b   : > { %v13542_v57 = vpop.f32.mrb[1].mxu0  ;;  %v13544_v58 = vpop.f32.mrb[1].mxu1 }
 0x17c   : > { %v13548_v60 = vpop.f32.mrb[2].mxu0  ;;  %v13550_v61 = vpop.f32.mrb[2].mxu1 }
 0x17d   : > { %v13556_v1 = vpop.f32.mrb[3].mxu0  ;;  %v13558_v2 = vpop.f32.mrb[3].mxu1 }
 0x17f   : > { %12008 = vmatmul.mubr.msk.bf16.gmra.mrb[108].mxu0 %vm4801_vm2, %v12560_v52  ;;  %12140 = vmatmul.mubr.msk.bf16.gmra.mrb[108].mxu1 %vm4801_vm2, %v12561_v53 }
 0x180   : > { %12011 = vmatprep.mubr.msk.bf16.mxu0 %vm4801_vm2, %v12562_v62  ;;  %12143 = vmatprep.mubr.msk.bf16.mxu1 %vm4801_vm2, %v12563_v63 }
 0x182   : > { %v13568_v6 = vpop.f32.mrb[4].mxu0  ;;  %v13570_v7 = vpop.f32.mrb[4].mxu1 }
 0x183   : > { %v13574_v9 = vpop.f32.mrb[5].mxu0  ;;  %v13576_v10 = vpop.f32.mrb[5].mxu1 }
 0x184   : > { %v13580_v12 = vpop.f32.mrb[6].mxu0  ;;  %v13582_v13 = vpop.f32.mrb[6].mxu1 }
 0x185   : > { %v13588_v17 = vpop.f32.mrb[7].mxu0  ;;  %v13590_v18 = vpop.f32.mrb[7].mxu1 }
 0x187   : > { %12012 = vmatmul.mubr.msk.bf16.gmra.mrb[112].mxu0 %vm4801_vm2, %v12564_v4  ;;  %12144 = vmatmul.mubr.msk.bf16.gmra.mrb[112].mxu1 %vm4801_vm2, %v12565_v5  ;;  %v12576_v5 = vld [vmem:[%s13312_s6 + $0x1f8] sm:$0xff]  }
 0x188   : > { %12015 = vmatprep.mubr.msk.bf16.mxu0 %vm4801_vm2, %v12566_v14  ;;  %12147 = vmatprep.mubr.msk.bf16.mxu1 %vm4801_vm2, %v12567_v15  ;;  %v12577_v14 = vld [vmem:[%s13312_s6 + $0x3f8] sm:$0xff]  }
 0x18a   : > { %v13598_v20 = vpop.f32.mrb[8].mxu0  ;;  %v13600_v21 = vpop.f32.mrb[8].mxu1 }
 0x18b   : > { %v13604_v23 = vpop.f32.mrb[9].mxu0  ;;  %v13606_v24 = vpop.f32.mrb[9].mxu1 }
 0x18c   : > { %v13612_v28 = vpop.f32.mrb[10].mxu0  ;;  %v13614_v29 = vpop.f32.mrb[10].mxu1 }
 0x18d   : > { %v13620_v33 = vpop.f32.mrb[11].mxu0  ;;  %v13622_v34 = vpop.f32.mrb[11].mxu1 }
 0x18f   : > { %12016 = vmatmul.mubr.msk.bf16.gmra.mrb[116].mxu0 %vm4801_vm2, %v12568_v25  ;;  %12148 = vmatmul.mubr.msk.bf16.gmra.mrb[116].mxu1 %vm4801_vm2, %v12569_v26 }
 0x190   : > { %12019 = vmatprep.mubr.msk.bf16.mxu0 %vm4801_vm2, %v12570_v30  ;;  %12151 = vmatprep.mubr.msk.bf16.mxu1 %vm4801_vm2, %v12571_v31  ;;  %v12578_v30 = vld [vmem:[%s13312_s6 + $0x400] sm:$0xff]  }
 0x191   : > { %v12579_v31 = vld [vmem:[%s13312_s6 + $0x600] sm:$0xff]  }
 0x192   : > { %v13630_v36 = vpop.f32.mrb[12].mxu0  ;;  %v13632_v37 = vpop.f32.mrb[12].mxu1 }
 0x193   : > { %v13636_v39 = vpop.f32.mrb[13].mxu0  ;;  %v13638_v40 = vpop.f32.mrb[13].mxu1 }
 0x194   : > { %v13644_v44 = vpop.f32.mrb[14].mxu0  ;;  %v13646_v45 = vpop.f32.mrb[14].mxu1 }
 0x195   : > { %v13652_v49 = vpop.f32.mrb[15].mxu0  ;;  %v13654_v50 = vpop.f32.mrb[15].mxu1 }
 0x197   : > { %12020 = vmatmul.mubr.msk.bf16.gmra.mrb[120].mxu0 %vm4801_vm2, %v12572_v41  ;;  %12152 = vmatmul.mubr.msk.bf16.gmra.mrb[120].mxu1 %vm4801_vm2, %v12573_v42 }
 0x198   : > { %12023 = vmatprep.mubr.msk.bf16.mxu0 %vm4801_vm2, %v12574_v46  ;;  %12155 = vmatprep.mubr.msk.bf16.mxu1 %vm4801_vm2, %v12575_v47  ;;  %v12580_v47 = vld [vmem:[%s13312_s6 + $0x408] sm:$0xff]  }
 0x19a   : > { %v13662_v52 = vpop.f32.mrb[16].mxu0  ;;  %v13664_v53 = vpop.f32.mrb[16].mxu1 }
 0x19b   : > { %v13668_v63 = vpop.f32.mrb[17].mxu0  ;;  %v13670_v4 = vpop.f32.mrb[17].mxu1 }
 0x19c   : > { %v13676_v25 = vpop.f32.mrb[18].mxu0  ;;  %v13678_v26 = vpop.f32.mrb[18].mxu1 }
 0x19d   : > { %v13684_v42 = vpop.f32.mrb[19].mxu0  ;;  %v13686_v46 = vpop.f32.mrb[19].mxu1 }
 0x19f   : > { %12024 = vmatmul.mubr.msk.bf16.gmra.mrb[124].mxu0 %vm4801_vm2, %v12576_v5  ;;  %12156 = vmatmul.mubr.msk.bf16.gmra.mrb[124].mxu1 %vm4801_vm2, %v12577_v14 }
 0x1a0   : > { %12163 = vmatprep.mubr.msk.bf16.mxu0 %vm4801_vm2, %v12578_v30  ;;  %12295 = vmatprep.mubr.msk.bf16.mxu1 %vm4801_vm2, %v12579_v31  ;;  %v12582_v31 = vld [vmem:[%s13312_s6 + $0x410] sm:$0xff]  }
 0x1a2   : > { %v13694_v15 = vpop.f32.mrb[20].mxu0  ;;  %v13696_v41 = vpop.f32.mrb[20].mxu1 }
 0x1a3   : > { %v13700_v51 = vpop.f32.mrb[21].mxu0  ;;  %v13702_v48 = vpop.f32.mrb[21].mxu1 }
 0x1a4   : > { %v13708_v14 = vpop.f32.mrb[22].mxu0  ;;  %v13710_v30 = vpop.f32.mrb[22].mxu1 }
 0x1a5   : > { %15606 = vst [vmem:[#allocation3_spill] sm:$0xff] %v13710_v30  ;;  %v13716_v35 = vpop.f32.mrb[23].mxu0  ;;  %v13718_v32 = vpop.f32.mrb[23].mxu1 }
 0x1a6   : > { %15607 = vst [vmem:[#allocation4_spill] sm:$0xff] %v13716_v35  ;;  %15608 = vst [vmem:[#allocation5_spill] sm:$0xff] %v13718_v32  ;;  %v15820_v35 = vmax.f32 %v13556_v1, %v13558_v2 }
 0x1a7   : > { %12164 = vmatmul.mubr.msk.bf16.vlgmr.msra.gmra.mrb[128].mxu0 %vm4801_vm2, %v12580_v47  ;;  %12296 = vmatmul.mubr.msk.bf16.vlgmr.msra.gmra.mrb[128].mxu1 %vm4801_vm2, %v12581_v43 }
 0x1a8   : > { %12167 = vmatprep.mubr.msk.bf16.mxu0 %vm4801_vm2, %v12582_v31  ;;  %12299 = vmatprep.mubr.msk.bf16.mxu1 %vm4801_vm2, %v12583_v38  ;;  %v12586_v38 = vld [vmem:[%s13312_s6 + $0x420] sm:$0xff]  }
 0x1aa   : > { %v13726_v5 = vpop.f32.mrb[24].mxu0  ;;  %v13728_v62 = vpop.f32.mrb[24].mxu1 }
 0x1ab   : > { %15609 = vst [vmem:[#allocation6_spill] sm:$0xff] %v13726_v5  ;;  %15610 = vst [vmem:[#allocation7_spill] sm:$0xff] %v13728_v62  ;;  %v13732_v19 = vpop.f32.mrb[25].mxu0  ;;  %v13734_v16 = vpop.f32.mrb[25].mxu1 }
 0x1ac   : > { %15611 = vst [vmem:[#allocation8_spill] sm:$0xff] %v13732_v19  ;;  %15612 = vst [vmem:[#allocation9_spill] sm:$0xff] %v13734_v16  ;;  %v13740_v47 = vpop.f32.mrb[26].mxu0  ;;  %v13742_v31 = vpop.f32.mrb[26].mxu1  ;;  %v12592_v16 = vld [vmem:[%s13312_s6 + $0x438] sm:$0xff]  }
 0x1ad   : > { %15613 = vst [vmem:[#allocation10_spill] sm:$0xff] %v13740_v47  ;;  %15614 = vst [vmem:[#allocation11_spill] sm:$0xff] %v13742_v31  ;;  %v13748_v3 = vpop.f32.mrb[27].mxu0  ;;  %v13750_v0 = vpop.f32.mrb[27].mxu1 }
 0x1ae   : > { %15615 = vst [vmem:[#allocation12_spill] sm:$0xff] %v13748_v3  ;;  %15616 = vst [vmem:[#allocation13_spill] sm:$0xff] %v13750_v0  ;;  %v12589_v0 = vld [vmem:[%s13312_s6 + $0x628] sm:$0xff]   ;;  %v12591_v3 = vld [vmem:[%s13312_s6 + $0x630] sm:$0xff]  }
 0x1af   : > { %12168 = vmatmul.mubr.msk.bf16.gmra.mrb[132].mxu0 %vm4801_vm2, %v12584_v27  ;;  %12300 = vmatmul.mubr.msk.bf16.gmra.mrb[132].mxu1 %vm4801_vm2, %v12585_v11 }
 0x1b0   : > { %12171 = vmatprep.mubr.msk.bf16.mxu0 %vm4801_vm2, %v12586_v38  ;;  %12303 = vmatprep.mubr.msk.bf16.mxu1 %vm4801_vm2, %v12587_v8  ;;  %v12590_v8 = vld [vmem:[%s13312_s6 + $0x430] sm:$0xff]  }
 0x1b2   : > { %v13758_v43 = vpop.f32.mrb[28].mxu0  ;;  %v13760_v22 = vpop.f32.mrb[28].mxu1 }
 0x1b3   : > { %15617 = vst [vmem:[#allocation14_spill] sm:$0xff] %v13758_v43  ;;  %15618 = vst [vmem:[#allocation15_spill] sm:$0xff] %v13760_v22  ;;  %v13764_v31 = vpop.f32.mrb[29].mxu0  ;;  %v13766_v47 = vpop.f32.mrb[29].mxu1 }
 0x1b4   : > { %15619 = vst [vmem:[#allocation16_spill] sm:$0xff] %v13764_v31  ;;  %15620 = vst [vmem:[#allocation17_spill] sm:$0xff] %v13766_v47  ;;  %v13772_v27 = vpop.f32.mrb[30].mxu0  ;;  %v13774_v38 = vpop.f32.mrb[30].mxu1  ;;  %v12596_v31 = vld [vmem:[%s13312_s6 + $0x448] sm:$0xff]  }
 0x1b5   : > { %15621 = vst [vmem:[#allocation18_spill] sm:$0xff] %v13772_v27  ;;  %15622 = vst [vmem:[#allocation19_spill] sm:$0xff] %v13774_v38  ;;  %v13780_v22 = vpop.f32.mrb[31].mxu0  ;;  %v13782_v43 = vpop.f32.mrb[31].mxu1 }
 0x1b6   : > { %15623 = vst [vmem:[#allocation20_spill] sm:$0xff] %v13780_v22  ;;  %15624 = vst [vmem:[#allocation21_spill] sm:$0xff] %v13782_v43  ;;  %v12593_v43 = vld [vmem:[%s13312_s6 + $0x638] sm:$0xff]   ;;  %v12595_v22 = vld [vmem:[%s13312_s6 + $0x640] sm:$0xff]  }
 0x1b7   : > { %12172 = vmatmul.mubr.msk.bf16.gmra.mrb[136].mxu0 %vm4801_vm2, %v12588_v59  ;;  %12304 = vmatmul.mubr.msk.bf16.gmra.mrb[136].mxu1 %vm4801_vm2, %v12589_v0 }
 0x1b8   : > { %12175 = vmatprep.mubr.msk.bf16.mxu0 %vm4801_vm2, %v12590_v8  ;;  %12307 = vmatprep.mubr.msk.bf16.mxu1 %vm4801_vm2, %v12591_v3  ;;  %v12594_v3 = vld [vmem:[%s13312_s6 + $0x440] sm:$0xff]  }
 0x1ba   : > { %v13790_v11 = vpop.f32.mrb[32].mxu0  ;;  %v13792_v56 = vpop.f32.mrb[32].mxu1 }
 0x1bb   : > { %15625 = vst [vmem:[#allocation22_spill] sm:$0xff] %v13790_v11  ;;  %15626 = vst [vmem:[#allocation23_spill] sm:$0xff] %v13792_v56  ;;  %v13796_v27 = vpop.f32.mrb[33].mxu0  ;;  %v13798_v47 = vpop.f32.mrb[33].mxu1 }
 0x1bc   : > { %15627 = vst [vmem:[#allocation24_spill] sm:$0xff] %v13796_v27  ;;  %15628 = vst [vmem:[#allocation25_spill] sm:$0xff] %v13798_v47  ;;  %v13804_v0 = vpop.f32.mrb[34].mxu0  ;;  %v13806_v8 = vpop.f32.mrb[34].mxu1  ;;  %v12600_v27 = vld [vmem:[%s13312_s6 + $0x458] sm:$0xff]  }
 0x1bd   : > { %15629 = vst [vmem:[#allocation26_spill] sm:$0xff] %v13804_v0  ;;  %15630 = vst [vmem:[#allocation27_spill] sm:$0xff] %v13806_v8  ;;  %v13812_v56 = vpop.f32.mrb[35].mxu0  ;;  %v13814_v11 = vpop.f32.mrb[35].mxu1 }
 0x1be   : > { %15631 = vst [vmem:[#allocation28_spill] sm:$0xff] %v13812_v56  ;;  %15632 = vst [vmem:[#allocation29_spill] sm:$0xff] %v13814_v11  ;;  %v12597_v11 = vld [vmem:[%s13312_s6 + $0x648] sm:$0xff]   ;;  %v12599_v56 = vld [vmem:[%s13312_s6 + $0x650] sm:$0xff]  }
 0x1bf   : > { %12176 = vmatmul.mubr.msk.bf16.gmra.mrb[140].mxu0 %vm4801_vm2, %v12592_v16  ;;  %12308 = vmatmul.mubr.msk.bf16.gmra.mrb[140].mxu1 %vm4801_vm2, %v12593_v43 }
 0x1c0   : > { %12179 = vmatprep.mubr.msk.bf16.mxu0 %vm4801_vm2, %v12594_v3  ;;  %12311 = vmatprep.mubr.msk.bf16.mxu1 %vm4801_vm2, %v12595_v22  ;;  %v12598_v22 = vld [vmem:[%s13312_s6 + $0x450] sm:$0xff]  }
 0x1c2   : > { %v13822_v59 = vpop.f32.mrb[36].mxu0  ;;  %v13824_v38 = vpop.f32.mrb[36].mxu1 }
 0x1c3   : > { %15633 = vst [vmem:[#allocation30_spill] sm:$0xff] %v13822_v59  ;;  %15634 = vst [vmem:[#allocation31_spill] sm:$0xff] %v13824_v38  ;;  %v13828_v0 = vpop.f32.mrb[37].mxu0  ;;  %v13830_v47 = vpop.f32.mrb[37].mxu1 }
 0x1c4   : > { %15635 = vst [vmem:[#allocation32_spill] sm:$0xff] %v13828_v0  ;;  %15636 = vst [vmem:[#allocation33_spill] sm:$0xff] %v13830_v47  ;;  %v13836_v43 = vpop.f32.mrb[38].mxu0  ;;  %v13838_v3 = vpop.f32.mrb[38].mxu1  ;;  %v12604_v0 = vld [vmem:[%s13312_s6 + $0x468] sm:$0xff]  }
 0x1c5   : > { %15637 = vst [vmem:[#allocation34_spill] sm:$0xff] %v13836_v43  ;;  %15638 = vst [vmem:[#allocation35_spill] sm:$0xff] %v13838_v3  ;;  %v13844_v38 = vpop.f32.mrb[39].mxu0  ;;  %v13846_v59 = vpop.f32.mrb[39].mxu1 }
 0x1c6   : > { %15639 = vst [vmem:[#allocation36_spill] sm:$0xff] %v13844_v38  ;;  %15640 = vst [vmem:[#allocation37_spill] sm:$0xff] %v13846_v59  ;;  %v12601_v59 = vld [vmem:[%s13312_s6 + $0x658] sm:$0xff]   ;;  %v12603_v38 = vld [vmem:[%s13312_s6 + $0x660] sm:$0xff]  }
 0x1c7   : > { %12180 = vmatmul.mubr.msk.bf16.gmra.mrb[144].mxu0 %vm4801_vm2, %v12596_v31  ;;  %12312 = vmatmul.mubr.msk.bf16.gmra.mrb[144].mxu1 %vm4801_vm2, %v12597_v11 }
 0x1c8   : > { %12183 = vmatprep.mubr.msk.bf16.mxu0 %vm4801_vm2, %v12598_v22  ;;  %12315 = vmatprep.mubr.msk.bf16.mxu1 %vm4801_vm2, %v12599_v56  ;;  %v12602_v56 = vld [vmem:[%s13312_s6 + $0x460] sm:$0xff]  }
 0x1ca   : > { %v13854_v16 = vpop.f32.mrb[40].mxu0  ;;  %v13856_v8 = vpop.f32.mrb[40].mxu1 }
 0x1cb   : > { %15641 = vst [vmem:[#allocation38_spill] sm:$0xff] %v13854_v16  ;;  %15642 = vst [vmem:[#allocation39_spill] sm:$0xff] %v13856_v8  ;;  %v13860_v43 = vpop.f32.mrb[41].mxu0  ;;  %v13862_v47 = vpop.f32.mrb[41].mxu1 }
 0x1cc   : > { %15643 = vst [vmem:[#allocation40_spill] sm:$0xff] %v13860_v43  ;;  %15644 = vst [vmem:[#allocation41_spill] sm:$0xff] %v13862_v47  ;;  %v13868_v11 = vpop.f32.mrb[42].mxu0  ;;  %v13870_v22 = vpop.f32.mrb[42].mxu1  ;;  %v12608_v43 = vld [vmem:[%s13312_s6 + $0x478] sm:$0xff]  }
 0x1cd   : > { %15645 = vst [vmem:[#allocation42_spill] sm:$0xff] %v13868_v11  ;;  %15646 = vst [vmem:[#allocation43_spill] sm:$0xff] %v13870_v22  ;;  %v13876_v8 = vpop.f32.mrb[43].mxu0  ;;  %v13878_v16 = vpop.f32.mrb[43].mxu1 }
 0x1ce   : > { %15647 = vst [vmem:[#allocation44_spill] sm:$0xff] %v13876_v8  ;;  %15648 = vst [vmem:[#allocation45_spill] sm:$0xff] %v13878_v16  ;;  %v12605_v16 = vld [vmem:[%s13312_s6 + $0x668] sm:$0xff]   ;;  %v12607_v8 = vld [vmem:[%s13312_s6 + $0x670] sm:$0xff]  }
 0x1cf   : > { %12184 = vmatmul.mubr.msk.bf16.gmra.mrb[148].mxu0 %vm4801_vm2, %v12600_v27  ;;  %12316 = vmatmul.mubr.msk.bf16.gmra.mrb[148].mxu1 %vm4801_vm2, %v12601_v59 }
 0x1d0   : > { %12187 = vmatprep.mubr.msk.bf16.mxu0 %vm4801_vm2, %v12602_v56  ;;  %12319 = vmatprep.mubr.msk.bf16.mxu1 %vm4801_vm2, %v12603_v38  ;;  %v12606_v38 = vld [vmem:[%s13312_s6 + $0x470] sm:$0xff]  }
 0x1d2   : > { %v13886_v31 = vpop.f32.mrb[44].mxu0  ;;  %v13888_v3 = vpop.f32.mrb[44].mxu1 }
 0x1d3   : > { %15649 = vst [vmem:[#allocation46_spill] sm:$0xff] %v13886_v31  ;;  %15650 = vst [vmem:[#allocation47_spill] sm:$0xff] %v13888_v3  ;;  %v13892_v11 = vpop.f32.mrb[45].mxu0  ;;  %v13894_v47 = vpop.f32.mrb[45].mxu1 }
 0x1d4   : > { %15651 = vst [vmem:[#allocation48_spill] sm:$0xff] %v13892_v11  ;;  %15652 = vst [vmem:[#allocation49_spill] sm:$0xff] %v13894_v47  ;;  %v13900_v59 = vpop.f32.mrb[46].mxu0  ;;  %v13902_v56 = vpop.f32.mrb[46].mxu1  ;;  %v12612_v11 = vld [vmem:[%s13312_s6 + $0x488] sm:$0xff]  }
 0x1d5   : > { %15653 = vst [vmem:[#allocation50_spill] sm:$0xff] %v13900_v59  ;;  %15654 = vst [vmem:[#allocation51_spill] sm:$0xff] %v13902_v56  ;;  %v13908_v3 = vpop.f32.mrb[47].mxu0  ;;  %v13910_v31 = vpop.f32.mrb[47].mxu1 }
 0x1d6   : > { %15655 = vst [vmem:[#allocation52_spill] sm:$0xff] %v13908_v3  ;;  %15656 = vst [vmem:[#allocation53_spill] sm:$0xff] %v13910_v31  ;;  %v12609_v31 = vld [vmem:[%s13312_s6 + $0x678] sm:$0xff]   ;;  %v12611_v3 = vld [vmem:[%s13312_s6 + $0x680] sm:$0xff]  }
 0x1d7   : > { %12188 = vmatmul.mubr.msk.bf16.gmra.mrb[152].mxu0 %vm4801_vm2, %v12604_v0  ;;  %12320 = vmatmul.mubr.msk.bf16.gmra.mrb[152].mxu1 %vm4801_vm2, %v12605_v16 }
 0x1d8   : > { %12191 = vmatprep.mubr.msk.bf16.mxu0 %vm4801_vm2, %v12606_v38  ;;  %12323 = vmatprep.mubr.msk.bf16.mxu1 %vm4801_vm2, %v12607_v8  ;;  %v12610_v8 = vld [vmem:[%s13312_s6 + $0x480] sm:$0xff]  }
 0x1da   : > { %v13918_v27 = vpop.f32.mrb[48].mxu0  ;;  %v13920_v22 = vpop.f32.mrb[48].mxu1 }
 0x1db   : > { %15657 = vst [vmem:[#allocation54_spill] sm:$0xff] %v13918_v27  ;;  %15658 = vst [vmem:[#allocation55_spill] sm:$0xff] %v13920_v22  ;;  %v13924_v59 = vpop.f32.mrb[49].mxu0  ;;  %v13926_v47 = vpop.f32.mrb[49].mxu1 }
 0x1dc   : > { %15659 = vst [vmem:[#allocation56_spill] sm:$0xff] %v13924_v59  ;;  %15660 = vst [vmem:[#allocation57_spill] sm:$0xff] %v13926_v47  ;;  %v13932_v16 = vpop.f32.mrb[50].mxu0  ;;  %v13934_v38 = vpop.f32.mrb[50].mxu1  ;;  %v12616_v59 = vld [vmem:[%s13312_s6 + $0x498] sm:$0xff]  }
 0x1dd   : > { %15661 = vst [vmem:[#allocation58_spill] sm:$0xff] %v13932_v16  ;;  %15662 = vst [vmem:[#allocation59_spill] sm:$0xff] %v13934_v38  ;;  %v13940_v22 = vpop.f32.mrb[51].mxu0  ;;  %v13942_v27 = vpop.f32.mrb[51].mxu1 }
 0x1de   : > { %15663 = vst [vmem:[#allocation60_spill] sm:$0xff] %v13940_v22  ;;  %15664 = vst [vmem:[#allocation61_spill] sm:$0xff] %v13942_v27  ;;  %v12613_v27 = vld [vmem:[%s13312_s6 + $0x688] sm:$0xff]   ;;  %v12615_v22 = vld [vmem:[%s13312_s6 + $0x690] sm:$0xff]  }
 0x1df   : > { %12192 = vmatmul.mubr.msk.bf16.gmra.mrb[156].mxu0 %vm4801_vm2, %v12608_v43  ;;  %12324 = vmatmul.mubr.msk.bf16.gmra.mrb[156].mxu1 %vm4801_vm2, %v12609_v31 }
 0x1e0   : > { %12195 = vmatprep.mubr.msk.bf16.mxu0 %vm4801_vm2, %v12610_v8  ;;  %12327 = vmatprep.mubr.msk.bf16.mxu1 %vm4801_vm2, %v12611_v3  ;;  %v12614_v3 = vld [vmem:[%s13312_s6 + $0x490] sm:$0xff]  }
 0x1e2   : > { %v13950_v0 = vpop.f32.mrb[52].mxu0  ;;  %v13952_v56 = vpop.f32.mrb[52].mxu1 }
 0x1e3   : > { %15665 = vst [vmem:[#allocation62_spill] sm:$0xff] %v13950_v0  ;;  %15666 = vst [vmem:[#allocation63_spill] sm:$0xff] %v13952_v56  ;;  %v13956_v16 = vpop.f32.mrb[53].mxu0  ;;  %v13958_v47 = vpop.f32.mrb[53].mxu1 }
 0x1e4   : > { %15667 = vst [vmem:[#allocation64_spill] sm:$0xff] %v13956_v16  ;;  %15668 = vst [vmem:[#allocation65_spill] sm:$0xff] %v13958_v47  ;;  %v13964_v31 = vpop.f32.mrb[54].mxu0  ;;  %v13966_v8 = vpop.f32.mrb[54].mxu1  ;;  %v12620_v16 = vld [vmem:[%s13312_s6 + $0x4a8] sm:$0xff]  }
 0x1e5   : > { %15669 = vst [vmem:[#allocation66_spill] sm:$0xff] %v13964_v31  ;;  %15670 = vst [vmem:[#allocation67_spill] sm:$0xff] %v13966_v8  ;;  %v13972_v56 = vpop.f32.mrb[55].mxu0  ;;  %v13974_v0 = vpop.f32.mrb[55].mxu1 }
 0x1e6   : > { %15671 = vst [vmem:[#allocation68_spill] sm:$0xff] %v13972_v56  ;;  %15672 = vst [vmem:[#allocation69_spill] sm:$0xff] %v13974_v0  ;;  %v12617_v0 = vld [vmem:[%s13312_s6 + $0x698] sm:$0xff]   ;;  %v12619_v56 = vld [vmem:[%s13312_s6 + $0x6a0] sm:$0xff]  }
 0x1e7   : > { %12196 = vmatmul.mubr.msk.bf16.gmra.mrb[160].mxu0 %vm4801_vm2, %v12612_v11  ;;  %12328 = vmatmul.mubr.msk.bf16.gmra.mrb[160].mxu1 %vm4801_vm2, %v12613_v27 }
 0x1e8   : > { %12199 = vmatprep.mubr.msk.bf16.mxu0 %vm4801_vm2, %v12614_v3  ;;  %12331 = vmatprep.mubr.msk.bf16.mxu1 %vm4801_vm2, %v12615_v22  ;;  %v12618_v22 = vld [vmem:[%s13312_s6 + $0x4a0] sm:$0xff]  }
 0x1ea   : > { %v13982_v43 = vpop.f32.mrb[56].mxu0  ;;  %v13984_v38 = vpop.f32.mrb[56].mxu1 }
 0x1eb   : > { %15673 = vst [vmem:[#allocation70_spill] sm:$0xff] %v13982_v43  ;;  %15674 = vst [vmem:[#allocation71_spill] sm:$0xff] %v13984_v38  ;;  %v13988_v31 = vpop.f32.mrb[57].mxu0  ;;  %v13990_v47 = vpop.f32.mrb[57].mxu1 }
 0x1ec   : > { %15675 = vst [vmem:[#allocation72_spill] sm:$0xff] %v13988_v31  ;;  %15676 = vst [vmem:[#allocation73_spill] sm:$0xff] %v13990_v47  ;;  %v13996_v27 = vpop.f32.mrb[58].mxu0  ;;  %v13998_v3 = vpop.f32.mrb[58].mxu1  ;;  %v12624_v31 = vld [vmem:[%s13312_s6 + $0x4b8] sm:$0xff]  }
 0x1ed   : > { %15677 = vst [vmem:[#allocation74_spill] sm:$0xff] %v13996_v27  ;;  %15678 = vst [vmem:[#allocation75_spill] sm:$0xff] %v13998_v3  ;;  %v14004_v38 = vpop.f32.mrb[59].mxu0  ;;  %v14006_v43 = vpop.f32.mrb[59].mxu1 }
 0x1ee   : > { %15679 = vst [vmem:[#allocation76_spill] sm:$0xff] %v14004_v38  ;;  %15680 = vst [vmem:[#allocation77_spill] sm:$0xff] %v14006_v43  ;;  %v12621_v43 = vld [vmem:[%s13312_s6 + $0x6a8] sm:$0xff]   ;;  %v12623_v38 = vld [vmem:[%s13312_s6 + $0x6b0] sm:$0xff]  }
 0x1ef   : > { %12200 = vmatmul.mubr.msk.bf16.gmra.mrb[164].mxu0 %vm4801_vm2, %v12616_v59  ;;  %12332 = vmatmul.mubr.msk.bf16.gmra.mrb[164].mxu1 %vm4801_vm2, %v12617_v0 }
 0x1f0   : > { %12203 = vmatprep.mubr.msk.bf16.mxu0 %vm4801_vm2, %v12618_v22  ;;  %12335 = vmatprep.mubr.msk.bf16.mxu1 %vm4801_vm2, %v12619_v56  ;;  %v12622_v56 = vld [vmem:[%s13312_s6 + $0x4b0] sm:$0xff]  }
 0x1f2   : > { %v14014_v11 = vpop.f32.mrb[60].mxu0  ;;  %v14016_v8 = vpop.f32.mrb[60].mxu1 }
 0x1f3   : > { %15681 = vst [vmem:[#allocation78_spill] sm:$0xff] %v14014_v11  ;;  %15682 = vst [vmem:[#allocation79_spill] sm:$0xff] %v14016_v8  ;;  %v14020_v27 = vpop.f32.mrb[61].mxu0  ;;  %v14022_v47 = vpop.f32.mrb[61].mxu1 }
 0x1f4   : > { %15683 = vst [vmem:[#allocation80_spill] sm:$0xff] %v14020_v27  ;;  %15684 = vst [vmem:[#allocation81_spill] sm:$0xff] %v14022_v47  ;;  %v14028_v0 = vpop.f32.mrb[62].mxu0  ;;  %v14030_v22 = vpop.f32.mrb[62].mxu1  ;;  %v12628_v27 = vld [vmem:[%s13312_s6 + $0x4c8] sm:$0xff]  }
 0x1f5   : > { %15685 = vst [vmem:[#allocation82_spill] sm:$0xff] %v14028_v0  ;;  %15686 = vst [vmem:[#allocation83_spill] sm:$0xff] %v14030_v22  ;;  %v14036_v8 = vpop.f32.mrb[63].mxu0  ;;  %v14038_v11 = vpop.f32.mrb[63].mxu1 }
 0x1f6   : > { %15687 = vst [vmem:[#allocation84_spill] sm:$0xff] %v14036_v8  ;;  %15688 = vst [vmem:[#allocation85_spill] sm:$0xff] %v14038_v11  ;;  %v12625_v11 = vld [vmem:[%s13312_s6 + $0x6b8] sm:$0xff]   ;;  %v12627_v8 = vld [vmem:[%s13312_s6 + $0x6c0] sm:$0xff]  }
 0x1f7   : > { %12204 = vmatmul.mubr.msk.bf16.gmra.mrb[168].mxu0 %vm4801_vm2, %v12620_v16  ;;  %12336 = vmatmul.mubr.msk.bf16.gmra.mrb[168].mxu1 %vm4801_vm2, %v12621_v43 }
 0x1f8   : > { %12207 = vmatprep.mubr.msk.bf16.mxu0 %vm4801_vm2, %v12622_v56  ;;  %12339 = vmatprep.mubr.msk.bf16.mxu1 %vm4801_vm2, %v12623_v38  ;;  %v12626_v38 = vld [vmem:[%s13312_s6 + $0x4c0] sm:$0xff]  }
 0x1fa   : > { %v14046_v59 = vpop.f32.mrb[64].mxu0  ;;  %v14048_v3 = vpop.f32.mrb[64].mxu1 }
 0x1fb   : > { %15689 = vst [vmem:[#allocation86_spill] sm:$0xff] %v14046_v59  ;;  %15690 = vst [vmem:[#allocation87_spill] sm:$0xff] %v14048_v3  ;;  %v14052_v0 = vpop.f32.mrb[65].mxu0  ;;  %v14054_v47 = vpop.f32.mrb[65].mxu1 }
 0x1fc   : > { %15691 = vst [vmem:[#allocation88_spill] sm:$0xff] %v14052_v0  ;;  %15692 = vst [vmem:[#allocation89_spill] sm:$0xff] %v14054_v47  ;;  %v14060_v43 = vpop.f32.mrb[66].mxu0  ;;  %v14062_v56 = vpop.f32.mrb[66].mxu1  ;;  %v12632_v0 = vld [vmem:[%s13312_s6 + $0x4d8] sm:$0xff]  }
 0x1fd   : > { %15693 = vst [vmem:[#allocation90_spill] sm:$0xff] %v14060_v43  ;;  %15694 = vst [vmem:[#allocation91_spill] sm:$0xff] %v14062_v56  ;;  %v14068_v3 = vpop.f32.mrb[67].mxu0  ;;  %v14070_v59 = vpop.f32.mrb[67].mxu1 }
 0x1fe   : > { %15695 = vst [vmem:[#allocation92_spill] sm:$0xff] %v14068_v3  ;;  %15696 = vst [vmem:[#allocation93_spill] sm:$0xff] %v14070_v59  ;;  %v12629_v59 = vld [vmem:[%s13312_s6 + $0x6c8] sm:$0xff]   ;;  %v12631_v3 = vld [vmem:[%s13312_s6 + $0x6d0] sm:$0xff]  }
 0x1ff   : > { %12208 = vmatmul.mubr.msk.bf16.gmra.mrb[172].mxu0 %vm4801_vm2, %v12624_v31  ;;  %12340 = vmatmul.mubr.msk.bf16.gmra.mrb[172].mxu1 %vm4801_vm2, %v12625_v11 }
 0x200   : > { %12211 = vmatprep.mubr.msk.bf16.mxu0 %vm4801_vm2, %v12626_v38  ;;  %12343 = vmatprep.mubr.msk.bf16.mxu1 %vm4801_vm2, %v12627_v8  ;;  %v12630_v8 = vld [vmem:[%s13312_s6 + $0x4d0] sm:$0xff]  }
 0x202   : > { %v14078_v16 = vpop.f32.mrb[68].mxu0  ;;  %v14080_v22 = vpop.f32.mrb[68].mxu1 }
 0x203   : > { %15697 = vst [vmem:[#allocation94_spill] sm:$0xff] %v14078_v16  ;;  %15698 = vst [vmem:[#allocation95_spill] sm:$0xff] %v14080_v22  ;;  %v14084_v43 = vpop.f32.mrb[69].mxu0  ;;  %v14086_v47 = vpop.f32.mrb[69].mxu1 }
 0x204   : > { %15699 = vst [vmem:[#allocation96_spill] sm:$0xff] %v14084_v43  ;;  %15700 = vst [vmem:[#allocation97_spill] sm:$0xff] %v14086_v47  ;;  %v14092_v11 = vpop.f32.mrb[70].mxu0  ;;  %v14094_v38 = vpop.f32.mrb[70].mxu1  ;;  %v12636_v43 = vld [vmem:[%s13312_s6 + $0x4e8] sm:$0xff]  }
 0x205   : > { %15701 = vst [vmem:[#allocation98_spill] sm:$0xff] %v14092_v11  ;;  %15702 = vst [vmem:[#allocation99_spill] sm:$0xff] %v14094_v38  ;;  %v14100_v22 = vpop.f32.mrb[71].mxu0  ;;  %v14102_v16 = vpop.f32.mrb[71].mxu1 }
 0x206   : > { %15703 = vst [vmem:[#allocation100_spill] sm:$0xff] %v14100_v22  ;;  %15704 = vst [vmem:[#allocation101_spill] sm:$0xff] %v14102_v16  ;;  %v12633_v16 = vld [vmem:[%s13312_s6 + $0x6d8] sm:$0xff]   ;;  %v12635_v22 = vld [vmem:[%s13312_s6 + $0x6e0] sm:$0xff]  }
 0x207   : > { %12212 = vmatmul.mubr.msk.bf16.gmra.mrb[176].mxu0 %vm4801_vm2, %v12628_v27  ;;  %12344 = vmatmul.mubr.msk.bf16.gmra.mrb[176].mxu1 %vm4801_vm2, %v12629_v59 }
 0x208   : > { %12215 = vmatprep.mubr.msk.bf16.mxu0 %vm4801_vm2, %v12630_v8  ;;  %12347 = vmatprep.mubr.msk.bf16.mxu1 %vm4801_vm2, %v12631_v3  ;;  %v12634_v3 = vld [vmem:[%s13312_s6 + $0x4e0] sm:$0xff]  }
 0x20a   : > { %v14110_v31 = vpop.f32.mrb[72].mxu0  ;;  %v14112_v56 = vpop.f32.mrb[72].mxu1 }
 0x20b   : > { %15705 = vst [vmem:[#allocation102_spill] sm:$0xff] %v14110_v31  ;;  %15706 = vst [vmem:[#allocation103_spill] sm:$0xff] %v14112_v56  ;;  %v14116_v11 = vpop.f32.mrb[73].mxu0  ;;  %v14118_v47 = vpop.f32.mrb[73].mxu1 }
 0x20c   : > { %15707 = vst [vmem:[#allocation104_spill] sm:$0xff] %v14116_v11  ;;  %15708 = vst [vmem:[#allocation105_spill] sm:$0xff] %v14118_v47  ;;  %v14124_v59 = vpop.f32.mrb[74].mxu0  ;;  %v14126_v8 = vpop.f32.mrb[74].mxu1  ;;  %v12640_v11 = vld [vmem:[%s13312_s6 + $0x4f8] sm:$0xff]  }
 0x20d   : > { %15709 = vst [vmem:[#allocation106_spill] sm:$0xff] %v14124_v59  ;;  %15710 = vst [vmem:[#allocation107_spill] sm:$0xff] %v14126_v8  ;;  %v14132_v56 = vpop.f32.mrb[75].mxu0  ;;  %v14134_v31 = vpop.f32.mrb[75].mxu1 }
 0x20e   : > { %15711 = vst [vmem:[#allocation108_spill] sm:$0xff] %v14132_v56  ;;  %15712 = vst [vmem:[#allocation109_spill] sm:$0xff] %v14134_v31  ;;  %v12637_v31 = vld [vmem:[%s13312_s6 + $0x6e8] sm:$0xff]   ;;  %v12639_v56 = vld [vmem:[%s13312_s6 + $0x6f0] sm:$0xff]  }
 0x20f   : > { %12216 = vmatmul.mubr.msk.bf16.gmra.mrb[180].mxu0 %vm4801_vm2, %v12632_v0  ;;  %12348 = vmatmul.mubr.msk.bf16.gmra.mrb[180].mxu1 %vm4801_vm2, %v12633_v16 }
 0x210   : > { %12219 = vmatprep.mubr.msk.bf16.mxu0 %vm4801_vm2, %v12634_v3  ;;  %12351 = vmatprep.mubr.msk.bf16.mxu1 %vm4801_vm2, %v12635_v22  ;;  %v12638_v22 = vld [vmem:[%s13312_s6 + $0x4f0] sm:$0xff]  }
 0x212   : > { %v14142_v27 = vpop.f32.mrb[76].mxu0  ;;  %v14144_v38 = vpop.f32.mrb[76].mxu1 }
 0x213   : > { %15713 = vst [vmem:[#allocation110_spill] sm:$0xff] %v14142_v27  ;;  %15714 = vst [vmem:[#allocation111_spill] sm:$0xff] %v14144_v38  ;;  %v14148_v59 = vpop.f32.mrb[77].mxu0  ;;  %v14150_v47 = vpop.f32.mrb[77].mxu1 }
 0x214   : > { %15715 = vst [vmem:[#allocation112_spill] sm:$0xff] %v14148_v59  ;;  %15716 = vst [vmem:[#allocation113_spill] sm:$0xff] %v14150_v47  ;;  %v14156_v16 = vpop.f32.mrb[78].mxu0  ;;  %v14158_v3 = vpop.f32.mrb[78].mxu1  ;;  %v12644_v59 = vld [vmem:[%s13312_s6 + $0x508] sm:$0xff]  }
 0x215   : > { %15717 = vst [vmem:[#allocation114_spill] sm:$0xff] %v14156_v16  ;;  %15718 = vst [vmem:[#allocation115_spill] sm:$0xff] %v14158_v3  ;;  %v14164_v38 = vpop.f32.mrb[79].mxu0  ;;  %v14166_v27 = vpop.f32.mrb[79].mxu1 }
 0x216   : > { %15719 = vst [vmem:[#allocation116_spill] sm:$0xff] %v14164_v38  ;;  %15720 = vst [vmem:[#allocation117_spill] sm:$0xff] %v14166_v27  ;;  %v12641_v27 = vld [vmem:[%s13312_s6 + $0x6f8] sm:$0xff]   ;;  %v12643_v38 = vld [vmem:[%s13312_s6 + $0x700] sm:$0xff]  }
 0x217   : > { %12220 = vmatmul.mubr.msk.bf16.gmra.mrb[184].mxu0 %vm4801_vm2, %v12636_v43  ;;  %12352 = vmatmul.mubr.msk.bf16.gmra.mrb[184].mxu1 %vm4801_vm2, %v12637_v31 }
 0x218   : > { %12223 = vmatprep.mubr.msk.bf16.mxu0 %vm4801_vm2, %v12638_v22  ;;  %12355 = vmatprep.mubr.msk.bf16.mxu1 %vm4801_vm2, %v12639_v56  ;;  %v12642_v56 = vld [vmem:[%s13312_s6 + $0x500] sm:$0xff]  }
 0x21a   : > { %v14174_v0 = vpop.f32.mrb[80].mxu0  ;;  %v14176_v8 = vpop.f32.mrb[80].mxu1 }
 0x21b   : > { %15721 = vst [vmem:[#allocation118_spill] sm:$0xff] %v14174_v0  ;;  %15722 = vst [vmem:[#allocation119_spill] sm:$0xff] %v14176_v8  ;;  %v14180_v16 = vpop.f32.mrb[81].mxu0  ;;  %v14182_v47 = vpop.f32.mrb[81].mxu1 }
 0x21c   : > { %15723 = vst [vmem:[#allocation120_spill] sm:$0xff] %v14180_v16  ;;  %15724 = vst [vmem:[#allocation121_spill] sm:$0xff] %v14182_v47  ;;  %v14188_v31 = vpop.f32.mrb[82].mxu0  ;;  %v14190_v22 = vpop.f32.mrb[82].mxu1  ;;  %v12648_v16 = vld [vmem:[%s13312_s6 + $0x518] sm:$0xff]  }
 0x21d   : > { %15725 = vst [vmem:[#allocation122_spill] sm:$0xff] %v14188_v31  ;;  %15726 = vst [vmem:[#allocation123_spill] sm:$0xff] %v14190_v22  ;;  %v14196_v8 = vpop.f32.mrb[83].mxu0  ;;  %v14198_v0 = vpop.f32.mrb[83].mxu1 }
 0x21e   : > { %15727 = vst [vmem:[#allocation124_spill] sm:$0xff] %v14196_v8  ;;  %15728 = vst [vmem:[#allocation125_spill] sm:$0xff] %v14198_v0  ;;  %v12645_v0 = vld [vmem:[%s13312_s6 + $0x708] sm:$0xff]   ;;  %v12647_v8 = vld [vmem:[%s13312_s6 + $0x710] sm:$0xff]  }
 0x21f   : > { %12224 = vmatmul.mubr.msk.bf16.gmra.mrb[188].mxu0 %vm4801_vm2, %v12640_v11  ;;  %12356 = vmatmul.mubr.msk.bf16.gmra.mrb[188].mxu1 %vm4801_vm2, %v12641_v27 }
 0x220   : > { %12227 = vmatprep.mubr.msk.bf16.mxu0 %vm4801_vm2, %v12642_v56  ;;  %12359 = vmatprep.mubr.msk.bf16.mxu1 %vm4801_vm2, %v12643_v38  ;;  %v12646_v38 = vld [vmem:[%s13312_s6 + $0x510] sm:$0xff]  }
 0x222   : > { %v14206_v43 = vpop.f32.mrb[84].mxu0  ;;  %v14208_v3 = vpop.f32.mrb[84].mxu1 }
 0x223   : > { %15729 = vst [vmem:[#allocation126_spill] sm:$0xff] %v14206_v43  ;;  %15730 = vst [vmem:[#allocation127_spill] sm:$0xff] %v14208_v3  ;;  %v14212_v31 = vpop.f32.mrb[85].mxu0  ;;  %v14214_v47 = vpop.f32.mrb[85].mxu1 }
 0x224   : > { %15731 = vst [vmem:[#allocation128_spill] sm:$0xff] %v14212_v31  ;;  %15732 = vst [vmem:[#allocation129_spill] sm:$0xff] %v14214_v47  ;;  %v14220_v27 = vpop.f32.mrb[86].mxu0  ;;  %v14222_v56 = vpop.f32.mrb[86].mxu1  ;;  %v12652_v31 = vld [vmem:[%s13312_s6 + $0x528] sm:$0xff]  }
 0x225   : > { %15733 = vst [vmem:[#allocation130_spill] sm:$0xff] %v14220_v27  ;;  %15734 = vst [vmem:[#allocation131_spill] sm:$0xff] %v14222_v56  ;;  %v14228_v3 = vpop.f32.mrb[87].mxu0  ;;  %v14230_v43 = vpop.f32.mrb[87].mxu1 }
 0x226   : > { %15735 = vst [vmem:[#allocation132_spill] sm:$0xff] %v14228_v3  ;;  %15736 = vst [vmem:[#allocation133_spill] sm:$0xff] %v14230_v43  ;;  %v12649_v43 = vld [vmem:[%s13312_s6 + $0x718] sm:$0xff]   ;;  %v12651_v3 = vld [vmem:[%s13312_s6 + $0x720] sm:$0xff]  }
 0x227   : > { %12228 = vmatmul.mubr.msk.bf16.gmra.mrb[192].mxu0 %vm4801_vm2, %v12644_v59  ;;  %12360 = vmatmul.mubr.msk.bf16.gmra.mrb[192].mxu1 %vm4801_vm2, %v12645_v0 }
 0x228   : > { %12231 = vmatprep.mubr.msk.bf16.mxu0 %vm4801_vm2, %v12646_v38  ;;  %12363 = vmatprep.mubr.msk.bf16.mxu1 %vm4801_vm2, %v12647_v8  ;;  %v12650_v8 = vld [vmem:[%s13312_s6 + $0x520] sm:$0xff]  }
 0x22a   : > { %v14238_v11 = vpop.f32.mrb[88].mxu0  ;;  %v14240_v22 = vpop.f32.mrb[88].mxu1 }
 0x22b   : > { %15737 = vst [vmem:[#allocation134_spill] sm:$0xff] %v14238_v11  ;;  %15738 = vst [vmem:[#allocation135_spill] sm:$0xff] %v14240_v22  ;;  %v14244_v27 = vpop.f32.mrb[89].mxu0  ;;  %v14246_v47 = vpop.f32.mrb[89].mxu1 }
 0x22c   : > { %15739 = vst [vmem:[#allocation136_spill] sm:$0xff] %v14244_v27  ;;  %15740 = vst [vmem:[#allocation137_spill] sm:$0xff] %v14246_v47  ;;  %v14252_v0 = vpop.f32.mrb[90].mxu0  ;;  %v14254_v38 = vpop.f32.mrb[90].mxu1  ;;  %v12656_v27 = vld [vmem:[%s13312_s6 + $0x538] sm:$0xff]  }
 0x22d   : > { %15741 = vst [vmem:[#allocation138_spill] sm:$0xff] %v14252_v0  ;;  %15742 = vst [vmem:[#allocation139_spill] sm:$0xff] %v14254_v38  ;;  %v14260_v22 = vpop.f32.mrb[91].mxu0  ;;  %v14262_v11 = vpop.f32.mrb[91].mxu1 }
 0x22e   : > { %15743 = vst [vmem:[#allocation140_spill] sm:$0xff] %v14260_v22  ;;  %15744 = vst [vmem:[#allocation141_spill] sm:$0xff] %v14262_v11  ;;  %v12653_v11 = vld [vmem:[%s13312_s6 + $0x728] sm:$0xff]   ;;  %v12655_v22 = vld [vmem:[%s13312_s6 + $0x730] sm:$0xff]  }
 0x22f   : > { %12232 = vmatmul.mubr.msk.bf16.gmra.mrb[196].mxu0 %vm4801_vm2, %v12648_v16  ;;  %12364 = vmatmul.mubr.msk.bf16.gmra.mrb[196].mxu1 %vm4801_vm2, %v12649_v43 }
 0x230   : > { %12235 = vmatprep.mubr.msk.bf16.mxu0 %vm4801_vm2, %v12650_v8  ;;  %12367 = vmatprep.mubr.msk.bf16.mxu1 %vm4801_vm2, %v12651_v3  ;;  %v12654_v3 = vld [vmem:[%s13312_s6 + $0x530] sm:$0xff]  }
 0x232   : > { %v14270_v59 = vpop.f32.mrb[92].mxu0  ;;  %v14272_v56 = vpop.f32.mrb[92].mxu1 }
 0x233   : > { %15745 = vst [vmem:[#allocation142_spill] sm:$0xff] %v14270_v59  ;;  %15746 = vst [vmem:[#allocation143_spill] sm:$0xff] %v14272_v56  ;;  %v14276_v0 = vpop.f32.mrb[93].mxu0  ;;  %v14278_v47 = vpop.f32.mrb[93].mxu1 }
 0x234   : > { %15747 = vst [vmem:[#allocation144_spill] sm:$0xff] %v14276_v0  ;;  %15748 = vst [vmem:[#allocation145_spill] sm:$0xff] %v14278_v47  ;;  %v14284_v43 = vpop.f32.mrb[94].mxu0  ;;  %v14286_v8 = vpop.f32.mrb[94].mxu1  ;;  %v12660_v0 = vld [vmem:[%s13312_s6 + $0x548] sm:$0xff]  }
 0x235   : > { %15749 = vst [vmem:[#allocation146_spill] sm:$0xff] %v14284_v43  ;;  %15750 = vst [vmem:[#allocation147_spill] sm:$0xff] %v14286_v8  ;;  %v14292_v56 = vpop.f32.mrb[95].mxu0  ;;  %v14294_v59 = vpop.f32.mrb[95].mxu1 }
 0x236   : > { %15751 = vst [vmem:[#allocation148_spill] sm:$0xff] %v14292_v56  ;;  %15752 = vst [vmem:[#allocation149_spill] sm:$0xff] %v14294_v59  ;;  %v12657_v59 = vld [vmem:[%s13312_s6 + $0x738] sm:$0xff]   ;;  %v12659_v56 = vld [vmem:[%s13312_s6 + $0x740] sm:$0xff]  }
 0x237   : > { %12236 = vmatmul.mubr.msk.bf16.gmra.mrb[200].mxu0 %vm4801_vm2, %v12652_v31  ;;  %12368 = vmatmul.mubr.msk.bf16.gmra.mrb[200].mxu1 %vm4801_vm2, %v12653_v11 }
 0x238   : > { %12239 = vmatprep.mubr.msk.bf16.mxu0 %vm4801_vm2, %v12654_v3  ;;  %12371 = vmatprep.mubr.msk.bf16.mxu1 %vm4801_vm2, %v12655_v22  ;;  %v12658_v22 = vld [vmem:[%s13312_s6 + $0x540] sm:$0xff]  }
 0x23a   : > { %v14302_v16 = vpop.f32.mrb[96].mxu0  ;;  %v14304_v38 = vpop.f32.mrb[96].mxu1 }
 0x23b   : > { %15753 = vst [vmem:[#allocation150_spill] sm:$0xff] %v14302_v16  ;;  %15754 = vst [vmem:[#allocation151_spill] sm:$0xff] %v14304_v38  ;;  %v14308_v43 = vpop.f32.mrb[97].mxu0  ;;  %v14310_v47 = vpop.f32.mrb[97].mxu1 }
 0x23c   : > { %15755 = vst [vmem:[#allocation152_spill] sm:$0xff] %v14308_v43  ;;  %15756 = vst [vmem:[#allocation153_spill] sm:$0xff] %v14310_v47  ;;  %v14316_v11 = vpop.f32.mrb[98].mxu0  ;;  %v14318_v3 = vpop.f32.mrb[98].mxu1  ;;  %v12664_v43 = vld [vmem:[%s13312_s6 + $0x558] sm:$0xff]  }
 0x23d   : > { %15757 = vst [vmem:[#allocation154_spill] sm:$0xff] %v14316_v11  ;;  %15758 = vst [vmem:[#allocation155_spill] sm:$0xff] %v14318_v3  ;;  %v14324_v38 = vpop.f32.mrb[99].mxu0  ;;  %v14326_v16 = vpop.f32.mrb[99].mxu1 }
 0x23e   : > { %15759 = vst [vmem:[#allocation156_spill] sm:$0xff] %v14324_v38  ;;  %15760 = vst [vmem:[#allocation157_spill] sm:$0xff] %v14326_v16  ;;  %v12661_v16 = vld [vmem:[%s13312_s6 + $0x748] sm:$0xff]   ;;  %v12663_v38 = vld [vmem:[%s13312_s6 + $0x750] sm:$0xff]  }
 0x23f   : > { %12240 = vmatmul.mubr.msk.bf16.gmra.mrb[204].mxu0 %vm4801_vm2, %v12656_v27  ;;  %12372 = vmatmul.mubr.msk.bf16.gmra.mrb[204].mxu1 %vm4801_vm2, %v12657_v59 }
 0x240   : > { %12243 = vmatprep.mubr.msk.bf16.mxu0 %vm4801_vm2, %v12658_v22  ;;  %12375 = vmatprep.mubr.msk.bf16.mxu1 %vm4801_vm2, %v12659_v56  ;;  %v12662_v56 = vld [vmem:[%s13312_s6 + $0x550] sm:$0xff]  }
 0x242   : > { %v14334_v31 = vpop.f32.mrb[100].mxu0  ;;  %v14336_v8 = vpop.f32.mrb[100].mxu1 }
 0x243   : > { %15761 = vst [vmem:[#allocation158_spill] sm:$0xff] %v14334_v31  ;;  %15762 = vst [vmem:[#allocation159_spill] sm:$0xff] %v14336_v8  ;;  %v14340_v11 = vpop.f32.mrb[101].mxu0  ;;  %v14342_v47 = vpop.f32.mrb[101].mxu1 }
 0x244   : > { %15763 = vst [vmem:[#allocation160_spill] sm:$0xff] %v14340_v11  ;;  %15764 = vst [vmem:[#allocation161_spill] sm:$0xff] %v14342_v47  ;;  %v14348_v59 = vpop.f32.mrb[102].mxu0  ;;  %v14350_v22 = vpop.f32.mrb[102].mxu1  ;;  %v12668_v11 = vld [vmem:[%s13312_s6 + $0x568] sm:$0xff]  }
 0x245   : > { %15765 = vst [vmem:[#allocation162_spill] sm:$0xff] %v14348_v59  ;;  %15766 = vst [vmem:[#allocation163_spill] sm:$0xff] %v14350_v22  ;;  %v14356_v8 = vpop.f32.mrb[103].mxu0  ;;  %v14358_v31 = vpop.f32.mrb[103].mxu1 }
 0x246   : > { %15767 = vst [vmem:[#allocation164_spill] sm:$0xff] %v14356_v8  ;;  %15768 = vst [vmem:[#allocation165_spill] sm:$0xff] %v14358_v31  ;;  %v12665_v31 = vld [vmem:[%s13312_s6 + $0x758] sm:$0xff]   ;;  %v12667_v8 = vld [vmem:[%s13312_s6 + $0x760] sm:$0xff]  }
 0x247   : > { %12244 = vmatmul.mubr.msk.bf16.gmra.mrb[208].mxu0 %vm4801_vm2, %v12660_v0  ;;  %12376 = vmatmul.mubr.msk.bf16.gmra.mrb[208].mxu1 %vm4801_vm2, %v12661_v16 }
 0x248   : > { %12247 = vmatprep.mubr.msk.bf16.mxu0 %vm4801_vm2, %v12662_v56  ;;  %12379 = vmatprep.mubr.msk.bf16.mxu1 %vm4801_vm2, %v12663_v38  ;;  %v12666_v38 = vld [vmem:[%s13312_s6 + $0x560] sm:$0xff]  }
 0x24a   : > { %v14366_v27 = vpop.f32.mrb[104].mxu0  ;;  %v14368_v3 = vpop.f32.mrb[104].mxu1 }
 0x24b   : > { %15769 = vst [vmem:[#allocation166_spill] sm:$0xff] %v14366_v27  ;;  %15770 = vst [vmem:[#allocation167_spill] sm:$0xff] %v14368_v3  ;;  %v14372_v59 = vpop.f32.mrb[105].mxu0  ;;  %v14374_v47 = vpop.f32.mrb[105].mxu1 }
 0x24c   : > { %15771 = vst [vmem:[#allocation168_spill] sm:$0xff] %v14372_v59  ;;  %15772 = vst [vmem:[#allocation169_spill] sm:$0xff] %v14374_v47  ;;  %v14380_v16 = vpop.f32.mrb[106].mxu0  ;;  %v14382_v56 = vpop.f32.mrb[106].mxu1  ;;  %v12672_v59 = vld [vmem:[%s13312_s6 + $0x578] sm:$0xff]  }
 0x24d   : > { %15773 = vst [vmem:[#allocation170_spill] sm:$0xff] %v14380_v16  ;;  %15774 = vst [vmem:[#allocation171_spill] sm:$0xff] %v14382_v56  ;;  %v14388_v3 = vpop.f32.mrb[107].mxu0  ;;  %v14390_v27 = vpop.f32.mrb[107].mxu1 }
 0x24e   : > { %15775 = vst [vmem:[#allocation172_spill] sm:$0xff] %v14388_v3  ;;  %15776 = vst [vmem:[#allocation173_spill] sm:$0xff] %v14390_v27  ;;  %v12669_v27 = vld [vmem:[%s13312_s6 + $0x768] sm:$0xff]   ;;  %v12671_v3 = vld [vmem:[%s13312_s6 + $0x770] sm:$0xff]  }
 0x24f   : > { %12248 = vmatmul.mubr.msk.bf16.gmra.mrb[212].mxu0 %vm4801_vm2, %v12664_v43  ;;  %12380 = vmatmul.mubr.msk.bf16.gmra.mrb[212].mxu1 %vm4801_vm2, %v12665_v31 }
 0x250   : > { %12251 = vmatprep.mubr.msk.bf16.mxu0 %vm4801_vm2, %v12666_v38  ;;  %12383 = vmatprep.mubr.msk.bf16.mxu1 %vm4801_vm2, %v12667_v8  ;;  %v12670_v8 = vld [vmem:[%s13312_s6 + $0x570] sm:$0xff]  }
 0x252   : > { %v14398_v0 = vpop.f32.mrb[108].mxu0  ;;  %v14400_v22 = vpop.f32.mrb[108].mxu1 }
 0x253   : > { %15777 = vst [vmem:[#allocation174_spill] sm:$0xff] %v14398_v0  ;;  %15778 = vst [vmem:[#allocation175_spill] sm:$0xff] %v14400_v22  ;;  %v14404_v16 = vpop.f32.mrb[109].mxu0  ;;  %v14406_v47 = vpop.f32.mrb[109].mxu1 }
 0x254   : > { %15779 = vst [vmem:[#allocation176_spill] sm:$0xff] %v14404_v16  ;;  %15780 = vst [vmem:[#allocation177_spill] sm:$0xff] %v14406_v47  ;;  %v14412_v31 = vpop.f32.mrb[110].mxu0  ;;  %v14414_v38 = vpop.f32.mrb[110].mxu1  ;;  %v12676_v16 = vld [vmem:[%s13312_s6 + $0x588] sm:$0xff]  }
 0x255   : > { %15781 = vst [vmem:[#allocation178_spill] sm:$0xff] %v14412_v31  ;;  %15782 = vst [vmem:[#allocation179_spill] sm:$0xff] %v14414_v38  ;;  %v14420_v22 = vpop.f32.mrb[111].mxu0  ;;  %v14422_v0 = vpop.f32.mrb[111].mxu1 }
 0x256   : > { %15783 = vst [vmem:[#allocation180_spill] sm:$0xff] %v14420_v22  ;;  %15784 = vst [vmem:[#allocation181_spill] sm:$0xff] %v14422_v0  ;;  %v12673_v0 = vld [vmem:[%s13312_s6 + $0x778] sm:$0xff]   ;;  %v12675_v22 = vld [vmem:[%s13312_s6 + $0x780] sm:$0xff]  }
 0x257   : > { %12252 = vmatmul.mubr.msk.bf16.gmra.mrb[216].mxu0 %vm4801_vm2, %v12668_v11  ;;  %12384 = vmatmul.mubr.msk.bf16.gmra.mrb[216].mxu1 %vm4801_vm2, %v12669_v27 }
 0x258   : > { %12255 = vmatprep.mubr.msk.bf16.mxu0 %vm4801_vm2, %v12670_v8  ;;  %12387 = vmatprep.mubr.msk.bf16.mxu1 %vm4801_vm2, %v12671_v3  ;;  %v12674_v3 = vld [vmem:[%s13312_s6 + $0x580] sm:$0xff]  }
 0x25a   : > { %v14430_v43 = vpop.f32.mrb[112].mxu0  ;;  %v14432_v56 = vpop.f32.mrb[112].mxu1 }
 0x25b   : > { %15785 = vst [vmem:[#allocation182_spill] sm:$0xff] %v14430_v43  ;;  %15786 = vst [vmem:[#allocation183_spill] sm:$0xff] %v14432_v56  ;;  %v14436_v31 = vpop.f32.mrb[113].mxu0  ;;  %v14438_v47 = vpop.f32.mrb[113].mxu1 }
 0x25c   : > { %15787 = vst [vmem:[#allocation184_spill] sm:$0xff] %v14436_v31  ;;  %15788 = vst [vmem:[#allocation185_spill] sm:$0xff] %v14438_v47  ;;  %v14444_v27 = vpop.f32.mrb[114].mxu0  ;;  %v14446_v8 = vpop.f32.mrb[114].mxu1  ;;  %v12680_v31 = vld [vmem:[%s13312_s6 + $0x598] sm:$0xff]  }
 0x25d   : > { %15789 = vst [vmem:[#allocation186_spill] sm:$0xff] %v14444_v27  ;;  %15790 = vst [vmem:[#allocation187_spill] sm:$0xff] %v14446_v8  ;;  %v14452_v56 = vpop.f32.mrb[115].mxu0  ;;  %v14454_v43 = vpop.f32.mrb[115].mxu1 }
 0x25e   : > { %15791 = vst [vmem:[#allocation188_spill] sm:$0xff] %v14452_v56  ;;  %15792 = vst [vmem:[#allocation189_spill] sm:$0xff] %v14454_v43  ;;  %v12677_v43 = vld [vmem:[%s13312_s6 + $0x788] sm:$0xff]   ;;  %v12679_v56 = vld [vmem:[%s13312_s6 + $0x790] sm:$0xff]  }
 0x25f   : > { %12256 = vmatmul.mubr.msk.bf16.gmra.mrb[220].mxu0 %vm4801_vm2, %v12672_v59  ;;  %12388 = vmatmul.mubr.msk.bf16.gmra.mrb[220].mxu1 %vm4801_vm2, %v12673_v0 }
 0x260   : > { %12259 = vmatprep.mubr.msk.bf16.mxu0 %vm4801_vm2, %v12674_v3  ;;  %12391 = vmatprep.mubr.msk.bf16.mxu1 %vm4801_vm2, %v12675_v22  ;;  %v12678_v22 = vld [vmem:[%s13312_s6 + $0x590] sm:$0xff]  }
 0x262   : > { %v14462_v11 = vpop.f32.mrb[116].mxu0  ;;  %v14464_v38 = vpop.f32.mrb[116].mxu1 }
 0x263   : > { %15793 = vst [vmem:[#allocation190_spill] sm:$0xff] %v14462_v11  ;;  %15794 = vst [vmem:[#allocation191_spill] sm:$0xff] %v14464_v38  ;;  %v14468_v27 = vpop.f32.mrb[117].mxu0  ;;  %v14470_v47 = vpop.f32.mrb[117].mxu1 }
 0x264   : > { %15795 = vst [vmem:[#allocation192_spill] sm:$0xff] %v14468_v27  ;;  %15796 = vst [vmem:[#allocation193_spill] sm:$0xff] %v14470_v47  ;;  %v14476_v0 = vpop.f32.mrb[118].mxu0  ;;  %v14478_v3 = vpop.f32.mrb[118].mxu1 }
 0x265   : > { %15797 = vst [vmem:[#allocation194_spill] sm:$0xff] %v14476_v0  ;;  %15798 = vst [vmem:[#allocation195_spill] sm:$0xff] %v14478_v3  ;;  %v14484_v38 = vpop.f32.mrb[119].mxu0  ;;  %v14486_v11 = vpop.f32.mrb[119].mxu1 }
 0x266   : > { %15799 = vst [vmem:[#allocation196_spill] sm:$0xff] %v14484_v38  ;;  %15800 = vst [vmem:[#allocation197_spill] sm:$0xff] %v14486_v11  ;;  %v12681_v11 = vld [vmem:[%s13312_s6 + $0x798] sm:$0xff]   ;;  %v12683_v38 = vld [vmem:[%s13312_s6 + $0x7a0] sm:$0xff]  }
 0x267   : > { %12260 = vmatmul.mubr.msk.bf16.gmra.mrb[224].mxu0 %vm4801_vm2, %v12676_v16  ;;  %12392 = vmatmul.mubr.msk.bf16.gmra.mrb[224].mxu1 %vm4801_vm2, %v12677_v43 }
 0x268   : > { %12263 = vmatprep.mubr.msk.bf16.mxu0 %vm4801_vm2, %v12678_v22  ;;  %12395 = vmatprep.mubr.msk.bf16.mxu1 %vm4801_vm2, %v12679_v56  ;;  %v12682_v56 = vld [vmem:[%s13312_s6 + $0x5a0] sm:$0xff]  }
 0x26a   : > { %v14494_v59 = vpop.f32.mrb[120].mxu0  ;;  %v14496_v8 = vpop.f32.mrb[120].mxu1 }
 0x26b   : > { %15801 = vst [vmem:[#allocation198_spill] sm:$0xff] %v14494_v59  ;;  %15802 = vst [vmem:[#allocation199_spill] sm:$0xff] %v14496_v8  ;;  %v14500_v0 = vpop.f32.mrb[121].mxu0  ;;  %v14502_v47 = vpop.f32.mrb[121].mxu1 }
 0x26c   : > { %15803 = vst [vmem:[#allocation200_spill] sm:$0xff] %v14500_v0  ;;  %15804 = vst [vmem:[#allocation201_spill] sm:$0xff] %v14502_v47  ;;  %v14508_v43 = vpop.f32.mrb[122].mxu0  ;;  %v14510_v22 = vpop.f32.mrb[122].mxu1  ;;  %v12687_v47 = vld [vmem:[%s13312_s6 + $0x7b0] sm:$0xff]  }
 0x26d   : > { %15805 = vst [vmem:[#allocation202_spill] sm:$0xff] %v14508_v43  ;;  %15806 = vst [vmem:[#allocation203_spill] sm:$0xff] %v14510_v22  ;;  %v14516_v8 = vpop.f32.mrb[123].mxu0  ;;  %v14518_v59 = vpop.f32.mrb[123].mxu1 }
 0x26e   : > { %15807 = vst [vmem:[#allocation204_spill] sm:$0xff] %v14516_v8  ;;  %15808 = vst [vmem:[#allocation205_spill] sm:$0xff] %v14518_v59  ;;  %v12684_v59 = vld [vmem:[%s13312_s6 + $0x5a8] sm:$0xff]  }
 0x26f   : > { %12264 = vmatmul.mubr.msk.bf16.gmra.mrb[228].mxu0 %vm4801_vm2, %v12680_v31  ;;  %12396 = vmatmul.mubr.msk.bf16.gmra.mrb[228].mxu1 %vm4801_vm2, %v12681_v11  ;;  %v12685_v31 = vld [vmem:[%s13312_s6 + $0x7a8] sm:$0xff]  }
 0x270   : > { %12267 = vmatprep.mubr.msk.bf16.mxu0 %vm4801_vm2, %v12682_v56  ;;  %12399 = vmatprep.mubr.msk.bf16.mxu1 %vm4801_vm2, %v12683_v38  ;;  %v12686_v38 = vld [vmem:[%s13312_s6 + $0x5b0] sm:$0xff]  }
 0x272   : > { %v14526_v16 = vpop.f32.mrb[124].mxu0  ;;  %v14528_v3 = vpop.f32.mrb[124].mxu1 }
 0x273   : > { %15809 = vst [vmem:[#allocation206_spill] sm:$0xff] %v14526_v16  ;;  %15810 = vst [vmem:[#allocation207_spill] sm:$0xff] %v14528_v3  ;;  %v14532_v43 = vpop.f32.mrb[125].mxu0  ;;  %v14534_v27 = vpop.f32.mrb[125].mxu1 }
 0x274   : > { %15811 = vst [vmem:[#allocation208_spill] sm:$0xff] %v14532_v43  ;;  %15812 = vst [vmem:[#allocation209_spill] sm:$0xff] %v14534_v27  ;;  %v14540_v8 = vpop.f32.mrb[126].mxu0  ;;  %v14542_v56 = vpop.f32.mrb[126].mxu1 }
 0x275   : > { %15813 = vst [vmem:[#allocation210_spill] sm:$0xff] %v14540_v8  ;;  %15814 = vst [vmem:[#allocation211_spill] sm:$0xff] %v14542_v56  ;;  %v14550_v3 = vpop.f32.mrb[127].mxu0  ;;  %v14552_v16 = vpop.f32.mrb[127].mxu1  ;;  %v15817_v8 = vmax.f32 %v13536_v54, %v13538_v55  ;;  %v12690_v54 = vld [vmem:[%s13312_s6 + $0x5c0] sm:$0xff]  }
 0x276   : > { %15815 = vst [vmem:[#allocation212_spill] sm:$0xff] %v14550_v3  ;;  %15816 = vst [vmem:[#allocation213_spill] sm:$0xff] %v14552_v16  ;;  %v12688_v16 = vld [vmem:[%s13312_s6 + $0x5b8] sm:$0xff]   ;;  %v14570_v3 = vld [vmem:[%s15393_s2] ss:$0 sm:$0xff] }
 0x277   : > { %12268 = vmatmul.mubr.msk.bf16.gmra.mrb[232].mxu0 %vm4801_vm2, %v12684_v59  ;;  %12400 = vmatmul.mubr.msk.bf16.gmra.mrb[232].mxu1 %vm4801_vm2, %v12685_v31  ;;  %v12689_v31 = vld [vmem:[%s13312_s6 + $0x7b8] sm:$0xff]   ;;  %v12691_v55 = vld [vmem:[%s13312_s6 + $0x7c0] sm:$0xff]  }
 0x278   : > { %12271 = vmatprep.mubr.msk.bf16.mxu0 %vm4801_vm2, %v12686_v38  ;;  %12403 = vmatprep.mubr.msk.bf16.mxu1 %vm4801_vm2, %v12687_v47  ;;  %v15818_v47 = vmax.f32 %v13542_v57, %v13544_v58 }
 0x27a   : > { %v12165_v22 = vpop.f32.mrb[128].mxu0  ;;  %v12297_v56 = vpop.f32.mrb[128].mxu1 }
 0x27b   : > { %v8048_v27 = vmax.f32 %v15817_v8, %v12165_v22  ;;  %v7535_v11 = vpop.f32.mrb[129].mxu0  ;;  %v8849_v59 = vpop.f32.mrb[129].mxu1  ;;  %v15819_v22 = vmax.f32 %v13548_v60, %v13550_v61 }
 0x27c   : > { %v8046_v38 = vmax.f32 %v15818_v47, %v7535_v11  ;;  %v12166_v43 = vpop.f32.mrb[130].mxu0  ;;  %v12298_v0 = vpop.f32.mrb[130].mxu1  ;;  %v15822_v47 = vmax.f32 %v13574_v9, %v13576_v10 }
 0x27d   : > { %v9362_v8 = vmax.f32 %v8048_v27, %v12297_v56  ;;  %v8049_v19 = vmax.f32 %v15819_v22, %v12166_v43  ;;  %v7538_v62 = vpop.f32.mrb[131].mxu0  ;;  %v8852_v5 = vpop.f32.mrb[131].mxu1  ;;  %v12692_v43 = vld [vmem:[%s13312_s6 + $0x5c8] sm:$0xff]   ;;  %v12695_v22 = vld [vmem:[%s13312_s6 + $0x7d0] sm:$0xff]  }
 0x27e   : > { %v9360_v32 = vmax.f32 %v8046_v38, %v8849_v59  ;;  %v8047_v30 = vmax.f32 %v15820_v35, %v7538_v62  ;;  %v12693_v56 = vld [vmem:[%s13312_s6 + $0x7c8] sm:$0xff]  }
 0x27f   : > { %v9497_v57 = vadd.f32 %v14570_v3, %v9362_v8  ;;  %v9363_v58 = vmax.f32 %v8049_v19, %v12298_v0  ;;  %12272 = vmatmul.mubr.msk.bf16.gmra.mrb[236].mxu0 %vm4801_vm2, %v12688_v16  ;;  %12404 = vmatmul.mubr.msk.bf16.gmra.mrb[236].mxu1 %vm4801_vm2, %v12689_v31  ;;  %v12694_v8 = vld [vmem:[%s13312_s6 + $0x5d0] sm:$0xff]  }
 0x280   : > { %v9495_v27 = vadd.f32 %v14570_v3, %v9360_v32  ;;  %v9361_v11 = vmax.f32 %v8047_v30, %v8852_v5  ;;  %12275 = vmatprep.mubr.msk.bf16.mxu0 %vm4801_vm2, %v12690_v54  ;;  %12407 = vmatprep.mubr.msk.bf16.mxu1 %vm4801_vm2, %v12691_v55  ;;  %v15821_v5 = vmax.f32 %v13568_v6, %v13570_v7 }
 0x281   : > { %v9625_v60 = vmax.f32 %v9497_v57, 0.0  ;;  %v9498_v61 = vadd.f32 %v14570_v3, %v9363_v58  ;;  %v15823_v57 = vmax.f32 %v13580_v12, %v13582_v13 }
 0x282   : > { %v9623_v1 = vmax.f32 %v9495_v27, 0.0  ;;  %v9496_v2 = vadd.f32 %v14570_v3, %v9361_v11  ;;  %v12169_v19 = vpop.f32.mrb[132].mxu0  ;;  %v12301_v32 = vpop.f32.mrb[132].mxu1 }
 0x283   : > { %v11505_v35 = vpack.c.bf16 %v9625_v60, %v9625_v60  ;;  %v9626_v62 = vmax.f32 %v9498_v61, 0.0  ;;  %v8052_v30 = vmax.f32 %v15821_v5, %v12169_v19  ;;  %v7551_v0 = vpop.f32.mrb[133].mxu0  ;;  %v8865_v16 = vpop.f32.mrb[133].mxu1  ;;  %v15824_v60 = vmax.f32 %v13588_v17, %v13590_v18 }
 0x284   : > { %v11503_v59 = vpack.c.bf16 %v9623_v1, %v9623_v1  ;;  %v9624_v31 = vmax.f32 %v9496_v2, 0.0  ;;  %v8050_v38 = vmax.f32 %v15822_v47, %v7551_v0  ;;  %v12170_v54 = vpop.f32.mrb[134].mxu0  ;;  %v12302_v55 = vpop.f32.mrb[134].mxu1  ;;  %v15825_v0 = vmax.f32 %v13598_v20, %v13600_v21 }
 0x285   : > { %10266 = vst.msk [vmem:[%s14594_s14 + $0x8] sm:$0xf] %vm10263_vm3, %v11505_v35  ;;  %v11506_v6 = vpack.c.bf16 %v9626_v62, %v9626_v62  ;;  %v9366_v7 = vmax.f32 %v8052_v30, %v12301_v32  ;;  %v8053_v58 = vmax.f32 %v15823_v57, %v12170_v54  ;;  %v7554_v27 = vpop.f32.mrb[135].mxu0  ;;  %v8868_v11 = vpop.f32.mrb[135].mxu1  ;;  %v15826_v54 = vmax.f32 %v13604_v23, %v13606_v24 }
 0x286   : > { %10264 = vst.msk [vmem:[%s14594_s14] sm:$0xf] %vm10263_vm3, %v11503_v59  ;;  %v11504_v9 = vpack.c.bf16 %v9624_v31, %v9624_v31  ;;  %v9364_v10 = vmax.f32 %v8050_v38, %v8865_v16  ;;  %v8051_v61 = vmax.f32 %v15824_v60, %v7554_v27  ;;  %v12696_v59 = vld [vmem:[%s13312_s6 + $0x5d8] sm:$0xff]   ;;  %v15827_v57 = vmax.f32 %v13612_v28, %v13614_v29 }
 0x287   : > { %10267 = vst.msk [vmem:[%s14594_s14 + $0xc] sm:$0xf] %vm10263_vm3, %v11506_v6  ;;  %v9501_v1 = vadd.f32 %v14570_v3, %v9366_v7  ;;  %v9367_v2 = vmax.f32 %v8053_v58, %v12302_v55  ;;  %12276 = vmatmul.mubr.msk.bf16.gmra.mrb[240].mxu0 %vm4801_vm2, %v12692_v43  ;;  %12408 = vmatmul.mubr.msk.bf16.gmra.mrb[240].mxu1 %vm4801_vm2, %v12693_v56  ;;  %v12697_v31 = vld [vmem:[%s13312_s6 + $0x7d8] sm:$0xff]   ;;  %v12698_v6 = vld [vmem:[%s13312_s6 + $0x5e0] sm:$0xff]  }
 0x288   : > { %10265 = vst.msk [vmem:[%s14594_s14 + $0x4] sm:$0xf] %vm10263_vm3, %v11504_v9  ;;  %v9499_v12 = vadd.f32 %v14570_v3, %v9364_v10  ;;  %v9365_v13 = vmax.f32 %v8051_v61, %v8868_v11  ;;  %12279 = vmatprep.mubr.msk.bf16.mxu0 %vm4801_vm2, %v12694_v8  ;;  %12411 = vmatprep.mubr.msk.bf16.mxu1 %vm4801_vm2, %v12695_v22  ;;  %v12699_v7 = vld [vmem:[%s13312_s6 + $0x7e0] sm:$0xff]  }
 0x289   : > { %v9629_v17 = vmax.f32 %v9501_v1, 0.0  ;;  %v9502_v18 = vadd.f32 %v14570_v3, %v9367_v2  ;;  %v15828_v9 = vmax.f32 %v13620_v33, %v13622_v34 }
 0x28a   : > { %v9627_v19 = vmax.f32 %v9499_v12, 0.0  ;;  %v9500_v32 = vadd.f32 %v14570_v3, %v9365_v13  ;;  %v12173_v35 = vpop.f32.mrb[136].mxu0  ;;  %v12305_v62 = vpop.f32.mrb[136].mxu1 }
 0x28b   : > { %v11509_v5 = vpack.c.bf16 %v9629_v17, %v9629_v17  ;;  %v9630_v30 = vmax.f32 %v9502_v18, 0.0  ;;  %v8056_v16 = vmax.f32 %v15825_v0, %v12173_v35  ;;  %v7567_v43 = vpop.f32.mrb[137].mxu0  ;;  %v8881_v56 = vpop.f32.mrb[137].mxu1 }
 0x28c   : > { %v11507_v47 = vpack.c.bf16 %v9627_v19, %v9627_v19  ;;  %v9628_v38 = vmax.f32 %v9500_v32, 0.0  ;;  %v8054_v55 = vmax.f32 %v15826_v54, %v7567_v43  ;;  %v12174_v8 = vpop.f32.mrb[138].mxu0  ;;  %v12306_v22 = vpop.f32.mrb[138].mxu1  ;;  %v15829_v19 = vmax.f32 %v13630_v36, %v13632_v37 }
 0x28d   : > { %10270 = vst.msk [vmem:[%s14594_s14 + $0x18] sm:$0xf] %vm10263_vm3, %v11509_v5  ;;  %v11510_v20 = vpack.c.bf16 %v9630_v30, %v9630_v30  ;;  %v9370_v21 = vmax.f32 %v8056_v16, %v12305_v62  ;;  %v8057_v58 = vmax.f32 %v15827_v57, %v12174_v8  ;;  %v7570_v27 = vpop.f32.mrb[139].mxu0  ;;  %v8884_v11 = vpop.f32.mrb[139].mxu1  ;;  %v12700_v5 = vld [vmem:[%s13312_s6 + $0x5e8] sm:$0xff]   ;;  %v15830_v43 = vmax.f32 %v13636_v39, %v13638_v40 }
 0x28e   : > { %10268 = vst.msk [vmem:[%s14594_s14 + $0x10] sm:$0xf] %vm10263_vm3, %v11507_v47  ;;  %v11508_v23 = vpack.c.bf16 %v9628_v38, %v9628_v38  ;;  %v9368_v24 = vmax.f32 %v8054_v55, %v8881_v56  ;;  %v8055_v10 = vmax.f32 %v15828_v9, %v7570_v27  ;;  %v12701_v30 = vld [vmem:[%s13312_s6 + $0x7e8] sm:$0xff]   ;;  %v12702_v47 = vld [vmem:[%s13312_s6 + $0x5f0] sm:$0xff]   ;;  %v15831_v54 = vmax.f32 %v13644_v44, %v13646_v45 }
 0x28f   : > { %10271 = vst.msk [vmem:[%s14594_s14 + $0x1c] sm:$0xf] %vm10263_vm3, %v11510_v20  ;;  %v9505_v60 = vadd.f32 %v14570_v3, %v9370_v21  ;;  %v9371_v61 = vmax.f32 %v8057_v58, %v12306_v22  ;;  %12280 = vmatmul.mubr.msk.bf16.gmra.mrb[244].mxu0 %vm4801_vm2, %v12696_v59  ;;  %12412 = vmatmul.mubr.msk.bf16.gmra.mrb[244].mxu1 %vm4801_vm2, %v12697_v31  ;;  %v12703_v38 = vld [vmem:[%s13312_s6 + $0x7f0] sm:$0xff]  }
 0x290   : > { %10269 = vst.msk [vmem:[%s14594_s14 + $0x14] sm:$0xf] %vm10263_vm3, %v11508_v23  ;;  %v9503_v28 = vadd.f32 %v14570_v3, %v9368_v24  ;;  %v9369_v29 = vmax.f32 %v8055_v10, %v8884_v11  ;;  %12283 = vmatprep.mubr.msk.bf16.mxu0 %vm4801_vm2, %v12698_v6  ;;  %12415 = vmatprep.mubr.msk.bf16.mxu1 %vm4801_vm2, %v12699_v7 }
 0x291   : > { %v9633_v33 = vmax.f32 %v9505_v60, 0.0  ;;  %v9506_v34 = vadd.f32 %v14570_v3, %v9371_v61  ;;  %v15832_v6 = vmax.f32 %v13652_v49, %v13654_v50  ;;  %v15833_v9 = vmax.f32 %v13662_v52, %v13664_v53 }
 0x292   : > { %v9631_v1 = vmax.f32 %v9503_v28, 0.0  ;;  %v9504_v2 = vadd.f32 %v14570_v3, %v9369_v29  ;;  %v12177_v12 = vpop.f32.mrb[140].mxu0  ;;  %v12309_v13 = vpop.f32.mrb[140].mxu1  ;;  %v12704_v28 = vld [vmem:[%s13312_s6 + $0x5f8] sm:$0xff]   ;;  %v15835_v53 = vmax.f32 %v13676_v25, %v13678_v26 }
 0x293   : > { %v11513_v17 = vpack.c.bf16 %v9633_v33, %v9633_v33  ;;  %v9634_v18 = vmax.f32 %v9506_v34, 0.0  ;;  %v8060_v32 = vmax.f32 %v15829_v19, %v12177_v12  ;;  %v7583_v35 = vpop.f32.mrb[141].mxu0  ;;  %v8897_v62 = vpop.f32.mrb[141].mxu1  ;;  %v12705_v29 = vld [vmem:[%s13312_s6 + $0x7f8] sm:$0xff]  }
 0x294   : > { %v11511_v0 = vpack.c.bf16 %v9631_v1, %v9631_v1  ;;  %v9632_v16 = vmax.f32 %v9504_v2, 0.0  ;;  %v8058_v56 = vmax.f32 %v15830_v43, %v7583_v35  ;;  %v12178_v59 = vpop.f32.mrb[142].mxu0  ;;  %v12310_v31 = vpop.f32.mrb[142].mxu1  ;;  %v15834_v1 = vmax.f32 %v13668_v63, %v13670_v4 }
 0x295   : > { %10274 = vst.msk [vmem:[%s14594_s14 + $0x28] sm:$0xf] %vm10263_vm3, %v11513_v17  ;;  %v11514_v36 = vpack.c.bf16 %v9634_v18, %v9634_v18  ;;  %v9374_v37 = vmax.f32 %v8060_v32, %v12309_v13  ;;  %v8061_v55 = vmax.f32 %v15831_v54, %v12178_v59  ;;  %v7586_v8 = vpop.f32.mrb[143].mxu0  ;;  %v8900_v22 = vpop.f32.mrb[143].mxu1  ;;  %v15836_v63 = vmax.f32 %v13684_v42, %v13686_v46 }
 0x296   : > { %10272 = vst.msk [vmem:[%s14594_s14 + $0x20] sm:$0xf] %vm10263_vm3, %v11511_v0  ;;  %v11512_v39 = vpack.c.bf16 %v9632_v16, %v9632_v16  ;;  %v9372_v40 = vmax.f32 %v8058_v56, %v8897_v62  ;;  %v8059_v7 = vmax.f32 %v15832_v6, %v7586_v8  ;;  %v15838_v8 = vmax.f32 %v13700_v51, %v13702_v48  ;;  %v15842_v48 = vld [vmem:[#allocation5_spill] sm:$0xff] }
 0x297   : > { %10275 = vst.msk [vmem:[%s14594_s14 + $0x2c] sm:$0xf] %vm10263_vm3, %v11514_v36  ;;  %v9509_v20 = vadd.f32 %v14570_v3, %v9374_v37  ;;  %v9375_v21 = vmax.f32 %v8061_v55, %v12310_v31  ;;  %12284 = vmatmul.mubr.msk.bf16.gmra.mrb[248].mxu0 %vm4801_vm2, %v12700_v5  ;;  %12416 = vmatmul.mubr.msk.bf16.gmra.mrb[248].mxu1 %vm4801_vm2, %v12701_v30 }
 0x298   : > { %10273 = vst.msk [vmem:[%s14594_s14 + $0x24] sm:$0xf] %vm10263_vm3, %v11512_v39  ;;  %v9507_v44 = vadd.f32 %v14570_v3, %v9372_v40  ;;  %v9373_v45 = vmax.f32 %v8059_v7, %v8900_v22  ;;  %12287 = vmatprep.mubr.msk.bf16.mxu0 %vm4801_vm2, %v12702_v47  ;;  %12419 = vmatprep.mubr.msk.bf16.mxu1 %vm4801_vm2, %v12703_v38 }
 0x299   : > { %v9637_v49 = vmax.f32 %v9509_v20, 0.0  ;;  %v9510_v50 = vadd.f32 %v14570_v3, %v9375_v21  ;;  %v15837_v47 = vmax.f32 %v13694_v15, %v13696_v41  ;;  %v15839_v20 = vld [vmem:[#allocation3_spill] sm:$0xff] }
 0x29a   : > { %v9635_v57 = vmax.f32 %v9507_v44, 0.0  ;;  %v9508_v58 = vadd.f32 %v14570_v3, %v9373_v45  ;;  %v12181_v27 = vpop.f32.mrb[144].mxu0  ;;  %v12313_v11 = vpop.f32.mrb[144].mxu1  ;;  %v15840_v15 = vmax.f32 %v13708_v14, %v15839_v20  ;;  %v15856_v20 = vld [vmem:[#allocation14_spill] sm:$0xff] }
 0x29b   : > { %v11517_v23 = vpack.c.bf16 %v9637_v49, %v9637_v49  ;;  %v9638_v24 = vmax.f32 %v9510_v50, 0.0  ;;  %v8064_v10 = vmax.f32 %v15833_v9, %v12181_v27  ;;  %v7599_v60 = vpop.f32.mrb[145].mxu0  ;;  %v8913_v61 = vpop.f32.mrb[145].mxu1  ;;  %v15841_v50 = vld [vmem:[#allocation4_spill] sm:$0xff] }
 0x29c   : > { %v11515_v33 = vpack.c.bf16 %v9635_v57, %v9635_v57  ;;  %v9636_v34 = vmax.f32 %v9508_v58, 0.0  ;;  %v8062_v2 = vmax.f32 %v15834_v1, %v7599_v60  ;;  %v12182_v12 = vpop.f32.mrb[146].mxu0  ;;  %v12314_v13 = vpop.f32.mrb[146].mxu1  ;;  %v15843_v51 = vmax.f32 %v15841_v50, %v15842_v48  ;;  %v15859_v48 = vld [vmem:[#allocation16_spill] sm:$0xff] }
 0x29d   : > { %10278 = vst.msk [vmem:[%s14594_s14 + $0x38] sm:$0xf] %vm10263_vm3, %v11517_v23  ;;  %v11518_v17 = vpack.c.bf16 %v9638_v24, %v9638_v24  ;;  %v9378_v52 = vmax.f32 %v8064_v10, %v12313_v11  ;;  %v8065_v18 = vmax.f32 %v15835_v53, %v12182_v12  ;;  %v7602_v19 = vpop.f32.mrb[147].mxu0  ;;  %v8916_v32 = vpop.f32.mrb[147].mxu1  ;;  %v15847_v53 = vld [vmem:[#allocation8_spill] sm:$0xff] }
 0x29e   : > { %10276 = vst.msk [vmem:[%s14594_s14 + $0x30] sm:$0xf] %vm10263_vm3, %v11515_v33  ;;  %v11516_v35 = vpack.c.bf16 %v9636_v34, %v9636_v34  ;;  %v9376_v62 = vmax.f32 %v8062_v2, %v8913_v61  ;;  %v8063_v4 = vmax.f32 %v15836_v63, %v7602_v19  ;;  %v15844_v33 = vld [vmem:[#allocation6_spill] sm:$0xff]  ;;  %v15845_v34 = vld [vmem:[#allocation7_spill] sm:$0xff] }
 0x29f   : > { %10279 = vst.msk [vmem:[%s14594_s14 + $0x3c] sm:$0xf] %vm10263_vm3, %v11518_v17  ;;  %v9513_v5 = vadd.f32 %v14570_v3, %v9378_v52  ;;  %v9379_v30 = vmax.f32 %v8065_v18, %v12314_v13  ;;  %12288 = vmatmul.mubr.msk.bf16.gmra.mrb[252].mxu0 %vm4801_vm2, %v12704_v28  ;;  %12420 = vmatmul.mubr.msk.bf16.gmra.mrb[252].mxu1 %vm4801_vm2, %v12705_v29  ;;  %v15848_v18 = vld [vmem:[#allocation9_spill] sm:$0xff] }
 0x2a0   : > { %10277 = vst.msk [vmem:[%s14594_s14 + $0x34] sm:$0xf] %vm10263_vm3, %v11516_v35  ;;  %v9511_v25 = vadd.f32 %v14570_v3, %v9376_v62  ;;  %v9377_v26 = vmax.f32 %v8063_v4, %v8916_v32  ;;  %v15846_v1 = vmax.f32 %v15844_v33, %v15845_v34  ;;  %v15849_v19 = vmax.f32 %v15847_v53, %v15848_v18  ;;  %v15865_v34 = vld [vmem:[#allocation20_spill] sm:$0xff] }
 0x2a1   : > { %v9641_v0 = vmax.f32 %v9513_v5, 0.0  ;;  %v9514_v16 = vadd.f32 %v14570_v3, %v9379_v30  ;;  %v15850_v5 = vld [vmem:[#allocation10_spill] sm:$0xff]  ;;  %v15851_v30 = vld [vmem:[#allocation11_spill] sm:$0xff] }
 0x2a2   : > { %v9639_v42 = vmax.f32 %v9511_v25, 0.0  ;;  %v9512_v46 = vadd.f32 %v14570_v3, %v9377_v26  ;;  %v12185_v43 = vpop.f32.mrb[148].mxu0  ;;  %v12317_v56 = vpop.f32.mrb[148].mxu1  ;;  %v15852_v25 = vmax.f32 %v15850_v5, %v15851_v30  ;;  %v15868_v30 = vld [vmem:[#allocation22_spill] sm:$0xff] }
 0x2a3   : > { %v11521_v59 = vpack.c.bf16 %v9641_v0, %v9641_v0  ;;  %v9642_v31 = vmax.f32 %v9514_v16, 0.0  ;;  %v8068_v38 = vmax.f32 %v15837_v47, %v12185_v43  ;;  %v7615_v36 = vpop.f32.mrb[149].mxu0  ;;  %v8929_v37 = vpop.f32.mrb[149].mxu1  ;;  %v15853_v43 = vld [vmem:[#allocation12_spill] sm:$0xff] }
 0x2a4   : > { %v11519_v54 = vpack.c.bf16 %v9639_v42, %v9639_v42  ;;  %v9640_v55 = vmax.f32 %v9512_v46, 0.0  ;;  %v8066_v22 = vmax.f32 %v15838_v8, %v7615_v36  ;;  %v12186_v39 = vpop.f32.mrb[150].mxu0  ;;  %v12318_v40 = vpop.f32.mrb[150].mxu1 }
 0x2a5   : > { %10282 = vst.msk [vmem:[%s14594_s14 + $0x48] sm:$0xf] %vm10263_vm3, %v11521_v59  ;;  %v11522_v6 = vpack.c.bf16 %v9642_v31, %v9642_v31  ;;  %v9382_v7 = vmax.f32 %v8068_v38, %v12317_v56  ;;  %v8069_v41 = vmax.f32 %v15840_v15, %v12186_v39  ;;  %v7618_v21 = vpop.f32.mrb[151].mxu0  ;;  %v8932_v44 = vpop.f32.mrb[151].mxu1  ;;  %v15854_v56 = vld [vmem:[#allocation13_spill] sm:$0xff]  ;;  %v15857_v15 = vld [vmem:[#allocation15_spill] sm:$0xff] }
 0x2a6   : > { %10280 = vst.msk [vmem:[%s14594_s14 + $0x40] sm:$0xf] %vm10263_vm3, %v11519_v54  ;;  %v11520_v45 = vpack.c.bf16 %v9640_v55, %v9640_v55  ;;  %v9380_v49 = vmax.f32 %v8066_v22, %v8929_v37  ;;  %v8067_v57 = vmax.f32 %v15843_v51, %v7618_v21  ;;  %v15855_v59 = vmax.f32 %v15853_v43, %v15854_v56  ;;  %v15860_v51 = vld [vmem:[#allocation17_spill] sm:$0xff]  ;;  %v15871_v56 = vld [vmem:[#allocation24_spill] sm:$0xff] }
 0x2a7   : > { %10283 = vst.msk [vmem:[%s14594_s14 + $0x4c] sm:$0xf] %vm10263_vm3, %v11522_v6  ;;  %v9517_v58 = vadd.f32 %v14570_v3, %v9382_v7  ;;  %v9383_v27 = vmax.f32 %v8069_v41, %v12318_v40  ;;  %v15858_v41 = vmax.f32 %v15856_v20, %v15857_v15  ;;  %v15877_v15 = vld [vmem:[#allocation28_spill] sm:$0xff] }
 0x2a8   : > { %10281 = vst.msk [vmem:[%s14594_s14 + $0x44] sm:$0xf] %vm10263_vm3, %v11520_v45  ;;  %v9515_v14 = vadd.f32 %v14570_v3, %v9380_v49  ;;  %v9381_v11 = vmax.f32 %v8067_v57, %v8932_v44  ;;  %v15861_v57 = vmax.f32 %v15859_v48, %v15860_v51 }
 0x2a9   : > { %v9645_v23 = vmax.f32 %v9517_v58, 0.0  ;;  %v9518_v24 = vadd.f32 %v14570_v3, %v9383_v27 }
 0x2aa   : > { %v9643_v9 = vmax.f32 %v9515_v14, 0.0  ;;  %v9516_v10 = vadd.f32 %v14570_v3, %v9381_v11  ;;  %v12189_v60 = vpop.f32.mrb[152].mxu0  ;;  %v12321_v61 = vpop.f32.mrb[152].mxu1 }
 0x2ab   : > { %v11525_v28 = vpack.c.bf16 %v9645_v23, %v9645_v23  ;;  %v9646_v29 = vmax.f32 %v9518_v24, 0.0  ;;  %v8072_v2 = vmax.f32 %v15846_v1, %v12189_v60  ;;  %v7631_v12 = vpop.f32.mrb[153].mxu0  ;;  %v8945_v13 = vpop.f32.mrb[153].mxu1  ;;  %v15862_v24 = vld [vmem:[#allocation18_spill] sm:$0xff]  ;;  %v15866_v1 = vld [vmem:[#allocation21_spill] sm:$0xff] }
 0x2ac   : > { %v11523_v17 = vpack.c.bf16 %v9643_v9, %v9643_v9  ;;  %v9644_v52 = vmax.f32 %v9516_v10, 0.0  ;;  %v8070_v32 = vmax.f32 %v15849_v19, %v7631_v12  ;;  %v12190_v35 = vpop.f32.mrb[154].mxu0  ;;  %v12322_v62 = vpop.f32.mrb[154].mxu1  ;;  %v15863_v9 = vld [vmem:[#allocation19_spill] sm:$0xff] }
 0x2ad   : > { %10286 = vst.msk [vmem:[%s14594_s14 + $0x58] sm:$0xf] %vm10263_vm3, %v11525_v28  ;;  %v11526_v63 = vpack.c.bf16 %v9646_v29, %v9646_v29  ;;  %v9386_v4 = vmax.f32 %v8072_v2, %v12321_v61  ;;  %v8073_v26 = vmax.f32 %v15852_v25, %v12190_v35  ;;  %v7634_v0 = vpop.f32.mrb[155].mxu0  ;;  %v8948_v16 = vpop.f32.mrb[155].mxu1  ;;  %v15864_v10 = vmax.f32 %v15862_v24, %v15863_v9  ;;  %v15869_v25 = vld [vmem:[#allocation23_spill] sm:$0xff]  ;;  %v15880_v9 = vld [vmem:[#allocation30_spill] sm:$0xff] }
 0x2ae   : > { %10284 = vst.msk [vmem:[%s14594_s14 + $0x50] sm:$0xf] %vm10263_vm3, %v11523_v17  ;;  %v11524_v42 = vpack.c.bf16 %v9644_v52, %v9644_v52  ;;  %v9384_v46 = vmax.f32 %v8070_v32, %v8945_v13  ;;  %v8071_v31 = vmax.f32 %v15855_v59, %v7634_v0  ;;  %v15867_v2 = vmax.f32 %v15865_v34, %v15866_v1  ;;  %v15872_v59 = vld [vmem:[#allocation25_spill] sm:$0xff]  ;;  %v15883_v1 = vld [vmem:[#allocation32_spill] sm:$0xff] }
 0x2af   : > { %10287 = vst.msk [vmem:[%s14594_s14 + $0x5c] sm:$0xf] %vm10263_vm3, %v11526_v63  ;;  %v9521_v47 = vadd.f32 %v14570_v3, %v9386_v4  ;;  %v9387_v38 = vmax.f32 %v8073_v26, %v12322_v62  ;;  %v15870_v26 = vmax.f32 %v15868_v30, %v15869_v25  ;;  %v15889_v25 = vld [vmem:[#allocation36_spill] sm:$0xff] }
 0x2b0   : > { %10285 = vst.msk [vmem:[%s14594_s14 + $0x54] sm:$0xf] %vm10263_vm3, %v11524_v42  ;;  %v9519_v36 = vadd.f32 %v14570_v3, %v9384_v46  ;;  %v9385_v37 = vmax.f32 %v8071_v31, %v8948_v16  ;;  %v15873_v31 = vmax.f32 %v15871_v56, %v15872_v59 }
 0x2b1   : > { %v9649_v54 = vmax.f32 %v9521_v47, 0.0  ;;  %v9522_v55 = vadd.f32 %v14570_v3, %v9387_v38 }
 0x2b2   : > { %v9647_v8 = vmax.f32 %v9519_v36, 0.0  ;;  %v9520_v22 = vadd.f32 %v14570_v3, %v9385_v37  ;;  %v12193_v39 = vpop.f32.mrb[156].mxu0  ;;  %v12325_v40 = vpop.f32.mrb[156].mxu1 }
 0x2b3   : > { %v11529_v6 = vpack.c.bf16 %v9649_v54, %v9649_v54  ;;  %v9650_v7 = vmax.f32 %v9522_v55, 0.0  ;;  %v8076_v21 = vmax.f32 %v15858_v41, %v12193_v39  ;;  %v7647_v44 = vpop.f32.mrb[157].mxu0  ;;  %v8961_v45 = vpop.f32.mrb[157].mxu1  ;;  %v15874_v55 = vld [vmem:[#allocation26_spill] sm:$0xff]  ;;  %v15878_v41 = vld [vmem:[#allocation29_spill] sm:$0xff] }
 0x2b4   : > { %v11527_v49 = vpack.c.bf16 %v9647_v8, %v9647_v8  ;;  %v9648_v50 = vmax.f32 %v9520_v22, 0.0  ;;  %v8074_v58 = vmax.f32 %v15861_v57, %v7647_v44  ;;  %v12194_v27 = vpop.f32.mrb[158].mxu0  ;;  %v12326_v14 = vpop.f32.mrb[158].mxu1  ;;  %v15875_v8 = vld [vmem:[#allocation27_spill] sm:$0xff] }
 0x2b5   : > { %10290 = vst.msk [vmem:[%s14594_s14 + $0x68] sm:$0xf] %vm10263_vm3, %v11529_v6  ;;  %v11530_v11 = vpack.c.bf16 %v9650_v7, %v9650_v7  ;;  %v9390_v23 = vmax.f32 %v8076_v21, %v12325_v40  ;;  %v8077_v60 = vmax.f32 %v15864_v10, %v12194_v27  ;;  %v7650_v61 = vpop.f32.mrb[159].mxu0  ;;  %v8964_v28 = vpop.f32.mrb[159].mxu1  ;;  %v15876_v22 = vmax.f32 %v15874_v55, %v15875_v8  ;;  %v15881_v10 = vld [vmem:[#allocation31_spill] sm:$0xff]  ;;  %v15892_v8 = vld [vmem:[#allocation38_spill] sm:$0xff] }
 0x2b6   : > { %10288 = vst.msk [vmem:[%s14594_s14 + $0x60] sm:$0xf] %vm10263_vm3, %v11527_v49  ;;  %v11528_v29 = vpack.c.bf16 %v9648_v50, %v9648_v50  ;;  %v9388_v33 = vmax.f32 %v8074_v58, %v8961_v45  ;;  %v8075_v12 = vmax.f32 %v15867_v2, %v7650_v61  ;;  %v15879_v21 = vmax.f32 %v15877_v15, %v15878_v41  ;;  %v15884_v2 = vld [vmem:[#allocation33_spill] sm:$0xff]  ;;  %v15895_v41 = vld [vmem:[#allocation40_spill] sm:$0xff] }
 0x2b7   : > { %10291 = vst.msk [vmem:[%s14594_s14 + $0x6c] sm:$0xf] %vm10263_vm3, %v11530_v11  ;;  %v9525_v13 = vadd.f32 %v14570_v3, %v9390_v23  ;;  %v9391_v17 = vmax.f32 %v8077_v60, %v12326_v14  ;;  %v15882_v60 = vmax.f32 %v15880_v9, %v15881_v10  ;;  %v15901_v10 = vld [vmem:[#allocation44_spill] sm:$0xff] }
 0x2b8   : > { %10289 = vst.msk [vmem:[%s14594_s14 + $0x64] sm:$0xf] %vm10263_vm3, %v11528_v29  ;;  %v9523_v52 = vadd.f32 %v14570_v3, %v9388_v33  ;;  %v9389_v53 = vmax.f32 %v8075_v12, %v8964_v28  ;;  %v15885_v12 = vmax.f32 %v15883_v1, %v15884_v2 }
 0x2b9   : > { %v9653_v18 = vmax.f32 %v9525_v13, 0.0  ;;  %v9526_v19 = vadd.f32 %v14570_v3, %v9391_v17 }
 0x2ba   : > { %v9651_v32 = vmax.f32 %v9523_v52, 0.0  ;;  %v9524_v35 = vadd.f32 %v14570_v3, %v9389_v53  ;;  %v12197_v62 = vpop.f32.mrb[160].mxu0  ;;  %v12329_v63 = vpop.f32.mrb[160].mxu1 }
 0x2bb   : > { %v11533_v4 = vpack.c.bf16 %v9653_v18, %v9653_v18  ;;  %v9654_v5 = vmax.f32 %v9526_v19, 0.0  ;;  %v8080_v0 = vmax.f32 %v15870_v26, %v12197_v62  ;;  %v7663_v16 = vpop.f32.mrb[161].mxu0  ;;  %v8977_v42 = vpop.f32.mrb[161].mxu1  ;;  %v15886_v19 = vld [vmem:[#allocation34_spill] sm:$0xff]  ;;  %v15890_v26 = vld [vmem:[#allocation37_spill] sm:$0xff] }
 0x2bc   : > { %v11531_v46 = vpack.c.bf16 %v9651_v32, %v9651_v32  ;;  %v9652_v43 = vmax.f32 %v9524_v35, 0.0  ;;  %v8078_v47 = vmax.f32 %v15873_v31, %v7663_v16  ;;  %v12198_v38 = vpop.f32.mrb[162].mxu0  ;;  %v12330_v36 = vpop.f32.mrb[162].mxu1  ;;  %v15887_v32 = vld [vmem:[#allocation35_spill] sm:$0xff] }
 0x2bd   : > { %10294 = vst.msk [vmem:[%s14594_s14 + $0x78] sm:$0xf] %vm10263_vm3, %v11533_v4  ;;  %v11534_v37 = vpack.c.bf16 %v9654_v5, %v9654_v5  ;;  %v9394_v54 = vmax.f32 %v8080_v0, %v12329_v63  ;;  %v8081_v39 = vmax.f32 %v15876_v22, %v12198_v38  ;;  %v7666_v40 = vpop.f32.mrb[163].mxu0  ;;  %v8980_v6 = vpop.f32.mrb[163].mxu1  ;;  %v15888_v35 = vmax.f32 %v15886_v19, %v15887_v32  ;;  %v15893_v22 = vld [vmem:[#allocation39_spill] sm:$0xff]  ;;  %v15904_v32 = vld [vmem:[#allocation46_spill] sm:$0xff] }
 0x2be   : > { %10292 = vst.msk [vmem:[%s14594_s14 + $0x70] sm:$0xf] %vm10263_vm3, %v11531_v46  ;;  %v11532_v7 = vpack.c.bf16 %v9652_v43, %v9652_v43  ;;  %v9392_v20 = vmax.f32 %v8078_v47, %v8977_v42  ;;  %v8079_v44 = vmax.f32 %v15879_v21, %v7666_v40  ;;  %v15891_v0 = vmax.f32 %v15889_v25, %v15890_v26  ;;  %v15896_v21 = vld [vmem:[#allocation41_spill] sm:$0xff]  ;;  %v15907_v26 = vld [vmem:[#allocation48_spill] sm:$0xff] }
 0x2bf   : > { %10295 = vst.msk [vmem:[%s14594_s14 + $0x7c] sm:$0xf] %vm10263_vm3, %v11534_v37  ;;  %v9529_v45 = vadd.f32 %v14570_v3, %v9394_v54  ;;  %v9395_v49 = vmax.f32 %v8081_v39, %v12330_v36  ;;  %v15894_v39 = vmax.f32 %v15892_v8, %v15893_v22  ;;  %v15913_v22 = vld [vmem:[#allocation52_spill] sm:$0xff] }
 0x2c0   : > { %10293 = vst.msk [vmem:[%s14594_s14 + $0x74] sm:$0xf] %vm10263_vm3, %v11532_v7  ;;  %v9527_v50 = vadd.f32 %v14570_v3, %v9392_v20  ;;  %v9393_v48 = vmax.f32 %v8079_v44, %v8980_v6  ;;  %v15897_v44 = vmax.f32 %v15895_v41, %v15896_v21 }
 0x2c1   : > { %v9657_v51 = vmax.f32 %v9529_v45, 0.0  ;;  %v9530_v57 = vadd.f32 %v14570_v3, %v9395_v49 }
 0x2c2   : > { %v9655_v58 = vmax.f32 %v9527_v50, 0.0  ;;  %v9528_v27 = vadd.f32 %v14570_v3, %v9393_v48  ;;  %v12201_v14 = vpop.f32.mrb[164].mxu0  ;;  %v12333_v11 = vpop.f32.mrb[164].mxu1 }
 0x2c3   : > { %v11537_v23 = vpack.c.bf16 %v9657_v51, %v9657_v51  ;;  %v9658_v24 = vmax.f32 %v9530_v57, 0.0  ;;  %v8084_v61 = vmax.f32 %v15882_v60, %v12201_v14  ;;  %v7679_v28 = vpop.f32.mrb[165].mxu0  ;;  %v8993_v29 = vpop.f32.mrb[165].mxu1  ;;  %v15898_v57 = vld [vmem:[#allocation42_spill] sm:$0xff]  ;;  %v15902_v60 = vld [vmem:[#allocation45_spill] sm:$0xff] }
 0x2c4   : > { %v11535_v33 = vpack.c.bf16 %v9655_v58, %v9655_v58  ;;  %v9656_v34 = vmax.f32 %v9528_v27, 0.0  ;;  %v8082_v13 = vmax.f32 %v15885_v12, %v7679_v28  ;;  %v12202_v17 = vpop.f32.mrb[166].mxu0  ;;  %v12334_v52 = vpop.f32.mrb[166].mxu1  ;;  %v15899_v58 = vld [vmem:[#allocation43_spill] sm:$0xff] }
 0x2c5   : > { %10298 = vst.msk [vmem:[%s14594_s14 + $0x88] sm:$0xf] %vm10263_vm3, %v11537_v23  ;;  %v11538_v53 = vpack.c.bf16 %v9658_v24, %v9658_v24  ;;  %v9398_v18 = vmax.f32 %v8084_v61, %v12333_v11  ;;  %v8085_v62 = vmax.f32 %v15888_v35, %v12202_v17  ;;  %v7682_v63 = vpop.f32.mrb[167].mxu0  ;;  %v8996_v4 = vpop.f32.mrb[167].mxu1  ;;  %v15900_v27 = vmax.f32 %v15898_v57, %v15899_v58  ;;  %v15905_v35 = vld [vmem:[#allocation47_spill] sm:$0xff]  ;;  %v15916_v58 = vld [vmem:[#allocation54_spill] sm:$0xff] }
 0x2c6   : > { %10296 = vst.msk [vmem:[%s14594_s14 + $0x80] sm:$0xf] %vm10263_vm3, %v11535_v33  ;;  %v11536_v5 = vpack.c.bf16 %v9656_v34, %v9656_v34  ;;  %v9396_v30 = vmax.f32 %v8082_v13, %v8993_v29  ;;  %v8083_v16 = vmax.f32 %v15891_v0, %v7682_v63  ;;  %v15903_v61 = vmax.f32 %v15901_v10, %v15902_v60  ;;  %v15908_v0 = vld [vmem:[#allocation49_spill] sm:$0xff]  ;;  %v15919_v60 = vld [vmem:[#allocation56_spill] sm:$0xff] }
 0x2c7   : > { %10299 = vst.msk [vmem:[%s14594_s14 + $0x8c] sm:$0xf] %vm10263_vm3, %v11538_v53  ;;  %v9533_v42 = vadd.f32 %v14570_v3, %v9398_v18  ;;  %v9399_v46 = vmax.f32 %v8085_v62, %v12334_v52  ;;  %v15906_v62 = vmax.f32 %v15904_v32, %v15905_v35  ;;  %v15925_v35 = vld [vmem:[#allocation60_spill] sm:$0xff] }
 0x2c8   : > { %10297 = vst.msk [vmem:[%s14594_s14 + $0x84] sm:$0xf] %vm10263_vm3, %v11536_v5  ;;  %v9531_v43 = vadd.f32 %v14570_v3, %v9396_v30  ;;  %v9397_v56 = vmax.f32 %v8083_v16, %v8996_v4  ;;  %v15909_v16 = vmax.f32 %v15907_v26, %v15908_v0 }
 0x2c9   : > { %v9661_v59 = vmax.f32 %v9533_v42, 0.0  ;;  %v9534_v31 = vadd.f32 %v14570_v3, %v9399_v46 }
 0x2ca   : > { %v9659_v47 = vmax.f32 %v9531_v43, 0.0  ;;  %v9532_v38 = vadd.f32 %v14570_v3, %v9397_v56  ;;  %v12205_v36 = vpop.f32.mrb[168].mxu0  ;;  %v12337_v37 = vpop.f32.mrb[168].mxu1 }
 0x2cb   : > { %v11541_v54 = vpack.c.bf16 %v9661_v59, %v9661_v59  ;;  %v9662_v55 = vmax.f32 %v9534_v31, 0.0  ;;  %v8088_v40 = vmax.f32 %v15894_v39, %v12205_v36  ;;  %v7695_v6 = vpop.f32.mrb[169].mxu0  ;;  %v9009_v7 = vpop.f32.mrb[169].mxu1  ;;  %v15910_v31 = vld [vmem:[#allocation50_spill] sm:$0xff]  ;;  %v15914_v39 = vld [vmem:[#allocation53_spill] sm:$0xff] }
 0x2cc   : > { %v11539_v20 = vpack.c.bf16 %v9659_v47, %v9659_v47  ;;  %v9660_v15 = vmax.f32 %v9532_v38, 0.0  ;;  %v8086_v45 = vmax.f32 %v15897_v44, %v7695_v6  ;;  %v12206_v49 = vpop.f32.mrb[170].mxu0  ;;  %v12338_v50 = vpop.f32.mrb[170].mxu1  ;;  %v15911_v47 = vld [vmem:[#allocation51_spill] sm:$0xff] }
 0x2cd   : > { %10302 = vst.msk [vmem:[%s14594_s14 + $0x98] sm:$0xf] %vm10263_vm3, %v11541_v54  ;;  %v11542_v48 = vpack.c.bf16 %v9662_v55, %v9662_v55  ;;  %v9402_v51 = vmax.f32 %v8088_v40, %v12337_v37  ;;  %v8089_v14 = vmax.f32 %v15900_v27, %v12206_v49  ;;  %v7698_v11 = vpop.f32.mrb[171].mxu0  ;;  %v9012_v23 = vpop.f32.mrb[171].mxu1  ;;  %v15912_v38 = vmax.f32 %v15910_v31, %v15911_v47  ;;  %v15917_v27 = vld [vmem:[#allocation55_spill] sm:$0xff]  ;;  %v15928_v47 = vld [vmem:[#allocation62_spill] sm:$0xff] }
 0x2ce   : > { %10300 = vst.msk [vmem:[%s14594_s14 + $0x90] sm:$0xf] %vm10263_vm3, %v11539_v20  ;;  %v11540_v24 = vpack.c.bf16 %v9660_v15, %v9660_v15  ;;  %v9400_v9 = vmax.f32 %v8086_v45, %v9009_v7  ;;  %v8087_v28 = vmax.f32 %v15903_v61, %v7698_v11  ;;  %v15915_v40 = vmax.f32 %v15913_v22, %v15914_v39  ;;  %v15920_v61 = vld [vmem:[#allocation57_spill] sm:$0xff]  ;;  %v15931_v39 = vld [vmem:[#allocation64_spill] sm:$0xff] }
 0x2cf   : > { %10303 = vst.msk [vmem:[%s14594_s14 + $0x9c] sm:$0xf] %vm10263_vm3, %v11542_v48  ;;  %v9537_v29 = vadd.f32 %v14570_v3, %v9402_v51  ;;  %v9403_v33 = vmax.f32 %v8089_v14, %v12338_v50  ;;  %v15918_v14 = vmax.f32 %v15916_v58, %v15917_v27  ;;  %v15937_v27 = vld [vmem:[#allocation68_spill] sm:$0xff] }
 0x2d0   : > { %10301 = vst.msk [vmem:[%s14594_s14 + $0x94] sm:$0xf] %vm10263_vm3, %v11540_v24  ;;  %v9535_v34 = vadd.f32 %v14570_v3, %v9400_v9  ;;  %v9401_v1 = vmax.f32 %v8087_v28, %v9012_v23  ;;  %v15921_v28 = vmax.f32 %v15919_v60, %v15920_v61 }
 0x2d1   : > { %v9665_v2 = vmax.f32 %v9537_v29, 0.0  ;;  %v9538_v12 = vadd.f32 %v14570_v3, %v9403_v33 }
 0x2d2   : > { %v9663_v13 = vmax.f32 %v9535_v34, 0.0  ;;  %v9536_v17 = vadd.f32 %v14570_v3, %v9401_v1  ;;  %v12209_v52 = vpop.f32.mrb[172].mxu0  ;;  %v12341_v53 = vpop.f32.mrb[172].mxu1 }
 0x2d3   : > { %v11545_v18 = vpack.c.bf16 %v9665_v2, %v9665_v2  ;;  %v9666_v19 = vmax.f32 %v9538_v12, 0.0  ;;  %v8092_v63 = vmax.f32 %v15906_v62, %v12209_v52  ;;  %v7711_v4 = vpop.f32.mrb[173].mxu0  ;;  %v9025_v5 = vpop.f32.mrb[173].mxu1  ;;  %v15922_v12 = vld [vmem:[#allocation58_spill] sm:$0xff]  ;;  %v15926_v62 = vld [vmem:[#allocation61_spill] sm:$0xff] }
 0x2d4   : > { %v11543_v30 = vpack.c.bf16 %v9663_v13, %v9663_v13  ;;  %v9664_v25 = vmax.f32 %v9536_v17, 0.0  ;;  %v8090_v42 = vmax.f32 %v15909_v16, %v7711_v4  ;;  %v12210_v46 = vpop.f32.mrb[174].mxu0  ;;  %v12342_v43 = vpop.f32.mrb[174].mxu1  ;;  %v15923_v13 = vld [vmem:[#allocation59_spill] sm:$0xff] }
 0x2d5   : > { %10306 = vst.msk [vmem:[%s14594_s14 + $0xa8] sm:$0xf] %vm10263_vm3, %v11545_v18  ;;  %v11546_v56 = vpack.c.bf16 %v9666_v19, %v9666_v19  ;;  %v9406_v59 = vmax.f32 %v8092_v63, %v12341_v53  ;;  %v8093_v36 = vmax.f32 %v15912_v38, %v12210_v46  ;;  %v7714_v37 = vpop.f32.mrb[175].mxu0  ;;  %v9028_v54 = vpop.f32.mrb[175].mxu1  ;;  %v15924_v17 = vmax.f32 %v15922_v12, %v15923_v13  ;;  %v15929_v38 = vld [vmem:[#allocation63_spill] sm:$0xff]  ;;  %v15940_v13 = vld [vmem:[#allocation70_spill] sm:$0xff] }
 0x2d6   : > { %10304 = vst.msk [vmem:[%s14594_s14 + $0xa0] sm:$0xf] %vm10263_vm3, %v11543_v30  ;;  %v11544_v55 = vpack.c.bf16 %v9664_v25, %v9664_v25  ;;  %v9404_v8 = vmax.f32 %v8090_v42, %v9025_v5  ;;  %v8091_v6 = vmax.f32 %v15915_v40, %v7714_v37  ;;  %v15927_v63 = vmax.f32 %v15925_v35, %v15926_v62  ;;  %v15932_v40 = vld [vmem:[#allocation65_spill] sm:$0xff]  ;;  %v15943_v62 = vld [vmem:[#allocation72_spill] sm:$0xff] }
 0x2d7   : > { %10307 = vst.msk [vmem:[%s14594_s14 + $0xac] sm:$0xf] %vm10263_vm3, %v11546_v56  ;;  %v9541_v7 = vadd.f32 %v14570_v3, %v9406_v59  ;;  %v9407_v20 = vmax.f32 %v8093_v36, %v12342_v43  ;;  %v15930_v36 = vmax.f32 %v15928_v47, %v15929_v38  ;;  %v15949_v38 = vld [vmem:[#allocation76_spill] sm:$0xff] }
 0x2d8   : > { %10305 = vst.msk [vmem:[%s14594_s14 + $0xa4] sm:$0xf] %vm10263_vm3, %v11544_v55  ;;  %v9539_v15 = vadd.f32 %v14570_v3, %v9404_v8  ;;  %v9405_v41 = vmax.f32 %v8091_v6, %v9028_v54  ;;  %v15933_v6 = vmax.f32 %v15931_v39, %v15932_v40 }
 0x2d9   : > { %v9669_v21 = vmax.f32 %v9541_v7, 0.0  ;;  %v9542_v44 = vadd.f32 %v14570_v3, %v9407_v20 }
 0x2da   : > { %v9667_v45 = vmax.f32 %v9539_v15, 0.0  ;;  %v9540_v49 = vadd.f32 %v14570_v3, %v9405_v41  ;;  %v12213_v50 = vpop.f32.mrb[176].mxu0  ;;  %v12345_v48 = vpop.f32.mrb[176].mxu1 }
 0x2db   : > { %v11549_v51 = vpack.c.bf16 %v9669_v21, %v9669_v21  ;;  %v9670_v57 = vmax.f32 %v9542_v44, 0.0  ;;  %v8096_v11 = vmax.f32 %v15918_v14, %v12213_v50  ;;  %v7727_v23 = vpop.f32.mrb[177].mxu0  ;;  %v9041_v24 = vpop.f32.mrb[177].mxu1  ;;  %v15934_v44 = vld [vmem:[#allocation66_spill] sm:$0xff]  ;;  %v15938_v14 = vld [vmem:[#allocation69_spill] sm:$0xff] }
 0x2dc   : > { %v11547_v9 = vpack.c.bf16 %v9667_v45, %v9667_v45  ;;  %v9668_v10 = vmax.f32 %v9540_v49, 0.0  ;;  %v8094_v29 = vmax.f32 %v15921_v28, %v7727_v23  ;;  %v12214_v33 = vpop.f32.mrb[178].mxu0  ;;  %v12346_v34 = vpop.f32.mrb[178].mxu1  ;;  %v15935_v45 = vld [vmem:[#allocation67_spill] sm:$0xff] }
 0x2dd   : > { %10310 = vst.msk [vmem:[%s14594_s14 + $0xb8] sm:$0xf] %vm10263_vm3, %v11549_v51  ;;  %v11550_v1 = vpack.c.bf16 %v9670_v57, %v9670_v57  ;;  %v9410_v2 = vmax.f32 %v8096_v11, %v12345_v48  ;;  %v8097_v52 = vmax.f32 %v15924_v17, %v12214_v33  ;;  %v7730_v53 = vpop.f32.mrb[179].mxu0  ;;  %v9044_v18 = vpop.f32.mrb[179].mxu1  ;;  %v15936_v49 = vmax.f32 %v15934_v44, %v15935_v45  ;;  %v15941_v17 = vld [vmem:[#allocation71_spill] sm:$0xff]  ;;  %v15952_v45 = vld [vmem:[#allocation78_spill] sm:$0xff] }
 0x2de   : > { %10308 = vst.msk [vmem:[%s14594_s14 + $0xb0] sm:$0xf] %vm10263_vm3, %v11547_v9  ;;  %v11548_v19 = vpack.c.bf16 %v9668_v10, %v9668_v10  ;;  %v9408_v32 = vmax.f32 %v8094_v29, %v9041_v24  ;;  %v8095_v4 = vmax.f32 %v15927_v63, %v7730_v53  ;;  %v15939_v11 = vmax.f32 %v15937_v27, %v15938_v14  ;;  %v15944_v63 = vld [vmem:[#allocation73_spill] sm:$0xff]  ;;  %v15955_v14 = vld [vmem:[#allocation80_spill] sm:$0xff] }
 0x2df   : > { %10311 = vst.msk [vmem:[%s14594_s14 + $0xbc] sm:$0xf] %vm10263_vm3, %v11550_v1  ;;  %v9545_v5 = vadd.f32 %v14570_v3, %v9410_v2  ;;  %v9411_v30 = vmax.f32 %v8097_v52, %v12346_v34  ;;  %v15942_v52 = vmax.f32 %v15940_v13, %v15941_v17  ;;  %v15961_v13 = vld [vmem:[#allocation84_spill] sm:$0xff]  ;;  %v15962_v17 = vld [vmem:[#allocation85_spill] sm:$0xff] }
 0x2e0   : > { %10309 = vst.msk [vmem:[%s14594_s14 + $0xb4] sm:$0xf] %vm10263_vm3, %v11548_v19  ;;  %v9543_v25 = vadd.f32 %v14570_v3, %v9408_v32  ;;  %v9409_v26 = vmax.f32 %v8095_v4, %v9044_v18  ;;  %v15945_v4 = vmax.f32 %v15943_v62, %v15944_v63 }
 0x2e1   : > { %v9673_v0 = vmax.f32 %v9545_v5, 0.0  ;;  %v9546_v16 = vadd.f32 %v14570_v3, %v9411_v30 }
 0x2e2   : > { %v9671_v42 = vmax.f32 %v9543_v25, 0.0  ;;  %v9544_v46 = vadd.f32 %v14570_v3, %v9409_v26  ;;  %v12217_v43 = vpop.f32.mrb[180].mxu0  ;;  %v12349_v56 = vpop.f32.mrb[180].mxu1 }
 0x2e3   : > { %v11553_v59 = vpack.c.bf16 %v9673_v0, %v9673_v0  ;;  %v9674_v31 = vmax.f32 %v9546_v16, 0.0  ;;  %v8100_v37 = vmax.f32 %v15930_v36, %v12217_v43  ;;  %v7743_v54 = vpop.f32.mrb[181].mxu0  ;;  %v9057_v55 = vpop.f32.mrb[181].mxu1  ;;  %v15946_v16 = vld [vmem:[#allocation74_spill] sm:$0xff]  ;;  %v15950_v36 = vld [vmem:[#allocation77_spill] sm:$0xff] }
 0x2e4   : > { %v11551_v8 = vpack.c.bf16 %v9671_v42, %v9671_v42  ;;  %v9672_v22 = vmax.f32 %v9544_v46, 0.0  ;;  %v8098_v7 = vmax.f32 %v15933_v6, %v7743_v54  ;;  %v12218_v20 = vpop.f32.mrb[182].mxu0  ;;  %v12350_v15 = vpop.f32.mrb[182].mxu1  ;;  %v15947_v42 = vld [vmem:[#allocation75_spill] sm:$0xff] }
 0x2e5   : > { %10314 = vst.msk [vmem:[%s14594_s14 + $0xc8] sm:$0xf] %vm10263_vm3, %v11553_v59  ;;  %v11554_v41 = vpack.c.bf16 %v9674_v31, %v9674_v31  ;;  %v9414_v21 = vmax.f32 %v8100_v37, %v12349_v56  ;;  %v8101_v50 = vmax.f32 %v15936_v49, %v12218_v20  ;;  %v7746_v48 = vpop.f32.mrb[183].mxu0  ;;  %v9060_v51 = vpop.f32.mrb[183].mxu1  ;;  %v15948_v46 = vmax.f32 %v15946_v16, %v15947_v42  ;;  %v15953_v49 = vld [vmem:[#allocation79_spill] sm:$0xff]  ;;  %v15964_v42 = vld [vmem:[#allocation86_spill] sm:$0xff] }
 0x2e6   : > { %10312 = vst.msk [vmem:[%s14594_s14 + $0xc0] sm:$0xf] %vm10263_vm3, %v11551_v8  ;;  %v11552_v57 = vpack.c.bf16 %v9672_v22, %v9672_v22  ;;  %v9412_v58 = vmax.f32 %v8098_v7, %v9057_v55  ;;  %v8099_v23 = vmax.f32 %v15939_v11, %v7746_v48  ;;  %v15951_v37 = vmax.f32 %v15949_v38, %v15950_v36  ;;  %v15956_v11 = vld [vmem:[#allocation81_spill] sm:$0xff]  ;;  %v15967_v36 = vld [vmem:[#allocation88_spill] sm:$0xff] }
 0x2e7   : > { %10315 = vst.msk [vmem:[%s14594_s14 + $0xcc] sm:$0xf] %vm10263_vm3, %v11554_v41  ;;  %v9549_v24 = vadd.f32 %v14570_v3, %v9414_v21  ;;  %v9415_v9 = vmax.f32 %v8101_v50, %v12350_v15  ;;  %v15954_v50 = vmax.f32 %v15952_v45, %v15953_v49  ;;  %v15973_v49 = vld [vmem:[#allocation92_spill] sm:$0xff] }
 0x2e8   : > { %10313 = vst.msk [vmem:[%s14594_s14 + $0xc4] sm:$0xf] %vm10263_vm3, %v11552_v57  ;;  %v9547_v10 = vadd.f32 %v14570_v3, %v9412_v58  ;;  %v9413_v60 = vmax.f32 %v8099_v23, %v9060_v51  ;;  %v15957_v23 = vmax.f32 %v15955_v14, %v15956_v11 }
 0x2e9   : > { %v9677_v61 = vmax.f32 %v9549_v24, 0.0  ;;  %v9550_v28 = vadd.f32 %v14570_v3, %v9415_v9 }
 0x2ea   : > { %v9675_v29 = vmax.f32 %v9547_v10, 0.0  ;;  %v9548_v33 = vadd.f32 %v14570_v3, %v9413_v60  ;;  %v12221_v34 = vpop.f32.mrb[184].mxu0  ;;  %v12353_v1 = vpop.f32.mrb[184].mxu1 }
 0x2eb   : > { %v11557_v2 = vpack.c.bf16 %v9677_v61, %v9677_v61  ;;  %v9678_v12 = vmax.f32 %v9550_v28, 0.0  ;;  %v8104_v53 = vmax.f32 %v15942_v52, %v12221_v34  ;;  %v7759_v18 = vpop.f32.mrb[185].mxu0  ;;  %v9073_v19 = vpop.f32.mrb[185].mxu1  ;;  %v15958_v61 = vld [vmem:[#allocation82_spill] sm:$0xff]  ;;  %v15959_v28 = vld [vmem:[#allocation83_spill] sm:$0xff]  ;;  %v15963_v52 = vmax.f32 %v15961_v13, %v15962_v17  ;;  %v15979_v17 = vld [vmem:[#allocation96_spill] sm:$0xff] }
 0x2ec   : > { %v11555_v32 = vpack.c.bf16 %v9675_v29, %v9675_v29  ;;  %v9676_v35 = vmax.f32 %v9548_v33, 0.0  ;;  %v8102_v5 = vmax.f32 %v15945_v4, %v7759_v18  ;;  %v12222_v30 = vpop.f32.mrb[186].mxu0  ;;  %v12354_v25 = vpop.f32.mrb[186].mxu1  ;;  %v15960_v29 = vmax.f32 %v15958_v61, %v15959_v28  ;;  %v14982_v18 = vld [vmem:[%s15393_s2] ss:$0 sm:$0xff]  ;;  %v15976_v28 = vld [vmem:[#allocation94_spill] sm:$0xff] }
 0x2ed   : > { %10318 = vst.msk [vmem:[%s14594_s14 + $0xd8] sm:$0xf] %vm10263_vm3, %v11557_v2  ;;  %v11558_v26 = vpack.c.bf16 %v9678_v12, %v9678_v12  ;;  %v9418_v0 = vmax.f32 %v8104_v53, %v12353_v1  ;;  %v8105_v43 = vmax.f32 %v15948_v46, %v12222_v30  ;;  %v7762_v56 = vpop.f32.mrb[187].mxu0  ;;  %v9076_v59 = vpop.f32.mrb[187].mxu1  ;;  %v15965_v46 = vld [vmem:[#allocation87_spill] sm:$0xff] }
 0x2ee   : > { %10316 = vst.msk [vmem:[%s14594_s14 + $0xd0] sm:$0xf] %vm10263_vm3, %v11555_v32  ;;  %v11556_v31 = vpack.c.bf16 %v9676_v35, %v9676_v35  ;;  %v9416_v47 = vmax.f32 %v8102_v5, %v9073_v19  ;;  %v8103_v54 = vmax.f32 %v15951_v37, %v7762_v56  ;;  %v15968_v37 = vld [vmem:[#allocation89_spill] sm:$0xff] }
 0x2ef   : > { %10319 = vst.msk [vmem:[%s14594_s14 + $0xdc] sm:$0xf] %vm10263_vm3, %v11558_v26  ;;  %v9553_v55 = vadd.f32 %v14570_v3, %v9418_v0  ;;  %v9419_v8 = vmax.f32 %v8105_v43, %v12354_v25  ;;  %v15966_v43 = vmax.f32 %v15964_v42, %v15965_v46  ;;  %v15985_v46 = vld [vmem:[#allocation100_spill] sm:$0xff] }
 0x2f0   : > { %10317 = vst.msk [vmem:[%s14594_s14 + $0xd4] sm:$0xf] %vm10263_vm3, %v11556_v31  ;;  %v9551_v22 = vadd.f32 %v14570_v3, %v9416_v47  ;;  %v9417_v39 = vmax.f32 %v8103_v54, %v9076_v59  ;;  %v15969_v54 = vmax.f32 %v15967_v36, %v15968_v37 }
 0x2f1   : > { %v9681_v40 = vmax.f32 %v9553_v55, 0.0  ;;  %v9554_v6 = vadd.f32 %v14570_v3, %v9419_v8 }
 0x2f2   : > { %v9679_v7 = vmax.f32 %v9551_v22, 0.0  ;;  %v9552_v20 = vadd.f32 %v14570_v3, %v9417_v39  ;;  %v12225_v15 = vpop.f32.mrb[188].mxu0  ;;  %v12357_v41 = vpop.f32.mrb[188].mxu1 }
 0x2f3   : > { %v11561_v21 = vpack.c.bf16 %v9681_v40, %v9681_v40  ;;  %v9682_v44 = vmax.f32 %v9554_v6, 0.0  ;;  %v8108_v48 = vmax.f32 %v15954_v50, %v12225_v15  ;;  %v7775_v51 = vpop.f32.mrb[189].mxu0  ;;  %v9089_v57 = vpop.f32.mrb[189].mxu1  ;;  %v15970_v6 = vld [vmem:[#allocation90_spill] sm:$0xff]  ;;  %v15974_v50 = vld [vmem:[#allocation93_spill] sm:$0xff] }
 0x2f4   : > { %v11559_v58 = vpack.c.bf16 %v9679_v7, %v9679_v7  ;;  %v9680_v27 = vmax.f32 %v9552_v20, 0.0  ;;  %v8106_v24 = vmax.f32 %v15957_v23, %v7775_v51  ;;  %v12226_v9 = vpop.f32.mrb[190].mxu0  ;;  %v12358_v3 = vpop.f32.mrb[190].mxu1  ;;  %v15971_v7 = vld [vmem:[#allocation91_spill] sm:$0xff] }
 0x2f5   : > { %10322 = vst.msk [vmem:[%s14594_s14 + $0xe8] sm:$0xf] %vm10263_vm3, %v11561_v21  ;;  %v11562_v10 = vpack.c.bf16 %v9682_v44, %v9682_v44  ;;  %v9422_v60 = vmax.f32 %v8108_v48, %v12357_v41  ;;  %v8109_v33 = vmax.f32 %v15960_v29, %v12226_v9  ;;  %v7778_v34 = vpop.f32.mrb[191].mxu0  ;;  %v9092_v1 = vpop.f32.mrb[191].mxu1  ;;  %v15972_v20 = vmax.f32 %v15970_v6, %v15971_v7  ;;  %v15977_v29 = vld [vmem:[#allocation95_spill] sm:$0xff]  ;;  %v15988_v7 = vld [vmem:[#allocation102_spill] sm:$0xff] }
 0x2f6   : > { %10320 = vst.msk [vmem:[%s14594_s14 + $0xe0] sm:$0xf] %vm10263_vm3, %v11559_v58  ;;  %v11560_v2 = vpack.c.bf16 %v9680_v27, %v9680_v27  ;;  %v9420_v12 = vmax.f32 %v8106_v24, %v9089_v57  ;;  %v8107_v53 = vmax.f32 %v15963_v52, %v7778_v34  ;;  %v15975_v48 = vmax.f32 %v15973_v49, %v15974_v50  ;;  %v15980_v52 = vld [vmem:[#allocation97_spill] sm:$0xff]  ;;  %v15991_v50 = vld [vmem:[#allocation104_spill] sm:$0xff] }
 0x2f7   : > { %10323 = vst.msk [vmem:[%s14594_s14 + $0xec] sm:$0xf] %vm10263_vm3, %v11562_v10  ;;  %v9557_v19 = vadd.f32 %v14982_v18, %v9422_v60  ;;  %v9423_v32 = vmax.f32 %v8109_v33, %v12358_v3  ;;  %v15978_v33 = vmax.f32 %v15976_v28, %v15977_v29  ;;  %v15997_v29 = vld [vmem:[#allocation108_spill] sm:$0xff] }
 0x2f8   : > { %10321 = vst.msk [vmem:[%s14594_s14 + $0xe4] sm:$0xf] %vm10263_vm3, %v11560_v2  ;;  %v9555_v35 = vadd.f32 %v14982_v18, %v9420_v12  ;;  %v9421_v62 = vmax.f32 %v8107_v53, %v9092_v1  ;;  %v15981_v53 = vmax.f32 %v15979_v17, %v15980_v52 }
 0x2f9   : > { %v9685_v63 = vmax.f32 %v9557_v19, 0.0  ;;  %v9558_v4 = vadd.f32 %v14982_v18, %v9423_v32 }
 0x2fa   : > { %v9683_v5 = vmax.f32 %v9555_v35, 0.0  ;;  %v9556_v30 = vadd.f32 %v14982_v18, %v9421_v62  ;;  %v12229_v25 = vpop.f32.mrb[192].mxu0  ;;  %v12361_v26 = vpop.f32.mrb[192].mxu1 }
 0x2fb   : > { %v11565_v0 = vpack.c.bf16 %v9685_v63, %v9685_v63  ;;  %v9686_v16 = vmax.f32 %v9558_v4, 0.0  ;;  %v8112_v56 = vmax.f32 %v15966_v43, %v12229_v25  ;;  %v7791_v59 = vpop.f32.mrb[193].mxu0  ;;  %v9105_v31 = vpop.f32.mrb[193].mxu1  ;;  %v15982_v4 = vld [vmem:[#allocation98_spill] sm:$0xff]  ;;  %v15986_v43 = vld [vmem:[#allocation101_spill] sm:$0xff] }
 0x2fc   : > { %v11563_v47 = vpack.c.bf16 %v9683_v5, %v9683_v5  ;;  %v9684_v38 = vmax.f32 %v9556_v30, 0.0  ;;  %v8110_v55 = vmax.f32 %v15969_v54, %v7791_v59  ;;  %v12230_v8 = vpop.f32.mrb[194].mxu0  ;;  %v12362_v22 = vpop.f32.mrb[194].mxu1  ;;  %v15983_v5 = vld [vmem:[#allocation99_spill] sm:$0xff] }
 0x2fd   : > { %10326 = vst.msk [vmem:[%s14594_s14 + $0xf8] sm:$0xf] %vm10263_vm3, %v11565_v0  ;;  %v11566_v39 = vpack.c.bf16 %v9686_v16, %v9686_v16  ;;  %v9426_v40 = vmax.f32 %v8112_v56, %v12361_v26  ;;  %v8113_v15 = vmax.f32 %v15972_v20, %v12230_v8  ;;  %v7794_v41 = vpop.f32.mrb[195].mxu0  ;;  %v9108_v21 = vpop.f32.mrb[195].mxu1  ;;  %v15984_v30 = vmax.f32 %v15982_v4, %v15983_v5  ;;  %v15989_v20 = vld [vmem:[#allocation103_spill] sm:$0xff]  ;;  %v16000_v5 = vld [vmem:[#allocation110_spill] sm:$0xff] }
 0x2fe   : > { %10324 = vst.msk [vmem:[%s14594_s14 + $0xf0] sm:$0xf] %vm10263_vm3, %v11563_v47  ;;  %v11564_v44 = vpack.c.bf16 %v9684_v38, %v9684_v38  ;;  %v9424_v45 = vmax.f32 %v8110_v55, %v9105_v31  ;;  %v8111_v51 = vmax.f32 %v15975_v48, %v7794_v41  ;;  %v15987_v56 = vmax.f32 %v15985_v46, %v15986_v43  ;;  %v15992_v48 = vld [vmem:[#allocation105_spill] sm:$0xff]  ;;  %v16003_v43 = vld [vmem:[#allocation112_spill] sm:$0xff] }
 0x2ff   : > { %10327 = vst.msk [vmem:[%s14594_s14 + $0xfc] sm:$0xf] %vm10263_vm3, %v11566_v39  ;;  %v9561_v57 = vadd.f32 %v14982_v18, %v9426_v40  ;;  %v9427_v58 = vmax.f32 %v8113_v15, %v12362_v22  ;;  %v15990_v15 = vmax.f32 %v15988_v7, %v15989_v20  ;;  %v16009_v20 = vld [vmem:[#allocation116_spill] sm:$0xff] }
 0x300   : > { %10325 = vst.msk [vmem:[%s14594_s14 + $0xf4] sm:$0xf] %vm10263_vm3, %v11564_v44  ;;  %v9559_v27 = vadd.f32 %v14982_v18, %v9424_v45  ;;  %v9425_v14 = vmax.f32 %v8111_v51, %v9108_v21  ;;  %v15993_v51 = vmax.f32 %v15991_v50, %v15992_v48 }
 0x301   : > { %v9689_v11 = vmax.f32 %v9561_v57, 0.0  ;;  %v9562_v23 = vadd.f32 %v14982_v18, %v9427_v58 }
 0x302   : > { %v9687_v24 = vmax.f32 %v9559_v27, 0.0  ;;  %v9560_v9 = vadd.f32 %v14982_v18, %v9425_v14  ;;  %v12233_v3 = vpop.f32.mrb[196].mxu0  ;;  %v12365_v10 = vpop.f32.mrb[196].mxu1 }
 0x303   : > { %v11569_v60 = vpack.c.bf16 %v9689_v11, %v9689_v11  ;;  %v9690_v61 = vmax.f32 %v9562_v23, 0.0  ;;  %v8116_v34 = vmax.f32 %v15978_v33, %v12233_v3  ;;  %v7807_v1 = vpop.f32.mrb[197].mxu0  ;;  %v9121_v2 = vpop.f32.mrb[197].mxu1  ;;  %v15994_v23 = vld [vmem:[#allocation106_spill] sm:$0xff]  ;;  %v15998_v33 = vld [vmem:[#allocation109_spill] sm:$0xff] }
 0x304   : > { %v11567_v12 = vpack.c.bf16 %v9687_v24, %v9687_v24  ;;  %v9688_v13 = vmax.f32 %v9560_v9, 0.0  ;;  %v8114_v19 = vmax.f32 %v15981_v53, %v7807_v1  ;;  %v12234_v32 = vpop.f32.mrb[198].mxu0  ;;  %v12366_v35 = vpop.f32.mrb[198].mxu1  ;;  %v15995_v24 = vld [vmem:[#allocation107_spill] sm:$0xff] }
 0x305   : > { %10330 = vst.msk [vmem:[%s14594_s14 + $0x108] sm:$0xf] %vm10263_vm3, %v11569_v60  ;;  %v11570_v62 = vpack.c.bf16 %v9690_v61, %v9690_v61  ;;  %v9430_v63 = vmax.f32 %v8116_v34, %v12365_v10  ;;  %v8117_v25 = vmax.f32 %v15984_v30, %v12234_v32  ;;  %v7810_v26 = vpop.f32.mrb[199].mxu0  ;;  %v9124_v0 = vpop.f32.mrb[199].mxu1  ;;  %v15996_v9 = vmax.f32 %v15994_v23, %v15995_v24  ;;  %v16001_v30 = vld [vmem:[#allocation111_spill] sm:$0xff]  ;;  %v16012_v24 = vld [vmem:[#allocation118_spill] sm:$0xff] }
 0x306   : > { %10328 = vst.msk [vmem:[%s14594_s14 + $0x100] sm:$0xf] %vm10263_vm3, %v11567_v12  ;;  %v11568_v16 = vpack.c.bf16 %v9688_v13, %v9688_v13  ;;  %v9428_v42 = vmax.f32 %v8114_v19, %v9121_v2  ;;  %v8115_v59 = vmax.f32 %v15987_v56, %v7810_v26  ;;  %v15999_v34 = vmax.f32 %v15997_v29, %v15998_v33  ;;  %v16004_v56 = vld [vmem:[#allocation113_spill] sm:$0xff]  ;;  %v16015_v33 = vld [vmem:[#allocation120_spill] sm:$0xff] }
 0x307   : > { %10331 = vst.msk [vmem:[%s14594_s14 + $0x10c] sm:$0xf] %vm10263_vm3, %v11570_v62  ;;  %v9565_v31 = vadd.f32 %v14982_v18, %v9430_v63  ;;  %v9431_v47 = vmax.f32 %v8117_v25, %v12366_v35  ;;  %v16002_v25 = vmax.f32 %v16000_v5, %v16001_v30  ;;  %v16021_v30 = vld [vmem:[#allocation124_spill] sm:$0xff] }
 0x308   : > { %10329 = vst.msk [vmem:[%s14594_s14 + $0x104] sm:$0xf] %vm10263_vm3, %v11568_v16  ;;  %v9563_v38 = vadd.f32 %v14982_v18, %v9428_v42  ;;  %v9429_v36 = vmax.f32 %v8115_v59, %v9124_v0  ;;  %v16005_v59 = vmax.f32 %v16003_v43, %v16004_v56 }
 0x309   : > { %v9693_v37 = vmax.f32 %v9565_v31, 0.0  ;;  %v9566_v54 = vadd.f32 %v14982_v18, %v9431_v47 }
 0x30a   : > { %v9691_v55 = vmax.f32 %v9563_v38, 0.0  ;;  %v9564_v8 = vadd.f32 %v14982_v18, %v9429_v36  ;;  %v12237_v22 = vpop.f32.mrb[200].mxu0  ;;  %v12369_v39 = vpop.f32.mrb[200].mxu1 }
 0x30b   : > { %v11573_v40 = vpack.c.bf16 %v9693_v37, %v9693_v37  ;;  %v9694_v6 = vmax.f32 %v9566_v54, 0.0  ;;  %v8120_v41 = vmax.f32 %v15990_v15, %v12237_v22  ;;  %v7823_v21 = vpop.f32.mrb[201].mxu0  ;;  %v9137_v44 = vpop.f32.mrb[201].mxu1  ;;  %v16006_v54 = vld [vmem:[#allocation114_spill] sm:$0xff]  ;;  %v16010_v15 = vld [vmem:[#allocation117_spill] sm:$0xff] }
 0x30c   : > { %v11571_v45 = vpack.c.bf16 %v9691_v55, %v9691_v55  ;;  %v9692_v49 = vmax.f32 %v9564_v8, 0.0  ;;  %v8118_v57 = vmax.f32 %v15993_v51, %v7823_v21  ;;  %v12238_v58 = vpop.f32.mrb[202].mxu0  ;;  %v12370_v27 = vpop.f32.mrb[202].mxu1  ;;  %v16007_v55 = vld [vmem:[#allocation115_spill] sm:$0xff] }
 0x30d   : > { %10334 = vst.msk [vmem:[%s14594_s14 + $0x118] sm:$0xf] %vm10263_vm3, %v11573_v40  ;;  %v11574_v14 = vpack.c.bf16 %v9694_v6, %v9694_v6  ;;  %v9434_v11 = vmax.f32 %v8120_v41, %v12369_v39  ;;  %v8121_v3 = vmax.f32 %v15996_v9, %v12238_v58  ;;  %v7826_v10 = vpop.f32.mrb[203].mxu0  ;;  %v9140_v60 = vpop.f32.mrb[203].mxu1  ;;  %v16008_v8 = vmax.f32 %v16006_v54, %v16007_v55  ;;  %v16013_v9 = vld [vmem:[#allocation119_spill] sm:$0xff]  ;;  %v16024_v55 = vld [vmem:[#allocation126_spill] sm:$0xff] }
 0x30e   : > { %10332 = vst.msk [vmem:[%s14594_s14 + $0x110] sm:$0xf] %vm10263_vm3, %v11571_v45  ;;  %v11572_v61 = vpack.c.bf16 %v9692_v49, %v9692_v49  ;;  %v9432_v28 = vmax.f32 %v8118_v57, %v9137_v44  ;;  %v8119_v1 = vmax.f32 %v15999_v34, %v7826_v10  ;;  %v16011_v41 = vmax.f32 %v16009_v20, %v16010_v15  ;;  %v16016_v34 = vld [vmem:[#allocation121_spill] sm:$0xff]  ;;  %v16027_v15 = vld [vmem:[#allocation128_spill] sm:$0xff] }
 0x30f   : > { %10335 = vst.msk [vmem:[%s14594_s14 + $0x11c] sm:$0xf] %vm10263_vm3, %v11574_v14  ;;  %v9569_v2 = vadd.f32 %v14982_v18, %v9434_v11  ;;  %v9435_v12 = vmax.f32 %v8121_v3, %v12370_v27  ;;  %v16014_v3 = vmax.f32 %v16012_v24, %v16013_v9  ;;  %v16033_v9 = vld [vmem:[#allocation132_spill] sm:$0xff] }
 0x310   : > { %10333 = vst.msk [vmem:[%s14594_s14 + $0x114] sm:$0xf] %vm10263_vm3, %v11572_v61  ;;  %v9567_v13 = vadd.f32 %v14982_v18, %v9432_v28  ;;  %v9433_v17 = vmax.f32 %v8119_v1, %v9140_v60  ;;  %v16017_v1 = vmax.f32 %v16015_v33, %v16016_v34 }
 0x311   : > { %v9697_v52 = vmax.f32 %v9569_v2, 0.0  ;;  %v9570_v53 = vadd.f32 %v14982_v18, %v9435_v12 }
 0x312   : > { %v9695_v19 = vmax.f32 %v9567_v13, 0.0  ;;  %v9568_v32 = vadd.f32 %v14982_v18, %v9433_v17  ;;  %v12241_v35 = vpop.f32.mrb[204].mxu0  ;;  %v12373_v62 = vpop.f32.mrb[204].mxu1 }
 0x313   : > { %v11577_v63 = vpack.c.bf16 %v9697_v52, %v9697_v52  ;;  %v9698_v4 = vmax.f32 %v9570_v53, 0.0  ;;  %v8124_v26 = vmax.f32 %v16002_v25, %v12241_v35  ;;  %v7839_v0 = vpop.f32.mrb[205].mxu0  ;;  %v9153_v16 = vpop.f32.mrb[205].mxu1  ;;  %v16018_v53 = vld [vmem:[#allocation122_spill] sm:$0xff]  ;;  %v16022_v25 = vld [vmem:[#allocation125_spill] sm:$0xff] }
 0x314   : > { %v11575_v42 = vpack.c.bf16 %v9695_v19, %v9695_v19  ;;  %v9696_v46 = vmax.f32 %v9568_v32, 0.0  ;;  %v8122_v31 = vmax.f32 %v16005_v59, %v7839_v0  ;;  %v12242_v47 = vpop.f32.mrb[206].mxu0  ;;  %v12374_v38 = vpop.f32.mrb[206].mxu1  ;;  %v16019_v19 = vld [vmem:[#allocation123_spill] sm:$0xff] }
 0x315   : > { %10338 = vst.msk [vmem:[%s14594_s14 + $0x128] sm:$0xf] %vm10263_vm3, %v11577_v63  ;;  %v11578_v36 = vpack.c.bf16 %v9698_v4, %v9698_v4  ;;  %v9438_v37 = vmax.f32 %v8124_v26, %v12373_v62  ;;  %v8125_v22 = vmax.f32 %v16008_v8, %v12242_v47  ;;  %v7842_v39 = vpop.f32.mrb[207].mxu0  ;;  %v9156_v40 = vpop.f32.mrb[207].mxu1  ;;  %v16020_v32 = vmax.f32 %v16018_v53, %v16019_v19  ;;  %v16025_v8 = vld [vmem:[#allocation127_spill] sm:$0xff]  ;;  %v16036_v19 = vld [vmem:[#allocation134_spill] sm:$0xff] }
 0x316   : > { %10336 = vst.msk [vmem:[%s14594_s14 + $0x120] sm:$0xf] %vm10263_vm3, %v11575_v42  ;;  %v11576_v6 = vpack.c.bf16 %v9696_v46, %v9696_v46  ;;  %v9436_v7 = vmax.f32 %v8122_v31, %v9153_v16  ;;  %v8123_v21 = vmax.f32 %v16011_v41, %v7842_v39  ;;  %v16023_v26 = vmax.f32 %v16021_v30, %v16022_v25  ;;  %v16028_v41 = vld [vmem:[#allocation129_spill] sm:$0xff]  ;;  %v16039_v25 = vld [vmem:[#allocation136_spill] sm:$0xff] }
 0x317   : > { %10339 = vst.msk [vmem:[%s14594_s14 + $0x12c] sm:$0xf] %vm10263_vm3, %v11578_v36  ;;  %v9573_v44 = vadd.f32 %v14982_v18, %v9438_v37  ;;  %v9439_v45 = vmax.f32 %v8125_v22, %v12374_v38  ;;  %v16026_v22 = vmax.f32 %v16024_v55, %v16025_v8  ;;  %v16045_v8 = vld [vmem:[#allocation140_spill] sm:$0xff] }
 0x318   : > { %10337 = vst.msk [vmem:[%s14594_s14 + $0x124] sm:$0xf] %vm10263_vm3, %v11576_v6  ;;  %v9571_v49 = vadd.f32 %v14982_v18, %v9436_v7  ;;  %v9437_v50 = vmax.f32 %v8123_v21, %v9156_v40  ;;  %v16029_v21 = vmax.f32 %v16027_v15, %v16028_v41 }
 0x319   : > { %v9701_v48 = vmax.f32 %v9573_v44, 0.0  ;;  %v9574_v51 = vadd.f32 %v14982_v18, %v9439_v45 }
 0x31a   : > { %v9699_v57 = vmax.f32 %v9571_v49, 0.0  ;;  %v9572_v58 = vadd.f32 %v14982_v18, %v9437_v50  ;;  %v12245_v27 = vpop.f32.mrb[208].mxu0  ;;  %v12377_v14 = vpop.f32.mrb[208].mxu1 }
 0x31b   : > { %v11581_v11 = vpack.c.bf16 %v9701_v48, %v9701_v48  ;;  %v9702_v23 = vmax.f32 %v9574_v51, 0.0  ;;  %v8128_v10 = vmax.f32 %v16014_v3, %v12245_v27  ;;  %v7855_v60 = vpop.f32.mrb[209].mxu0  ;;  %v9169_v61 = vpop.f32.mrb[209].mxu1  ;;  %v16030_v51 = vld [vmem:[#allocation130_spill] sm:$0xff]  ;;  %v16034_v3 = vld [vmem:[#allocation133_spill] sm:$0xff] }
 0x31c   : > { %v11579_v28 = vpack.c.bf16 %v9699_v57, %v9699_v57  ;;  %v9700_v29 = vmax.f32 %v9572_v58, 0.0  ;;  %v8126_v2 = vmax.f32 %v16017_v1, %v7855_v60  ;;  %v12246_v12 = vpop.f32.mrb[210].mxu0  ;;  %v12378_v13 = vpop.f32.mrb[210].mxu1  ;;  %v16031_v57 = vld [vmem:[#allocation131_spill] sm:$0xff] }
 0x31d   : > { %10342 = vst.msk [vmem:[%s14594_s14 + $0x138] sm:$0xf] %vm10263_vm3, %v11581_v11  ;;  %v11582_v17 = vpack.c.bf16 %v9702_v23, %v9702_v23  ;;  %v9442_v52 = vmax.f32 %v8128_v10, %v12377_v14  ;;  %v8129_v35 = vmax.f32 %v16020_v32, %v12246_v12  ;;  %v7858_v62 = vpop.f32.mrb[211].mxu0  ;;  %v9172_v63 = vpop.f32.mrb[211].mxu1  ;;  %v16032_v58 = vmax.f32 %v16030_v51, %v16031_v57  ;;  %v16037_v32 = vld [vmem:[#allocation135_spill] sm:$0xff]  ;;  %v16048_v57 = vld [vmem:[#allocation142_spill] sm:$0xff] }
 0x31e   : > { %10340 = vst.msk [vmem:[%s14594_s14 + $0x130] sm:$0xf] %vm10263_vm3, %v11579_v28  ;;  %v11580_v4 = vpack.c.bf16 %v9700_v29, %v9700_v29  ;;  %v9440_v5 = vmax.f32 %v8126_v2, %v9169_v61  ;;  %v8127_v0 = vmax.f32 %v16023_v26, %v7858_v62  ;;  %v16035_v10 = vmax.f32 %v16033_v9, %v16034_v3  ;;  %v16040_v26 = vld [vmem:[#allocation137_spill] sm:$0xff]  ;;  %v16051_v3 = vld [vmem:[#allocation144_spill] sm:$0xff] }
 0x31f   : > { %10343 = vst.msk [vmem:[%s14594_s14 + $0x13c] sm:$0xf] %vm10263_vm3, %v11582_v17  ;;  %v9577_v16 = vadd.f32 %v14982_v18, %v9442_v52  ;;  %v9443_v42 = vmax.f32 %v8129_v35, %v12378_v13  ;;  %v16038_v35 = vmax.f32 %v16036_v19, %v16037_v32  ;;  %v16057_v32 = vld [vmem:[#allocation148_spill] sm:$0xff] }
 0x320   : > { %10341 = vst.msk [vmem:[%s14594_s14 + $0x134] sm:$0xf] %vm10263_vm3, %v11580_v4  ;;  %v9575_v46 = vadd.f32 %v14982_v18, %v9440_v5  ;;  %v9441_v43 = vmax.f32 %v8127_v0, %v9172_v63  ;;  %v16041_v0 = vmax.f32 %v16039_v25, %v16040_v26 }
 0x321   : > { %v9705_v56 = vmax.f32 %v9577_v16, 0.0  ;;  %v9578_v59 = vadd.f32 %v14982_v18, %v9443_v42 }
 0x322   : > { %v9703_v31 = vmax.f32 %v9575_v46, 0.0  ;;  %v9576_v47 = vadd.f32 %v14982_v18, %v9441_v43  ;;  %v12249_v38 = vpop.f32.mrb[212].mxu0  ;;  %v12381_v36 = vpop.f32.mrb[212].mxu1 }
 0x323   : > { %v11585_v37 = vpack.c.bf16 %v9705_v56, %v9705_v56  ;;  %v9706_v54 = vmax.f32 %v9578_v59, 0.0  ;;  %v8132_v39 = vmax.f32 %v16026_v22, %v12249_v38  ;;  %v7871_v40 = vpop.f32.mrb[213].mxu0  ;;  %v9185_v6 = vpop.f32.mrb[213].mxu1  ;;  %v16042_v59 = vld [vmem:[#allocation138_spill] sm:$0xff]  ;;  %v16046_v22 = vld [vmem:[#allocation141_spill] sm:$0xff] }
 0x324   : > { %v11583_v7 = vpack.c.bf16 %v9703_v31, %v9703_v31  ;;  %v9704_v20 = vmax.f32 %v9576_v47, 0.0  ;;  %v8130_v44 = vmax.f32 %v16029_v21, %v7871_v40  ;;  %v12250_v45 = vpop.f32.mrb[214].mxu0  ;;  %v12382_v49 = vpop.f32.mrb[214].mxu1  ;;  %v16043_v31 = vld [vmem:[#allocation139_spill] sm:$0xff] }
 0x325   : > { %10346 = vst.msk [vmem:[%s14594_s14 + $0x148] sm:$0xf] %vm10263_vm3, %v11585_v37  ;;  %v11586_v50 = vpack.c.bf16 %v9706_v54, %v9706_v54  ;;  %v9446_v48 = vmax.f32 %v8132_v39, %v12381_v36  ;;  %v8133_v27 = vmax.f32 %v16032_v58, %v12250_v45  ;;  %v7874_v14 = vpop.f32.mrb[215].mxu0  ;;  %v9188_v11 = vpop.f32.mrb[215].mxu1  ;;  %v16044_v47 = vmax.f32 %v16042_v59, %v16043_v31  ;;  %v16049_v58 = vld [vmem:[#allocation143_spill] sm:$0xff]  ;;  %v16060_v31 = vld [vmem:[#allocation150_spill] sm:$0xff] }
 0x326   : > { %10344 = vst.msk [vmem:[%s14594_s14 + $0x140] sm:$0xf] %vm10263_vm3, %v11583_v7  ;;  %v11584_v23 = vpack.c.bf16 %v9704_v20, %v9704_v20  ;;  %v9444_v24 = vmax.f32 %v8130_v44, %v9185_v6  ;;  %v8131_v60 = vmax.f32 %v16035_v10, %v7874_v14  ;;  %v16047_v39 = vmax.f32 %v16045_v8, %v16046_v22  ;;  %v16052_v10 = vld [vmem:[#allocation145_spill] sm:$0xff]  ;;  %v16063_v22 = vld [vmem:[#allocation152_spill] sm:$0xff] }
 0x327   : > { %10347 = vst.msk [vmem:[%s14594_s14 + $0x14c] sm:$0xf] %vm10263_vm3, %v11586_v50  ;;  %v9581_v61 = vadd.f32 %v14982_v18, %v9446_v48  ;;  %v9447_v28 = vmax.f32 %v8133_v27, %v12382_v49  ;;  %v16050_v27 = vmax.f32 %v16048_v57, %v16049_v58  ;;  %v16069_v58 = vld [vmem:[#allocation156_spill] sm:$0xff] }
 0x328   : > { %10345 = vst.msk [vmem:[%s14594_s14 + $0x144] sm:$0xf] %vm10263_vm3, %v11584_v23  ;;  %v9579_v29 = vadd.f32 %v14982_v18, %v9444_v24  ;;  %v9445_v33 = vmax.f32 %v8131_v60, %v9188_v11  ;;  %v16053_v60 = vmax.f32 %v16051_v3, %v16052_v10 }
 0x329   : > { %v9709_v34 = vmax.f32 %v9581_v61, 0.0  ;;  %v9582_v1 = vadd.f32 %v14982_v18, %v9447_v28 }
 0x32a   : > { %v9707_v2 = vmax.f32 %v9579_v29, 0.0  ;;  %v9580_v12 = vadd.f32 %v14982_v18, %v9445_v33  ;;  %v12253_v13 = vpop.f32.mrb[216].mxu0  ;;  %v12385_v17 = vpop.f32.mrb[216].mxu1 }
 0x32b   : > { %v11589_v52 = vpack.c.bf16 %v9709_v34, %v9709_v34  ;;  %v9710_v53 = vmax.f32 %v9582_v1, 0.0  ;;  %v8136_v62 = vmax.f32 %v16038_v35, %v12253_v13  ;;  %v7887_v63 = vpop.f32.mrb[217].mxu0  ;;  %v9201_v4 = vpop.f32.mrb[217].mxu1  ;;  %v16054_v1 = vld [vmem:[#allocation146_spill] sm:$0xff]  ;;  %v16058_v35 = vld [vmem:[#allocation149_spill] sm:$0xff] }
 0x32c   : > { %v11587_v5 = vpack.c.bf16 %v9707_v2, %v9707_v2  ;;  %v9708_v30 = vmax.f32 %v9580_v12, 0.0  ;;  %v8134_v16 = vmax.f32 %v16041_v0, %v7887_v63  ;;  %v12254_v42 = vpop.f32.mrb[218].mxu0  ;;  %v12386_v46 = vpop.f32.mrb[218].mxu1  ;;  %v16055_v2 = vld [vmem:[#allocation147_spill] sm:$0xff] }
 0x32d   : > { %10350 = vst.msk [vmem:[%s14594_s14 + $0x158] sm:$0xf] %vm10263_vm3, %v11589_v52  ;;  %v11590_v43 = vpack.c.bf16 %v9710_v53, %v9710_v53  ;;  %v9450_v56 = vmax.f32 %v8136_v62, %v12385_v17  ;;  %v8137_v38 = vmax.f32 %v16044_v47, %v12254_v42  ;;  %v7890_v36 = vpop.f32.mrb[219].mxu0  ;;  %v9204_v37 = vpop.f32.mrb[219].mxu1  ;;  %v16056_v12 = vmax.f32 %v16054_v1, %v16055_v2  ;;  %v16061_v47 = vld [vmem:[#allocation151_spill] sm:$0xff]  ;;  %v16072_v2 = vld [vmem:[#allocation158_spill] sm:$0xff] }
 0x32e   : > { %10348 = vst.msk [vmem:[%s14594_s14 + $0x150] sm:$0xf] %vm10263_vm3, %v11587_v5  ;;  %v11588_v54 = vpack.c.bf16 %v9708_v30, %v9708_v30  ;;  %v9448_v55 = vmax.f32 %v8134_v16, %v9201_v4  ;;  %v8135_v40 = vmax.f32 %v16047_v39, %v7890_v36  ;;  %v16059_v62 = vmax.f32 %v16057_v32, %v16058_v35  ;;  %v16064_v39 = vld [vmem:[#allocation153_spill] sm:$0xff]  ;;  %v16075_v35 = vld [vmem:[#allocation160_spill] sm:$0xff] }
 0x32f   : > { %10351 = vst.msk [vmem:[%s14594_s14 + $0x15c] sm:$0xf] %vm10263_vm3, %v11590_v43  ;;  %v9585_v6 = vadd.f32 %v14982_v18, %v9450_v56  ;;  %v9451_v7 = vmax.f32 %v8137_v38, %v12386_v46  ;;  %v16062_v38 = vmax.f32 %v16060_v31, %v16061_v47  ;;  %v16081_v47 = vld [vmem:[#allocation164_spill] sm:$0xff] }
 0x330   : > { %10349 = vst.msk [vmem:[%s14594_s14 + $0x154] sm:$0xf] %vm10263_vm3, %v11588_v54  ;;  %v9583_v20 = vadd.f32 %v14982_v18, %v9448_v55  ;;  %v9449_v15 = vmax.f32 %v8135_v40, %v9204_v37  ;;  %v16065_v40 = vmax.f32 %v16063_v22, %v16064_v39 }
 0x331   : > { %v9713_v41 = vmax.f32 %v9585_v6, 0.0  ;;  %v9586_v21 = vadd.f32 %v14982_v18, %v9451_v7 }
 0x332   : > { %v9711_v44 = vmax.f32 %v9583_v20, 0.0  ;;  %v9584_v45 = vadd.f32 %v14982_v18, %v9449_v15  ;;  %v12257_v49 = vpop.f32.mrb[220].mxu0  ;;  %v12389_v50 = vpop.f32.mrb[220].mxu1 }
 0x333   : > { %v11593_v48 = vpack.c.bf16 %v9713_v41, %v9713_v41  ;;  %v9714_v51 = vmax.f32 %v9586_v21, 0.0  ;;  %v8140_v14 = vmax.f32 %v16050_v27, %v12257_v49  ;;  %v7903_v11 = vpop.f32.mrb[221].mxu0  ;;  %v9217_v23 = vpop.f32.mrb[221].mxu1  ;;  %v16066_v21 = vld [vmem:[#allocation154_spill] sm:$0xff]  ;;  %v16070_v27 = vld [vmem:[#allocation157_spill] sm:$0xff] }
 0x334   : > { %v11591_v24 = vpack.c.bf16 %v9711_v44, %v9711_v44  ;;  %v9712_v9 = vmax.f32 %v9584_v45, 0.0  ;;  %v8138_v61 = vmax.f32 %v16053_v60, %v7903_v11  ;;  %v12258_v28 = vpop.f32.mrb[222].mxu0  ;;  %v12390_v29 = vpop.f32.mrb[222].mxu1  ;;  %v16067_v44 = vld [vmem:[#allocation155_spill] sm:$0xff] }
 0x335   : > { %10354 = vst.msk [vmem:[%s14594_s14 + $0x168] sm:$0xf] %vm10263_vm3, %v11593_v48  ;;  %v11594_v33 = vpack.c.bf16 %v9714_v51, %v9714_v51  ;;  %v9454_v34 = vmax.f32 %v8140_v14, %v12389_v50  ;;  %v8141_v13 = vmax.f32 %v16056_v12, %v12258_v28  ;;  %v7906_v17 = vpop.f32.mrb[223].mxu0  ;;  %v9220_v52 = vpop.f32.mrb[223].mxu1  ;;  %v16068_v45 = vmax.f32 %v16066_v21, %v16067_v44  ;;  %v16073_v12 = vld [vmem:[#allocation159_spill] sm:$0xff]  ;;  %v16084_v44 = vld [vmem:[#allocation166_spill] sm:$0xff] }
 0x336   : > { %10352 = vst.msk [vmem:[%s14594_s14 + $0x160] sm:$0xf] %vm10263_vm3, %v11591_v24  ;;  %v11592_v53 = vpack.c.bf16 %v9712_v9, %v9712_v9  ;;  %v9452_v19 = vmax.f32 %v8138_v61, %v9217_v23  ;;  %v8139_v63 = vmax.f32 %v16059_v62, %v7906_v17  ;;  %v16071_v14 = vmax.f32 %v16069_v58, %v16070_v27  ;;  %v16076_v62 = vld [vmem:[#allocation161_spill] sm:$0xff]  ;;  %v16087_v27 = vld [vmem:[#allocation168_spill] sm:$0xff] }
 0x337   : > { %10355 = vst.msk [vmem:[%s14594_s14 + $0x16c] sm:$0xf] %vm10263_vm3, %v11594_v33  ;;  %v9589_v4 = vadd.f32 %v14982_v18, %v9454_v34  ;;  %v9455_v5 = vmax.f32 %v8141_v13, %v12390_v29  ;;  %v16074_v13 = vmax.f32 %v16072_v2, %v16073_v12  ;;  %v16093_v12 = vld [vmem:[#allocation172_spill] sm:$0xff] }
 0x338   : > { %10353 = vst.msk [vmem:[%s14594_s14 + $0x164] sm:$0xf] %vm10263_vm3, %v11592_v53  ;;  %v9587_v30 = vadd.f32 %v14982_v18, %v9452_v19  ;;  %v9453_v25 = vmax.f32 %v8139_v63, %v9220_v52  ;;  %v16077_v63 = vmax.f32 %v16075_v35, %v16076_v62 }
 0x339   : > { %v9717_v26 = vmax.f32 %v9589_v4, 0.0  ;;  %v9590_v0 = vadd.f32 %v14982_v18, %v9455_v5 }
 0x33a   : > { %v9715_v16 = vmax.f32 %v9587_v30, 0.0  ;;  %v9588_v42 = vadd.f32 %v14982_v18, %v9453_v25  ;;  %v12261_v46 = vpop.f32.mrb[224].mxu0  ;;  %v12393_v43 = vpop.f32.mrb[224].mxu1 }
 0x33b   : > { %v11597_v56 = vpack.c.bf16 %v9717_v26, %v9717_v26  ;;  %v9718_v59 = vmax.f32 %v9590_v0, 0.0  ;;  %v8144_v36 = vmax.f32 %v16062_v38, %v12261_v46  ;;  %v7919_v37 = vpop.f32.mrb[225].mxu0  ;;  %v9233_v54 = vpop.f32.mrb[225].mxu1  ;;  %v16078_v0 = vld [vmem:[#allocation162_spill] sm:$0xff]  ;;  %v16082_v38 = vld [vmem:[#allocation165_spill] sm:$0xff] }
 0x33c   : > { %v11595_v55 = vpack.c.bf16 %v9715_v16, %v9715_v16  ;;  %v9716_v8 = vmax.f32 %v9588_v42, 0.0  ;;  %v8142_v6 = vmax.f32 %v16065_v40, %v7919_v37  ;;  %v12262_v7 = vpop.f32.mrb[226].mxu0  ;;  %v12394_v20 = vpop.f32.mrb[226].mxu1  ;;  %v16079_v16 = vld [vmem:[#allocation163_spill] sm:$0xff] }
 0x33d   : > { %10358 = vst.msk [vmem:[%s14594_s14 + $0x178] sm:$0xf] %vm10263_vm3, %v11597_v56  ;;  %v11598_v15 = vpack.c.bf16 %v9718_v59, %v9718_v59  ;;  %v9458_v41 = vmax.f32 %v8144_v36, %v12393_v43  ;;  %v8145_v49 = vmax.f32 %v16068_v45, %v12262_v7  ;;  %v7922_v50 = vpop.f32.mrb[227].mxu0  ;;  %v9236_v48 = vpop.f32.mrb[227].mxu1  ;;  %v16080_v42 = vmax.f32 %v16078_v0, %v16079_v16  ;;  %v16085_v45 = vld [vmem:[#allocation167_spill] sm:$0xff]  ;;  %v16096_v16 = vld [vmem:[#allocation174_spill] sm:$0xff] }
 0x33e   : > { %10356 = vst.msk [vmem:[%s14594_s14 + $0x170] sm:$0xf] %vm10263_vm3, %v11595_v55  ;;  %v11596_v51 = vpack.c.bf16 %v9716_v8, %v9716_v8  ;;  %v9456_v57 = vmax.f32 %v8142_v6, %v9233_v54  ;;  %v8143_v11 = vmax.f32 %v16071_v14, %v7922_v50  ;;  %v16083_v36 = vmax.f32 %v16081_v47, %v16082_v38  ;;  %v16088_v14 = vld [vmem:[#allocation169_spill] sm:$0xff]  ;;  %v16099_v38 = vld [vmem:[#allocation176_spill] sm:$0xff] }
 0x33f   : > { %10359 = vst.msk [vmem:[%s14594_s14 + $0x17c] sm:$0xf] %vm10263_vm3, %v11598_v15  ;;  %v9593_v23 = vadd.f32 %v14982_v18, %v9458_v41  ;;  %v9459_v24 = vmax.f32 %v8145_v49, %v12394_v20  ;;  %v16086_v49 = vmax.f32 %v16084_v44, %v16085_v45  ;;  %v16105_v45 = vld [vmem:[#allocation180_spill] sm:$0xff] }
 0x340   : > { %10357 = vst.msk [vmem:[%s14594_s14 + $0x174] sm:$0xf] %vm10263_vm3, %v11596_v51  ;;  %v9591_v9 = vadd.f32 %v14982_v18, %v9456_v57  ;;  %v9457_v3 = vmax.f32 %v8143_v11, %v9236_v48  ;;  %v16089_v11 = vmax.f32 %v16087_v27, %v16088_v14 }
 0x341   : > { %v9721_v10 = vmax.f32 %v9593_v23, 0.0  ;;  %v9594_v60 = vadd.f32 %v14982_v18, %v9459_v24 }
 0x342   : > { %v9719_v61 = vmax.f32 %v9591_v9, 0.0  ;;  %v9592_v28 = vadd.f32 %v14982_v18, %v9457_v3  ;;  %v12265_v29 = vpop.f32.mrb[228].mxu0  ;;  %v12397_v33 = vpop.f32.mrb[228].mxu1 }
 0x343   : > { %v11601_v34 = vpack.c.bf16 %v9721_v10, %v9721_v10  ;;  %v9722_v1 = vmax.f32 %v9594_v60, 0.0  ;;  %v8148_v17 = vmax.f32 %v16074_v13, %v12265_v29  ;;  %v7935_v52 = vpop.f32.mrb[229].mxu0  ;;  %v9249_v53 = vpop.f32.mrb[229].mxu1  ;;  %v16090_v60 = vld [vmem:[#allocation170_spill] sm:$0xff]  ;;  %v16094_v13 = vld [vmem:[#allocation173_spill] sm:$0xff] }
 0x344   : > { %v11599_v19 = vpack.c.bf16 %v9719_v61, %v9719_v61  ;;  %v9720_v32 = vmax.f32 %v9592_v28, 0.0  ;;  %v8146_v4 = vmax.f32 %v16077_v63, %v7935_v52  ;;  %v12266_v5 = vpop.f32.mrb[230].mxu0  ;;  %v12398_v30 = vpop.f32.mrb[230].mxu1  ;;  %v16091_v61 = vld [vmem:[#allocation171_spill] sm:$0xff] }
 0x345   : > { %10362 = vst.msk [vmem:[%s14594_s14 + $0x188] sm:$0xf] %vm10263_vm3, %v11601_v34  ;;  %v11602_v25 = vpack.c.bf16 %v9722_v1, %v9722_v1  ;;  %v9462_v26 = vmax.f32 %v8148_v17, %v12397_v33  ;;  %v8149_v46 = vmax.f32 %v16080_v42, %v12266_v5  ;;  %v7938_v43 = vpop.f32.mrb[231].mxu0  ;;  %v9252_v56 = vpop.f32.mrb[231].mxu1  ;;  %v16092_v28 = vmax.f32 %v16090_v60, %v16091_v61  ;;  %v16097_v42 = vld [vmem:[#allocation175_spill] sm:$0xff]  ;;  %v16108_v61 = vld [vmem:[#allocation182_spill] sm:$0xff] }
 0x346   : > { %10360 = vst.msk [vmem:[%s14594_s14 + $0x180] sm:$0xf] %vm10263_vm3, %v11599_v19  ;;  %v11600_v59 = vpack.c.bf16 %v9720_v32, %v9720_v32  ;;  %v9460_v31 = vmax.f32 %v8146_v4, %v9249_v53  ;;  %v8147_v37 = vmax.f32 %v16083_v36, %v7938_v43  ;;  %v16095_v17 = vmax.f32 %v16093_v12, %v16094_v13  ;;  %v16100_v36 = vld [vmem:[#allocation177_spill] sm:$0xff]  ;;  %v16111_v13 = vld [vmem:[#allocation184_spill] sm:$0xff] }
 0x347   : > { %10363 = vst.msk [vmem:[%s14594_s14 + $0x18c] sm:$0xf] %vm10263_vm3, %v11602_v25  ;;  %v9597_v54 = vadd.f32 %v14982_v18, %v9462_v26  ;;  %v9463_v55 = vmax.f32 %v8149_v46, %v12398_v30  ;;  %v16098_v46 = vmax.f32 %v16096_v16, %v16097_v42  ;;  %v16117_v42 = vld [vmem:[#allocation188_spill] sm:$0xff] }
 0x348   : > { %10361 = vst.msk [vmem:[%s14594_s14 + $0x184] sm:$0xf] %vm10263_vm3, %v11600_v59  ;;  %v9595_v8 = vadd.f32 %v14982_v18, %v9460_v31  ;;  %v9461_v22 = vmax.f32 %v8147_v37, %v9252_v56  ;;  %v16101_v37 = vmax.f32 %v16099_v38, %v16100_v36 }
 0x349   : > { %v9725_v39 = vmax.f32 %v9597_v54, 0.0  ;;  %v9598_v40 = vadd.f32 %v14982_v18, %v9463_v55 }
 0x34a   : > { %v9723_v6 = vmax.f32 %v9595_v8, 0.0  ;;  %v9596_v7 = vadd.f32 %v14982_v18, %v9461_v22  ;;  %v12269_v20 = vpop.f32.mrb[232].mxu0  ;;  %v12401_v15 = vpop.f32.mrb[232].mxu1 }
 0x34b   : > { %v11605_v41 = vpack.c.bf16 %v9725_v39, %v9725_v39  ;;  %v9726_v21 = vmax.f32 %v9598_v40, 0.0  ;;  %v8152_v50 = vmax.f32 %v16086_v49, %v12269_v20  ;;  %v7951_v48 = vpop.f32.mrb[233].mxu0  ;;  %v9265_v51 = vpop.f32.mrb[233].mxu1  ;;  %v16102_v40 = vld [vmem:[#allocation178_spill] sm:$0xff]  ;;  %v16106_v49 = vld [vmem:[#allocation181_spill] sm:$0xff] }
 0x34c   : > { %v11603_v57 = vpack.c.bf16 %v9723_v6, %v9723_v6  ;;  %v9724_v58 = vmax.f32 %v9596_v7, 0.0  ;;  %v8150_v23 = vmax.f32 %v16089_v11, %v7951_v48  ;;  %v12270_v24 = vpop.f32.mrb[234].mxu0  ;;  %v12402_v9 = vpop.f32.mrb[234].mxu1  ;;  %v16103_v6 = vld [vmem:[#allocation179_spill] sm:$0xff] }
 0x34d   : > { %10366 = vst.msk [vmem:[%s14594_s14 + $0x198] sm:$0xf] %vm10263_vm3, %v11605_v41  ;;  %v11606_v3 = vpack.c.bf16 %v9726_v21, %v9726_v21  ;;  %v9466_v10 = vmax.f32 %v8152_v50, %v12401_v15  ;;  %v8153_v29 = vmax.f32 %v16092_v28, %v12270_v24  ;;  %v7954_v33 = vpop.f32.mrb[235].mxu0  ;;  %v9268_v34 = vpop.f32.mrb[235].mxu1  ;;  %v16104_v7 = vmax.f32 %v16102_v40, %v16103_v6  ;;  %v16109_v28 = vld [vmem:[#allocation183_spill] sm:$0xff]  ;;  %v16120_v6 = vld [vmem:[#allocation190_spill] sm:$0xff] }
 0x34e   : > { %10364 = vst.msk [vmem:[%s14594_s14 + $0x190] sm:$0xf] %vm10263_vm3, %v11603_v57  ;;  %v11604_v1 = vpack.c.bf16 %v9724_v58, %v9724_v58  ;;  %v9464_v2 = vmax.f32 %v8150_v23, %v9265_v51  ;;  %v8151_v52 = vmax.f32 %v16095_v17, %v7954_v33  ;;  %v16107_v50 = vmax.f32 %v16105_v45, %v16106_v49  ;;  %v16112_v17 = vld [vmem:[#allocation185_spill] sm:$0xff]  ;;  %v16123_v49 = vld [vmem:[#allocation192_spill] sm:$0xff] }
 0x34f   : > { %10367 = vst.msk [vmem:[%s14594_s14 + $0x19c] sm:$0xf] %vm10263_vm3, %v11606_v3  ;;  %v9601_v53 = vadd.f32 %v14982_v18, %v9466_v10  ;;  %v9467_v19 = vmax.f32 %v8153_v29, %v12402_v9  ;;  %v16110_v29 = vmax.f32 %v16108_v61, %v16109_v28  ;;  %v16129_v28 = vld [vmem:[#allocation196_spill] sm:$0xff] }
 0x350   : > { %10365 = vst.msk [vmem:[%s14594_s14 + $0x194] sm:$0xf] %vm10263_vm3, %v11604_v1  ;;  %v9599_v32 = vadd.f32 %v14982_v18, %v9464_v2  ;;  %v9465_v35 = vmax.f32 %v8151_v52, %v9268_v34  ;;  %v16113_v52 = vmax.f32 %v16111_v13, %v16112_v17 }
 0x351   : > { %v9729_v62 = vmax.f32 %v9601_v53, 0.0  ;;  %v9602_v63 = vadd.f32 %v14982_v18, %v9467_v19 }
 0x352   : > { %v9727_v4 = vmax.f32 %v9599_v32, 0.0  ;;  %v9600_v5 = vadd.f32 %v14982_v18, %v9465_v35  ;;  %v12273_v30 = vpop.f32.mrb[236].mxu0  ;;  %v12405_v25 = vpop.f32.mrb[236].mxu1 }
 0x353   : > { %v11609_v26 = vpack.c.bf16 %v9729_v62, %v9729_v62  ;;  %v9730_v0 = vmax.f32 %v9602_v63, 0.0  ;;  %v8156_v43 = vmax.f32 %v16098_v46, %v12273_v30  ;;  %v7967_v56 = vpop.f32.mrb[237].mxu0  ;;  %v9281_v59 = vpop.f32.mrb[237].mxu1  ;;  %v16114_v63 = vld [vmem:[#allocation186_spill] sm:$0xff]  ;;  %v16118_v46 = vld [vmem:[#allocation189_spill] sm:$0xff] }
 0x354   : > { %v11607_v31 = vpack.c.bf16 %v9727_v4, %v9727_v4  ;;  %v9728_v47 = vmax.f32 %v9600_v5, 0.0  ;;  %v8154_v54 = vmax.f32 %v16101_v37, %v7967_v56  ;;  %v12274_v55 = vpop.f32.mrb[238].mxu0  ;;  %v12406_v8 = vpop.f32.mrb[238].mxu1  ;;  %v16115_v4 = vld [vmem:[#allocation187_spill] sm:$0xff] }
 0x355   : > { %10370 = vst.msk [vmem:[%s14594_s14 + $0x1a8] sm:$0xf] %vm10263_vm3, %v11609_v26  ;;  %v11610_v22 = vpack.c.bf16 %v9730_v0, %v9730_v0  ;;  %v9470_v39 = vmax.f32 %v8156_v43, %v12405_v25  ;;  %v8157_v20 = vmax.f32 %v16104_v7, %v12274_v55  ;;  %v7970_v15 = vpop.f32.mrb[239].mxu0  ;;  %v9284_v41 = vpop.f32.mrb[239].mxu1  ;;  %v16116_v5 = vmax.f32 %v16114_v63, %v16115_v4  ;;  %v16121_v7 = vld [vmem:[#allocation191_spill] sm:$0xff]  ;;  %v16132_v4 = vld [vmem:[#allocation198_spill] sm:$0xff] }
 0x356   : > { %10368 = vst.msk [vmem:[%s14594_s14 + $0x1a0] sm:$0xf] %vm10263_vm3, %v11607_v31  ;;  %v11608_v21 = vpack.c.bf16 %v9728_v47, %v9728_v47  ;;  %v9468_v44 = vmax.f32 %v8154_v54, %v9281_v59  ;;  %v8155_v48 = vmax.f32 %v16107_v50, %v7970_v15  ;;  %v16119_v43 = vmax.f32 %v16117_v42, %v16118_v46  ;;  %v16124_v50 = vld [vmem:[#allocation193_spill] sm:$0xff]  ;;  %v16135_v46 = vld [vmem:[#allocation200_spill] sm:$0xff] }
 0x357   : > { %10371 = vst.msk [vmem:[%s14594_s14 + $0x1ac] sm:$0xf] %vm10263_vm3, %v11610_v22  ;;  %v9605_v51 = vadd.f32 %v14982_v18, %v9470_v39  ;;  %v9471_v57 = vmax.f32 %v8157_v20, %v12406_v8  ;;  %v16122_v20 = vmax.f32 %v16120_v6, %v16121_v7  ;;  %v16141_v7 = vld [vmem:[#allocation204_spill] sm:$0xff] }
 0x358   : > { %10369 = vst.msk [vmem:[%s14594_s14 + $0x1a4] sm:$0xf] %vm10263_vm3, %v11608_v21  ;;  %v9603_v58 = vadd.f32 %v14982_v18, %v9468_v44  ;;  %v9469_v27 = vmax.f32 %v8155_v48, %v9284_v41  ;;  %v16125_v48 = vmax.f32 %v16123_v49, %v16124_v50 }
 0x359   : > { %v9733_v14 = vmax.f32 %v9605_v51, 0.0  ;;  %v9606_v11 = vadd.f32 %v14982_v18, %v9471_v57 }
 0x35a   : > { %v9731_v23 = vmax.f32 %v9603_v58, 0.0  ;;  %v9604_v24 = vadd.f32 %v14982_v18, %v9469_v27  ;;  %v12277_v9 = vpop.f32.mrb[240].mxu0  ;;  %v12409_v3 = vpop.f32.mrb[240].mxu1 }
 0x35b   : > { %v11613_v10 = vpack.c.bf16 %v9733_v14, %v9733_v14  ;;  %v9734_v60 = vmax.f32 %v9606_v11, 0.0  ;;  %v8160_v33 = vmax.f32 %v16110_v29, %v12277_v9  ;;  %v7983_v34 = vpop.f32.mrb[241].mxu0  ;;  %v9297_v1 = vpop.f32.mrb[241].mxu1  ;;  %v16126_v11 = vld [vmem:[#allocation194_spill] sm:$0xff]  ;;  %v16130_v29 = vld [vmem:[#allocation197_spill] sm:$0xff] }
 0x35c   : > { %v11611_v2 = vpack.c.bf16 %v9731_v23, %v9731_v23  ;;  %v9732_v12 = vmax.f32 %v9604_v24, 0.0  ;;  %v8158_v53 = vmax.f32 %v16113_v52, %v7983_v34  ;;  %v12278_v19 = vpop.f32.mrb[242].mxu0  ;;  %v12410_v32 = vpop.f32.mrb[242].mxu1  ;;  %v16127_v23 = vld [vmem:[#allocation195_spill] sm:$0xff] }
 0x35d   : > { %10374 = vst.msk [vmem:[%s14594_s14 + $0x1b8] sm:$0xf] %vm10263_vm3, %v11613_v10  ;;  %v11614_v35 = vpack.c.bf16 %v9734_v60, %v9734_v60  ;;  %v9474_v62 = vmax.f32 %v8160_v33, %v12409_v3  ;;  %v8161_v30 = vmax.f32 %v16116_v5, %v12278_v19  ;;  %v7986_v25 = vpop.f32.mrb[243].mxu0  ;;  %v9300_v26 = vpop.f32.mrb[243].mxu1  ;;  %v16128_v24 = vmax.f32 %v16126_v11, %v16127_v23  ;;  %v16133_v5 = vld [vmem:[#allocation199_spill] sm:$0xff]  ;;  %v16144_v23 = vld [vmem:[#allocation206_spill] sm:$0xff] }
 0x35e   : > { %10372 = vst.msk [vmem:[%s14594_s14 + $0x1b0] sm:$0xf] %vm10263_vm3, %v11611_v2  ;;  %v11612_v0 = vpack.c.bf16 %v9732_v12, %v9732_v12  ;;  %v9472_v16 = vmax.f32 %v8158_v53, %v9297_v1  ;;  %v8159_v56 = vmax.f32 %v16119_v43, %v7986_v25  ;;  %v16131_v33 = vmax.f32 %v16129_v28, %v16130_v29  ;;  %v16136_v43 = vld [vmem:[#allocation201_spill] sm:$0xff]  ;;  %v16147_v29 = vld [vmem:[#allocation208_spill] sm:$0xff] }
 0x35f   : > { %10375 = vst.msk [vmem:[%s14594_s14 + $0x1bc] sm:$0xf] %vm10263_vm3, %v11614_v35  ;;  %v9609_v59 = vadd.f32 %v14982_v18, %v9474_v62  ;;  %v9475_v31 = vmax.f32 %v8161_v30, %v12410_v32  ;;  %v16134_v30 = vmax.f32 %v16132_v4, %v16133_v5  ;;  %v16153_v4 = vld [vmem:[#allocation212_spill] sm:$0xff]  ;;  %v16154_v5 = vld [vmem:[#allocation213_spill] sm:$0xff] }
 0x360   : > { %10373 = vst.msk [vmem:[%s14594_s14 + $0x1b4] sm:$0xf] %vm10263_vm3, %v11612_v0  ;;  %v9607_v47 = vadd.f32 %v14982_v18, %v9472_v16  ;;  %v9473_v38 = vmax.f32 %v8159_v56, %v9300_v26  ;;  %v16137_v56 = vmax.f32 %v16135_v46, %v16136_v43 }
 0x361   : > { %v9737_v36 = vmax.f32 %v9609_v59, 0.0  ;;  %v9610_v37 = vadd.f32 %v14982_v18, %v9475_v31 }
 0x362   : > { %v9735_v54 = vmax.f32 %v9607_v47, 0.0  ;;  %v9608_v55 = vadd.f32 %v14982_v18, %v9473_v38  ;;  %v12281_v8 = vpop.f32.mrb[244].mxu0  ;;  %v12413_v22 = vpop.f32.mrb[244].mxu1 }
 0x363   : > { %v11617_v39 = vpack.c.bf16 %v9737_v36, %v9737_v36  ;;  %v9738_v40 = vmax.f32 %v9610_v37, 0.0  ;;  %v8164_v15 = vmax.f32 %v16122_v20, %v12281_v8  ;;  %v7999_v41 = vpop.f32.mrb[245].mxu0  ;;  %v9313_v21 = vpop.f32.mrb[245].mxu1  ;;  %v16138_v37 = vld [vmem:[#allocation202_spill] sm:$0xff]  ;;  %v16142_v20 = vld [vmem:[#allocation205_spill] sm:$0xff] }
 0x364   : > { %v11615_v44 = vpack.c.bf16 %v9735_v54, %v9735_v54  ;;  %v9736_v45 = vmax.f32 %v9608_v55, 0.0  ;;  %v8162_v51 = vmax.f32 %v16125_v48, %v7999_v41  ;;  %v12282_v57 = vpop.f32.mrb[246].mxu0  ;;  %v12414_v58 = vpop.f32.mrb[246].mxu1  ;;  %v16139_v54 = vld [vmem:[#allocation203_spill] sm:$0xff] }
 0x365   : > { %10378 = vst.msk [vmem:[%s14594_s14 + $0x1c8] sm:$0xf] %vm10263_vm3, %v11617_v39  ;;  %v11618_v27 = vpack.c.bf16 %v9738_v40, %v9738_v40  ;;  %v9478_v14 = vmax.f32 %v8164_v15, %v12413_v22  ;;  %v8165_v9 = vmax.f32 %v16128_v24, %v12282_v57  ;;  %v8002_v3 = vpop.f32.mrb[247].mxu0  ;;  %v9316_v10 = vpop.f32.mrb[247].mxu1  ;;  %v16140_v55 = vmax.f32 %v16138_v37, %v16139_v54  ;;  %v16145_v24 = vld [vmem:[#allocation207_spill] sm:$0xff] }
 0x366   : > { %10376 = vst.msk [vmem:[%s14594_s14 + $0x1c0] sm:$0xf] %vm10263_vm3, %v11615_v44  ;;  %v11616_v60 = vpack.c.bf16 %v9736_v45, %v9736_v45  ;;  %v9476_v61 = vmax.f32 %v8162_v51, %v9313_v21  ;;  %v8163_v34 = vmax.f32 %v16131_v33, %v8002_v3  ;;  %v16143_v15 = vmax.f32 %v16141_v7, %v16142_v20  ;;  %v16148_v33 = vld [vmem:[#allocation209_spill] sm:$0xff] }
 0x367   : > { %10379 = vst.msk [vmem:[%s14594_s14 + $0x1cc] sm:$0xf] %vm10263_vm3, %v11618_v27  ;;  %v9613_v1 = vadd.f32 %v14982_v18, %v9478_v14  ;;  %v9479_v2 = vmax.f32 %v8165_v9, %v12414_v58  ;;  %v16146_v9 = vmax.f32 %v16144_v23, %v16145_v24 }
 0x368   : > { %10377 = vst.msk [vmem:[%s14594_s14 + $0x1c4] sm:$0xf] %vm10263_vm3, %v11616_v60  ;;  %v9611_v12 = vadd.f32 %v14982_v18, %v9476_v61  ;;  %v9477_v13 = vmax.f32 %v8163_v34, %v9316_v10  ;;  %v16149_v34 = vmax.f32 %v16147_v29, %v16148_v33 }
 0x369   : > { %v9741_v17 = vmax.f32 %v9613_v1, 0.0  ;;  %v9614_v52 = vadd.f32 %v14982_v18, %v9479_v2 }
 0x36a   : > { %v9739_v53 = vmax.f32 %v9611_v12, 0.0  ;;  %v9612_v19 = vadd.f32 %v14982_v18, %v9477_v13  ;;  %v12285_v32 = vpop.f32.mrb[248].mxu0  ;;  %v12417_v35 = vpop.f32.mrb[248].mxu1 }
 0x36b   : > { %v11621_v62 = vpack.c.bf16 %v9741_v17, %v9741_v17  ;;  %v9742_v63 = vmax.f32 %v9614_v52, 0.0  ;;  %v8168_v25 = vmax.f32 %v16134_v30, %v12285_v32  ;;  %v8015_v26 = vpop.f32.mrb[249].mxu0  ;;  %v9329_v0 = vpop.f32.mrb[249].mxu1  ;;  %v16150_v17 = vld [vmem:[#allocation210_spill] sm:$0xff]  ;;  %v16151_v52 = vld [vmem:[#allocation211_spill] sm:$0xff]  ;;  %v16155_v30 = vmax.f32 %v16153_v4, %v16154_v5 }
 0x36c   : > { %v11619_v16 = vpack.c.bf16 %v9739_v53, %v9739_v53  ;;  %v9740_v42 = vmax.f32 %v9612_v19, 0.0  ;;  %v8166_v59 = vmax.f32 %v16137_v56, %v8015_v26  ;;  %v12286_v31 = vpop.f32.mrb[250].mxu0  ;;  %v12418_v47 = vpop.f32.mrb[250].mxu1  ;;  %v16152_v53 = vmax.f32 %v16150_v17, %v16151_v52  ;;  %v12707_v26 = vld [vmem:[%s15393_s2] ss:$0 sm:$0xff] }
 0x36d   : > { %10382 = vst.msk [vmem:[%s14594_s14 + $0x1d8] sm:$0xf] %vm10263_vm3, %v11621_v62  ;;  %v11622_v38 = vpack.c.bf16 %v9742_v63, %v9742_v63  ;;  %v9482_v36 = vmax.f32 %v8168_v25, %v12417_v35  ;;  %v8169_v8 = vmax.f32 %v16140_v55, %v12286_v31  ;;  %v8018_v22 = vpop.f32.mrb[251].mxu0  ;;  %v9332_v39 = vpop.f32.mrb[251].mxu1 }
 0x36e   : > { %10380 = vst.msk [vmem:[%s14594_s14 + $0x1d0] sm:$0xf] %vm10263_vm3, %v11619_v16  ;;  %v11620_v40 = vpack.c.bf16 %v9740_v42, %v9740_v42  ;;  %v9480_v6 = vmax.f32 %v8166_v59, %v9329_v0  ;;  %v8167_v41 = vmax.f32 %v16143_v15, %v8018_v22 }
 0x36f   : > { %10383 = vst.msk [vmem:[%s14594_s14 + $0x1dc] sm:$0xf] %vm10263_vm3, %v11622_v38  ;;  %v9617_v21 = vadd.f32 %v14982_v18, %v9482_v36  ;;  %v9483_v44 = vmax.f32 %v8169_v8, %v12418_v47 }
 0x370   : > { %10381 = vst.msk [vmem:[%s14594_s14 + $0x1d4] sm:$0xf] %vm10263_vm3, %v11620_v40  ;;  %v9615_v45 = vadd.f32 %v14982_v18, %v9480_v6  ;;  %v9481_v49 = vmax.f32 %v8167_v41, %v9332_v39 }
 0x371   : > { %v9745_v50 = vmax.f32 %v9617_v21, 0.0  ;;  %v9618_v48 = vadd.f32 %v14982_v18, %v9483_v44 }
 0x372   : > { %v9743_v51 = vmax.f32 %v9615_v45, 0.0  ;;  %v9616_v57 = vadd.f32 %v14982_v18, %v9481_v49  ;;  %v12289_v58 = vpop.f32.mrb[252].mxu0  ;;  %v12421_v27 = vpop.f32.mrb[252].mxu1 }
 0x373   : > { %v11625_v14 = vpack.c.bf16 %v9745_v50, %v9745_v50  ;;  %v9746_v11 = vmax.f32 %v9618_v48, 0.0  ;;  %v8172_v3 = vmax.f32 %v16146_v9, %v12289_v58  ;;  %v8031_v10 = vpop.f32.mrb[253].mxu0  ;;  %v9345_v60 = vpop.f32.mrb[253].mxu1 }
 0x374   : > { %v11623_v61 = vpack.c.bf16 %v9743_v51, %v9743_v51  ;;  %v9744_v28 = vmax.f32 %v9616_v57, 0.0  ;;  %v8170_v1 = vmax.f32 %v16149_v34, %v8031_v10  ;;  %v12290_v2 = vpop.f32.mrb[254].mxu0  ;;  %v12422_v18 = vpop.f32.mrb[254].mxu1 }
 0x375   : > { %10386 = vst.msk [vmem:[%s14594_s14 + $0x1e8] sm:$0xf] %vm10263_vm3, %v11625_v14  ;;  %v11626_v12 = vpack.c.bf16 %v9746_v11, %v9746_v11  ;;  %v9486_v13 = vmax.f32 %v8172_v3, %v12421_v27  ;;  %v8173_v19 = vmax.f32 %v16152_v53, %v12290_v2  ;;  %v8034_v32 = vpop.f32.mrb[255].mxu0  ;;  %v9348_v35 = vpop.f32.mrb[255].mxu1 }
 0x376   : > { %10384 = vst.msk [vmem:[%s14594_s14 + $0x1e0] sm:$0xf] %vm10263_vm3, %v11623_v61  ;;  %v11624_v62 = vpack.c.bf16 %v9744_v28, %v9744_v28  ;;  %v9484_v63 = vmax.f32 %v8170_v1, %v9345_v60  ;;  %v8171_v25 = vmax.f32 %v16155_v30, %v8034_v32 }
 0x377   : > { %10387 = vst.msk [vmem:[%s14594_s14 + $0x1ec] sm:$0xf] %vm10263_vm3, %v11626_v12  ;;  %v9621_v0 = vadd.f32 %v12707_v26, %v9486_v13  ;;  %v9487_v16 = vmax.f32 %v8173_v19, %v12422_v18 }
 0x378   : > { %10385 = vst.msk [vmem:[%s14594_s14 + $0x1e4] sm:$0xf] %vm10263_vm3, %v11624_v62  ;;  %v9619_v42 = vadd.f32 %v12707_v26, %v9484_v63  ;;  %v9485_v46 = vmax.f32 %v8171_v25, %v9348_v35 }
 0x379   : > { %v9749_v43 = vmax.f32 %v9621_v0, 0.0  ;;  %v9622_v56 = vadd.f32 %v12707_v26, %v9487_v16 }
 0x37a   : > { %v9747_v59 = vmax.f32 %v9619_v42, 0.0  ;;  %v9620_v31 = vadd.f32 %v12707_v26, %v9485_v46 }
 0x37b   : > { %v11629_v47 = vpack.c.bf16 %v9749_v43, %v9749_v43  ;;  %v9750_v38 = vmax.f32 %v9622_v56, 0.0 }
 0x37c   : > { %v11627_v36 = vpack.c.bf16 %v9747_v59, %v9747_v59  ;;  %v9748_v37 = vmax.f32 %v9620_v31, 0.0 }
 0x37d   : > { %10390 = vst.msk [vmem:[%s14594_s14 + $0x1f8] sm:$0xf] %vm10263_vm3, %v11629_v47  ;;  %v11630_v54 = vpack.c.bf16 %v9750_v38, %v9750_v38 }
 0x37e   : > { %10388 = vst.msk [vmem:[%s14594_s14 + $0x1f0] sm:$0xf] %vm10263_vm3, %v11627_v36  ;;  %v11628_v55 = vpack.c.bf16 %v9748_v37, %v9748_v37 }
 0x37f   : > { %10391 = vst.msk [vmem:[%s14594_s14 + $0x1fc] sm:$0xf] %vm10263_vm3, %v11630_v54 }
 0x380   : > { %10389 = vst.msk [vmem:[%s14594_s14 + $0x1f4] sm:$0xf] %vm10263_vm3, %v11628_v55 }
 0x381 PF: > { %p10_p9 = scmp.ge.s32.totalorder %s12770_s16, 4   ;;  %s16156_s12 = smov %s12726_s13 }
 0x382   : > { %s16157_s13 = smov %s12779_s19  ;;  %s16158_s14 = smov %s12770_s16 }
 0x383   :  { %12 = sbr.rel (!%p10_p9) target bundleno = 2 (0x2), region = 126 }

// kernel: simple_cnn_forward.4
= control target key start
LH: loop header
LB: loop body
LE: loop exit
PB: predicated region body
PF: predicated region fallthrough
CT: control target
= control target key end

     0   :  { %s5782_s12 = smov 0   ;;  %s5784_s13 = smov 0   ;;  %s7566_s0 = inlined_call_operand.vmem [shape: bf16[4,512,288], index: 0, kind: input, shape index: {}]   ;;  %s7567_s1 = inlined_call_operand.vmem [shape: bf16[288,64], index: 1, kind: input, shape index: {}]   ;;  %s7568_s2 = inlined_call_operand.vmem [shape: f32[1,64], index: 2, kind: input, shape index: {}]   ;;  %s7569_s3 = inlined_call_operand.vmem [shape: bf16[512,64], index: 3, kind: output, shape index: {}]  }
   0x1   :  { %s5786_s14 = smov 0  }
   0x2 LB: > { %s3952_s15 = sadd.s32 4294967295, %s5760_s14   ;;  %s5799_s16 = sadd.s32 1, %s5760_s14   ;;  %s5760_s14 = sphi %s5786_s14, %s7687_s14   ;;  %s5756_s13 = sphi %s5784_s13, %s7686_s13   ;;  %s5752_s12 = sphi %s5782_s12, %s7685_s12  }
   0x3   : > { %s17_s17 = ssub.s32 %s5760_s14, %s5799_s16  ;;  %s20_s18 = sadd.s32 1, %s5756_s13 }
   0x4   : > { %p18_p0 = scmp.eq.s32.totalorder %s17_s17, 0  ;;  %p27_p1 = scmp.ne.s32.totalorder %s5756_s13, %s5752_s12 }
   0x5   : > { %p28_p2 = scmp.eq.s32.totalorder %s5760_s14, 0  ;;  %p3955_p4 = scmp.ge.s32.totalorder %s5760_s14, 2 }
   0x6   : > { %s5808_s19 = scalar_select %p18_p0, %s5756_s13, %s20_s18  }
   0x7   : > { %p29_p3 = por %p28_p2, %p27_p1  ;;  %127 = sbr.rel (%p3955_p4) target bundleno = 168 (0xa8), region = 24 }
   0xe   : > { %130 = sbr.rel (!%p29_p3) target bundleno = 168 (0xa8), region = 28  ;;  %s132_s20 = sand.u32 (%p29_p3), 1, %s5756_s13  }
   0xf   : > { %s5420_s21 = smul.u32 (%p29_p3), 384, %s5760_s14 }
  0x10   : > { %s5419_s22 = smul.u32 (%p29_p3), 1536, %s132_s20 }
  0x11   : > { %s5816_s25 = scalar_lea.vmem (%p29_p3), %s7566_s0, %s5420_s21 }
  0x12   : > { %v153_v0 = vld [vmem:[%s5816_s25] sm:$0xff] (%p29_p3)  ;;  %v155_v1 = vld [vmem:[%s5816_s25 + $0xc] sm:$0xff] (%p29_p3)  ;;  %v157_v2 = vld [vmem:[%s5816_s25 + $0x18] sm:$0xff] (%p29_p3)  ;;  %s5821_s26 = scalar_lea.vmem (%p29_p3), [#allocation2], %s5419_s22 }
  0x13   : > { %154 = vst [vmem:[%s5821_s26] sm:$0xff] (%p29_p3), %v153_v0  ;;  %156 = vst [vmem:[%s5821_s26 + $0xc] sm:$0xff] (%p29_p3), %v155_v1  ;;  %v159_v3 = vld [vmem:[%s5816_s25 + $0x24] sm:$0xff] (%p29_p3)  ;;  %v161_v4 = vld [vmem:[%s5816_s25 + $0x30] sm:$0xff] (%p29_p3) }
  0x14   : > { %158 = vst [vmem:[%s5821_s26 + $0x18] sm:$0xff] (%p29_p3), %v157_v2  ;;  %v163_v5 = vld [vmem:[%s5816_s25 + $0x3c] sm:$0xff] (%p29_p3)  ;;  %160 = vst [vmem:[%s5821_s26 + $0x24] sm:$0xff] (%p29_p3), %v159_v3  ;;  %v165_v6 = vld [vmem:[%s5816_s25 + $0x48] sm:$0xff] (%p29_p3) }
  0x15   : > { %162 = vst [vmem:[%s5821_s26 + $0x30] sm:$0xff] %v161_v4  ;;  %164 = vst [vmem:[%s5821_s26 + $0x3c] sm:$0xff] %v163_v5  ;;  %v167_v7 = vld [vmem:[%s5816_s25 + $0x54] sm:$0xff]  ;;  %v169_v8 = vld [vmem:[%s5816_s25 + $0x60] sm:$0xff] }
  0x16   : > { %166 = vst [vmem:[%s5821_s26 + $0x48] sm:$0xff] %v165_v6  ;;  %168 = vst [vmem:[%s5821_s26 + $0x54] sm:$0xff] %v167_v7  ;;  %v171_v9 = vld [vmem:[%s5816_s25 + $0x6c] sm:$0xff]  ;;  %v173_v10 = vld [vmem:[%s5816_s25 + $0x78] sm:$0xff] }
  0x17   : > { %170 = vst [vmem:[%s5821_s26 + $0x60] sm:$0xff] %v169_v8  ;;  %v175_v11 = vld [vmem:[%s5816_s25 + $0x84] sm:$0xff]  ;;  %172 = vst [vmem:[%s5821_s26 + $0x6c] sm:$0xff] %v171_v9  ;;  %v177_v12 = vld [vmem:[%s5816_s25 + $0x90] sm:$0xff] }
  0x18   : > { %174 = vst [vmem:[%s5821_s26 + $0x78] sm:$0xff] %v173_v10  ;;  %176 = vst [vmem:[%s5821_s26 + $0x84] sm:$0xff] %v175_v11  ;;  %v179_v13 = vld [vmem:[%s5816_s25 + $0x9c] sm:$0xff]  ;;  %v181_v14 = vld [vmem:[%s5816_s25 + $0xa8] sm:$0xff] }
  0x19   : > { %178 = vst [vmem:[%s5821_s26 + $0x90] sm:$0xff] %v177_v12  ;;  %180 = vst [vmem:[%s5821_s26 + $0x9c] sm:$0xff] %v179_v13  ;;  %v183_v15 = vld [vmem:[%s5816_s25 + $0xb4] sm:$0xff]  ;;  %v185_v16 = vld [vmem:[%s5816_s25 + $0xc0] sm:$0xff] }
  0x1a   : > { %182 = vst [vmem:[%s5821_s26 + $0xa8] sm:$0xff] %v181_v14  ;;  %v187_v17 = vld [vmem:[%s5816_s25 + $0xcc] sm:$0xff]  ;;  %184 = vst [vmem:[%s5821_s26 + $0xb4] sm:$0xff] %v183_v15  ;;  %v189_v18 = vld [vmem:[%s5816_s25 + $0xd8] sm:$0xff] }
  0x1b   : > { %186 = vst [vmem:[%s5821_s26 + $0xc0] sm:$0xff] %v185_v16  ;;  %188 = vst [vmem:[%s5821_s26 + $0xcc] sm:$0xff] %v187_v17  ;;  %v191_v19 = vld [vmem:[%s5816_s25 + $0xe4] sm:$0xff]  ;;  %v193_v20 = vld [vmem:[%s5816_s25 + $0xf0] sm:$0xff] }
  0x1c   : > { %190 = vst [vmem:[%s5821_s26 + $0xd8] sm:$0xff] %v189_v18  ;;  %192 = vst [vmem:[%s5821_s26 + $0xe4] sm:$0xff] %v191_v19  ;;  %v195_v21 = vld [vmem:[%s5816_s25 + $0xfc] sm:$0xff]  ;;  %v197_v22 = vld [vmem:[%s5816_s25 + $0x108] sm:$0xff] }
  0x1d   : > { %194 = vst [vmem:[%s5821_s26 + $0xf0] sm:$0xff] %v193_v20  ;;  %v199_v23 = vld [vmem:[%s5816_s25 + $0x114] sm:$0xff]  ;;  %196 = vst [vmem:[%s5821_s26 + $0xfc] sm:$0xff] %v195_v21  ;;  %v201_v24 = vld [vmem:[%s5816_s25 + $0x120] sm:$0xff] }
  0x1e   : > { %198 = vst [vmem:[%s5821_s26 + $0x108] sm:$0xff] %v197_v22  ;;  %200 = vst [vmem:[%s5821_s26 + $0x114] sm:$0xff] %v199_v23  ;;  %v203_v25 = vld [vmem:[%s5816_s25 + $0x12c] sm:$0xff]  ;;  %v205_v26 = vld [vmem:[%s5816_s25 + $0x138] sm:$0xff] }
  0x1f   : > { %202 = vst [vmem:[%s5821_s26 + $0x120] sm:$0xff] %v201_v24  ;;  %204 = vst [vmem:[%s5821_s26 + $0x12c] sm:$0xff] %v203_v25  ;;  %v207_v27 = vld [vmem:[%s5816_s25 + $0x144] sm:$0xff]  ;;  %v209_v28 = vld [vmem:[%s5816_s25 + $0x150] sm:$0xff] }
  0x20   : > { %206 = vst [vmem:[%s5821_s26 + $0x138] sm:$0xff] %v205_v26  ;;  %v211_v29 = vld [vmem:[%s5816_s25 + $0x15c] sm:$0xff]  ;;  %208 = vst [vmem:[%s5821_s26 + $0x144] sm:$0xff] %v207_v27  ;;  %v213_v30 = vld [vmem:[%s5816_s25 + $0x168] sm:$0xff] }
  0x21   : > { %210 = vst [vmem:[%s5821_s26 + $0x150] sm:$0xff] %v209_v28  ;;  %212 = vst [vmem:[%s5821_s26 + $0x15c] sm:$0xff] %v211_v29  ;;  %v215_v31 = vld [vmem:[%s5816_s25 + $0x174] sm:$0xff]  ;;  %v217_v32 = vld [vmem:[%s5816_s25 + $0x300] sm:$0xff] }
  0x22   : > { %214 = vst [vmem:[%s5821_s26 + $0x168] sm:$0xff] %v213_v30  ;;  %216 = vst [vmem:[%s5821_s26 + $0x174] sm:$0xff] %v215_v31  ;;  %v219_v33 = vld [vmem:[%s5816_s25 + $0x30c] sm:$0xff]  ;;  %v221_v34 = vld [vmem:[%s5816_s25 + $0x318] sm:$0xff] }
  0x23   : > { %218 = vst [vmem:[%s5821_s26 + $0x180] sm:$0xff] %v217_v32  ;;  %v223_v35 = vld [vmem:[%s5816_s25 + $0x324] sm:$0xff]  ;;  %220 = vst [vmem:[%s5821_s26 + $0x18c] sm:$0xff] %v219_v33  ;;  %v225_v36 = vld [vmem:[%s5816_s25 + $0x330] sm:$0xff] }
  0x24   : > { %222 = vst [vmem:[%s5821_s26 + $0x198] sm:$0xff] %v221_v34  ;;  %224 = vst [vmem:[%s5821_s26 + $0x1a4] sm:$0xff] %v223_v35  ;;  %v227_v37 = vld [vmem:[%s5816_s25 + $0x33c] sm:$0xff]  ;;  %v229_v38 = vld [vmem:[%s5816_s25 + $0x348] sm:$0xff] }
  0x25   : > { %226 = vst [vmem:[%s5821_s26 + $0x1b0] sm:$0xff] %v225_v36  ;;  %228 = vst [vmem:[%s5821_s26 + $0x1bc] sm:$0xff] %v227_v37  ;;  %v231_v39 = vld [vmem:[%s5816_s25 + $0x354] sm:$0xff]  ;;  %v233_v40 = vld [vmem:[%s5816_s25 + $0x360] sm:$0xff] }
  0x26   : > { %230 = vst [vmem:[%s5821_s26 + $0x1c8] sm:$0xff] %v229_v38  ;;  %v235_v41 = vld [vmem:[%s5816_s25 + $0x36c] sm:$0xff]  ;;  %232 = vst [vmem:[%s5821_s26 + $0x1d4] sm:$0xff] %v231_v39  ;;  %v237_v42 = vld [vmem:[%s5816_s25 + $0x378] sm:$0xff] }
  0x27   : > { %234 = vst [vmem:[%s5821_s26 + $0x1e0] sm:$0xff] %v233_v40  ;;  %236 = vst [vmem:[%s5821_s26 + $0x1ec] sm:$0xff] %v235_v41  ;;  %v239_v43 = vld [vmem:[%s5816_s25 + $0x384] sm:$0xff]  ;;  %v241_v44 = vld [vmem:[%s5816_s25 + $0x390] sm:$0xff] }
  0x28   : > { %238 = vst [vmem:[%s5821_s26 + $0x1f8] sm:$0xff] %v237_v42  ;;  %240 = vst [vmem:[%s5821_s26 + $0x204] sm:$0xff] %v239_v43  ;;  %v243_v45 = vld [vmem:[%s5816_s25 + $0x39c] sm:$0xff]  ;;  %v245_v46 = vld [vmem:[%s5816_s25 + $0x3a8] sm:$0xff] }
  0x29   : > { %242 = vst [vmem:[%s5821_s26 + $0x210] sm:$0xff] %v241_v44  ;;  %v247_v47 = vld [vmem:[%s5816_s25 + $0x3b4] sm:$0xff]  ;;  %244 = vst [vmem:[%s5821_s26 + $0x21c] sm:$0xff] %v243_v45  ;;  %v249_v48 = vld [vmem:[%s5816_s25 + $0x3c0] sm:$0xff] }
  0x2a   : > { %246 = vst [vmem:[%s5821_s26 + $0x228] sm:$0xff] %v245_v46  ;;  %248 = vst [vmem:[%s5821_s26 + $0x234] sm:$0xff] %v247_v47  ;;  %v251_v49 = vld [vmem:[%s5816_s25 + $0x3cc] sm:$0xff]  ;;  %v253_v50 = vld [vmem:[%s5816_s25 + $0x3d8] sm:$0xff] }
  0x2b   : > { %250 = vst [vmem:[%s5821_s26 + $0x240] sm:$0xff] %v249_v48  ;;  %252 = vst [vmem:[%s5821_s26 + $0x24c] sm:$0xff] %v251_v49  ;;  %v255_v51 = vld [vmem:[%s5816_s25 + $0x3e4] sm:$0xff]  ;;  %v257_v52 = vld [vmem:[%s5816_s25 + $0x3f0] sm:$0xff] }
  0x2c   : > { %254 = vst [vmem:[%s5821_s26 + $0x258] sm:$0xff] %v253_v50  ;;  %v259_v53 = vld [vmem:[%s5816_s25 + $0x3fc] sm:$0xff]  ;;  %256 = vst [vmem:[%s5821_s26 + $0x264] sm:$0xff] %v255_v51  ;;  %v261_v54 = vld [vmem:[%s5816_s25 + $0x408] sm:$0xff] }
  0x2d   : > { %258 = vst [vmem:[%s5821_s26 + $0x270] sm:$0xff] %v257_v52  ;;  %260 = vst [vmem:[%s5821_s26 + $0x27c] sm:$0xff] %v259_v53  ;;  %v263_v55 = vld [vmem:[%s5816_s25 + $0x414] sm:$0xff]  ;;  %v265_v56 = vld [vmem:[%s5816_s25 + $0x420] sm:$0xff] }
  0x2e   : > { %262 = vst [vmem:[%s5821_s26 + $0x288] sm:$0xff] %v261_v54  ;;  %264 = vst [vmem:[%s5821_s26 + $0x294] sm:$0xff] %v263_v55  ;;  %v267_v57 = vld [vmem:[%s5816_s25 + $0x42c] sm:$0xff]  ;;  %v269_v58 = vld [vmem:[%s5816_s25 + $0x438] sm:$0xff] }
  0x2f   : > { %266 = vst [vmem:[%s5821_s26 + $0x2a0] sm:$0xff] %v265_v56  ;;  %v271_v59 = vld [vmem:[%s5816_s25 + $0x444] sm:$0xff]  ;;  %268 = vst [vmem:[%s5821_s26 + $0x2ac] sm:$0xff] %v267_v57  ;;  %v273_v60 = vld [vmem:[%s5816_s25 + $0x450] sm:$0xff] }
  0x30   : > { %270 = vst [vmem:[%s5821_s26 + $0x2b8] sm:$0xff] %v269_v58  ;;  %272 = vst [vmem:[%s5821_s26 + $0x2c4] sm:$0xff] %v271_v59  ;;  %v275_v61 = vld [vmem:[%s5816_s25 + $0x45c] sm:$0xff]  ;;  %v277_v62 = vld [vmem:[%s5816_s25 + $0x468] sm:$0xff] }
  0x31   : > { %274 = vst [vmem:[%s5821_s26 + $0x2d0] sm:$0xff] %v273_v60  ;;  %276 = vst [vmem:[%s5821_s26 + $0x2dc] sm:$0xff] %v275_v61  ;;  %v279_v63 = vld [vmem:[%s5816_s25 + $0x474] sm:$0xff]  ;;  %v281_v0 = vld [vmem:[%s5816_s25 + $0x600] sm:$0xff] }
  0x32   : > { %278 = vst [vmem:[%s5821_s26 + $0x2e8] sm:$0xff] %v277_v62  ;;  %v283_v1 = vld [vmem:[%s5816_s25 + $0x60c] sm:$0xff]  ;;  %280 = vst [vmem:[%s5821_s26 + $0x2f4] sm:$0xff] %v279_v63  ;;  %v285_v2 = vld [vmem:[%s5816_s25 + $0x618] sm:$0xff] }
  0x33   : > { %282 = vst [vmem:[%s5821_s26 + $0x300] sm:$0xff] %v281_v0  ;;  %284 = vst [vmem:[%s5821_s26 + $0x30c] sm:$0xff] %v283_v1  ;;  %v287_v3 = vld [vmem:[%s5816_s25 + $0x624] sm:$0xff]  ;;  %v289_v4 = vld [vmem:[%s5816_s25 + $0x630] sm:$0xff] }
  0x34   : > { %286 = vst [vmem:[%s5821_s26 + $0x318] sm:$0xff] %v285_v2  ;;  %288 = vst [vmem:[%s5821_s26 + $0x324] sm:$0xff] %v287_v3  ;;  %v291_v5 = vld [vmem:[%s5816_s25 + $0x63c] sm:$0xff]  ;;  %v293_v6 = vld [vmem:[%s5816_s25 + $0x648] sm:$0xff] }
  0x35   : > { %290 = vst [vmem:[%s5821_s26 + $0x330] sm:$0xff] %v289_v4  ;;  %v295_v7 = vld [vmem:[%s5816_s25 + $0x654] sm:$0xff]  ;;  %292 = vst [vmem:[%s5821_s26 + $0x33c] sm:$0xff] %v291_v5  ;;  %v297_v8 = vld [vmem:[%s5816_s25 + $0x660] sm:$0xff] }
  0x36   : > { %294 = vst [vmem:[%s5821_s26 + $0x348] sm:$0xff] %v293_v6  ;;  %296 = vst [vmem:[%s5821_s26 + $0x354] sm:$0xff] %v295_v7  ;;  %v299_v9 = vld [vmem:[%s5816_s25 + $0x66c] sm:$0xff]  ;;  %v301_v10 = vld [vmem:[%s5816_s25 + $0x678] sm:$0xff] }
  0x37   : > { %298 = vst [vmem:[%s5821_s26 + $0x360] sm:$0xff] %v297_v8  ;;  %300 = vst [vmem:[%s5821_s26 + $0x36c] sm:$0xff] %v299_v9  ;;  %v303_v11 = vld [vmem:[%s5816_s25 + $0x684] sm:$0xff]  ;;  %v305_v12 = vld [vmem:[%s5816_s25 + $0x690] sm:$0xff] }
  0x38   : > { %302 = vst [vmem:[%s5821_s26 + $0x378] sm:$0xff] %v301_v10  ;;  %v307_v13 = vld [vmem:[%s5816_s25 + $0x69c] sm:$0xff]  ;;  %304 = vst [vmem:[%s5821_s26 + $0x384] sm:$0xff] %v303_v11  ;;  %v309_v14 = vld [vmem:[%s5816_s25 + $0x6a8] sm:$0xff] }
  0x39   : > { %306 = vst [vmem:[%s5821_s26 + $0x390] sm:$0xff] %v305_v12  ;;  %308 = vst [vmem:[%s5821_s26 + $0x39c] sm:$0xff] %v307_v13  ;;  %v311_v15 = vld [vmem:[%s5816_s25 + $0x6b4] sm:$0xff]  ;;  %v313_v16 = vld [vmem:[%s5816_s25 + $0x6c0] sm:$0xff] }
  0x3a   : > { %310 = vst [vmem:[%s5821_s26 + $0x3a8] sm:$0xff] %v309_v14  ;;  %312 = vst [vmem:[%s5821_s26 + $0x3b4] sm:$0xff] %v311_v15  ;;  %v315_v17 = vld [vmem:[%s5816_s25 + $0x6cc] sm:$0xff]  ;;  %v317_v18 = vld [vmem:[%s5816_s25 + $0x6d8] sm:$0xff] }
  0x3b   : > { %314 = vst [vmem:[%s5821_s26 + $0x3c0] sm:$0xff] %v313_v16  ;;  %v319_v19 = vld [vmem:[%s5816_s25 + $0x6e4] sm:$0xff]  ;;  %316 = vst [vmem:[%s5821_s26 + $0x3cc] sm:$0xff] %v315_v17  ;;  %v321_v20 = vld [vmem:[%s5816_s25 + $0x6f0] sm:$0xff] }
  0x3c   : > { %318 = vst [vmem:[%s5821_s26 + $0x3d8] sm:$0xff] %v317_v18  ;;  %320 = vst [vmem:[%s5821_s26 + $0x3e4] sm:$0xff] %v319_v19  ;;  %v323_v21 = vld [vmem:[%s5816_s25 + $0x6fc] sm:$0xff]  ;;  %v325_v22 = vld [vmem:[%s5816_s25 + $0x708] sm:$0xff] }
  0x3d   : > { %322 = vst [vmem:[%s5821_s26 + $0x3f0] sm:$0xff] %v321_v20  ;;  %324 = vst [vmem:[%s5821_s26 + $0x3fc] sm:$0xff] %v323_v21  ;;  %v327_v23 = vld [vmem:[%s5816_s25 + $0x714] sm:$0xff]  ;;  %v329_v24 = vld [vmem:[%s5816_s25 + $0x720] sm:$0xff] }
  0x3e   : > { %326 = vst [vmem:[%s5821_s26 + $0x408] sm:$0xff] %v325_v22  ;;  %v331_v25 = vld [vmem:[%s5816_s25 + $0x72c] sm:$0xff]  ;;  %328 = vst [vmem:[%s5821_s26 + $0x414] sm:$0xff] %v327_v23  ;;  %v333_v26 = vld [vmem:[%s5816_s25 + $0x738] sm:$0xff] }
  0x3f   : > { %330 = vst [vmem:[%s5821_s26 + $0x420] sm:$0xff] %v329_v24  ;;  %332 = vst [vmem:[%s5821_s26 + $0x42c] sm:$0xff] %v331_v25  ;;  %v335_v27 = vld [vmem:[%s5816_s25 + $0x744] sm:$0xff]  ;;  %v337_v28 = vld [vmem:[%s5816_s25 + $0x750] sm:$0xff] }
  0x40   : > { %334 = vst [vmem:[%s5821_s26 + $0x438] sm:$0xff] %v333_v26  ;;  %336 = vst [vmem:[%s5821_s26 + $0x444] sm:$0xff] %v335_v27  ;;  %v339_v29 = vld [vmem:[%s5816_s25 + $0x75c] sm:$0xff]  ;;  %v341_v30 = vld [vmem:[%s5816_s25 + $0x768] sm:$0xff] }
  0x41   : > { %338 = vst [vmem:[%s5821_s26 + $0x450] sm:$0xff] %v337_v28  ;;  %v343_v31 = vld [vmem:[%s5816_s25 + $0x774] sm:$0xff]  ;;  %340 = vst [vmem:[%s5821_s26 + $0x45c] sm:$0xff] %v339_v29  ;;  %v345_v32 = vld [vmem:[%s5816_s25 + $0x900] sm:$0xff] }
  0x42   : > { %342 = vst [vmem:[%s5821_s26 + $0x468] sm:$0xff] %v341_v30  ;;  %344 = vst [vmem:[%s5821_s26 + $0x474] sm:$0xff] %v343_v31  ;;  %v347_v33 = vld [vmem:[%s5816_s25 + $0x90c] sm:$0xff]  ;;  %v349_v34 = vld [vmem:[%s5816_s25 + $0x918] sm:$0xff] }
  0x43   : > { %346 = vst [vmem:[%s5821_s26 + $0x480] sm:$0xff] %v345_v32  ;;  %348 = vst [vmem:[%s5821_s26 + $0x48c] sm:$0xff] %v347_v33  ;;  %v351_v35 = vld [vmem:[%s5816_s25 + $0x924] sm:$0xff]  ;;  %v353_v36 = vld [vmem:[%s5816_s25 + $0x930] sm:$0xff] }
  0x44   : > { %350 = vst [vmem:[%s5821_s26 + $0x498] sm:$0xff] %v349_v34  ;;  %v355_v37 = vld [vmem:[%s5816_s25 + $0x93c] sm:$0xff]  ;;  %352 = vst [vmem:[%s5821_s26 + $0x4a4] sm:$0xff] %v351_v35  ;;  %v357_v38 = vld [vmem:[%s5816_s25 + $0x948] sm:$0xff] }
  0x45   : > { %354 = vst [vmem:[%s5821_s26 + $0x4b0] sm:$0xff] %v353_v36  ;;  %356 = vst [vmem:[%s5821_s26 + $0x4bc] sm:$0xff] %v355_v37  ;;  %v359_v39 = vld [vmem:[%s5816_s25 + $0x954] sm:$0xff]  ;;  %v361_v40 = vld [vmem:[%s5816_s25 + $0x960] sm:$0xff] }
  0x46   : > { %358 = vst [vmem:[%s5821_s26 + $0x4c8] sm:$0xff] %v357_v38  ;;  %360 = vst [vmem:[%s5821_s26 + $0x4d4] sm:$0xff] %v359_v39  ;;  %v363_v41 = vld [vmem:[%s5816_s25 + $0x96c] sm:$0xff]  ;;  %v365_v42 = vld [vmem:[%s5816_s25 + $0x978] sm:$0xff] }
  0x47   : > { %362 = vst [vmem:[%s5821_s26 + $0x4e0] sm:$0xff] %v361_v40  ;;  %v367_v43 = vld [vmem:[%s5816_s25 + $0x984] sm:$0xff]  ;;  %364 = vst [vmem:[%s5821_s26 + $0x4ec] sm:$0xff] %v363_v41  ;;  %v369_v44 = vld [vmem:[%s5816_s25 + $0x990] sm:$0xff] }
  0x48   : > { %366 = vst [vmem:[%s5821_s26 + $0x4f8] sm:$0xff] %v365_v42  ;;  %368 = vst [vmem:[%s5821_s26 + $0x504] sm:$0xff] %v367_v43  ;;  %v371_v45 = vld [vmem:[%s5816_s25 + $0x99c] sm:$0xff]  ;;  %v373_v46 = vld [vmem:[%s5816_s25 + $0x9a8] sm:$0xff] }
  0x49   : > { %370 = vst [vmem:[%s5821_s26 + $0x510] sm:$0xff] %v369_v44  ;;  %372 = vst [vmem:[%s5821_s26 + $0x51c] sm:$0xff] %v371_v45  ;;  %v375_v47 = vld [vmem:[%s5816_s25 + $0x9b4] sm:$0xff]  ;;  %v377_v48 = vld [vmem:[%s5816_s25 + $0x9c0] sm:$0xff] }
  0x4a   : > { %374 = vst [vmem:[%s5821_s26 + $0x528] sm:$0xff] %v373_v46  ;;  %v379_v49 = vld [vmem:[%s5816_s25 + $0x9cc] sm:$0xff]  ;;  %376 = vst [vmem:[%s5821_s26 + $0x534] sm:$0xff] %v375_v47  ;;  %v381_v50 = vld [vmem:[%s5816_s25 + $0x9d8] sm:$0xff] }
  0x4b   : > { %378 = vst [vmem:[%s5821_s26 + $0x540] sm:$0xff] %v377_v48  ;;  %380 = vst [vmem:[%s5821_s26 + $0x54c] sm:$0xff] %v379_v49  ;;  %v383_v51 = vld [vmem:[%s5816_s25 + $0x9e4] sm:$0xff]  ;;  %v385_v52 = vld [vmem:[%s5816_s25 + $0x9f0] sm:$0xff] }
  0x4c   : > { %382 = vst [vmem:[%s5821_s26 + $0x558] sm:$0xff] %v381_v50  ;;  %384 = vst [vmem:[%s5821_s26 + $0x564] sm:$0xff] %v383_v51  ;;  %v387_v53 = vld [vmem:[%s5816_s25 + $0x9fc] sm:$0xff]  ;;  %v389_v54 = vld [vmem:[%s5816_s25 + $0xa08] sm:$0xff] }
  0x4d   : > { %386 = vst [vmem:[%s5821_s26 + $0x570] sm:$0xff] %v385_v52  ;;  %v391_v55 = vld [vmem:[%s5816_s25 + $0xa14] sm:$0xff]  ;;  %388 = vst [vmem:[%s5821_s26 + $0x57c] sm:$0xff] %v387_v53  ;;  %v393_v56 = vld [vmem:[%s5816_s25 + $0xa20] sm:$0xff] }
  0x4e   : > { %390 = vst [vmem:[%s5821_s26 + $0x588] sm:$0xff] %v389_v54  ;;  %392 = vst [vmem:[%s5821_s26 + $0x594] sm:$0xff] %v391_v55  ;;  %v395_v57 = vld [vmem:[%s5816_s25 + $0xa2c] sm:$0xff]  ;;  %v397_v58 = vld [vmem:[%s5816_s25 + $0xa38] sm:$0xff] }
  0x4f   : > { %394 = vst [vmem:[%s5821_s26 + $0x5a0] sm:$0xff] %v393_v56  ;;  %396 = vst [vmem:[%s5821_s26 + $0x5ac] sm:$0xff] %v395_v57  ;;  %v399_v59 = vld [vmem:[%s5816_s25 + $0xa44] sm:$0xff]  ;;  %v401_v60 = vld [vmem:[%s5816_s25 + $0xa50] sm:$0xff] }
  0x50   : > { %398 = vst [vmem:[%s5821_s26 + $0x5b8] sm:$0xff] %v397_v58  ;;  %v403_v61 = vld [vmem:[%s5816_s25 + $0xa5c] sm:$0xff]  ;;  %400 = vst [vmem:[%s5821_s26 + $0x5c4] sm:$0xff] %v399_v59  ;;  %v405_v62 = vld [vmem:[%s5816_s25 + $0xa68] sm:$0xff] }
  0x51   : > { %402 = vst [vmem:[%s5821_s26 + $0x5d0] sm:$0xff] %v401_v60  ;;  %404 = vst [vmem:[%s5821_s26 + $0x5dc] sm:$0xff] %v403_v61  ;;  %v407_v63 = vld [vmem:[%s5816_s25 + $0xa74] sm:$0xff]  ;;  %v3959_v0 = vld [vmem:[%s5816_s25 + $0x8] sm:$0xf] }
  0x52   : > { %406 = vst [vmem:[%s5821_s26 + $0x5e8] sm:$0xff] %v405_v62  ;;  %408 = vst [vmem:[%s5821_s26 + $0x5f4] sm:$0xff] %v407_v63  ;;  %v3961_v1 = vld [vmem:[%s5816_s25 + $0x14] sm:$0xf]  ;;  %v3963_v2 = vld [vmem:[%s5816_s25 + $0x20] sm:$0xf] }
  0x53   : > { %3960 = vst [vmem:[%s5821_s26 + $0x8] sm:$0xf] %v3959_v0  ;;  %v3965_v3 = vld [vmem:[%s5816_s25 + $0x2c] sm:$0xf]  ;;  %3962 = vst [vmem:[%s5821_s26 + $0x14] sm:$0xf] %v3961_v1 }
  0x54   : > { %3964 = vst [vmem:[%s5821_s26 + $0x20] sm:$0xf] %v3963_v2  ;;  %3966 = vst [vmem:[%s5821_s26 + $0x2c] sm:$0xf] %v3965_v3  ;;  %v3967_v4 = vld [vmem:[%s5816_s25 + $0x38] sm:$0xf] }
  0x55   : > { %v3969_v5 = vld [vmem:[%s5816_s25 + $0x44] sm:$0xf]  ;;  %v3971_v6 = vld [vmem:[%s5816_s25 + $0x50] sm:$0xf]  ;;  %3968 = vst [vmem:[%s5821_s26 + $0x38] sm:$0xf] %v3967_v4 }
  0x56   : > { %3970 = vst [vmem:[%s5821_s26 + $0x44] sm:$0xf] %v3969_v5  ;;  %3972 = vst [vmem:[%s5821_s26 + $0x50] sm:$0xf] %v3971_v6  ;;  %v3973_v7 = vld [vmem:[%s5816_s25 + $0x5c] sm:$0xf] }
  0x57   : > { %v3975_v8 = vld [vmem:[%s5816_s25 + $0x68] sm:$0xf]  ;;  %v3977_v9 = vld [vmem:[%s5816_s25 + $0x74] sm:$0xf]  ;;  %3974 = vst [vmem:[%s5821_s26 + $0x5c] sm:$0xf] %v3973_v7 }
  0x58   : > { %3976 = vst [vmem:[%s5821_s26 + $0x68] sm:$0xf] %v3975_v8  ;;  %3978 = vst [vmem:[%s5821_s26 + $0x74] sm:$0xf] %v3977_v9  ;;  %v3979_v10 = vld [vmem:[%s5816_s25 + $0x80] sm:$0xf] }
  0x59   : > { %v3981_v11 = vld [vmem:[%s5816_s25 + $0x8c] sm:$0xf]  ;;  %v3983_v12 = vld [vmem:[%s5816_s25 + $0x98] sm:$0xf]  ;;  %3980 = vst [vmem:[%s5821_s26 + $0x80] sm:$0xf] %v3979_v10 }
  0x5a   : > { %3982 = vst [vmem:[%s5821_s26 + $0x8c] sm:$0xf] %v3981_v11  ;;  %3984 = vst [vmem:[%s5821_s26 + $0x98] sm:$0xf] %v3983_v12  ;;  %v3985_v13 = vld [vmem:[%s5816_s25 + $0xa4] sm:$0xf] }
  0x5b   : > { %v3987_v14 = vld [vmem:[%s5816_s25 + $0xb0] sm:$0xf]  ;;  %v3989_v15 = vld [vmem:[%s5816_s25 + $0xbc] sm:$0xf]  ;;  %3986 = vst [vmem:[%s5821_s26 + $0xa4] sm:$0xf] %v3985_v13 }
  0x5c   : > { %3988 = vst [vmem:[%s5821_s26 + $0xb0] sm:$0xf] %v3987_v14  ;;  %3990 = vst [vmem:[%s5821_s26 + $0xbc] sm:$0xf] %v3989_v15  ;;  %v3991_v16 = vld [vmem:[%s5816_s25 + $0xc8] sm:$0xf] }
  0x5d   : > { %v3993_v17 = vld [vmem:[%s5816_s25 + $0xd4] sm:$0xf]  ;;  %v3995_v18 = vld [vmem:[%s5816_s25 + $0xe0] sm:$0xf]  ;;  %3992 = vst [vmem:[%s5821_s26 + $0xc8] sm:$0xf] %v3991_v16 }
  0x5e   : > { %3994 = vst [vmem:[%s5821_s26 + $0xd4] sm:$0xf] %v3993_v17  ;;  %3996 = vst [vmem:[%s5821_s26 + $0xe0] sm:$0xf] %v3995_v18  ;;  %v3997_v19 = vld [vmem:[%s5816_s25 + $0xec] sm:$0xf] }
  0x5f   : > { %v3999_v20 = vld [vmem:[%s5816_s25 + $0xf8] sm:$0xf]  ;;  %v4001_v21 = vld [vmem:[%s5816_s25 + $0x104] sm:$0xf]  ;;  %3998 = vst [vmem:[%s5821_s26 + $0xec] sm:$0xf] %v3997_v19 }
  0x60   : > { %4000 = vst [vmem:[%s5821_s26 + $0xf8] sm:$0xf] %v3999_v20  ;;  %4002 = vst [vmem:[%s5821_s26 + $0x104] sm:$0xf] %v4001_v21  ;;  %v4003_v22 = vld [vmem:[%s5816_s25 + $0x110] sm:$0xf] }
  0x61   : > { %v4005_v23 = vld [vmem:[%s5816_s25 + $0x11c] sm:$0xf]  ;;  %v4007_v24 = vld [vmem:[%s5816_s25 + $0x128] sm:$0xf]  ;;  %4004 = vst [vmem:[%s5821_s26 + $0x110] sm:$0xf] %v4003_v22 }
  0x62   : > { %4006 = vst [vmem:[%s5821_s26 + $0x11c] sm:$0xf] %v4005_v23  ;;  %4008 = vst [vmem:[%s5821_s26 + $0x128] sm:$0xf] %v4007_v24  ;;  %v4009_v25 = vld [vmem:[%s5816_s25 + $0x134] sm:$0xf] }
  0x63   : > { %v4011_v26 = vld [vmem:[%s5816_s25 + $0x140] sm:$0xf]  ;;  %v4013_v27 = vld [vmem:[%s5816_s25 + $0x14c] sm:$0xf]  ;;  %4010 = vst [vmem:[%s5821_s26 + $0x134] sm:$0xf] %v4009_v25 }
  0x64   : > { %4012 = vst [vmem:[%s5821_s26 + $0x140] sm:$0xf] %v4011_v26  ;;  %4014 = vst [vmem:[%s5821_s26 + $0x14c] sm:$0xf] %v4013_v27  ;;  %v4015_v28 = vld [vmem:[%s5816_s25 + $0x158] sm:$0xf] }
  0x65   : > { %v4017_v29 = vld [vmem:[%s5816_s25 + $0x164] sm:$0xf]  ;;  %v4019_v30 = vld [vmem:[%s5816_s25 + $0x170] sm:$0xf]  ;;  %4016 = vst [vmem:[%s5821_s26 + $0x158] sm:$0xf] %v4015_v28 }
  0x66   : > { %4018 = vst [vmem:[%s5821_s26 + $0x164] sm:$0xf] %v4017_v29  ;;  %4020 = vst [vmem:[%s5821_s26 + $0x170] sm:$0xf] %v4019_v30  ;;  %v4021_v31 = vld [vmem:[%s5816_s25 + $0x17c] sm:$0xf] }
  0x67   : > { %v4023_v32 = vld [vmem:[%s5816_s25 + $0x308] sm:$0xf]  ;;  %v4025_v33 = vld [vmem:[%s5816_s25 + $0x314] sm:$0xf]  ;;  %4022 = vst [vmem:[%s5821_s26 + $0x17c] sm:$0xf] %v4021_v31 }
  0x68   : > { %4024 = vst [vmem:[%s5821_s26 + $0x188] sm:$0xf] %v4023_v32  ;;  %4026 = vst [vmem:[%s5821_s26 + $0x194] sm:$0xf] %v4025_v33  ;;  %v4027_v34 = vld [vmem:[%s5816_s25 + $0x320] sm:$0xf] }
  0x69   : > { %v4029_v35 = vld [vmem:[%s5816_s25 + $0x32c] sm:$0xf]  ;;  %v4031_v36 = vld [vmem:[%s5816_s25 + $0x338] sm:$0xf]  ;;  %4028 = vst [vmem:[%s5821_s26 + $0x1a0] sm:$0xf] %v4027_v34 }
  0x6a   : > { %4030 = vst [vmem:[%s5821_s26 + $0x1ac] sm:$0xf] %v4029_v35  ;;  %4032 = vst [vmem:[%s5821_s26 + $0x1b8] sm:$0xf] %v4031_v36  ;;  %v4033_v37 = vld [vmem:[%s5816_s25 + $0x344] sm:$0xf] }
  0x6b   : > { %v4035_v38 = vld [vmem:[%s5816_s25 + $0x350] sm:$0xf]  ;;  %v4037_v39 = vld [vmem:[%s5816_s25 + $0x35c] sm:$0xf]  ;;  %4034 = vst [vmem:[%s5821_s26 + $0x1c4] sm:$0xf] %v4033_v37 }
  0x6c   : > { %4036 = vst [vmem:[%s5821_s26 + $0x1d0] sm:$0xf] %v4035_v38  ;;  %4038 = vst [vmem:[%s5821_s26 + $0x1dc] sm:$0xf] %v4037_v39  ;;  %v4039_v40 = vld [vmem:[%s5816_s25 + $0x368] sm:$0xf] }
  0x6d   : > { %v4041_v41 = vld [vmem:[%s5816_s25 + $0x374] sm:$0xf]  ;;  %v4043_v42 = vld [vmem:[%s5816_s25 + $0x380] sm:$0xf]  ;;  %4040 = vst [vmem:[%s5821_s26 + $0x1e8] sm:$0xf] %v4039_v40 }
  0x6e   : > { %4042 = vst [vmem:[%s5821_s26 + $0x1f4] sm:$0xf] %v4041_v41  ;;  %4044 = vst [vmem:[%s5821_s26 + $0x200] sm:$0xf] %v4043_v42  ;;  %v4045_v43 = vld [vmem:[%s5816_s25 + $0x38c] sm:$0xf] }
  0x6f   : > { %v4047_v44 = vld [vmem:[%s5816_s25 + $0x398] sm:$0xf]  ;;  %v4049_v45 = vld [vmem:[%s5816_s25 + $0x3a4] sm:$0xf]  ;;  %4046 = vst [vmem:[%s5821_s26 + $0x20c] sm:$0xf] %v4045_v43 }
  0x70   : > { %4048 = vst [vmem:[%s5821_s26 + $0x218] sm:$0xf] %v4047_v44  ;;  %4050 = vst [vmem:[%s5821_s26 + $0x224] sm:$0xf] %v4049_v45  ;;  %v4051_v46 = vld [vmem:[%s5816_s25 + $0x3b0] sm:$0xf] }
  0x71   : > { %v4053_v47 = vld [vmem:[%s5816_s25 + $0x3bc] sm:$0xf]  ;;  %v4055_v48 = vld [vmem:[%s5816_s25 + $0x3c8] sm:$0xf]  ;;  %4052 = vst [vmem:[%s5821_s26 + $0x230] sm:$0xf] %v4051_v46 }
  0x72   : > { %4054 = vst [vmem:[%s5821_s26 + $0x23c] sm:$0xf] %v4053_v47  ;;  %4056 = vst [vmem:[%s5821_s26 + $0x248] sm:$0xf] %v4055_v48  ;;  %v4057_v49 = vld [vmem:[%s5816_s25 + $0x3d4] sm:$0xf] }
  0x73   : > { %v4059_v50 = vld [vmem:[%s5816_s25 + $0x3e0] sm:$0xf]  ;;  %v4061_v51 = vld [vmem:[%s5816_s25 + $0x3ec] sm:$0xf]  ;;  %4058 = vst [vmem:[%s5821_s26 + $0x254] sm:$0xf] %v4057_v49 }
  0x74   : > { %4060 = vst [vmem:[%s5821_s26 + $0x260] sm:$0xf] %v4059_v50  ;;  %4062 = vst [vmem:[%s5821_s26 + $0x26c] sm:$0xf] %v4061_v51  ;;  %v4063_v52 = vld [vmem:[%s5816_s25 + $0x3f8] sm:$0xf] }
  0x75   : > { %v4065_v53 = vld [vmem:[%s5816_s25 + $0x404] sm:$0xf]  ;;  %v4067_v54 = vld [vmem:[%s5816_s25 + $0x410] sm:$0xf]  ;;  %4064 = vst [vmem:[%s5821_s26 + $0x278] sm:$0xf] %v4063_v52 }
  0x76   : > { %4066 = vst [vmem:[%s5821_s26 + $0x284] sm:$0xf] %v4065_v53  ;;  %4068 = vst [vmem:[%s5821_s26 + $0x290] sm:$0xf] %v4067_v54  ;;  %v4069_v55 = vld [vmem:[%s5816_s25 + $0x41c] sm:$0xf] }
  0x77   : > { %v4071_v56 = vld [vmem:[%s5816_s25 + $0x428] sm:$0xf]  ;;  %v4073_v57 = vld [vmem:[%s5816_s25 + $0x434] sm:$0xf]  ;;  %4070 = vst [vmem:[%s5821_s26 + $0x29c] sm:$0xf] %v4069_v55 }
  0x78   : > { %4072 = vst [vmem:[%s5821_s26 + $0x2a8] sm:$0xf] %v4071_v56  ;;  %4074 = vst [vmem:[%s5821_s26 + $0x2b4] sm:$0xf] %v4073_v57  ;;  %v4075_v58 = vld [vmem:[%s5816_s25 + $0x440] sm:$0xf] }
  0x79   : > { %v4077_v59 = vld [vmem:[%s5816_s25 + $0x44c] sm:$0xf]  ;;  %v4079_v60 = vld [vmem:[%s5816_s25 + $0x458] sm:$0xf]  ;;  %4076 = vst [vmem:[%s5821_s26 + $0x2c0] sm:$0xf] %v4075_v58 }
  0x7a   : > { %4078 = vst [vmem:[%s5821_s26 + $0x2cc] sm:$0xf] %v4077_v59  ;;  %4080 = vst [vmem:[%s5821_s26 + $0x2d8] sm:$0xf] %v4079_v60  ;;  %v4081_v61 = vld [vmem:[%s5816_s25 + $0x464] sm:$0xf] }
  0x7b   : > { %v4083_v62 = vld [vmem:[%s5816_s25 + $0x470] sm:$0xf]  ;;  %v4085_v63 = vld [vmem:[%s5816_s25 + $0x47c] sm:$0xf]  ;;  %4082 = vst [vmem:[%s5821_s26 + $0x2e4] sm:$0xf] %v4081_v61 }
  0x7c   : > { %4084 = vst [vmem:[%s5821_s26 + $0x2f0] sm:$0xf] %v4083_v62  ;;  %4086 = vst [vmem:[%s5821_s26 + $0x2fc] sm:$0xf] %v4085_v63  ;;  %v4087_v0 = vld [vmem:[%s5816_s25 + $0x608] sm:$0xf] }
  0x7d   : > { %v4089_v1 = vld [vmem:[%s5816_s25 + $0x614] sm:$0xf]  ;;  %v4091_v2 = vld [vmem:[%s5816_s25 + $0x620] sm:$0xf]  ;;  %4088 = vst [vmem:[%s5821_s26 + $0x308] sm:$0xf] %v4087_v0 }
  0x7e   : > { %4090 = vst [vmem:[%s5821_s26 + $0x314] sm:$0xf] %v4089_v1  ;;  %4092 = vst [vmem:[%s5821_s26 + $0x320] sm:$0xf] %v4091_v2  ;;  %v4093_v3 = vld [vmem:[%s5816_s25 + $0x62c] sm:$0xf] }
  0x7f   : > { %v4095_v4 = vld [vmem:[%s5816_s25 + $0x638] sm:$0xf]  ;;  %v4097_v5 = vld [vmem:[%s5816_s25 + $0x644] sm:$0xf]  ;;  %4094 = vst [vmem:[%s5821_s26 + $0x32c] sm:$0xf] %v4093_v3 }
  0x80   : > { %4096 = vst [vmem:[%s5821_s26 + $0x338] sm:$0xf] %v4095_v4  ;;  %4098 = vst [vmem:[%s5821_s26 + $0x344] sm:$0xf] %v4097_v5  ;;  %v4099_v6 = vld [vmem:[%s5816_s25 + $0x650] sm:$0xf] }
  0x81   : > { %v4101_v7 = vld [vmem:[%s5816_s25 + $0x65c] sm:$0xf]  ;;  %v4103_v8 = vld [vmem:[%s5816_s25 + $0x668] sm:$0xf]  ;;  %4100 = vst [vmem:[%s5821_s26 + $0x350] sm:$0xf] %v4099_v6 }
  0x82   : > { %4102 = vst [vmem:[%s5821_s26 + $0x35c] sm:$0xf] %v4101_v7  ;;  %4104 = vst [vmem:[%s5821_s26 + $0x368] sm:$0xf] %v4103_v8  ;;  %v4105_v9 = vld [vmem:[%s5816_s25 + $0x674] sm:$0xf] }
  0x83   : > { %v4107_v10 = vld [vmem:[%s5816_s25 + $0x680] sm:$0xf]  ;;  %v4109_v11 = vld [vmem:[%s5816_s25 + $0x68c] sm:$0xf]  ;;  %4106 = vst [vmem:[%s5821_s26 + $0x374] sm:$0xf] %v4105_v9 }
  0x84   : > { %4108 = vst [vmem:[%s5821_s26 + $0x380] sm:$0xf] %v4107_v10  ;;  %4110 = vst [vmem:[%s5821_s26 + $0x38c] sm:$0xf] %v4109_v11  ;;  %v4111_v12 = vld [vmem:[%s5816_s25 + $0x698] sm:$0xf] }
  0x85   : > { %v4113_v13 = vld [vmem:[%s5816_s25 + $0x6a4] sm:$0xf]  ;;  %v4115_v14 = vld [vmem:[%s5816_s25 + $0x6b0] sm:$0xf]  ;;  %4112 = vst [vmem:[%s5821_s26 + $0x398] sm:$0xf] %v4111_v12 }
  0x86   : > { %4114 = vst [vmem:[%s5821_s26 + $0x3a4] sm:$0xf] %v4113_v13  ;;  %4116 = vst [vmem:[%s5821_s26 + $0x3b0] sm:$0xf] %v4115_v14  ;;  %v4117_v15 = vld [vmem:[%s5816_s25 + $0x6bc] sm:$0xf] }
  0x87   : > { %v4119_v16 = vld [vmem:[%s5816_s25 + $0x6c8] sm:$0xf]  ;;  %v4121_v17 = vld [vmem:[%s5816_s25 + $0x6d4] sm:$0xf]  ;;  %4118 = vst [vmem:[%s5821_s26 + $0x3bc] sm:$0xf] %v4117_v15 }
  0x88   : > { %4120 = vst [vmem:[%s5821_s26 + $0x3c8] sm:$0xf] %v4119_v16  ;;  %4122 = vst [vmem:[%s5821_s26 + $0x3d4] sm:$0xf] %v4121_v17  ;;  %v4123_v18 = vld [vmem:[%s5816_s25 + $0x6e0] sm:$0xf] }
  0x89   : > { %v4125_v19 = vld [vmem:[%s5816_s25 + $0x6ec] sm:$0xf]  ;;  %v4127_v20 = vld [vmem:[%s5816_s25 + $0x6f8] sm:$0xf]  ;;  %4124 = vst [vmem:[%s5821_s26 + $0x3e0] sm:$0xf] %v4123_v18 }
  0x8a   : > { %4126 = vst [vmem:[%s5821_s26 + $0x3ec] sm:$0xf] %v4125_v19  ;;  %4128 = vst [vmem:[%s5821_s26 + $0x3f8] sm:$0xf] %v4127_v20  ;;  %v4129_v21 = vld [vmem:[%s5816_s25 + $0x704] sm:$0xf] }
  0x8b   : > { %v4131_v22 = vld [vmem:[%s5816_s25 + $0x710] sm:$0xf]  ;;  %v4133_v23 = vld [vmem:[%s5816_s25 + $0x71c] sm:$0xf]  ;;  %4130 = vst [vmem:[%s5821_s26 + $0x404] sm:$0xf] %v4129_v21 }
  0x8c   : > { %4132 = vst [vmem:[%s5821_s26 + $0x410] sm:$0xf] %v4131_v22  ;;  %4134 = vst [vmem:[%s5821_s26 + $0x41c] sm:$0xf] %v4133_v23  ;;  %v4135_v24 = vld [vmem:[%s5816_s25 + $0x728] sm:$0xf] }
  0x8d   : > { %v4137_v25 = vld [vmem:[%s5816_s25 + $0x734] sm:$0xf]  ;;  %v4139_v26 = vld [vmem:[%s5816_s25 + $0x740] sm:$0xf]  ;;  %4136 = vst [vmem:[%s5821_s26 + $0x428] sm:$0xf] %v4135_v24 }
  0x8e   : > { %4138 = vst [vmem:[%s5821_s26 + $0x434] sm:$0xf] %v4137_v25  ;;  %4140 = vst [vmem:[%s5821_s26 + $0x440] sm:$0xf] %v4139_v26  ;;  %v4141_v27 = vld [vmem:[%s5816_s25 + $0x74c] sm:$0xf] }
  0x8f   : > { %v4143_v28 = vld [vmem:[%s5816_s25 + $0x758] sm:$0xf]  ;;  %v4145_v29 = vld [vmem:[%s5816_s25 + $0x764] sm:$0xf]  ;;  %4142 = vst [vmem:[%s5821_s26 + $0x44c] sm:$0xf] %v4141_v27 }
  0x90   : > { %4144 = vst [vmem:[%s5821_s26 + $0x458] sm:$0xf] %v4143_v28  ;;  %4146 = vst [vmem:[%s5821_s26 + $0x464] sm:$0xf] %v4145_v29  ;;  %v4147_v30 = vld [vmem:[%s5816_s25 + $0x770] sm:$0xf] }
  0x91   : > { %v4149_v31 = vld [vmem:[%s5816_s25 + $0x77c] sm:$0xf]  ;;  %v4151_v32 = vld [vmem:[%s5816_s25 + $0x908] sm:$0xf]  ;;  %4148 = vst [vmem:[%s5821_s26 + $0x470] sm:$0xf] %v4147_v30 }
  0x92   : > { %4150 = vst [vmem:[%s5821_s26 + $0x47c] sm:$0xf] %v4149_v31  ;;  %4152 = vst [vmem:[%s5821_s26 + $0x488] sm:$0xf] %v4151_v32  ;;  %v4153_v33 = vld [vmem:[%s5816_s25 + $0x914] sm:$0xf] }
  0x93   : > { %v4155_v34 = vld [vmem:[%s5816_s25 + $0x920] sm:$0xf]  ;;  %v4157_v35 = vld [vmem:[%s5816_s25 + $0x92c] sm:$0xf]  ;;  %4154 = vst [vmem:[%s5821_s26 + $0x494] sm:$0xf] %v4153_v33 }
  0x94   : > { %4156 = vst [vmem:[%s5821_s26 + $0x4a0] sm:$0xf] %v4155_v34  ;;  %4158 = vst [vmem:[%s5821_s26 + $0x4ac] sm:$0xf] %v4157_v35  ;;  %v4159_v36 = vld [vmem:[%s5816_s25 + $0x938] sm:$0xf] }
  0x95   : > { %v4161_v37 = vld [vmem:[%s5816_s25 + $0x944] sm:$0xf]  ;;  %v4163_v38 = vld [vmem:[%s5816_s25 + $0x950] sm:$0xf]  ;;  %4160 = vst [vmem:[%s5821_s26 + $0x4b8] sm:$0xf] %v4159_v36 }
  0x96   : > { %4162 = vst [vmem:[%s5821_s26 + $0x4c4] sm:$0xf] %v4161_v37  ;;  %4164 = vst [vmem:[%s5821_s26 + $0x4d0] sm:$0xf] %v4163_v38  ;;  %v4165_v39 = vld [vmem:[%s5816_s25 + $0x95c] sm:$0xf] }
  0x97   : > { %v4167_v40 = vld [vmem:[%s5816_s25 + $0x968] sm:$0xf]  ;;  %v4169_v41 = vld [vmem:[%s5816_s25 + $0x974] sm:$0xf]  ;;  %4166 = vst [vmem:[%s5821_s26 + $0x4dc] sm:$0xf] %v4165_v39 }
  0x98   : > { %4168 = vst [vmem:[%s5821_s26 + $0x4e8] sm:$0xf] %v4167_v40  ;;  %4170 = vst [vmem:[%s5821_s26 + $0x4f4] sm:$0xf] %v4169_v41  ;;  %v4171_v42 = vld [vmem:[%s5816_s25 + $0x980] sm:$0xf] }
  0x99   : > { %v4173_v43 = vld [vmem:[%s5816_s25 + $0x98c] sm:$0xf]  ;;  %v4175_v44 = vld [vmem:[%s5816_s25 + $0x998] sm:$0xf]  ;;  %4172 = vst [vmem:[%s5821_s26 + $0x500] sm:$0xf] %v4171_v42 }
  0x9a   : > { %4174 = vst [vmem:[%s5821_s26 + $0x50c] sm:$0xf] %v4173_v43  ;;  %4176 = vst [vmem:[%s5821_s26 + $0x518] sm:$0xf] %v4175_v44  ;;  %v4177_v45 = vld [vmem:[%s5816_s25 + $0x9a4] sm:$0xf] }
  0x9b   : > { %v4179_v46 = vld [vmem:[%s5816_s25 + $0x9b0] sm:$0xf]  ;;  %v4181_v47 = vld [vmem:[%s5816_s25 + $0x9bc] sm:$0xf]  ;;  %4178 = vst [vmem:[%s5821_s26 + $0x524] sm:$0xf] %v4177_v45 }
  0x9c   : > { %4180 = vst [vmem:[%s5821_s26 + $0x530] sm:$0xf] %v4179_v46  ;;  %4182 = vst [vmem:[%s5821_s26 + $0x53c] sm:$0xf] %v4181_v47  ;;  %v4183_v48 = vld [vmem:[%s5816_s25 + $0x9c8] sm:$0xf] }
  0x9d   : > { %v4185_v49 = vld [vmem:[%s5816_s25 + $0x9d4] sm:$0xf]  ;;  %v4187_v50 = vld [vmem:[%s5816_s25 + $0x9e0] sm:$0xf]  ;;  %4184 = vst [vmem:[%s5821_s26 + $0x548] sm:$0xf] %v4183_v48 }
  0x9e   : > { %4186 = vst [vmem:[%s5821_s26 + $0x554] sm:$0xf] %v4185_v49  ;;  %4188 = vst [vmem:[%s5821_s26 + $0x560] sm:$0xf] %v4187_v50  ;;  %v4189_v51 = vld [vmem:[%s5816_s25 + $0x9ec] sm:$0xf] }
  0x9f   : > { %v4191_v52 = vld [vmem:[%s5816_s25 + $0x9f8] sm:$0xf]  ;;  %v4193_v53 = vld [vmem:[%s5816_s25 + $0xa04] sm:$0xf]  ;;  %4190 = vst [vmem:[%s5821_s26 + $0x56c] sm:$0xf] %v4189_v51 }
  0xa0   : > { %4192 = vst [vmem:[%s5821_s26 + $0x578] sm:$0xf] %v4191_v52  ;;  %4194 = vst [vmem:[%s5821_s26 + $0x584] sm:$0xf] %v4193_v53  ;;  %v4195_v54 = vld [vmem:[%s5816_s25 + $0xa10] sm:$0xf] }
  0xa1   : > { %v4197_v55 = vld [vmem:[%s5816_s25 + $0xa1c] sm:$0xf]  ;;  %v4199_v56 = vld [vmem:[%s5816_s25 + $0xa28] sm:$0xf]  ;;  %4196 = vst [vmem:[%s5821_s26 + $0x590] sm:$0xf] %v4195_v54 }
  0xa2   : > { %4198 = vst [vmem:[%s5821_s26 + $0x59c] sm:$0xf] %v4197_v55  ;;  %4200 = vst [vmem:[%s5821_s26 + $0x5a8] sm:$0xf] %v4199_v56  ;;  %v4201_v57 = vld [vmem:[%s5816_s25 + $0xa34] sm:$0xf] }
  0xa3   : > { %v4203_v58 = vld [vmem:[%s5816_s25 + $0xa40] sm:$0xf]  ;;  %v4205_v59 = vld [vmem:[%s5816_s25 + $0xa4c] sm:$0xf]  ;;  %4202 = vst [vmem:[%s5821_s26 + $0x5b4] sm:$0xf] %v4201_v57 }
  0xa4   : > { %4204 = vst [vmem:[%s5821_s26 + $0x5c0] sm:$0xf] %v4203_v58  ;;  %4206 = vst [vmem:[%s5821_s26 + $0x5cc] sm:$0xf] %v4205_v59  ;;  %v4207_v60 = vld [vmem:[%s5816_s25 + $0xa58] sm:$0xf] }
  0xa5   : > { %v4209_v61 = vld [vmem:[%s5816_s25 + $0xa64] sm:$0xf]  ;;  %v4211_v62 = vld [vmem:[%s5816_s25 + $0xa70] sm:$0xf]  ;;  %4208 = vst [vmem:[%s5821_s26 + $0x5d8] sm:$0xf] %v4207_v60 }
  0xa6   : > { %4210 = vst [vmem:[%s5821_s26 + $0x5e4] sm:$0xf] %v4209_v61  ;;  %4212 = vst [vmem:[%s5821_s26 + $0x5f0] sm:$0xf] %v4211_v62  ;;  %v4213_v63 = vld [vmem:[%s5816_s25 + $0xa7c] sm:$0xf] }
  0xa7   : > { %4214 = vst [vmem:[%s5821_s26 + $0x5fc] sm:$0xf] %v4213_v63 }
  0xa8 PF: > { %p4215_p5 = scmp.ge.s32.totalorder %s5760_s14, 1  ;;  %p676_p6 = scmp.lt.s32.totalorder %s5760_s14, 3 }
  0xaa   : > { %p677_p7 = pnand %p4215_p5, %p676_p6 }
  0xac   : > { %680 = sbr.rel (%p677_p7) target bundleno = 809 (0x329), region = 54 }
  0xb3   : > { %v6337_v0 = vld [vmem:[%s7567_s1 + $0x40] sm:$0xff]   ;;  %s683_s29 = sand.u32 1, %s5752_s12   ;;  %v6355_v3 = vld [vmem:[%s7567_s1 + $0x48] sm:$0xff]   ;;  %vm1162_vm0 = vcmask 261120   ;;  %v6377_v7 = vld [vmem:[%s7567_s1 + $0x50] sm:$0xff]   ;;  %vm3853_vm1 = vcmask 519168  }
  0xb4   : > { %v6343_v1 = vld [vmem:[%s7567_s1 + $0x80] sm:$0xff]   ;;  %s5421_s5 = smul.u32 1536, %s683_s29  ;;  %4751 = vmatprep.subr.bf16.mxu0 %v6337_v0  ;;  %v6362_v4 = vld [vmem:[%s7567_s1 + $0x88] sm:$0xff]   ;;  %v6387_v9 = vld [vmem:[%s7567_s1 + $0x10] sm:$0xff]  }
  0xb5   : > { %v6349_v2 = vld [vmem:[%s7567_s1] sm:$0xff]   ;;  %5271 = vmatprep.subr.bf16.mxu1 %v6343_v1  ;;  %v6368_v5 = vld [vmem:[%s7567_s1 + $0x8] sm:$0xff]   ;;  %v6392_v10 = vld [vmem:[%s7567_s1 + $0x58] sm:$0xff]  }
  0xb6   : > { %4752 = vmatpush3.bf16.msra.mxu0 %v6349_v2  ;;  %5272 = vmatpush3.bf16.msra.mxu1 %v6343_v1  ;;  %s6371_s18 = scalar_lea.vmem [#allocation2], %s5421_s5  ;;  %v6399_v11 = vld [vmem:[%s7567_s1 + $0x18] sm:$0xff]   ;;  %v6408_v13 = vld [vmem:[%s7567_s1 + $0x60] sm:$0xff]   ;;  %v6424_v16 = vld [vmem:[%s7567_s1 + $0x68] sm:$0xff]  }
  0xb7   : > { %4753 = vmatprep.subr.bf16.mxu0 %v6355_v3  ;;  %5273 = vmatprep.subr.bf16.mxu1 %v6362_v4  ;;  %v5452_v6 = vld [vmem:[%s6371_s18 + $0x8] ss:$12 sps:$4 sm:$0xff]   ;;  %v5454_v8 = vld [vmem:[%s6371_s18 + $0x20] ss:$12 sps:$4 sm:$0xff]   ;;  %v5458_v12 = vld [vmem:[%s6371_s18 + $0x38] ss:$12 sps:$4 sm:$0xff]  }
  0xb8   : > { %5275 = vmatprep.mubr.msk.bf16.mxu1 %vm1162_vm0, %v5452_v6  ;;  %v5460_v14 = vld [vmem:[%s6371_s18 + $0x50] ss:$12 sps:$4 sm:$0xff]   ;;  %v6417_v15 = vld [vmem:[%s7567_s1 + $0x20] sm:$0xff]   ;;  %v5464_v17 = vld [vmem:[%s6371_s18 + $0x68] ss:$12 sps:$4 sm:$0xff]  }
  0xb9   : > { %v6433_v18 = vld [vmem:[%s7567_s1 + $0x28] sm:$0xff]   ;;  %v6440_v19 = vld [vmem:[%s7567_s1 + $0x70] sm:$0xff]   ;;  %v6454_v22 = vld [vmem:[%s7567_s1 + $0x78] sm:$0xff]  }
  0xba   : > { %4754 = vmatpush3.bf16.msra.mxu0 %v6368_v5  ;;  %5274 = vmatpush3.bf16.msra.mxu1 %v6362_v4  ;;  %v5466_v20 = vld [vmem:[%s6371_s18 + $0x80] ss:$12 sps:$4 sm:$0xff]   ;;  %v6448_v21 = vld [vmem:[%s7567_s1 + $0x30] sm:$0xff]   ;;  %v5473_v24 = vld [vmem:[%s6371_s18 + $0x98] ss:$12 sps:$4 sm:$0xff]  }
  0xbb   : > { %4755 = vmatprep.subr.bf16.mxu0 %v6377_v7  ;;  %4881 = vmatprep.subr.bf16.mxu1 %v6337_v0  ;;  %v5472_v23 = vld [vmem:[%s6371_s18 + $0x4] ss:$12 sps:$4 sm:$0xff]   ;;  %v6466_v25 = vld [vmem:[%s7567_s1 + $0x38] sm:$0xff]   ;;  %v5470_v26 = vld [vmem:[%s6371_s18] ss:$12 sps:$4 sm:$0xff]  }
  0xbc   : > { %1243 = vmatprep.mubr.bf16.mxu0 %v5472_v23  ;;  %v5474_v27 = vld [vmem:[%s6371_s18 + $0xb0] ss:$12 sps:$4 sm:$0xff]   ;;  %v5477_v29 = vld [vmem:[%s6371_s18 + $0xc8] ss:$12 sps:$4 sm:$0xff]   ;;  %v5478_v30 = vld [vmem:[%s6371_s18 + $0x18] ss:$12 sps:$4 sm:$0xff]  }
  0xbd   : > { %5276 = vmatmul.mubr.msk.bf16.vlgmr.msra.gmra.mrb[0].mxu1 %vm1162_vm0, %v5454_v8  ;;  %v5475_v28 = vld [vmem:[%s6371_s18 + $0x1c] ss:$12 sps:$4 sm:$0xff]   ;;  %v5479_v31 = vld [vmem:[%s6371_s18 + $0xe0] ss:$12 sps:$4 sm:$0xff]   ;;  %v5482_v33 = vld [vmem:[%s6371_s18 + $0xf8] ss:$12 sps:$4 sm:$0xff]  }
  0xbe   : > { %4756 = vmatpush3.bf16.msra.mxu0 %v6387_v9  ;;  %4882 = vmatpush3.bf16.msra.mxu1 %v6349_v2  ;;  %v5480_v32 = vld [vmem:[%s6371_s18 + $0x34] ss:$12 sps:$4 sm:$0xff]   ;;  %v5483_v34 = vld [vmem:[%s6371_s18 + $0x30] ss:$12 sps:$4 sm:$0xff]   ;;  %v5485_v36 = vld [vmem:[%s6371_s18 + $0x4c] ss:$12 sps:$4 sm:$0xff]  }
  0xbf   : > { %4757 = vmatprep.subr.bf16.mxu0 %v6392_v10  ;;  %4883 = vmatprep.subr.bf16.mxu1 %v6355_v3  ;;  %v5484_v35 = vld [vmem:[%s6371_s18 + $0x110] ss:$12 sps:$4 sm:$0xff]   ;;  %v5487_v37 = vld [vmem:[%s6371_s18 + $0x128] ss:$12 sps:$4 sm:$0xff]   ;;  %v5489_v39 = vld [vmem:[%s6371_s18 + $0x140] ss:$12 sps:$4 sm:$0xff]  }
  0xc0   : > { %5279 = vmatprep.mubr.msk.bf16.mxu1 %vm1162_vm0, %v5458_v12  ;;  %v5488_v38 = vld [vmem:[%s6371_s18 + $0x48] ss:$12 sps:$4 sm:$0xff]   ;;  %v5490_v40 = vld [vmem:[%s6371_s18 + $0x64] ss:$12 sps:$4 sm:$0xff]   ;;  %v5493_v42 = vld [vmem:[%s6371_s18 + $0x60] ss:$12 sps:$4 sm:$0xff]  }
  0xc1   : > { %v5492_v41 = vld [vmem:[%s6371_s18 + $0x158] ss:$12 sps:$4 sm:$0xff]   ;;  %v5494_v43 = vld [vmem:[%s6371_s18 + $0x170] ss:$12 sps:$4 sm:$0xff]   ;;  %v5497_v46 = vld [vmem:[%s6371_s18 + $0x180] ss:$12 sps:$4 sm:$0xff]  }
  0xc2   : > { %4758 = vmatpush3.bf16.msra.mxu0 %v6399_v11  ;;  %4884 = vmatpush3.bf16.msra.mxu1 %v6368_v5  ;;  %v5495_v44 = vld [vmem:[%s6371_s18 + $0x7c] ss:$12 sps:$4 sm:$0xff]   ;;  %v5499_v45 = vld [vmem:[%s6371_s18 + $0x184] ss:$12 sps:$4 sm:$0xff]   ;;  %v5501_v48 = vld [vmem:[%s6371_s18 + $0x94] ss:$12 sps:$4 sm:$0xff]  }
  0xc3   : > { %4759 = vmatprep.subr.bf16.mxu0 %v6408_v13  ;;  %4885 = vmatprep.subr.bf16.mxu1 %v6377_v7  ;;  %v5500_v47 = vld [vmem:[%s6371_s18 + $0x78] ss:$12 sps:$4 sm:$0xff]   ;;  %v5503_v49 = vld [vmem:[%s6371_s18 + $0x19c] ss:$12 sps:$4 sm:$0xff]   ;;  %v5509_v53 = vld [vmem:[%s6371_s18 + $0x1b4] ss:$12 sps:$4 sm:$0xff]  }
  0xc4   : > { %v5505_v50 = vld [vmem:[%s6371_s18 + $0x90] ss:$12 sps:$4 sm:$0xff]   ;;  %v5506_v51 = vld [vmem:[%s6371_s18 + $0x198] ss:$12 sps:$4 sm:$0xff]   ;;  %v5511_v54 = vld [vmem:[%s6371_s18 + $0xa8] ss:$12 sps:$4 sm:$0xff]  }
  0xc5   : > { %5280 = vmatmul.mubr.msk.bf16.gmra.mrb[4].mxu1 %vm1162_vm0, %v5460_v14  ;;  %v5507_v52 = vld [vmem:[%s6371_s18 + $0xac] ss:$12 sps:$4 sm:$0xff]   ;;  %v5512_v55 = vld [vmem:[%s6371_s18 + $0x1b0] ss:$12 sps:$4 sm:$0xff]   ;;  %v5518_v59 = vld [vmem:[%s6371_s18 + $0x1c8] ss:$12 sps:$4 sm:$0xff]  }
  0xc6   : > { %4760 = vmatpush3.bf16.msra.mxu0 %v6417_v15  ;;  %5283 = vmatprep.mubr.msk.bf16.mxu1 %vm1162_vm0, %v5464_v17  ;;  %v5513_v56 = vld [vmem:[%s6371_s18 + $0xc4] ss:$12 sps:$4 sm:$0xff]   ;;  %v5515_v57 = vld [vmem:[%s6371_s18 + $0x1cc] ss:$12 sps:$4 sm:$0xff]   ;;  %v5519_v60 = vld [vmem:[%s6371_s18 + $0xdc] ss:$12 sps:$4 sm:$0xff]  }
  0xc7   : > { %4761 = vmatprep.subr.bf16.mxu0 %v6424_v16  ;;  %4886 = vmatpush3.bf16.msra.mxu1 %v6387_v9  ;;  %v5517_v58 = vld [vmem:[%s6371_s18 + $0xc0] ss:$12 sps:$4 sm:$0xff]   ;;  %v5521_v61 = vld [vmem:[%s6371_s18 + $0x1e4] ss:$12 sps:$4 sm:$0xff]   ;;  %v5535_v8 = vld [vmem:[%s6371_s18 + $0x108] ss:$12 sps:$4 sm:$0xff]  }
  0xc8   : > { %4887 = vmatprep.subr.bf16.mxu1 %v6392_v10  ;;  %v5523_v62 = vld [vmem:[%s6371_s18 + $0xd8] ss:$12 sps:$4 sm:$0xff]   ;;  %v5524_v63 = vld [vmem:[%s6371_s18 + $0x1e0] ss:$12 sps:$4 sm:$0xff]   ;;  %v5542_v12 = vld [vmem:[%s6371_s18 + $0x228] ss:$12 sps:$4 sm:$0xff]  }
  0xc9   : > { %v5531_v6 = vld [vmem:[%s6371_s18 + $0x10c] ss:$12 sps:$4 sm:$0xff]   ;;  %v5545_v14 = vld [vmem:[%s6371_s18 + $0x244] ss:$12 sps:$4 sm:$0xff]   ;;  %v5549_v17 = vld [vmem:[%s6371_s18 + $0x154] ss:$12 sps:$4 sm:$0xff]  }
  0xca   : > { %4762 = vmatpush3.bf16.msra.mxu0 %v6433_v18  ;;  %v5559_v23 = vld [vmem:[%s6371_s18 + $0x168] ss:$12 sps:$4 sm:$0xff]  }
  0xcb   : > { %4763 = vmatprep.subr.bf16.mxu0 %v6440_v19  ;;  %4888 = vmatpush3.bf16.msra.mxu1 %v6399_v11 }
  0xcc   : > { %4889 = vmatprep.subr.bf16.mxu1 %v6408_v13 }
  0xcd   : > { %5284 = vmatmul.mubr.msk.bf16.gmra.mrb[8].mxu1 %vm1162_vm0, %v5466_v20  ;;  %v5554_v20 = vld [vmem:[%s6371_s18 + $0x258] ss:$12 sps:$4 sm:$0xff]  }
  0xce   : > { %4764 = vmatpush3.bf16.msra.mxu0 %v6448_v21  ;;  %5287 = vmatprep.mubr.msk.bf16.mxu1 %vm1162_vm0, %v5473_v24  ;;  %v5560_v24 = vld [vmem:[%s6371_s18 + $0x270] ss:$12 sps:$4 sm:$0xff]  }
  0xcf   : > { %4765 = vmatprep.subr.bf16.mxu0 %v6454_v22  ;;  %4890 = vmatpush3.bf16.msra.mxu1 %v6417_v15 }
  0xd0   : > { %4891 = vmatprep.subr.bf16.mxu1 %v6424_v16 }
  0xd2   : > { %4766 = vmatpush3.bf16.msra.mxu0 %v6466_v25 }
  0xd3   : > { %5307 = vmatprep.subr.bf16.mxu0 %v6343_v1  ;;  %4892 = vmatpush3.bf16.msra.mxu1 %v6433_v18 }
  0xd4   : > { %4893 = vmatprep.subr.bf16.mxu1 %v6440_v19 }
  0xd5   : > { %1244 = vmatmul.mubr.bf16.vlgmr.msra.gmra.mrb[0].mxu0 %v5470_v26  ;;  %5288 = vmatmul.mubr.msk.bf16.gmra.mrb[12].mxu1 %vm1162_vm0, %v5474_v27  ;;  %v5563_v26 = vld [vmem:[%s6371_s18 + $0x188] ss:$12 sps:$4 sm:$0xff]  }
  0xd6   : > { %5308 = vmatpush3.bf16.msra.mxu0 %v6343_v1  ;;  %1251 = vmatprep.mubr.bf16.mxu0 %v5475_v28  ;;  %v5564_v27 = vld [vmem:[%s6371_s18 + $0x288] ss:$12 sps:$4 sm:$0xff]   ;;  %v5565_v28 = vld [vmem:[%s6371_s18 + $0x1a0] ss:$12 sps:$4 sm:$0xff]  }
  0xd7   : > { %5291 = vmatprep.mubr.msk.bf16.mxu1 %vm1162_vm0, %v5477_v29  ;;  %4894 = vmatpush3.bf16.msra.mxu1 %v6448_v21  ;;  %v5566_v29 = vld [vmem:[%s6371_s18 + $0x2a4] ss:$12 sps:$4 sm:$0xff]  }
  0xd8   : > { %4895 = vmatprep.subr.bf16.mxu1 %v6454_v22  ;;  %5309 = vmatprep.subr.bf16.mxu0 %v6362_v4 }
  0xda   : > { %5310 = vmatpush3.bf16.msra.mxu0 %v6362_v4 }
  0xdb   : > { %4896 = vmatpush3.bf16.msra.mxu1 %v6466_v25  ;;  %5343 = vmatprep.subr.bf16.mxu0 %v6343_v1 }
  0xdc   : > { %5011 = vmatprep.subr.bf16.mxu1 %v6337_v0  ;;  %v5525_v0 = vld [vmem:[%s6371_s18 + $0xf4] ss:$12 sps:$4 sm:$0xff]  }
  0xdd   : > { %1252 = vmatmul.mubr.bf16.gmra.mrb[4].mxu0 %v5478_v30  ;;  %5292 = vmatmul.mubr.msk.bf16.gmra.mrb[16].mxu1 %vm1162_vm0, %v5479_v31  ;;  %v5568_v30 = vld [vmem:[%s6371_s18 + $0x1b8] ss:$12 sps:$4 sm:$0xff]  }
  0xde   : > { %1259 = vmatprep.mubr.bf16.mxu0 %v5480_v32  ;;  %5295 = vmatprep.mubr.msk.bf16.mxu1 %vm1162_vm0, %v5482_v33  ;;  %v6582_v31 = vld [vmem:[%s7567_s1 + $0x80] sm:$0xff]   ;;  %v5570_v33 = vld [vmem:[%s6371_s18 + $0x1d0] ss:$12 sps:$4 sm:$0xff]  }
  0xdf   : > { %v5569_v32 = vld [vmem:[%s6371_s18 + $0x2a0] ss:$12 sps:$4 sm:$0xff]  }
  0xe5   : > { %1260 = vmatmul.mubr.bf16.gmra.mrb[8].mxu0 %v5483_v34  ;;  %5296 = vmatmul.mubr.msk.bf16.gmra.mrb[20].mxu1 %vm1162_vm0, %v5484_v35  ;;  %v5571_v34 = vld [vmem:[%s6371_s18 + $0x2bc] ss:$12 sps:$4 sm:$0xff]  }
  0xe6   : > { %1267 = vmatprep.mubr.bf16.mxu0 %v5485_v36  ;;  %5299 = vmatprep.mubr.msk.bf16.mxu1 %vm1162_vm0, %v5487_v37  ;;  %v5573_v35 = vld [vmem:[%s6371_s18 + $0x1e8] ss:$12 sps:$4 sm:$0xff]   ;;  %v5721_v36 = vld [vmem:[%s7567_s1 + $0x40] sm:$0xff]  }
  0xe7   : > { %v5574_v37 = vld [vmem:[%s6371_s18 + $0x2b8] ss:$12 sps:$4 sm:$0xff]  }
  0xed   : > { %1268 = vmatmul.mubr.bf16.gmra.mrb[12].mxu0 %v5488_v38  ;;  %5300 = vmatmul.mubr.msk.bf16.gmra.mrb[24].mxu1 %vm1162_vm0, %v5489_v39  ;;  %v5575_v38 = vld [vmem:[%s6371_s18 + $0x200] ss:$12 sps:$4 sm:$0xff]  }
  0xee   : > { %1275 = vmatprep.mubr.bf16.mxu0 %v5490_v40  ;;  %5303 = vmatprep.mubr.msk.bf16.mxu1 %vm1162_vm0, %v5492_v41  ;;  %v5576_v39 = vld [vmem:[%s6371_s18 + $0x2d4] ss:$12 sps:$4 sm:$0xff]   ;;  %v5579_v40 = vld [vmem:[%s6371_s18 + $0x2d0] ss:$12 sps:$4 sm:$0xff]  }
  0xef   : > { %v5580_v41 = vld [vmem:[%s6371_s18 + $0x230] ss:$12 sps:$4 sm:$0xff]  }
  0xf5   : > { %1276 = vmatmul.mubr.bf16.gmra.mrb[16].mxu0 %v5493_v42  ;;  %5304 = vmatmul.mubr.msk.bf16.gmra.mrb[28].mxu1 %vm1162_vm0, %v5494_v43  ;;  %v5581_v42 = vld [vmem:[%s6371_s18 + $0x2ec] ss:$12 sps:$4 sm:$0xff]   ;;  %v5583_v43 = vld [vmem:[%s6371_s18 + $0x248] ss:$12 sps:$4 sm:$0xff]  }
  0xf6   : > { %1283 = vmatprep.mubr.bf16.mxu0 %v5495_v44  ;;  %1918 = vmatprep.mubr.bf16.mxu1 %v5499_v45  ;;  %v5584_v44 = vld [vmem:[%s6371_s18 + $0x2e8] ss:$12 sps:$4 sm:$0xff]   ;;  %v5585_v45 = vld [vmem:[%s6371_s18 + $0x260] ss:$12 sps:$4 sm:$0xff]  }
  0xfd   : > { %1284 = vmatmul.mubr.bf16.gmra.mrb[20].mxu0 %v5500_v47  ;;  %1919 = vmatmul.mubr.bf16.vlgmr.msra.gmra.mrb[32].mxu1 %v5497_v46  ;;  %v5586_v46 = vld [vmem:[%s6371_s18 + $0x278] ss:$12 sps:$4 sm:$0xff]  }
  0xfe   : > { %1291 = vmatprep.mubr.bf16.mxu0 %v5501_v48  ;;  %1926 = vmatprep.mubr.bf16.mxu1 %v5503_v49  ;;  %v5589_v47 = vld [vmem:[%s6371_s18 + $0x304] ss:$12 sps:$4 sm:$0xff]   ;;  %v5587_v48 = vld [vmem:[%s6371_s18 + $0x300] ss:$12 sps:$4 sm:$0xff]  }
  0xff   : > { %5012 = vmatpush3.bf16.msra.mxu1 %v6349_v2  ;;  %v5527_v2 = vld [vmem:[%s6371_s18 + $0x1fc] ss:$12 sps:$4 sm:$0xff]  }
 0x100   : > { %5013 = vmatprep.subr.bf16.mxu1 %v6355_v3  ;;  %v5529_v3 = vld [vmem:[%s6371_s18 + $0xf0] ss:$12 sps:$4 sm:$0xff]  }
 0x101   : > { %v5590_v49 = vld [vmem:[%s6371_s18 + $0x290] ss:$12 sps:$4 sm:$0xff]  }
 0x103   : > { %5014 = vmatpush3.bf16.msra.mxu1 %v6368_v5  ;;  %v5530_v5 = vld [vmem:[%s6371_s18 + $0x1f8] ss:$12 sps:$4 sm:$0xff]  }
 0x104   : > { %5015 = vmatprep.subr.bf16.mxu1 %v6377_v7  ;;  %v5533_v7 = vld [vmem:[%s6371_s18 + $0x214] ss:$12 sps:$4 sm:$0xff]  }
 0x105   : > { %1292 = vmatmul.mubr.bf16.gmra.mrb[24].mxu0 %v5505_v50  ;;  %1927 = vmatmul.mubr.bf16.gmra.mrb[36].mxu1 %v5506_v51  ;;  %v5591_v50 = vld [vmem:[%s6371_s18 + $0x2a8] ss:$12 sps:$4 sm:$0xff]  }
 0x106   : > { %1299 = vmatprep.mubr.bf16.mxu0 %v5507_v52  ;;  %1934 = vmatprep.mubr.bf16.mxu1 %v5509_v53  ;;  %v5592_v51 = vld [vmem:[%s6371_s18 + $0x31c] ss:$12 sps:$4 sm:$0xff]   ;;  %v5594_v53 = vld [vmem:[%s6371_s18 + $0x2c0] ss:$12 sps:$4 sm:$0xff]  }
 0x107   : > { %5016 = vmatpush3.bf16.msra.mxu1 %v6387_v9  ;;  %v5537_v9 = vld [vmem:[%s6371_s18 + $0x124] ss:$12 sps:$4 sm:$0xff]   ;;  %v6625_v52 = vld [vmem:[%s7567_s1 + $0x88] sm:$0xff]  }
 0x108   : > { %5017 = vmatprep.subr.bf16.mxu1 %v6392_v10  ;;  %v5539_v10 = vld [vmem:[%s6371_s18 + $0x22c] ss:$12 sps:$4 sm:$0xff]  }
 0x10b   : > { %5018 = vmatpush3.bf16.msra.mxu1 %v6399_v11  ;;  %v5541_v11 = vld [vmem:[%s6371_s18 + $0x120] ss:$12 sps:$4 sm:$0xff]  }
 0x10c   : > { %5019 = vmatprep.subr.bf16.mxu1 %v6408_v13  ;;  %v5543_v13 = vld [vmem:[%s6371_s18 + $0x13c] ss:$12 sps:$4 sm:$0xff]  }
 0x10d   : > { %1300 = vmatmul.mubr.bf16.gmra.mrb[28].mxu0 %v5511_v54  ;;  %1935 = vmatmul.mubr.bf16.gmra.mrb[40].mxu1 %v5512_v55  ;;  %v5595_v54 = vld [vmem:[%s6371_s18 + $0x318] ss:$12 sps:$4 sm:$0xff]  }
 0x10e   : > { %1307 = vmatprep.mubr.bf16.mxu0 %v5513_v56  ;;  %1942 = vmatprep.mubr.bf16.mxu1 %v5515_v57  ;;  %v5596_v55 = vld [vmem:[%s6371_s18 + $0x2d8] ss:$12 sps:$4 sm:$0xff]   ;;  %v5597_v56 = vld [vmem:[%s6371_s18 + $0x334] ss:$12 sps:$4 sm:$0xff]   ;;  %v5599_v57 = vld [vmem:[%s6371_s18 + $0x2f0] ss:$12 sps:$4 sm:$0xff]  }
 0x10f   : > { %5020 = vmatpush3.bf16.msra.mxu1 %v6417_v15  ;;  %v5547_v15 = vld [vmem:[%s6371_s18 + $0x138] ss:$12 sps:$4 sm:$0xff]  }
 0x110   : > { %5021 = vmatprep.subr.bf16.mxu1 %v6424_v16  ;;  %v5548_v16 = vld [vmem:[%s6371_s18 + $0x240] ss:$12 sps:$4 sm:$0xff]  }
 0x113   : > { %5022 = vmatpush3.bf16.msra.mxu1 %v6433_v18  ;;  %v5551_v18 = vld [vmem:[%s6371_s18 + $0x25c] ss:$12 sps:$4 sm:$0xff]  }
 0x114   : > { %5023 = vmatprep.subr.bf16.mxu1 %v6440_v19  ;;  %v5553_v19 = vld [vmem:[%s6371_s18 + $0x150] ss:$12 sps:$4 sm:$0xff]  }
 0x115   : > { %1308 = vmatmul.mubr.bf16.gmra.mrb[32].mxu0 %v5517_v58  ;;  %1943 = vmatmul.mubr.bf16.gmra.mrb[44].mxu1 %v5518_v59  ;;  %v5600_v58 = vld [vmem:[%s6371_s18 + $0x330] ss:$12 sps:$4 sm:$0xff]   ;;  %v5601_v59 = vld [vmem:[%s6371_s18 + $0x34c] ss:$12 sps:$4 sm:$0xff]  }
 0x116   : > { %1315 = vmatprep.mubr.bf16.mxu0 %v5519_v60  ;;  %1950 = vmatprep.mubr.bf16.mxu1 %v5521_v61  ;;  %v5603_v60 = vld [vmem:[%s6371_s18 + $0x308] ss:$12 sps:$4 sm:$0xff]  }
 0x117   : > { %5024 = vmatpush3.bf16.msra.mxu1 %v6448_v21  ;;  %v5555_v21 = vld [vmem:[%s6371_s18 + $0x16c] ss:$12 sps:$4 sm:$0xff]  }
 0x118   : > { %5025 = vmatprep.subr.bf16.mxu1 %v6454_v22  ;;  %v5557_v22 = vld [vmem:[%s6371_s18 + $0x274] ss:$12 sps:$4 sm:$0xff]  }
 0x11b   : > { %5026 = vmatpush3.bf16.msra.mxu1 %v6466_v25  ;;  %v5561_v25 = vld [vmem:[%s6371_s18 + $0x28c] ss:$12 sps:$4 sm:$0xff]  }
 0x11c   : > { %5415 = vmatprep.subr.bf16.mxu1 %v6343_v1  ;;  %v5536_v1 = vld [vmem:[%s6371_s18 + $0x210] ss:$12 sps:$4 sm:$0xff]  }
 0x11d   : > { %1316 = vmatmul.mubr.bf16.gmra.mrb[36].mxu0 %v5523_v62  ;;  %1951 = vmatmul.mubr.bf16.gmra.mrb[48].mxu1 %v5524_v63  ;;  %v5604_v62 = vld [vmem:[%s6371_s18 + $0x348] ss:$12 sps:$4 sm:$0xff]   ;;  %v5605_v63 = vld [vmem:[%s6371_s18 + $0x320] ss:$12 sps:$4 sm:$0xff]  }
 0x11e   : > { %1323 = vmatprep.mubr.bf16.mxu0 %v5525_v0  ;;  %1958 = vmatprep.mubr.bf16.mxu1 %v5527_v2 }
 0x125   : > { %1324 = vmatmul.mubr.bf16.gmra.mrb[40].mxu0 %v5529_v3  ;;  %1959 = vmatmul.mubr.bf16.gmra.mrb[52].mxu1 %v5530_v5  ;;  %v5606_v3 = vld [vmem:[%s6371_s18 + $0x364] ss:$12 sps:$4 sm:$0xff]  }
 0x126   : > { %1331 = vmatprep.mubr.bf16.mxu0 %v5531_v6  ;;  %1966 = vmatprep.mubr.bf16.mxu1 %v5533_v7  ;;  %v5608_v6 = vld [vmem:[%s6371_s18 + $0x338] ss:$12 sps:$4 sm:$0xff]  }
 0x127   : > { %v5723_v7 = vld [vmem:[%s7567_s1] sm:$0xff]  }
 0x12d   : > { %1332 = vmatmul.mubr.bf16.gmra.mrb[44].mxu0 %v5535_v8  ;;  %1967 = vmatmul.mubr.bf16.gmra.mrb[56].mxu1 %v5536_v1  ;;  %v5724_v8 = vld [vmem:[%s7567_s1 + $0x48] sm:$0xff]  }
 0x12e   : > { %1339 = vmatprep.mubr.bf16.mxu0 %v5537_v9  ;;  %1974 = vmatprep.mubr.bf16.mxu1 %v5539_v10  ;;  %v5609_v9 = vld [vmem:[%s6371_s18 + $0x360] ss:$12 sps:$4 sm:$0xff]   ;;  %v5610_v10 = vld [vmem:[%s6371_s18 + $0x350] ss:$12 sps:$4 sm:$0xff]  }
 0x135   : > { %1340 = vmatmul.mubr.bf16.gmra.mrb[48].mxu0 %v5541_v11  ;;  %1975 = vmatmul.mubr.bf16.gmra.mrb[60].mxu1 %v5542_v12  ;;  %v5725_v12 = vld [vmem:[%s7567_s1 + $0x8] sm:$0xff]  }
 0x136   : > { %1347 = vmatprep.mubr.bf16.mxu0 %v5543_v13  ;;  %1982 = vmatprep.mubr.bf16.mxu1 %v5545_v14  ;;  %v5611_v14 = vld [vmem:[%s6371_s18 + $0x37c] ss:$12 sps:$4 sm:$0xff]  }
 0x13d   : > { %1348 = vmatmul.mubr.bf16.gmra.mrb[52].mxu0 %v5547_v15  ;;  %1983 = vmatmul.mubr.bf16.gmra.mrb[64].mxu1 %v5548_v16  ;;  %v5613_v15 = vld [vmem:[%s6371_s18 + $0x368] ss:$12 sps:$4 sm:$0xff]  }
 0x13e   : > { %1355 = vmatprep.mubr.bf16.mxu0 %v5549_v17  ;;  %1990 = vmatprep.mubr.bf16.mxu1 %v5551_v18  ;;  %v5726_v17 = vld [vmem:[%s7567_s1 + $0x50] sm:$0xff]  }
 0x13f   : > { %v5727_v18 = vld [vmem:[%s7567_s1 + $0x10] sm:$0xff]  }
 0x145   : > { %1356 = vmatmul.mubr.bf16.gmra.mrb[56].mxu0 %v5553_v19  ;;  %1991 = vmatmul.mubr.bf16.gmra.mrb[68].mxu1 %v5554_v20  ;;  %v5728_v20 = vld [vmem:[%s7567_s1 + $0x58] sm:$0xff]  }
 0x146   : > { %1363 = vmatprep.mubr.bf16.mxu0 %v5555_v21  ;;  %1998 = vmatprep.mubr.bf16.mxu1 %v5557_v22  ;;  %v5614_v21 = vld [vmem:[%s6371_s18 + $0x378] ss:$12 sps:$4 sm:$0xff]   ;;  %v5615_v22 = vld [vmem:[%s6371_s18 + $0x380] ss:$12 sps:$4 sm:$0xff]  }
 0x14d   : > { %1364 = vmatmul.mubr.bf16.gmra.mrb[60].mxu0 %v5559_v23  ;;  %1999 = vmatmul.mubr.bf16.gmra.mrb[72].mxu1 %v5560_v24 }
 0x14e   : > { %2006 = vmatprep.mubr.bf16.mxu1 %v5561_v25  ;;  %5311 = vmatprep.mubr.msk.bf16.mxu0 %vm1162_vm0, %v5563_v26  ;;  %v5616_v25 = vld [vmem:[%s6371_s18 + $0x394] ss:$12 sps:$4 sm:$0xff]   ;;  %v5618_v26 = vld [vmem:[%s6371_s18 + $0x398] ss:$12 sps:$4 sm:$0xff]  }
 0x155   : > { %2007 = vmatmul.mubr.bf16.gmra.mrb[76].mxu1 %v5564_v27  ;;  %5312 = vmatmul.mubr.msk.bf16.vlgmr.msra.gmra.mrb[64].mxu0 %vm1162_vm0, %v5565_v28  ;;  %v5729_v28 = vld [vmem:[%s7567_s1 + $0x18] sm:$0xff]  }
 0x156   : > { %5344 = vmatpush3.bf16.msra.mxu0 %v6582_v31  ;;  %2014 = vmatprep.mubr.bf16.mxu1 %v5566_v29  ;;  %v5730_v29 = vld [vmem:[%s7567_s1 + $0x60] sm:$0xff]  }
 0x157   : > { %5315 = vmatprep.mubr.msk.bf16.mxu0 %vm1162_vm0, %v5568_v30  ;;  %5345 = vmatprep.subr.bf16.mxu0 %v6362_v4  ;;  %v5731_v30 = vld [vmem:[%s7567_s1 + $0x20] sm:$0xff]  }
 0x15a   : > { %5346 = vmatpush3.bf16.msra.mxu0 %v6362_v4  ;;  %v5578_v4 = vld [vmem:[%s6371_s18 + $0x218] ss:$12 sps:$4 sm:$0xff]  }
 0x15b   : > { %5141 = vmatprep.subr.bf16.mxu0 %v5721_v36  ;;  %v5619_v36 = vld [vmem:[%s6371_s18 + $0x390] ss:$12 sps:$4 sm:$0xff]  }
 0x15d   : > { %2015 = vmatmul.mubr.bf16.gmra.mrb[80].mxu1 %v5569_v32  ;;  %5316 = vmatmul.mubr.msk.bf16.gmra.mrb[68].mxu0 %vm1162_vm0, %v5570_v33 }
 0x15e   : > { %2022 = vmatprep.mubr.bf16.mxu1 %v5571_v34  ;;  %5319 = vmatprep.mubr.msk.bf16.mxu0 %vm1162_vm0, %v5573_v35  ;;  %v5732_v34 = vld [vmem:[%s7567_s1 + $0x68] sm:$0xff]  }
 0x165   : > { %2023 = vmatmul.mubr.bf16.gmra.mrb[84].mxu1 %v5574_v37  ;;  %5320 = vmatmul.mubr.msk.bf16.gmra.mrb[72].mxu0 %vm1162_vm0, %v5575_v38  ;;  %v5620_v37 = vld [vmem:[%s6371_s18 + $0x3b0] ss:$12 sps:$4 sm:$0xff]  }
 0x166   : > { %2030 = vmatprep.mubr.bf16.mxu1 %v5576_v39  ;;  %5323 = vmatprep.mubr.msk.bf16.mxu0 %vm1162_vm0, %v5578_v4 }
 0x16d   : > { %2031 = vmatmul.mubr.bf16.gmra.mrb[88].mxu1 %v5579_v40  ;;  %5324 = vmatmul.mubr.msk.bf16.gmra.mrb[76].mxu0 %vm1162_vm0, %v5580_v41  ;;  %v5621_v41 = vld [vmem:[%s6371_s18 + $0x3ac] ss:$12 sps:$4 sm:$0xff]  }
 0x16e   : > { %2038 = vmatprep.mubr.bf16.mxu1 %v5581_v42  ;;  %5327 = vmatprep.mubr.msk.bf16.mxu0 %vm1162_vm0, %v5583_v43  ;;  %v5623_v42 = vld [vmem:[%s6371_s18 + $0x3c8] ss:$12 sps:$4 sm:$0xff]  }
 0x175   : > { %2039 = vmatmul.mubr.bf16.gmra.mrb[92].mxu1 %v5584_v44  ;;  %5328 = vmatmul.mubr.msk.bf16.gmra.mrb[80].mxu0 %vm1162_vm0, %v5585_v45  ;;  %v5733_v45 = vld [vmem:[%s7567_s1 + $0x28] sm:$0xff]  }
 0x176   : > { %5331 = vmatprep.mubr.msk.bf16.mxu0 %vm1162_vm0, %v5586_v46  ;;  %2625 = vmatprep.mubr.bf16.mxu1 %v5589_v47 }
 0x17d   : > { %5332 = vmatmul.mubr.msk.bf16.gmra.mrb[84].mxu0 %vm1162_vm0, %v5590_v49  ;;  %2626 = vmatmul.mubr.bf16.vlgmr.msra.gmra.mrb[96].mxu1 %v5587_v48  ;;  %v5734_v48 = vld [vmem:[%s7567_s1 + $0x70] sm:$0xff]  }
 0x17e   : > { %5335 = vmatprep.mubr.msk.bf16.mxu0 %vm1162_vm0, %v5591_v50  ;;  %2633 = vmatprep.mubr.bf16.mxu1 %v5592_v51  ;;  %v5735_v50 = vld [vmem:[%s7567_s1 + $0x30] sm:$0xff]  }
 0x17f   : > { %5417 = vmatpush3.bf16.msra.mxu1 %v6582_v31 }
 0x180   : > { %5416 = vmatprep.subr.bf16.mxu1 %v6625_v52 }
 0x183   : > { %5418 = vmatpush3.bf16.msra.mxu1 %v6625_v52 }
 0x184   : > { %5379 = vmatprep.subr.bf16.mxu1 %v6582_v31 }
 0x185   : > { %5336 = vmatmul.mubr.msk.bf16.gmra.mrb[88].mxu0 %vm1162_vm0, %v5594_v53  ;;  %2634 = vmatmul.mubr.bf16.gmra.mrb[100].mxu1 %v5595_v54  ;;  %v5736_v54 = vld [vmem:[%s7567_s1 + $0x78] sm:$0xff]  }
 0x186   : > { %5339 = vmatprep.mubr.msk.bf16.mxu0 %vm1162_vm0, %v5596_v55  ;;  %2641 = vmatprep.mubr.bf16.mxu1 %v5597_v56  ;;  %v5624_v56 = vld [vmem:[%s6371_s18 + $0x3a8] ss:$12 sps:$4 sm:$0xff]  }
 0x18d   : > { %5340 = vmatmul.mubr.msk.bf16.gmra.mrb[92].mxu0 %vm1162_vm0, %v5599_v57  ;;  %2642 = vmatmul.mubr.bf16.gmra.mrb[104].mxu1 %v5600_v58  ;;  %v5625_v57 = vld [vmem:[%s6371_s18 + $0x3e0] ss:$12 sps:$4 sm:$0xff]  }
 0x18e   : > { %2649 = vmatprep.mubr.bf16.mxu1 %v5601_v59  ;;  %5347 = vmatprep.mubr.msk.bf16.mxu0 %vm1162_vm0, %v5603_v60 }
 0x190   : > { %v6642_v61 = vpop.f32.mrb[0].mxu1 }
 0x191   : > { %v6646_v0 = vpop.f32.mrb[1].mxu1 }
 0x192   : > { %v6648_v2 = vpop.f32.mrb[2].mxu1 }
 0x193   : > { %v6651_v5 = vpop.f32.mrb[3].mxu1 }
 0x195   : > { %2650 = vmatmul.mubr.bf16.gmra.mrb[108].mxu1 %v5604_v62  ;;  %5348 = vmatmul.mubr.msk.bf16.vlgmr.msra.gmra.mrb[96].mxu0 %vm1162_vm0, %v5605_v63  ;;  %v5626_v63 = vld [vmem:[%s6371_s18 + $0x3c4] ss:$12 sps:$4 sm:$0xff]  }
 0x196   : > { %5142 = vmatpush3.bf16.msra.mxu0 %v5723_v7  ;;  %2657 = vmatprep.mubr.bf16.mxu1 %v5606_v3 }
 0x197   : > { %5351 = vmatprep.mubr.msk.bf16.mxu0 %vm1162_vm0, %v5608_v6  ;;  %5143 = vmatprep.subr.bf16.mxu0 %v5724_v8  ;;  %v5737_v6 = vld [vmem:[%s7567_s1 + $0x38] sm:$0xff]  }
 0x198   : > { %v6662_v1 = vpop.f32.mrb[4].mxu1 }
 0x199   : > { %v6666_v11 = vpop.f32.mrb[5].mxu1 }
 0x19a   : > { %5144 = vmatpush3.bf16.msra.mxu0 %v5725_v12  ;;  %v6671_v13 = vpop.f32.mrb[6].mxu1 }
 0x19b   : > { %v6675_v16 = vpop.f32.mrb[7].mxu1  ;;  %5145 = vmatprep.subr.bf16.mxu0 %v5726_v17  ;;  %v5630_v17 = vld [vmem:[%s6371_s18 + $0x410] ss:$12 sps:$4 sm:$0xff]  }
 0x19d   : > { %2658 = vmatmul.mubr.bf16.gmra.mrb[112].mxu1 %v5609_v9  ;;  %5352 = vmatmul.mubr.msk.bf16.gmra.mrb[100].mxu0 %vm1162_vm0, %v5610_v10 }
 0x19e   : > { %2665 = vmatprep.mubr.bf16.mxu1 %v5611_v14  ;;  %5355 = vmatprep.mubr.msk.bf16.mxu0 %vm1162_vm0, %v5613_v15  ;;  %v5629_v15 = vld [vmem:[%s6371_s18 + $0x3c0] ss:$12 sps:$4 sm:$0xff]  }
 0x19f   : > { %5146 = vmatpush3.bf16.msra.mxu0 %v5727_v18 }
 0x1a0   : > { %v6685_v19 = vpop.f32.mrb[8].mxu1  ;;  %5147 = vmatprep.subr.bf16.mxu0 %v5728_v20 }
 0x1a1   : > { %v6692_v23 = vpop.f32.mrb[9].mxu1 }
 0x1a2   : > { %v6694_v24 = vpop.f32.mrb[10].mxu1 }
 0x1a3   : > { %v6698_v27 = vpop.f32.mrb[11].mxu1  ;;  %5148 = vmatpush3.bf16.msra.mxu0 %v5729_v28 }
 0x1a4   : > { %5149 = vmatprep.subr.bf16.mxu0 %v5730_v29 }
 0x1a5   : > { %2666 = vmatmul.mubr.bf16.gmra.mrb[116].mxu1 %v5614_v21  ;;  %5356 = vmatmul.mubr.msk.bf16.gmra.mrb[104].mxu0 %vm1162_vm0, %v5615_v22  ;;  %v5631_v22 = vld [vmem:[%s6371_s18 + $0x3dc] ss:$12 sps:$4 sm:$0xff]  }
 0x1a6   : > { %2673 = vmatprep.mubr.bf16.mxu1 %v5616_v25  ;;  %5359 = vmatprep.mubr.msk.bf16.mxu0 %vm1162_vm0, %v5618_v26 }
 0x1a7   : > { %5150 = vmatpush3.bf16.msra.mxu0 %v5731_v30 }
 0x1a8   : > { %v4767_v32 = vpop.f32.mrb[0].mxu0  ;;  %v6711_v33 = vpop.f32.mrb[12].mxu1  ;;  %5151 = vmatprep.subr.bf16.mxu0 %v5732_v34 }
 0x1a9   : > { %v4768_v35 = vpop.f32.mrb[1].mxu0  ;;  %v6718_v38 = vpop.f32.mrb[13].mxu1 }
 0x1aa   : > { %v4769_v39 = vadd.f32 %v4768_v35, %v4767_v32  ;;  %v4770_v4 = vpop.f32.mrb[2].mxu0  ;;  %v6720_v40 = vpop.f32.mrb[14].mxu1 }
 0x1ab   : > { %v4771_v43 = vpop.f32.mrb[3].mxu0  ;;  %v6724_v44 = vpop.f32.mrb[15].mxu1  ;;  %5152 = vmatpush3.bf16.msra.mxu0 %v5733_v45 }
 0x1ac   : > { %v6730_v46 = vadd.f32 %v4769_v39, %v6646_v0  ;;  %v4772_v47 = vadd.f32 %v4771_v43, %v4770_v4  ;;  %5153 = vmatprep.subr.bf16.mxu0 %v5734_v48  ;;  %v5628_v0 = vld [vmem:[%s6371_s18 + $0x3f8] ss:$12 sps:$4 sm:$0xff]  }
 0x1ad   : > { %2674 = vmatmul.mubr.bf16.gmra.mrb[120].mxu1 %v5619_v36  ;;  %5360 = vmatmul.mubr.msk.bf16.gmra.mrb[108].mxu0 %vm1162_vm0, %v5620_v37  ;;  %v5634_v36 = vld [vmem:[%s6371_s18 + $0x3d8] ss:$12 sps:$4 sm:$0xff]   ;;  %v5635_v37 = vld [vmem:[%s6371_s18 + $0x440] ss:$12 sps:$4 sm:$0xff]  }
 0x1ae   : > { %v6737_v49 = vadd.f32 %v4772_v47, %v6651_v5  ;;  %2681 = vmatprep.mubr.bf16.mxu1 %v5621_v41  ;;  %5363 = vmatprep.mubr.msk.bf16.mxu0 %vm1162_vm0, %v5623_v42  ;;  %v5636_v42 = vld [vmem:[%s6371_s18 + $0x3f4] ss:$12 sps:$4 sm:$0xff]  }
 0x1af   : > { %5154 = vmatpush3.bf16.msra.mxu0 %v5735_v50 }
 0x1b0   : > { %v4773_v51 = vpop.f32.mrb[4].mxu0  ;;  %v6743_v53 = vpop.f32.mrb[16].mxu1  ;;  %5155 = vmatprep.subr.bf16.mxu0 %v5736_v54 }
 0x1b1   : > { %v4774_v55 = vpop.f32.mrb[5].mxu0  ;;  %v6750_v58 = vpop.f32.mrb[17].mxu1 }
 0x1b2   : > { %v4775_v59 = vadd.f32 %v4774_v55, %v4773_v51  ;;  %v4776_v60 = vpop.f32.mrb[6].mxu0  ;;  %v6752_v62 = vpop.f32.mrb[18].mxu1 }
 0x1b3   : > { %v4777_v3 = vpop.f32.mrb[7].mxu0  ;;  %v6756_v5 = vpop.f32.mrb[19].mxu1  ;;  %5156 = vmatpush3.bf16.msra.mxu0 %v5737_v6 }
 0x1b4   : > { %v6762_v7 = vadd.f32 %v6642_v61, %v4775_v59  ;;  %v4778_v8 = vadd.f32 %v4777_v3, %v4776_v60  ;;  %v5644_v3 = vld [vmem:[%s6371_s18 + $0x49c] ss:$12 sps:$4 sm:$0xff]  }
 0x1b5   : > { %2682 = vmatmul.mubr.bf16.gmra.mrb[124].mxu1 %v5624_v56  ;;  %5364 = vmatmul.mubr.msk.bf16.gmra.mrb[112].mxu0 %vm1162_vm0, %v5625_v57  ;;  %v5638_v56 = vld [vmem:[%s6371_s18 + $0x480] ss:$12 sps:$4 sm:$0xff]   ;;  %v5641_v57 = vld [vmem:[%s6371_s18 + $0x3f0] ss:$12 sps:$4 sm:$0xff]  }
 0x1b6   : > { %v6766_v9 = vadd.f32 %v6648_v2, %v4778_v8  ;;  %2689 = vmatprep.mubr.bf16.mxu1 %v5626_v63  ;;  %5367 = vmatprep.mubr.msk.bf16.mxu0 %vm1162_vm0, %v5628_v0  ;;  %v5633_v2 = vld [vmem:[%s6371_s18 + $0x428] ss:$12 sps:$4 sm:$0xff]   ;;  %v5642_v0 = vld [vmem:[%s6371_s18 + $0x40c] ss:$12 sps:$4 sm:$0xff]  }
 0x1b8   : > { %v4779_v10 = vpop.f32.mrb[8].mxu0  ;;  %v6769_v12 = vpop.f32.mrb[20].mxu1 }
 0x1b9   : > { %v4780_v14 = vpop.f32.mrb[9].mxu0  ;;  %v6773_v61 = vpop.f32.mrb[21].mxu1 }
 0x1ba   : > { %v4781_v18 = vadd.f32 %v4780_v14, %v4779_v10  ;;  %v4782_v20 = vpop.f32.mrb[10].mxu0  ;;  %v6775_v21 = vpop.f32.mrb[22].mxu1 }
 0x1bb   : > { %v4783_v25 = vpop.f32.mrb[11].mxu0  ;;  %v6779_v26 = vpop.f32.mrb[23].mxu1 }
 0x1bc   : > { %v6782_v28 = vadd.f32 %v4781_v18, %v6666_v11  ;;  %v4784_v29 = vadd.f32 %v4783_v25, %v4782_v20  ;;  %v5646_v20 = vld [vmem:[%s6371_s18 + $0x408] ss:$12 sps:$4 sm:$0xff]  }
 0x1bd   : > { %2690 = vmatmul.mubr.bf16.gmra.mrb[128].mxu1 %v5629_v15  ;;  %5368 = vmatmul.mubr.msk.bf16.gmra.mrb[116].mxu0 %vm1162_vm0, %v5630_v17 }
 0x1be   : > { %v6786_v30 = vadd.f32 %v4784_v29, %v6675_v16  ;;  %2697 = vmatprep.mubr.bf16.mxu1 %v5631_v22  ;;  %5371 = vmatprep.mubr.msk.bf16.mxu0 %vm1162_vm0, %v5633_v2  ;;  %v5640_v16 = vld [vmem:[%s6371_s18 + $0x484] ss:$12 sps:$4 sm:$0xff]  }
 0x1bf   : > { %v5647_v22 = vld [vmem:[%s6371_s18 + $0x498] ss:$12 sps:$4 sm:$0xff]  }
 0x1c0   : > { %v4785_v32 = vpop.f32.mrb[12].mxu0  ;;  %v6789_v34 = vpop.f32.mrb[24].mxu1 }
 0x1c1   : > { %v4786_v35 = vpop.f32.mrb[13].mxu0  ;;  %v6793_v11 = vpop.f32.mrb[25].mxu1 }
 0x1c2   : > { %v4787_v39 = vadd.f32 %v4786_v35, %v4785_v32  ;;  %v4788_v4 = vpop.f32.mrb[14].mxu0  ;;  %v6795_v41 = vpop.f32.mrb[26].mxu1  ;;  %v5648_v35 = vld [vmem:[%s6371_s18 + $0x424] ss:$12 sps:$4 sm:$0xff]  }
 0x1c3   : > { %v4789_v43 = vpop.f32.mrb[15].mxu0  ;;  %v6799_v45 = vpop.f32.mrb[27].mxu1 }
 0x1c4   : > { %v6802_v47 = vadd.f32 %v6662_v1, %v4787_v39  ;;  %v4790_v48 = vadd.f32 %v4789_v43, %v4788_v4 }
 0x1c5   : > { %2698 = vmatmul.mubr.bf16.gmra.mrb[132].mxu1 %v5634_v36  ;;  %5372 = vmatmul.mubr.msk.bf16.gmra.mrb[120].mxu0 %vm1162_vm0, %v5635_v37  ;;  %v5650_v36 = vld [vmem:[%s6371_s18 + $0x4b4] ss:$12 sps:$4 sm:$0xff]  }
 0x1c6   : > { %v6806_v50 = vadd.f32 %v6671_v13, %v4790_v48  ;;  %2705 = vmatprep.mubr.bf16.mxu1 %v5636_v42  ;;  %3332 = vmatprep.mubr.bf16.mxu0 %v5640_v16 }
 0x1c8   : > { %v4791_v51 = vpop.f32.mrb[16].mxu0  ;;  %v6808_v54 = vpop.f32.mrb[28].mxu1 }
 0x1c9   : > { %v4792_v55 = vpop.f32.mrb[17].mxu0  ;;  %v6812_v59 = vpop.f32.mrb[29].mxu1 }
 0x1ca   : > { %v4793_v1 = vadd.f32 %v4792_v55, %v4791_v51  ;;  %v4794_v60 = vpop.f32.mrb[18].mxu0  ;;  %v6814_v63 = vpop.f32.mrb[30].mxu1  ;;  %v5652_v55 = vld [vmem:[%s6371_s18 + $0x420] ss:$12 sps:$4 sm:$0xff]  }
 0x1cb   : > { %v4795_v13 = vpop.f32.mrb[19].mxu0  ;;  %v6818_v6 = vpop.f32.mrb[31].mxu1 }
 0x1cc   : > { %v6821_v8 = vadd.f32 %v4793_v1, %v6692_v23  ;;  %v4796_v10 = vadd.f32 %v4795_v13, %v4794_v60  ;;  %v5656_v13 = vld [vmem:[%s6371_s18 + $0x4cc] ss:$12 sps:$4 sm:$0xff]  }
 0x1cd   : > { %2706 = vmatmul.mubr.bf16.gmra.mrb[136].mxu1 %v5641_v57  ;;  %3333 = vmatmul.mubr.bf16.vlgmr.msra.gmra.mrb[124].mxu0 %v5638_v56  ;;  %v5653_v56 = vld [vmem:[%s6371_s18 + $0x4b0] ss:$12 sps:$4 sm:$0xff]  }
 0x1ce   : > { %v6824_v14 = vadd.f32 %v4796_v10, %v6698_v27  ;;  %2713 = vmatprep.mubr.bf16.mxu1 %v5642_v0  ;;  %3340 = vmatprep.mubr.bf16.mxu0 %v5644_v3  ;;  %v5654_v3 = vld [vmem:[%s6371_s18 + $0x43c] ss:$12 sps:$4 sm:$0xff]  }
 0x1d0   : > { %v4797_v15 = vpop.f32.mrb[20].mxu0  ;;  %v4897_v17 = vpop.f32.mrb[32].mxu1 }
 0x1d1   : > { %v4798_v18 = vpop.f32.mrb[21].mxu0  ;;  %v4898_v2 = vpop.f32.mrb[33].mxu1 }
 0x1d2   : > { %v4799_v25 = vadd.f32 %v4798_v18, %v4797_v15  ;;  %v4800_v29 = vpop.f32.mrb[22].mxu0  ;;  %v6828_v23 = vadd.f32 %v4898_v2, %v4897_v17  ;;  %v4900_v32 = vpop.f32.mrb[34].mxu1 }
 0x1d3   : > { %v4801_v37 = vpop.f32.mrb[23].mxu0  ;;  %v4901_v27 = vpop.f32.mrb[35].mxu1 }
 0x1d4   : > { %v6833_v39 = vadd.f32 %v6685_v19, %v4799_v25  ;;  %v4802_v4 = vadd.f32 %v4801_v37, %v4800_v29  ;;  %v6835_v42 = vadd.f32 %v4901_v27, %v4900_v32  ;;  %v5658_v29 = vld [vmem:[%s6371_s18 + $0x438] ss:$12 sps:$4 sm:$0xff]   ;;  %v5659_v32 = vld [vmem:[%s6371_s18 + $0x4c8] ss:$12 sps:$4 sm:$0xff]  }
 0x1d5   : > { %2714 = vmatmul.mubr.bf16.gmra.mrb[140].mxu1 %v5646_v20  ;;  %3341 = vmatmul.mubr.bf16.gmra.mrb[128].mxu0 %v5647_v22 }
 0x1d6   : > { %v6838_v16 = vadd.f32 %v6694_v24, %v4802_v4  ;;  %2721 = vmatprep.mubr.bf16.mxu1 %v5648_v35  ;;  %3348 = vmatprep.mubr.bf16.mxu0 %v5650_v36  ;;  %v5660_v4 = vld [vmem:[%s6371_s18 + $0x454] ss:$12 sps:$4 sm:$0xff]  }
 0x1d8   : > { %v4803_v43 = vpop.f32.mrb[24].mxu0  ;;  %v4903_v48 = vpop.f32.mrb[36].mxu1 }
 0x1d9   : > { %v4804_v51 = vpop.f32.mrb[25].mxu0  ;;  %v4904_v57 = vpop.f32.mrb[37].mxu1 }
 0x1da   : > { %v4805_v19 = vadd.f32 %v4804_v51, %v4803_v43  ;;  %v4806_v1 = vpop.f32.mrb[26].mxu0  ;;  %v6842_v60 = vadd.f32 %v4904_v57, %v4903_v48  ;;  %v4906_v0 = vpop.f32.mrb[38].mxu1  ;;  %v5662_v43 = vld [vmem:[%s6371_s18 + $0x4e4] ss:$12 sps:$4 sm:$0xff]  }
 0x1db   : > { %v4807_v10 = vpop.f32.mrb[27].mxu0  ;;  %v4907_v24 = vpop.f32.mrb[39].mxu1 }
 0x1dc   : > { %v6847_v15 = vadd.f32 %v4805_v19, %v6718_v38  ;;  %v4808_v17 = vadd.f32 %v4807_v10, %v4806_v1  ;;  %v6849_v18 = vadd.f32 %v4907_v24, %v4906_v0 }
 0x1dd   : > { %2722 = vmatmul.mubr.bf16.gmra.mrb[144].mxu1 %v5652_v55  ;;  %3349 = vmatmul.mubr.bf16.gmra.mrb[132].mxu0 %v5653_v56 }
 0x1de   : > { %v6852_v20 = vadd.f32 %v4808_v17, %v6724_v44  ;;  %2729 = vmatprep.mubr.bf16.mxu1 %v5654_v3  ;;  %3356 = vmatprep.mubr.bf16.mxu0 %v5656_v13  ;;  %v5664_v3 = vld [vmem:[%s6371_s18 + $0x450] ss:$12 sps:$4 sm:$0xff]   ;;  %v5665_v13 = vld [vmem:[%s6371_s18 + $0x4e0] ss:$12 sps:$4 sm:$0xff]  }
 0x1e0   : > { %v4809_v22 = vpop.f32.mrb[28].mxu0  ;;  %v4909_v2 = vpop.f32.mrb[40].mxu1 }
 0x1e1   : > { %v4810_v25 = vpop.f32.mrb[29].mxu0  ;;  %v4910_v35 = vpop.f32.mrb[41].mxu1 }
 0x1e2   : > { %v4811_v38 = vadd.f32 %v4810_v25, %v4809_v22  ;;  %v4812_v36 = vpop.f32.mrb[30].mxu0  ;;  %v6856_v37 = vadd.f32 %v4910_v35, %v4909_v2  ;;  %v4912_v27 = vpop.f32.mrb[42].mxu1  ;;  %v5666_v2 = vld [vmem:[%s6371_s18 + $0x46c] ss:$12 sps:$4 sm:$0xff]   ;;  %v5668_v25 = vld [vmem:[%s6371_s18 + $0x4fc] ss:$12 sps:$4 sm:$0xff]  }
 0x1e3   : > { %v4813_v48 = vpop.f32.mrb[31].mxu0  ;;  %v4913_v44 = vpop.f32.mrb[43].mxu1 }
 0x1e4   : > { %v6861_v51 = vadd.f32 %v6711_v33, %v4811_v38  ;;  %v4814_v55 = vadd.f32 %v4813_v48, %v4812_v36  ;;  %v6863_v56 = vadd.f32 %v4913_v44, %v4912_v27  ;;  %v5670_v48 = vld [vmem:[%s6371_s18 + $0x468] ss:$12 sps:$4 sm:$0xff]   ;;  %v5671_v44 = vld [vmem:[%s6371_s18 + $0x4f8] ss:$12 sps:$4 sm:$0xff]  }
 0x1e5   : > { %2730 = vmatmul.mubr.bf16.gmra.mrb[148].mxu1 %v5658_v29  ;;  %3357 = vmatmul.mubr.bf16.gmra.mrb[136].mxu0 %v5659_v32 }
 0x1e6   : > { %v6866_v57 = vadd.f32 %v6720_v40, %v4814_v55  ;;  %2737 = vmatprep.mubr.bf16.mxu1 %v5660_v4  ;;  %3364 = vmatprep.mubr.bf16.mxu0 %v5662_v43 }
 0x1e8   : > { %v4815_v19 = vpop.f32.mrb[32].mxu0  ;;  %v4915_v1 = vpop.f32.mrb[44].mxu1 }
 0x1e9   : > { %v4816_v0 = vpop.f32.mrb[33].mxu0  ;;  %v4916_v10 = vpop.f32.mrb[45].mxu1 }
 0x1ea   : > { %v4817_v33 = vadd.f32 %v4816_v0, %v4815_v19  ;;  %v4818_v24 = vpop.f32.mrb[34].mxu0  ;;  %v6870_v17 = vadd.f32 %v4916_v10, %v4915_v1  ;;  %v4918_v22 = vpop.f32.mrb[46].mxu1 }
 0x1eb   : > { %v4819_v29 = vpop.f32.mrb[35].mxu0  ;;  %v4919_v40 = vpop.f32.mrb[47].mxu1 }
 0x1ec   : > { %v6875_v32 = vadd.f32 %v4817_v33, %v6750_v58  ;;  %v4820_v35 = vadd.f32 %v4819_v29, %v4818_v24  ;;  %v6877_v38 = vadd.f32 %v4919_v40, %v4918_v22 }
 0x1ed   : > { %2738 = vmatmul.mubr.bf16.gmra.mrb[152].mxu1 %v5664_v3  ;;  %3365 = vmatmul.mubr.bf16.gmra.mrb[140].mxu0 %v5665_v13  ;;  %v5672_v3 = vld [vmem:[%s6371_s18 + $0x458] ss:$12 sps:$4 sm:$0xff]   ;;  %v5673_v13 = vld [vmem:[%s6371_s18 + $0x514] ss:$12 sps:$4 sm:$0xff]  }
 0x1ee   : > { %v6880_v36 = vadd.f32 %v4820_v35, %v6756_v5  ;;  %2745 = vmatprep.mubr.bf16.mxu1 %v5666_v2  ;;  %3372 = vmatprep.mubr.bf16.mxu0 %v5668_v25  ;;  %v5675_v35 = vld [vmem:[%s6371_s18 + $0x470] ss:$12 sps:$4 sm:$0xff]  }
 0x1f0   : > { %v4821_v27 = vpop.f32.mrb[36].mxu0  ;;  %v4921_v4 = vpop.f32.mrb[48].mxu1 }
 0x1f1   : > { %v4822_v43 = vpop.f32.mrb[37].mxu0  ;;  %v4922_v55 = vpop.f32.mrb[49].mxu1 }
 0x1f2   : > { %v4823_v58 = vadd.f32 %v4822_v43, %v4821_v27  ;;  %v4824_v19 = vpop.f32.mrb[38].mxu0  ;;  %v6884_v1 = vadd.f32 %v4922_v55, %v4921_v4  ;;  %v4924_v0 = vpop.f32.mrb[50].mxu1  ;;  %v5676_v27 = vld [vmem:[%s6371_s18 + $0x510] ss:$12 sps:$4 sm:$0xff]  }
 0x1f3   : > { %v4825_v10 = vpop.f32.mrb[39].mxu0  ;;  %v4925_v5 = vpop.f32.mrb[51].mxu1 }
 0x1f4   : > { %v6889_v33 = vadd.f32 %v6743_v53, %v4823_v58  ;;  %v4826_v24 = vadd.f32 %v4825_v10, %v4824_v19  ;;  %v6891_v22 = vadd.f32 %v4925_v5, %v4924_v0  ;;  %v5679_v19 = vld [vmem:[%s6371_s18 + $0x488] ss:$12 sps:$4 sm:$0xff]  }
 0x1f5   : > { %2746 = vmatmul.mubr.bf16.gmra.mrb[156].mxu1 %v5670_v48  ;;  %3373 = vmatmul.mubr.bf16.gmra.mrb[144].mxu0 %v5671_v44  ;;  %v5677_v48 = vld [vmem:[%s6371_s18 + $0x52c] ss:$12 sps:$4 sm:$0xff]  }
 0x1f6   : > { %v6894_v2 = vadd.f32 %v6752_v62, %v4826_v24  ;;  %5375 = vmatprep.mubr.msk.bf16.mxu1 %vm1162_vm0, %v5672_v3  ;;  %3380 = vmatprep.mubr.bf16.mxu0 %v5673_v13 }
 0x1f8   : > { %v4827_v25 = vpop.f32.mrb[40].mxu0  ;;  %v4927_v29 = vpop.f32.mrb[52].mxu1 }
 0x1f9   : > { %v4828_v40 = vpop.f32.mrb[41].mxu0  ;;  %v4928_v53 = vpop.f32.mrb[53].mxu1 }
 0x1fa   : > { %v4829_v4 = vadd.f32 %v4828_v40, %v4827_v25  ;;  %v4830_v43 = vpop.f32.mrb[42].mxu0  ;;  %v6899_v55 = vadd.f32 %v4928_v53, %v4927_v29  ;;  %v4930_v58 = vpop.f32.mrb[54].mxu1  ;;  %v5680_v25 = vld [vmem:[%s6371_s18 + $0x528] ss:$12 sps:$4 sm:$0xff]   ;;  %v5681_v29 = vld [vmem:[%s6371_s18 + $0x4a0] ss:$12 sps:$4 sm:$0xff]  }
 0x1fb   : > { %v4831_v44 = vpop.f32.mrb[43].mxu0  ;;  %v4931_v62 = vpop.f32.mrb[55].mxu1 }
 0x1fc   : > { %v6904_v0 = vadd.f32 %v4829_v4, %v6773_v61  ;;  %v4832_v3 = vadd.f32 %v4831_v44, %v4830_v43  ;;  %v6906_v13 = vadd.f32 %v4931_v62, %v4930_v58  ;;  %v5684_v4 = vld [vmem:[%s6371_s18 + $0x4b8] ss:$12 sps:$4 sm:$0xff]  }
 0x1fd   : > { %5376 = vmatmul.mubr.msk.bf16.vlgmr.msra.gmra.mrb[160].mxu1 %vm1162_vm0, %v5675_v35  ;;  %3381 = vmatmul.mubr.bf16.gmra.mrb[148].mxu0 %v5676_v27 }
 0x1fe   : > { %v6910_v10 = vadd.f32 %v4832_v3, %v6779_v26  ;;  %5380 = vmatpush3.bf16.msra.mxu1 %v6582_v31  ;;  %3388 = vmatprep.mubr.bf16.mxu0 %v5677_v48  ;;  %v5682_v31 = vld [vmem:[%s6371_s18 + $0x544] ss:$12 sps:$4 sm:$0xff]  }
 0x1ff   : > { %5381 = vmatprep.subr.bf16.mxu1 %v6625_v52  ;;  %5383 = vmatprep.mubr.msk.bf16.mxu1 %vm1162_vm0, %v5679_v19 }
 0x200   : > { %v4833_v61 = vpop.f32.mrb[44].mxu0  ;;  %v4933_v5 = vpop.f32.mrb[56].mxu1 }
 0x201   : > { %v4834_v24 = vpop.f32.mrb[45].mxu0  ;;  %v4934_v40 = vpop.f32.mrb[57].mxu1 }
 0x202   : > { %v4835_v35 = vadd.f32 %v4834_v24, %v4833_v61  ;;  %v4836_v27 = vpop.f32.mrb[46].mxu0  ;;  %5382 = vmatpush3.bf16.msra.mxu1 %v6625_v52  ;;  %v6918_v26 = vadd.f32 %v4934_v40, %v4933_v5  ;;  %v4936_v53 = vpop.f32.mrb[58].mxu1  ;;  %v5685_v5 = vld [vmem:[%s6371_s18 + $0x540] ss:$12 sps:$4 sm:$0xff]  }
 0x203   : > { %v4837_v43 = vpop.f32.mrb[47].mxu0  ;;  %v4937_v58 = vpop.f32.mrb[59].mxu1 }
 0x204   : > { %v6923_v48 = vadd.f32 %v6769_v12, %v4835_v35  ;;  %v4838_v44 = vadd.f32 %v4837_v43, %v4836_v27  ;;  %v6925_v62 = vadd.f32 %v4937_v58, %v4936_v53  ;;  %v5686_v12 = vld [vmem:[%s6371_s18 + $0x4d0] ss:$12 sps:$4 sm:$0xff]  }
 0x205   : > { %3389 = vmatmul.mubr.bf16.gmra.mrb[152].mxu0 %v5680_v25  ;;  %5384 = vmatmul.mubr.msk.bf16.vlgmr.msra.gmra.mrb[164].mxu1 %vm1162_vm0, %v5681_v29  ;;  %v5687_v53 = vld [vmem:[%s6371_s18 + $0x55c] ss:$12 sps:$4 sm:$0xff]  }
 0x206   : > { %7595 = vst [vmem:[#allocation3_spill] sm:$0xff] %v6923_v48  ;;  %v6929_v52 = vadd.f32 %v6775_v21, %v4838_v44  ;;  %3396 = vmatprep.mubr.bf16.mxu0 %v5682_v31  ;;  %5387 = vmatprep.mubr.msk.bf16.mxu1 %vm1162_vm0, %v5684_v4  ;;  %v5689_v29 = vld [vmem:[%s6371_s18 + $0x4e8] ss:$12 sps:$4 sm:$0xff]  }
 0x208   : > { %7596 = vst [vmem:[#allocation4_spill] sm:$0xff] %v6929_v52  ;;  %v4839_v19 = vpop.f32.mrb[48].mxu0  ;;  %v4939_v3 = vpop.f32.mrb[60].mxu1 }
 0x209   : > { %v4840_v61 = vpop.f32.mrb[49].mxu0  ;;  %v4940_v24 = vpop.f32.mrb[61].mxu1 }
 0x20a   : > { %v4841_v40 = vadd.f32 %v4840_v61, %v4839_v19  ;;  %v4842_v35 = vpop.f32.mrb[50].mxu0  ;;  %v6934_v27 = vadd.f32 %v4940_v24, %v4939_v3  ;;  %v4942_v25 = vpop.f32.mrb[62].mxu1  ;;  %v5690_v24 = vld [vmem:[%s6371_s18 + $0x558] ss:$12 sps:$4 sm:$0xff]  }
 0x20b   : > { %v4843_v21 = vpop.f32.mrb[51].mxu0  ;;  %v4943_v43 = vpop.f32.mrb[63].mxu1 }
 0x20c   : > { %v6939_v31 = vadd.f32 %v4841_v40, %v6793_v11  ;;  %v4844_v4 = vadd.f32 %v4843_v21, %v4842_v35  ;;  %v6941_v58 = vadd.f32 %v4943_v43, %v4942_v25  ;;  %v5691_v11 = vld [vmem:[%s6371_s18 + $0x500] ss:$12 sps:$4 sm:$0xff]  }
 0x20d   : > { %3397 = vmatmul.mubr.bf16.gmra.mrb[156].mxu0 %v5685_v5  ;;  %5388 = vmatmul.mubr.msk.bf16.gmra.mrb[168].mxu1 %vm1162_vm0, %v5686_v12  ;;  %v5692_v43 = vld [vmem:[%s6371_s18 + $0x574] ss:$12 sps:$4 sm:$0xff]   ;;  %v5694_v12 = vld [vmem:[%s6371_s18 + $0x518] ss:$12 sps:$4 sm:$0xff]  }
 0x20e   : > { %7597 = vst [vmem:[#allocation5_spill] sm:$0xff] %v6939_v31  ;;  %v6945_v44 = vadd.f32 %v4844_v4, %v6799_v45  ;;  %3404 = vmatprep.mubr.bf16.mxu0 %v5687_v53  ;;  %5391 = vmatprep.mubr.msk.bf16.mxu1 %vm1162_vm0, %v5689_v29  ;;  %v5695_v31 = vld [vmem:[%s6371_s18 + $0x570] ss:$12 sps:$4 sm:$0xff]  }
 0x210   : > { %7598 = vst [vmem:[#allocation6_spill] sm:$0xff] %v6945_v44  ;;  %v4845_v19 = vpop.f32.mrb[52].mxu0  ;;  %v4945_v3 = vpop.f32.mrb[64].mxu1 }
 0x211   : > { %v4846_v61 = vpop.f32.mrb[53].mxu0  ;;  %v4946_v40 = vpop.f32.mrb[65].mxu1 }
 0x212   : > { %v4847_v35 = vadd.f32 %v4846_v61, %v4845_v19  ;;  %v4848_v25 = vpop.f32.mrb[54].mxu0  ;;  %v6950_v21 = vadd.f32 %v4946_v40, %v4945_v3  ;;  %v4948_v5 = vpop.f32.mrb[66].mxu1 }
 0x213   : > { %v4849_v45 = vpop.f32.mrb[55].mxu0  ;;  %v4949_v4 = vpop.f32.mrb[67].mxu1 }
 0x214   : > { %v6955_v53 = vadd.f32 %v6789_v34, %v4847_v35  ;;  %v4850_v29 = vadd.f32 %v4849_v45, %v4848_v25  ;;  %v6957_v44 = vadd.f32 %v4949_v4, %v4948_v5  ;;  %v5696_v34 = vld [vmem:[%s6371_s18 + $0x530] ss:$12 sps:$4 sm:$0xff]   ;;  %v5697_v4 = vld [vmem:[%s6371_s18 + $0x58c] ss:$12 sps:$4 sm:$0xff]  }
 0x215   : > { %3405 = vmatmul.mubr.bf16.gmra.mrb[160].mxu0 %v5690_v24  ;;  %5392 = vmatmul.mubr.msk.bf16.gmra.mrb[172].mxu1 %vm1162_vm0, %v5691_v11  ;;  %v5699_v11 = vld [vmem:[%s6371_s18 + $0x548] ss:$12 sps:$4 sm:$0xff]  }
 0x216   : > { %7599 = vst [vmem:[#allocation7_spill] sm:$0xff] %v6955_v53  ;;  %v6961_v19 = vadd.f32 %v6795_v41, %v4850_v29  ;;  %3412 = vmatprep.mubr.bf16.mxu0 %v5692_v43  ;;  %5395 = vmatprep.mubr.msk.bf16.mxu1 %vm1162_vm0, %v5694_v12  ;;  %v5700_v53 = vld [vmem:[%s6371_s18 + $0x588] ss:$12 sps:$4 sm:$0xff]  }
 0x217   : > { %v7619_v52 = vld [vmem:[#allocation5_spill] sm:$0xff] }
 0x218   : > { %7600 = vst [vmem:[#allocation8_spill] sm:$0xff] %v6961_v19  ;;  %v4851_v3 = vpop.f32.mrb[56].mxu0  ;;  %v4951_v61 = vpop.f32.mrb[68].mxu1 }
 0x219   : > { %v4852_v40 = vpop.f32.mrb[57].mxu0  ;;  %v4952_v35 = vpop.f32.mrb[69].mxu1 }
 0x21a   : > { %v4853_v25 = vadd.f32 %v4852_v40, %v4851_v3  ;;  %v4854_v5 = vpop.f32.mrb[58].mxu0  ;;  %v6966_v45 = vadd.f32 %v4952_v35, %v4951_v61  ;;  %v4954_v24 = vpop.f32.mrb[70].mxu1 }
 0x21b   : > { %v4855_v41 = vpop.f32.mrb[59].mxu0  ;;  %v4955_v29 = vpop.f32.mrb[71].mxu1 }
 0x21c   : > { %v6971_v43 = vadd.f32 %v4853_v25, %v6812_v59  ;;  %v4856_v12 = vadd.f32 %v4855_v41, %v4854_v5  ;;  %v6973_v19 = vadd.f32 %v4955_v29, %v4954_v24  ;;  %v5701_v59 = vld [vmem:[%s6371_s18 + $0x560] ss:$12 sps:$4 sm:$0xff]   ;;  %v5702_v29 = vld [vmem:[%s6371_s18 + $0x5a4] ss:$12 sps:$4 sm:$0xff]  }
 0x21d   : > { %3413 = vmatmul.mubr.bf16.gmra.mrb[164].mxu0 %v5695_v31  ;;  %5396 = vmatmul.mubr.msk.bf16.gmra.mrb[176].mxu1 %vm1162_vm0, %v5696_v34  ;;  %v5704_v34 = vld [vmem:[%s6371_s18 + $0x578] ss:$12 sps:$4 sm:$0xff]  }
 0x21e   : > { %v6977_v3 = vadd.f32 %v4856_v12, %v6818_v6  ;;  %3420 = vmatprep.mubr.bf16.mxu0 %v5697_v4  ;;  %5399 = vmatprep.mubr.msk.bf16.mxu1 %vm1162_vm0, %v5699_v11 }
 0x220   : > { %7601 = vst [vmem:[#allocation9_spill] sm:$0xff] %v6977_v3  ;;  %v4857_v61 = vpop.f32.mrb[60].mxu0  ;;  %v4957_v40 = vpop.f32.mrb[72].mxu1 }
 0x221   : > { %v4858_v35 = vpop.f32.mrb[61].mxu0  ;;  %v4958_v25 = vpop.f32.mrb[73].mxu1 }
 0x222   : > { %v4859_v5 = vadd.f32 %v4858_v35, %v4857_v61  ;;  %v4860_v24 = vpop.f32.mrb[62].mxu0  ;;  %v6982_v41 = vadd.f32 %v4958_v25, %v4957_v40  ;;  %v4960_v31 = vpop.f32.mrb[74].mxu1 }
 0x223   : > { %v4861_v6 = vpop.f32.mrb[63].mxu0  ;;  %v4961_v12 = vpop.f32.mrb[75].mxu1 }
 0x224   : > { %v6987_v4 = vadd.f32 %v6808_v54, %v4859_v5  ;;  %v4862_v11 = vadd.f32 %v4861_v6, %v4860_v24  ;;  %v6989_v3 = vadd.f32 %v4961_v12, %v4960_v31  ;;  %v5705_v5 = vld [vmem:[%s6371_s18 + $0x5a0] ss:$12 sps:$4 sm:$0xff]   ;;  %v5706_v24 = vld [vmem:[%s6371_s18 + $0x590] ss:$12 sps:$4 sm:$0xff]  }
 0x225   : > { %3421 = vmatmul.mubr.bf16.gmra.mrb[168].mxu0 %v5700_v53  ;;  %5400 = vmatmul.mubr.msk.bf16.gmra.mrb[180].mxu1 %vm1162_vm0, %v5701_v59  ;;  %v5707_v12 = vld [vmem:[%s6371_s18 + $0x5bc] ss:$12 sps:$4 sm:$0xff]  }
 0x226   : > { %7602 = vst [vmem:[#allocation10_spill] sm:$0xff] %v6987_v4  ;;  %v6993_v61 = vadd.f32 %v6814_v63, %v4862_v11  ;;  %3428 = vmatprep.mubr.bf16.mxu0 %v5702_v29  ;;  %5403 = vmatprep.mubr.msk.bf16.mxu1 %vm1162_vm0, %v5704_v34  ;;  %v5709_v29 = vld [vmem:[%s6371_s18 + $0x5a8] ss:$12 sps:$4 sm:$0xff]  }
 0x228   : > { %v5313_v40 = vpop.f32.mrb[64].mxu0  ;;  %v4963_v35 = vpop.f32.mrb[76].mxu1 }
 0x229   : > { %v6997_v25 = vadd.f32 %v5313_v40, %v6842_v60  ;;  %v2081_v54 = vpop.f32.mrb[65].mxu0  ;;  %v4964_v31 = vpop.f32.mrb[77].mxu1 }
 0x22a   : > { %v7002_v53 = vadd.f32 %v6828_v23, %v2081_v54  ;;  %v5314_v59 = vpop.f32.mrb[66].mxu0  ;;  %v7004_v6 = vadd.f32 %v4964_v31, %v4963_v35  ;;  %v4966_v63 = vpop.f32.mrb[78].mxu1 }
 0x22b   : > { %v7011_v11 = vadd.f32 %v5314_v59, %v6849_v18  ;;  %v2084_v60 = vpop.f32.mrb[67].mxu0  ;;  %v4967_v40 = vpop.f32.mrb[79].mxu1  ;;  %v5712_v18 = vld [vmem:[%s6371_s18 + $0x5d4] ss:$12 sps:$4 sm:$0xff]  }
 0x22c   : > { %v7016_v54 = vadd.f32 %v6835_v42, %v2084_v60  ;;  %v7018_v35 = vadd.f32 %v4967_v40, %v4966_v63  ;;  %v5710_v60 = vld [vmem:[%s6371_s18 + $0x5b8] ss:$12 sps:$4 sm:$0xff]   ;;  %v5711_v40 = vld [vmem:[%s6371_s18 + $0x5c0] ss:$12 sps:$4 sm:$0xff]  }
 0x22d   : > { %7603 = vst [vmem:[#allocation11_spill] sm:$0xff] %v7011_v11  ;;  %3429 = vmatmul.mubr.bf16.gmra.mrb[172].mxu0 %v5705_v5  ;;  %5404 = vmatmul.mubr.msk.bf16.gmra.mrb[184].mxu1 %vm1162_vm0, %v5706_v24 }
 0x22e   : > { %7604 = vst [vmem:[#allocation12_spill] sm:$0xff] %v7016_v54  ;;  %3436 = vmatprep.mubr.bf16.mxu0 %v5707_v12  ;;  %5407 = vmatprep.mubr.msk.bf16.mxu1 %vm1162_vm0, %v5709_v29  ;;  %v5715_v12 = vld [vmem:[%s6371_s18 + $0x5d8] ss:$12 sps:$4 sm:$0xff]  }
 0x230   : > { %v5317_v59 = vpop.f32.mrb[68].mxu0  ;;  %v4969_v23 = vpop.f32.mrb[80].mxu1 }
 0x231   : > { %v7027_v42 = vadd.f32 %v5317_v59, %v6870_v17  ;;  %v2097_v63 = vpop.f32.mrb[69].mxu0  ;;  %v4970_v31 = vpop.f32.mrb[81].mxu1 }
 0x232   : > { %v7032_v5 = vadd.f32 %v6856_v37, %v2097_v63  ;;  %v5318_v24 = vpop.f32.mrb[70].mxu0  ;;  %v7034_v34 = vadd.f32 %v4970_v31, %v4969_v23  ;;  %v4972_v11 = vpop.f32.mrb[82].mxu1 }
 0x233   : > { %v7041_v54 = vadd.f32 %v5318_v24, %v6877_v38  ;;  %v2100_v17 = vpop.f32.mrb[71].mxu0  ;;  %v4973_v59 = vpop.f32.mrb[83].mxu1  ;;  %v5717_v38 = vld [vmem:[%s6371_s18 + $0x5ec] ss:$12 sps:$4 sm:$0xff]  }
 0x234   : > { %v7046_v63 = vadd.f32 %v6863_v56, %v2100_v17  ;;  %v7048_v23 = vadd.f32 %v4973_v59, %v4972_v11  ;;  %v5714_v17 = vld [vmem:[%s6371_s18 + $0x5d0] ss:$12 sps:$4 sm:$0xff]  }
 0x235   : > { %7605 = vst [vmem:[#allocation13_spill] sm:$0xff] %v7041_v54  ;;  %3437 = vmatmul.mubr.bf16.gmra.mrb[176].mxu0 %v5710_v60  ;;  %5408 = vmatmul.mubr.msk.bf16.gmra.mrb[188].mxu1 %vm1162_vm0, %v5711_v40  ;;  %v5716_v59 = vld [vmem:[%s6371_s18 + $0x5f0] ss:$12 sps:$4 sm:$0xff]  }
 0x236   : > { %7606 = vst [vmem:[#allocation14_spill] sm:$0xff] %v7046_v63  ;;  %3444 = vmatprep.mubr.bf16.mxu0 %v5712_v18  ;;  %5411 = vmatprep.mubr.msk.bf16.mxu1 %vm1162_vm0, %v5715_v12 }
 0x238   : > { %v5321_v24 = vpop.f32.mrb[72].mxu0  ;;  %v4975_v37 = vpop.f32.mrb[84].mxu1 }
 0x239   : > { %v7057_v56 = vadd.f32 %v5321_v24, %v6899_v55  ;;  %v2113_v11 = vpop.f32.mrb[73].mxu0  ;;  %v4976_v29 = vpop.f32.mrb[85].mxu1 }
 0x23a   : > { %v7062_v60 = vadd.f32 %v6884_v1, %v2113_v11  ;;  %v5322_v31 = vpop.f32.mrb[74].mxu0  ;;  %v7064_v40 = vadd.f32 %v4976_v29, %v4975_v37  ;;  %v4978_v54 = vpop.f32.mrb[86].mxu1 }
 0x23b   : > { %v7070_v12 = vadd.f32 %v5322_v31, %v6906_v13  ;;  %v2116_v55 = vpop.f32.mrb[75].mxu0  ;;  %v4979_v24 = vpop.f32.mrb[87].mxu1 }
 0x23c   : > { %v7075_v1 = vadd.f32 %v6891_v22, %v2116_v55  ;;  %v7077_v11 = vadd.f32 %v4979_v24, %v4978_v54  ;;  %v5719_v22 = vld [vmem:[%s6371_s18 + $0x5e8] ss:$12 sps:$4 sm:$0xff]   ;;  %s4216_s18 = sshll.u32 %s3952_s15, 5 }
 0x23d   : > { %7607 = vst [vmem:[#allocation15_spill] sm:$0xff] %v7070_v12  ;;  %3445 = vmatmul.mubr.bf16.gmra.mrb[180].mxu0 %v5714_v17  ;;  %5412 = vmatmul.mubr.msk.bf16.gmra.mrb[192].mxu1 %vm1162_vm0, %v5716_v59  ;;  %p708_p8 = scmp.lt.s32.totalorder %s4216_s18, 63 }
 0x23e   : > { %3452 = vmatprep.mubr.bf16.mxu0 %v5717_v38 }
 0x23f   : > { %s7689_s18 = smov (!%p708_p8, %s4216_s18), 63 }
 0x240   : > { %v5325_v37 = vpop.f32.mrb[76].mxu0  ;;  %v4981_v31 = vpop.f32.mrb[88].mxu1  ;;  %s4217_s11 = sshll.u32 %s7689_s18, 2 }
 0x241   : > { %v7085_v18 = vadd.f32 %v5325_v37, %v6934_v27  ;;  %v2129_v63 = vpop.f32.mrb[77].mxu0  ;;  %v4982_v55 = vpop.f32.mrb[89].mxu1  ;;  %s7406_s20 = scalar_lea.vmem %s7569_s3, %s4217_s11 }
 0x242   : > { %v7089_v54 = vadd.f32 %v6918_v26, %v2129_v63  ;;  %v5326_v24 = vpop.f32.mrb[78].mxu0  ;;  %v7091_v29 = vadd.f32 %v4982_v55, %v4981_v31  ;;  %v4984_v17 = vpop.f32.mrb[90].mxu1 }
 0x243   : > { %7608 = vst [vmem:[#allocation16_spill] sm:$0xff] %v7085_v18  ;;  %v7096_v38 = vadd.f32 %v5326_v24, %v6941_v58  ;;  %v2132_v13 = vpop.f32.mrb[79].mxu0  ;;  %v4985_v12 = vpop.f32.mrb[91].mxu1 }
 0x244   : > { %v7101_v37 = vadd.f32 %v6925_v62, %v2132_v13  ;;  %v7103_v26 = vadd.f32 %v4985_v12, %v4984_v17 }
 0x245   : > { %7609 = vst [vmem:[#allocation17_spill] sm:$0xff] %v7096_v38  ;;  %3453 = vmatmul.mubr.bf16.gmra.mrb[184].mxu0 %v5719_v22 }
 0x248   : > { %v5329_v55 = vpop.f32.mrb[80].mxu0  ;;  %v4987_v58 = vpop.f32.mrb[92].mxu1 }
 0x249   : > { %v7110_v24 = vadd.f32 %v5329_v55, %v6966_v45  ;;  %v2145_v59 = vpop.f32.mrb[81].mxu0  ;;  %v4988_v18 = vpop.f32.mrb[93].mxu1 }
 0x24a   : > { %v7113_v27 = vadd.f32 %v6950_v21, %v2145_v59  ;;  %v5330_v62 = vpop.f32.mrb[82].mxu0  ;;  %v4989_v12 = vadd.f32 %v4988_v18, %v4987_v58  ;;  %v4990_v13 = vpop.f32.mrb[94].mxu1 }
 0x24b   : > { %7610 = vst [vmem:[#allocation18_spill] sm:$0xff] %v7110_v24  ;;  %v7118_v22 = vadd.f32 %v5330_v62, %v6973_v19  ;;  %v2148_v63 = vpop.f32.mrb[83].mxu0  ;;  %v4991_v31 = vpop.f32.mrb[95].mxu1 }
 0x24c   : > { %v7123_v55 = vadd.f32 %v6957_v44, %v2148_v63  ;;  %v4992_v38 = vadd.f32 %v4991_v31, %v4990_v13 }
 0x24d   : > { %7611 = vst [vmem:[#allocation19_spill] sm:$0xff] %v7118_v22 }
 0x250   : > { %v5333_v59 = vpop.f32.mrb[84].mxu0  ;;  %v5027_v58 = vpop.f32.mrb[96].mxu1 }
 0x251   : > { %v7130_v19 = vadd.f32 %v5333_v59, %v7004_v6  ;;  %v2161_v62 = vpop.f32.mrb[85].mxu0  ;;  %v5028_v17 = vpop.f32.mrb[97].mxu1 }
 0x252   : > { %v7133_v24 = vadd.f32 %v6982_v41, %v2161_v62  ;;  %v5334_v45 = vpop.f32.mrb[86].mxu0  ;;  %v5029_v44 = vadd.f32 %v5028_v17, %v5027_v58  ;;  %v5030_v63 = vpop.f32.mrb[98].mxu1 }
 0x253   : > { %7612 = vst [vmem:[#allocation20_spill] sm:$0xff] %v7130_v19  ;;  %v7138_v13 = vadd.f32 %v5334_v45, %v7018_v35  ;;  %v2164_v21 = vpop.f32.mrb[87].mxu0  ;;  %v5031_v18 = vpop.f32.mrb[99].mxu1 }
 0x254   : > { %v7143_v59 = vadd.f32 %v6989_v3, %v2164_v21  ;;  %v5032_v22 = vadd.f32 %v5031_v18, %v5030_v63 }
 0x255   : > { %7613 = vst [vmem:[#allocation21_spill] sm:$0xff] %v7138_v13 }
 0x256   : > { %7614 = vst [vmem:[#allocation22_spill] sm:$0xff] %v7143_v59 }
 0x258   : > { %v5337_v58 = vpop.f32.mrb[88].mxu0  ;;  %v5033_v62 = vpop.f32.mrb[100].mxu1 }
 0x259   : > { %v7150_v35 = vadd.f32 %v5337_v58, %v7064_v40  ;;  %v2177_v45 = vpop.f32.mrb[89].mxu0  ;;  %v5034_v31 = vpop.f32.mrb[101].mxu1 }
 0x25a   : > { %v7153_v19 = vadd.f32 %v7034_v34, %v2177_v45  ;;  %v5338_v6 = vpop.f32.mrb[90].mxu0  ;;  %v5035_v3 = vadd.f32 %v5034_v31, %v5033_v62  ;;  %v5036_v21 = vpop.f32.mrb[102].mxu1  ;;  %v7622_v31 = vld [vmem:[#allocation6_spill] sm:$0xff] }
 0x25b   : > { %7615 = vst [vmem:[#allocation23_spill] sm:$0xff] %v7150_v35  ;;  %v7158_v41 = vadd.f32 %v5338_v6, %v7077_v11  ;;  %v2180_v17 = vpop.f32.mrb[91].mxu0  ;;  %v5037_v13 = vpop.f32.mrb[103].mxu1 }
 0x25c   : > { %7616 = vst [vmem:[#allocation24_spill] sm:$0xff] %v7153_v19  ;;  %v7163_v58 = vadd.f32 %v7048_v23, %v2180_v17  ;;  %v5038_v48 = vadd.f32 %v5037_v13, %v5036_v21 }
 0x25d   : > { %7618 = vst [vmem:[#allocation25_spill] sm:$0xff] %v7158_v41 }
 0x25e   : > { %7620 = vst [vmem:[#allocation5_spill] sm:$0xff] %v7163_v58 }
 0x260   : > { %v5341_v59 = vpop.f32.mrb[92].mxu0  ;;  %v5039_v63 = vpop.f32.mrb[104].mxu1 }
 0x261   : > { %v7169_v35 = vadd.f32 %v5341_v59, %v4989_v12  ;;  %v2193_v11 = vpop.f32.mrb[93].mxu0  ;;  %v5040_v6 = vpop.f32.mrb[105].mxu1 }
 0x262   : > { %v7172_v18 = vadd.f32 %v7091_v29, %v2193_v11  ;;  %v5342_v40 = vpop.f32.mrb[94].mxu0  ;;  %v5041_v19 = vadd.f32 %v5040_v6, %v5039_v63  ;;  %v5042_v23 = vpop.f32.mrb[106].mxu1  ;;  %v7624_v63 = vld [vmem:[#allocation9_spill] sm:$0xff]  ;;  %v7627_v11 = vmax.f32 %v6730_v46, %v7002_v53 }
 0x263   : > { %7623 = vst [vmem:[#allocation6_spill] sm:$0xff] %v7169_v35  ;;  %v7176_v17 = vadd.f32 %v5342_v40, %v4992_v38  ;;  %v2196_v21 = vpop.f32.mrb[95].mxu0  ;;  %v5043_v45 = vpop.f32.mrb[107].mxu1 }
 0x264   : > { %v7181_v12 = vadd.f32 %v7103_v26, %v2196_v21  ;;  %v5044_v59 = vadd.f32 %v5043_v45, %v5042_v23  ;;  %v7625_v26 = vmax.f32 %v6762_v7, %v6997_v25 }
 0x268   : > { %v5349_v6 = vpop.f32.mrb[96].mxu0  ;;  %v5045_v41 = vpop.f32.mrb[108].mxu1 }
 0x269   : > { %v2797_v13 = vadd.f32 %v5349_v6, %v5035_v3  ;;  %v2788_v38 = vpop.f32.mrb[97].mxu0  ;;  %v5046_v40 = vpop.f32.mrb[109].mxu1 }
 0x26a   : > { %v2789_v35 = vadd.f32 %v5029_v44, %v2788_v38  ;;  %v5350_v4 = vpop.f32.mrb[98].mxu0  ;;  %v5047_v34 = vadd.f32 %v5046_v40, %v5045_v41  ;;  %v5048_v58 = vpop.f32.mrb[110].mxu1  ;;  %v7628_v44 = vld [vmem:[#allocation11_spill] sm:$0xff]  ;;  %v7630_v40 = vld [vmem:[#allocation12_spill] sm:$0xff] }
 0x26b   : > { %v7190_v21 = vmax.f32 %v7625_v26, %v2797_v13  ;;  %v2800_v45 = vadd.f32 %v5350_v4, %v5038_v48  ;;  %v2791_v23 = vpop.f32.mrb[99].mxu0  ;;  %v5049_v29 = vpop.f32.mrb[111].mxu1  ;;  %v7629_v38 = vmax.f32 %v6766_v9, %v7628_v44  ;;  %v7631_v7 = vmax.f32 %v6737_v49, %v7630_v40 }
 0x26c   : > { %v7195_v62 = vmax.f32 %v7627_v11, %v2789_v35  ;;  %v2792_v3 = vadd.f32 %v5032_v22, %v2791_v23  ;;  %v5050_v6 = vadd.f32 %v5049_v29, %v5048_v58  ;;  %v7632_v58 = vmax.f32 %v6802_v47, %v7027_v42 }
 0x26d   : > { %7626 = vst [vmem:[#allocation9_spill] sm:$0xff] %v7190_v21  ;;  %v7200_v41 = vmax.f32 %v7629_v38, %v2800_v45  ;;  %v7633_v49 = vmax.f32 %v6782_v28, %v7032_v5  ;;  %v7636_v38 = vld [vmem:[#allocation14_spill] sm:$0xff] }
 0x26e   : > { %v7205_v25 = vmax.f32 %v7631_v7, %v2792_v3  ;;  %v7637_v47 = vmax.f32 %v6786_v30, %v7636_v38 }
 0x270   : > { %v5353_v48 = vpop.f32.mrb[100].mxu0  ;;  %v5051_v4 = vpop.f32.mrb[112].mxu1 }
 0x271   : > { %v2813_v13 = vadd.f32 %v5353_v48, %v5047_v34  ;;  %v2804_v26 = vpop.f32.mrb[101].mxu0  ;;  %v5052_v21 = vpop.f32.mrb[113].mxu1 }
 0x272   : > { %v2805_v46 = vadd.f32 %v5041_v19, %v2804_v26  ;;  %v5354_v53 = vpop.f32.mrb[102].mxu0  ;;  %v5053_v35 = vadd.f32 %v5052_v21, %v5051_v4  ;;  %v5054_v22 = vpop.f32.mrb[114].mxu1  ;;  %v7634_v19 = vld [vmem:[#allocation13_spill] sm:$0xff] }
 0x273   : > { %v7210_v9 = vmax.f32 %v7632_v58, %v2813_v13  ;;  %v2816_v29 = vadd.f32 %v5354_v53, %v5050_v6  ;;  %v2807_v11 = vpop.f32.mrb[103].mxu0  ;;  %v5055_v45 = vpop.f32.mrb[115].mxu1  ;;  %v7635_v44 = vmax.f32 %v6806_v50, %v7634_v19  ;;  %v7638_v50 = vmax.f32 %v6821_v8, %v7062_v60  ;;  %v7641_v19 = vld [vmem:[#allocation15_spill] sm:$0xff] }
 0x274   : > { %v7215_v23 = vmax.f32 %v7633_v49, %v2805_v46  ;;  %v2808_v34 = vadd.f32 %v5044_v59, %v2807_v11  ;;  %v5056_v3 = vadd.f32 %v5055_v45, %v5054_v22  ;;  %v7642_v8 = vmax.f32 %v6838_v16, %v7641_v19  ;;  %v7647_v19 = vld [vmem:[#allocation17_spill] sm:$0xff] }
 0x275   : > { %v7220_v21 = vmax.f32 %v7635_v44, %v2816_v29  ;;  %v7639_v29 = vmax.f32 %v6824_v14, %v7075_v1  ;;  %v7644_v16 = vmax.f32 %v6852_v20, %v7101_v37 }
 0x276   : > { %v7225_v42 = vmax.f32 %v7637_v47, %v2808_v34 }
 0x278   : > { %v5057_v6 = vpop.f32.mrb[116].mxu1  ;;  %v5357_v40 = vpop.f32.mrb[104].mxu0 }
 0x279   : > { %v5058_v7 = vpop.f32.mrb[117].mxu1  ;;  %v2820_v48 = vpop.f32.mrb[105].mxu0 }
 0x27a   : > { %v5059_v4 = vadd.f32 %v5058_v7, %v5057_v6  ;;  %v2821_v28 = vadd.f32 %v5053_v35, %v2820_v48  ;;  %v5060_v5 = vpop.f32.mrb[118].mxu1  ;;  %v5358_v13 = vpop.f32.mrb[106].mxu0  ;;  %v7640_v35 = vmax.f32 %v6833_v39, %v7057_v56  ;;  %v7643_v39 = vmax.f32 %v6847_v15, %v7089_v54  ;;  %v7645_v54 = vld [vmem:[#allocation16_spill] sm:$0xff] }
 0x27b   : > { %v5061_v59 = vpop.f32.mrb[119].mxu1  ;;  %v2823_v26 = vpop.f32.mrb[107].mxu0 }
 0x27c   : > { %v2829_v46 = vadd.f32 %v5357_v40, %v5059_v4  ;;  %v7230_v53 = vmax.f32 %v7638_v50, %v2821_v28  ;;  %v5062_v22 = vadd.f32 %v5061_v59, %v5060_v5  ;;  %v2824_v30 = vadd.f32 %v5056_v3, %v2823_v26 }
 0x27e   : > { %v2832_v58 = vadd.f32 %v5358_v13, %v5062_v22  ;;  %v7235_v11 = vmax.f32 %v7639_v29, %v2824_v30  ;;  %v7240_v45 = vmax.f32 %v7640_v35, %v2829_v46  ;;  %v7646_v35 = vmax.f32 %v6861_v51, %v7645_v54  ;;  %v7651_v54 = vld [vmem:[#allocation18_spill] sm:$0xff] }
 0x27f   : > { %v7649_v51 = vmax.f32 %v6875_v32, %v7113_v27 }
 0x280   : > { %v5063_v49 = vpop.f32.mrb[120].mxu1  ;;  %v5361_v34 = vpop.f32.mrb[108].mxu0  ;;  %v7245_v60 = vmax.f32 %v7642_v8, %v2832_v58  ;;  %v7648_v8 = vmax.f32 %v6866_v57, %v7647_v19  ;;  %v7650_v57 = vmax.f32 %v6880_v36, %v7123_v55  ;;  %v7653_v55 = vld [vmem:[#allocation19_spill] sm:$0xff] }
 0x281   : > { %v5064_v44 = vpop.f32.mrb[121].mxu1  ;;  %v2836_v3 = vpop.f32.mrb[109].mxu0 }
 0x282   : > { %v5065_v38 = vadd.f32 %v5064_v44, %v5063_v49  ;;  %v5066_v47 = vpop.f32.mrb[122].mxu1  ;;  %v5362_v6 = vpop.f32.mrb[110].mxu0 }
 0x283   : > { %v5067_v14 = vpop.f32.mrb[123].mxu1  ;;  %v2839_v1 = vpop.f32.mrb[111].mxu0 }
 0x284   : > { %v2837_v40 = vadd.f32 %v5065_v38, %v2836_v3  ;;  %v5068_v7 = vadd.f32 %v5067_v14, %v5066_v47 }
 0x286   : > { %v7250_v56 = vmax.f32 %v7643_v39, %v2837_v40  ;;  %v2840_v48 = vadd.f32 %v5068_v7, %v2839_v1 }
 0x288   : > { %v7255_v4 = vmax.f32 %v7644_v16, %v2840_v48  ;;  %v5069_v28 = vpop.f32.mrb[124].mxu1  ;;  %v5365_v5 = vpop.f32.mrb[112].mxu0 }
 0x289   : > { %v5070_v13 = vpop.f32.mrb[125].mxu1  ;;  %v2852_v59 = vpop.f32.mrb[113].mxu0 }
 0x28a   : > { %v5071_v26 = vadd.f32 %v5070_v13, %v5069_v28  ;;  %v5072_v46 = vpop.f32.mrb[126].mxu1  ;;  %v5366_v50 = vpop.f32.mrb[114].mxu0 }
 0x28b   : > { %v5073_v22 = vpop.f32.mrb[127].mxu1  ;;  %v2855_v30 = vpop.f32.mrb[115].mxu0 }
 0x28c   : > { %v2845_v58 = vadd.f32 %v5361_v34, %v5071_v26  ;;  %v5074_v29 = vadd.f32 %v5073_v22, %v5072_v46 }
 0x28e   : > { %v2848_v15 = vadd.f32 %v5362_v6, %v5074_v29  ;;  %v7260_v49 = vmax.f32 %v7646_v35, %v2845_v58  ;;  %v7652_v35 = vmax.f32 %v6889_v33, %v7651_v54 }
 0x290   : > { %v5075_v20 = vpop.f32.mrb[128].mxu1  ;;  %v5369_v37 = vpop.f32.mrb[116].mxu0  ;;  %v7265_v44 = vmax.f32 %v7648_v8, %v2848_v15  ;;  %v7654_v8 = vmax.f32 %v6894_v2, %v7653_v55 }
 0x291   : > { %v5076_v3 = vpop.f32.mrb[129].mxu1  ;;  %v2868_v38 = vpop.f32.mrb[117].mxu0 }
 0x292   : > { %v5077_v47 = vadd.f32 %v5076_v3, %v5075_v20  ;;  %v5078_v14 = vpop.f32.mrb[130].mxu1  ;;  %v5370_v1 = vpop.f32.mrb[118].mxu0 }
 0x293   : > { %v5079_v34 = vpop.f32.mrb[131].mxu1  ;;  %v2871_v40 = vpop.f32.mrb[119].mxu0 }
 0x294   : > { %v2853_v6 = vadd.f32 %v5077_v47, %v2852_v59  ;;  %v5080_v7 = vadd.f32 %v5079_v34, %v5078_v14 }
 0x296   : > { %v2856_v39 = vadd.f32 %v5080_v7, %v2855_v30  ;;  %v7270_v48 = vmax.f32 %v7649_v51, %v2853_v6 }
 0x298   : > { %v5081_v16 = vpop.f32.mrb[132].mxu1  ;;  %v7272_v28 = vpop.f32.mrb[120].mxu0  ;;  %v7277_v13 = vmax.f32 %v7650_v57, %v2856_v39 }
 0x299   : > { %v5082_v26 = vpop.f32.mrb[133].mxu1  ;;  %v2884_v46 = vpop.f32.mrb[121].mxu0 }
 0x29a   : > { %v5083_v22 = vadd.f32 %v5082_v26, %v5081_v16  ;;  %v5084_v58 = vpop.f32.mrb[134].mxu1  ;;  %v7279_v59 = vpop.f32.mrb[122].mxu0  ;;  %v7655_v26 = vmax.f32 %v6904_v0, %v7133_v24 }
 0x29b   : > { %v5085_v30 = vpop.f32.mrb[135].mxu1  ;;  %v2887_v29 = vpop.f32.mrb[123].mxu0 }
 0x29c   : > { %v2861_v15 = vadd.f32 %v5365_v5, %v5083_v22  ;;  %v5086_v32 = vadd.f32 %v5085_v30, %v5084_v58  ;;  %v7656_v30 = vld [vmem:[#allocation22_spill] sm:$0xff] }
 0x29e   : > { %v2864_v27 = vadd.f32 %v5366_v50, %v5086_v32  ;;  %v7284_v20 = vmax.f32 %v7652_v35, %v2861_v15  ;;  %v7657_v15 = vmax.f32 %v6910_v10, %v7656_v30 }
 0x2a0   : > { %v5087_v19 = vpop.f32.mrb[136].mxu1  ;;  %v5157_v36 = vpop.f32.mrb[124].mxu0  ;;  %v7289_v3 = vmax.f32 %v7654_v8, %v2864_v27 }
 0x2a1   : > { %v5088_v47 = vpop.f32.mrb[137].mxu1  ;;  %v5158_v14 = vpop.f32.mrb[125].mxu0 }
 0x2a2   : > { %v5089_v34 = vadd.f32 %v5088_v47, %v5087_v19  ;;  %v7291_v6 = vadd.f32 %v5158_v14, %v5157_v36  ;;  %v5090_v5 = vpop.f32.mrb[138].mxu1  ;;  %v5160_v7 = vpop.f32.mrb[126].mxu0  ;;  %v7658_v14 = vld [vmem:[#allocation3_spill] sm:$0xff] }
 0x2a3   : > { %v5091_v50 = vpop.f32.mrb[139].mxu1  ;;  %v5161_v39 = vpop.f32.mrb[127].mxu0 }
 0x2a4   : > { %v2869_v51 = vadd.f32 %v5089_v34, %v2868_v38  ;;  %v5092_v33 = vadd.f32 %v5091_v50, %v5090_v5  ;;  %v7293_v16 = vadd.f32 %v5161_v39, %v5160_v7  ;;  %v7659_v34 = vld [vmem:[#allocation20_spill] sm:$0xff] }
 0x2a5   : > { %v7660_v5 = vmax.f32 %v7658_v14, %v7659_v34  ;;  %v7661_v39 = vld [vmem:[#allocation4_spill] sm:$0xff]  ;;  %v7666_v14 = vld [vmem:[#allocation5_spill] sm:$0xff] }
 0x2a6   : > { %v2872_v57 = vadd.f32 %v5092_v33, %v2871_v40  ;;  %v7298_v2 = vmax.f32 %v7655_v26, %v2869_v51  ;;  %v7662_v51 = vld [vmem:[#allocation21_spill] sm:$0xff]  ;;  %v7667_v34 = vmax.f32 %v7622_v31, %v7666_v14 }
 0x2a7   : > { %v7663_v33 = vmax.f32 %v7661_v39, %v7662_v51 }
 0x2a8   : > { %v5093_v22 = vpop.f32.mrb[140].mxu1  ;;  %v5163_v58 = vpop.f32.mrb[128].mxu0  ;;  %v7303_v32 = vmax.f32 %v7657_v15, %v2872_v57 }
 0x2a9   : > { %v5094_v27 = vpop.f32.mrb[141].mxu1  ;;  %v5164_v54 = vpop.f32.mrb[129].mxu0 }
 0x2aa   : > { %v5095_v35 = vadd.f32 %v5094_v27, %v5093_v22  ;;  %v7305_v38 = vadd.f32 %v5164_v54, %v5163_v58  ;;  %v5096_v19 = vpop.f32.mrb[142].mxu1  ;;  %v5166_v36 = vpop.f32.mrb[130].mxu0 }
 0x2ab   : > { %v5097_v40 = vpop.f32.mrb[143].mxu1  ;;  %v5167_v55 = vpop.f32.mrb[131].mxu0 }
 0x2ac   : > { %v2877_v8 = vadd.f32 %v5369_v37, %v5095_v35  ;;  %v5098_v0 = vadd.f32 %v5097_v40, %v5096_v19  ;;  %v7307_v24 = vadd.f32 %v5167_v55, %v5166_v36  ;;  %v7664_v40 = vld [vmem:[#allocation24_spill] sm:$0xff] }
 0x2ad   : > { %v7665_v55 = vmax.f32 %v7619_v52, %v7664_v40 }
 0x2ae   : > { %v2880_v47 = vadd.f32 %v5370_v1, %v5098_v0  ;;  %v7312_v10 = vmax.f32 %v7660_v5, %v2877_v8 }
 0x2b0   : > { %v5099_v7 = vpop.f32.mrb[144].mxu1  ;;  %v5169_v50 = vpop.f32.mrb[132].mxu0  ;;  %v7317_v57 = vmax.f32 %v7663_v33, %v2880_v47 }
 0x2b1   : > { %v5100_v26 = vpop.f32.mrb[145].mxu1  ;;  %v5170_v22 = vpop.f32.mrb[133].mxu0 }
 0x2b2   : > { %v5101_v58 = vadd.f32 %v5100_v26, %v5099_v7  ;;  %v7319_v37 = vadd.f32 %v5170_v22, %v5169_v50  ;;  %v5102_v30 = vpop.f32.mrb[146].mxu1  ;;  %v5172_v15 = vpop.f32.mrb[134].mxu0 }
 0x2b3   : > { %v5103_v1 = vpop.f32.mrb[147].mxu1  ;;  %v5173_v27 = vpop.f32.mrb[135].mxu0 }
 0x2b4   : > { %v2885_v54 = vadd.f32 %v5101_v58, %v2884_v46  ;;  %v5104_v35 = vadd.f32 %v5103_v1, %v5102_v30  ;;  %v7321_v19 = vadd.f32 %v5173_v27, %v5172_v15  ;;  %v7669_v30 = vld [vmem:[#allocation7_spill] sm:$0xff] }
 0x2b5   : > { %v7670_v15 = vld [vmem:[#allocation23_spill] sm:$0xff] }
 0x2b6   : > { %v2888_v36 = vadd.f32 %v5104_v35, %v2887_v29  ;;  %v7326_v8 = vmax.f32 %v7665_v55, %v2885_v54  ;;  %v7671_v1 = vmax.f32 %v7669_v30, %v7670_v15  ;;  %v7672_v54 = vld [vmem:[#allocation8_spill] sm:$0xff]  ;;  %v7673_v35 = vld [vmem:[#allocation25_spill] sm:$0xff] }
 0x2b8   : > { %v5105_v0 = vpop.f32.mrb[148].mxu1  ;;  %v5175_v47 = vpop.f32.mrb[136].mxu0  ;;  %v7331_v5 = vmax.f32 %v7667_v34, %v2888_v36  ;;  %v7674_v36 = vmax.f32 %v7672_v54, %v7673_v35 }
 0x2b9   : > { %v5106_v7 = vpop.f32.mrb[149].mxu1  ;;  %v5176_v50 = vpop.f32.mrb[137].mxu0 }
 0x2ba   : > { %7668 = vst [vmem:[#allocation11_spill] sm:$0xff] %v7331_v5  ;;  %v5107_v39 = vadd.f32 %v5106_v7, %v5105_v0  ;;  %v7333_v46 = vadd.f32 %v5176_v50, %v5175_v47  ;;  %v5108_v51 = vpop.f32.mrb[150].mxu1  ;;  %v5178_v33 = vpop.f32.mrb[138].mxu0 }
 0x2bb   : > { %v5109_v29 = vpop.f32.mrb[151].mxu1  ;;  %v5179_v26 = vpop.f32.mrb[139].mxu0 }
 0x2bc   : > { %v2893_v52 = vadd.f32 %v7272_v28, %v5107_v39  ;;  %v5110_v22 = vadd.f32 %v5109_v29, %v5108_v51  ;;  %v7336_v58 = vadd.f32 %v5179_v26, %v5178_v33 }
 0x2be   : > { %v7341_v31 = vmax.f32 %v7671_v1, %v2893_v52  ;;  %v2896_v27 = vadd.f32 %v7279_v59, %v5110_v22 }
 0x2c0   : > { %v7347_v40 = vmax.f32 %v7674_v36, %v2896_v27  ;;  %v5181_v55 = vpop.f32.mrb[140].mxu0  ;;  %v5111_v0 = vpop.f32.mrb[152].mxu1 }
 0x2c1   : > { %v5182_v47 = vpop.f32.mrb[141].mxu0  ;;  %v5112_v14 = vpop.f32.mrb[153].mxu1 }
 0x2c2   : > { %7675 = vst [vmem:[#allocation12_spill] sm:$0xff] %v7347_v40  ;;  %v7349_v28 = vadd.f32 %v5182_v47, %v5181_v55  ;;  %v5184_v34 = vpop.f32.mrb[142].mxu0  ;;  %v5113_v7 = vadd.f32 %v5112_v14, %v5111_v0  ;;  %v5114_v50 = vpop.f32.mrb[154].mxu1 }
 0x2c3   : > { %v5185_v39 = vpop.f32.mrb[143].mxu0  ;;  %v5115_v51 = vpop.f32.mrb[155].mxu1 }
 0x2c4   : > { %v7351_v33 = vadd.f32 %v5185_v39, %v5184_v34  ;;  %v5116_v29 = vadd.f32 %v5115_v51, %v5114_v50 }
 0x2c8   : > { %v5187_v59 = vpop.f32.mrb[144].mxu0  ;;  %v5117_v26 = vpop.f32.mrb[156].mxu1 }
 0x2c9   : > { %v5188_v52 = vpop.f32.mrb[145].mxu0  ;;  %v5118_v22 = vpop.f32.mrb[157].mxu1 }
 0x2ca   : > { %v7353_v30 = vadd.f32 %v5188_v52, %v5187_v59  ;;  %v5190_v15 = vpop.f32.mrb[146].mxu0  ;;  %v5119_v1 = vadd.f32 %v5118_v22, %v5117_v26  ;;  %v5120_v27 = vpop.f32.mrb[158].mxu1  ;;  %v7676_v52 = vld [vmem:[#allocation10_spill] sm:$0xff] }
 0x2cb   : > { %v5191_v54 = vpop.f32.mrb[147].mxu0  ;;  %v5121_v35 = vpop.f32.mrb[159].mxu1  ;;  %v7677_v26 = vld [vmem:[#allocation6_spill] sm:$0xff] }
 0x2cc   : > { %v7355_v36 = vadd.f32 %v5191_v54, %v5190_v15  ;;  %v5122_v55 = vadd.f32 %v5121_v35, %v5120_v27  ;;  %v7678_v22 = vmax.f32 %v7676_v52, %v7677_v26 }
 0x2d0   : > { %v5377_v0 = vpop.f32.mrb[160].mxu1  ;;  %v5193_v47 = vpop.f32.mrb[148].mxu0 }
 0x2d1   : > { %v2909_v14 = vadd.f32 %v5377_v0, %v5119_v1  ;;  %v2900_v34 = vpop.f32.mrb[161].mxu1  ;;  %v5194_v50 = vpop.f32.mrb[149].mxu0  ;;  %v7679_v1 = vmax.f32 %v6971_v43, %v7172_v18 }
 0x2d2   : > { %v2901_v39 = vadd.f32 %v5113_v7, %v2900_v34  ;;  %v7357_v51 = vadd.f32 %v5194_v50, %v5193_v47  ;;  %v5378_v40 = vpop.f32.mrb[162].mxu1  ;;  %v5196_v59 = vpop.f32.mrb[150].mxu0  ;;  %v7680_v47 = vmax.f32 %v6993_v61, %v7176_v17 }
 0x2d3   : > { %v7364_v5 = vmax.f32 %v7678_v22, %v2909_v14  ;;  %v2912_v15 = vadd.f32 %v5378_v40, %v5122_v55  ;;  %v2903_v54 = vpop.f32.mrb[163].mxu1  ;;  %v5197_v27 = vpop.f32.mrb[151].mxu0  ;;  %v7681_v14 = vmax.f32 %v7624_v63, %v7181_v12  ;;  %v7682_v63 = vld [vmem:[#allocation9_spill] sm:$0xff] }
 0x2d4   : > { %v7369_v35 = vmax.f32 %v7679_v1, %v2901_v39  ;;  %v2904_v7 = vadd.f32 %v5116_v29, %v2903_v54  ;;  %v7371_v0 = vadd.f32 %v5197_v27, %v5196_v59  ;;  %v7387_v39 = vld [vmem:[%s7568_s2] ss:$0 sm:$0xff] }
 0x2d5   : > { %v7376_v34 = vmax.f32 %v7680_v47, %v2912_v15 }
 0x2d6   : > { %v7381_v40 = vmax.f32 %v7681_v14, %v2904_v7 }
 0x2d8   : > { %v5199_v55 = vpop.f32.mrb[152].mxu0  ;;  %v5385_v50 = vpop.f32.mrb[164].mxu1 }
 0x2d9   : > { %v3504_v43 = vadd.f32 %v5385_v50, %v7305_v38  ;;  %v5200_v18 = vpop.f32.mrb[153].mxu0  ;;  %v3495_v29 = vpop.f32.mrb[165].mxu1 }
 0x2da   : > { %v7389_v61 = vadd.f32 %v5200_v18, %v5199_v55  ;;  %v3496_v17 = vadd.f32 %v7291_v6, %v3495_v29  ;;  %v5202_v59 = vpop.f32.mrb[154].mxu0  ;;  %v5386_v12 = vpop.f32.mrb[166].mxu1 }
 0x2db   : > { %v3624_v52 = vmax.f32 %v7682_v63, %v3504_v43  ;;  %v3507_v26 = vadd.f32 %v5386_v12, %v7307_v24  ;;  %v5203_v22 = vpop.f32.mrb[155].mxu0  ;;  %v3498_v15 = vpop.f32.mrb[167].mxu1 }
 0x2dc   : > { %v3622_v38 = vmax.f32 %v7195_v62, %v3496_v17  ;;  %v7395_v54 = vadd.f32 %v5203_v22, %v5202_v59  ;;  %v3499_v27 = vadd.f32 %v7293_v16, %v3498_v15 }
 0x2dd   : > { %v3663_v1 = vadd.f32 %v7387_v39, %v3624_v52  ;;  %v3625_v7 = vmax.f32 %v7200_v41, %v3507_v26 }
 0x2de   : > { %v3661_v6 = vadd.f32 %v7387_v39, %v3622_v38  ;;  %v3623_v47 = vmax.f32 %v7205_v25, %v3499_v27 }
 0x2df   : > { %v3695_v14 = vmax.f32 %v3663_v1, 0.0  ;;  %v3664_v24 = vadd.f32 %v7387_v39, %v3625_v7 }
 0x2e0   : > { %v3693_v62 = vmax.f32 %v3661_v6, 0.0  ;;  %v3662_v16 = vadd.f32 %v7387_v39, %v3623_v47  ;;  %v5205_v55 = vpop.f32.mrb[156].mxu0  ;;  %v5389_v50 = vpop.f32.mrb[168].mxu1 }
 0x2e1   : > { %v4721_v41 = vpack.c.bf16 %v3695_v14, %v3695_v14  ;;  %v3696_v43 = vmax.f32 %v3664_v24, 0.0  ;;  %v3520_v25 = vadd.f32 %v5389_v50, %v7333_v46  ;;  %v5206_v18 = vpop.f32.mrb[157].mxu0  ;;  %v3511_v29 = vpop.f32.mrb[169].mxu1 }
 0x2e2   : > { %v4719_v17 = vpack.c.bf16 %v3693_v62, %v3693_v62  ;;  %v3694_v59 = vmax.f32 %v3662_v16, 0.0  ;;  %v7410_v12 = vadd.f32 %v5206_v18, %v5205_v55  ;;  %v3512_v63 = vadd.f32 %v7319_v37, %v3511_v29  ;;  %v5208_v52 = vpop.f32.mrb[158].mxu0  ;;  %v5390_v26 = vpop.f32.mrb[170].mxu1 }
 0x2e3   : > { %3856 = vst.msk [vmem:[%s7406_s20 + $0x8] sm:$0xf] %vm3853_vm1, %v4721_v41  ;;  %v4722_v22 = vpack.c.bf16 %v3696_v43, %v3696_v43  ;;  %v3628_v15 = vmax.f32 %v7210_v9, %v3520_v25  ;;  %v3523_v38 = vadd.f32 %v5390_v26, %v7336_v58  ;;  %v5209_v46 = vpop.f32.mrb[159].mxu0  ;;  %v3514_v27 = vpop.f32.mrb[171].mxu1 }
 0x2e4   : > { %3854 = vst.msk [vmem:[%s7406_s20] sm:$0xf] %vm3853_vm1, %v4719_v17  ;;  %v4720_v1 = vpack.c.bf16 %v3694_v59, %v3694_v59  ;;  %v3626_v7 = vmax.f32 %v7215_v23, %v3512_v63  ;;  %v7420_v6 = vadd.f32 %v5209_v46, %v5208_v52  ;;  %v3515_v37 = vadd.f32 %v7321_v19, %v3514_v27 }
 0x2e5   : > { %3857 = vst.msk [vmem:[%s7406_s20 + $0xc] sm:$0xf] %vm3853_vm1, %v4722_v22  ;;  %v3667_v47 = vadd.f32 %v7387_v39, %v3628_v15  ;;  %v3629_v14 = vmax.f32 %v7220_v21, %v3523_v38 }
 0x2e6   : > { %3855 = vst.msk [vmem:[%s7406_s20 + $0x4] sm:$0xf] %vm3853_vm1, %v4720_v1  ;;  %v3665_v9 = vadd.f32 %v7387_v39, %v3626_v7  ;;  %v3627_v58 = vmax.f32 %v7225_v42, %v3515_v37 }
 0x2e7   : > { %v3699_v24 = vmax.f32 %v3667_v47, 0.0  ;;  %v3668_v62 = vadd.f32 %v7387_v39, %v3629_v14 }
 0x2e8   : > { %v3697_v23 = vmax.f32 %v3665_v9, 0.0  ;;  %v3666_v16 = vadd.f32 %v7387_v39, %v3627_v58  ;;  %v5211_v19 = vpop.f32.mrb[160].mxu0  ;;  %v5393_v55 = vpop.f32.mrb[172].mxu1 }
 0x2e9   : > { %v4725_v50 = vpack.c.bf16 %v3699_v24, %v3699_v24  ;;  %v3700_v41 = vmax.f32 %v3668_v62, 0.0  ;;  %v3536_v21 = vadd.f32 %v5393_v55, %v7353_v30  ;;  %v5212_v43 = vpop.f32.mrb[161].mxu0  ;;  %v3527_v25 = vpop.f32.mrb[173].mxu1 }
 0x2ea   : > { %v4723_v18 = vpack.c.bf16 %v3697_v23, %v3697_v23  ;;  %v3698_v29 = vmax.f32 %v3666_v16, 0.0  ;;  %v7434_v42 = vadd.f32 %v5212_v43, %v5211_v19  ;;  %v3528_v17 = vadd.f32 %v7349_v28, %v3527_v25  ;;  %v5214_v59 = vpop.f32.mrb[162].mxu0  ;;  %v5394_v63 = vpop.f32.mrb[174].mxu1 }
 0x2eb   : > { %3860 = vst.msk [vmem:[%s7406_s20 + $0x18] sm:$0xf] %vm3853_vm1, %v4725_v50  ;;  %v4726_v52 = vpack.c.bf16 %v3700_v41, %v3700_v41  ;;  %v3632_v26 = vmax.f32 %v7240_v45, %v3536_v21  ;;  %v3539_v22 = vadd.f32 %v5394_v63, %v7355_v36  ;;  %v5215_v30 = vpop.f32.mrb[163].mxu0  ;;  %v3530_v15 = vpop.f32.mrb[175].mxu1 }
 0x2ec   : > { %3858 = vst.msk [vmem:[%s7406_s20 + $0x10] sm:$0xf] %vm3853_vm1, %v4723_v18  ;;  %v4724_v38 = vpack.c.bf16 %v3698_v29, %v3698_v29  ;;  %v3630_v46 = vmax.f32 %v7230_v53, %v3528_v17  ;;  %v5216_v27 = vadd.f32 %v5215_v30, %v5214_v59  ;;  %v3531_v28 = vadd.f32 %v7351_v33, %v3530_v15 }
 0x2ed   : > { %3861 = vst.msk [vmem:[%s7406_s20 + $0x1c] sm:$0xf] %vm3853_vm1, %v4726_v52  ;;  %v3671_v1 = vadd.f32 %v7387_v39, %v3632_v26  ;;  %v3633_v7 = vmax.f32 %v7245_v60, %v3539_v22 }
 0x2ee   : > { %3859 = vst.msk [vmem:[%s7406_s20 + $0x14] sm:$0xf] %vm3853_vm1, %v4724_v38  ;;  %v3669_v45 = vadd.f32 %v7387_v39, %v3630_v46  ;;  %v3631_v36 = vmax.f32 %v7235_v11, %v3531_v28 }
 0x2ef   : > { %v3703_v37 = vmax.f32 %v3671_v1, 0.0  ;;  %v3672_v47 = vadd.f32 %v7387_v39, %v3633_v7 }
 0x2f0   : > { %v3701_v53 = vmax.f32 %v3669_v45, 0.0  ;;  %v3670_v14 = vadd.f32 %v7387_v39, %v3631_v36  ;;  %v5217_v33 = vpop.f32.mrb[164].mxu0  ;;  %v5397_v9 = vpop.f32.mrb[176].mxu1 }
 0x2f1   : > { %v4729_v58 = vpack.c.bf16 %v3703_v37, %v3703_v37  ;;  %v3704_v24 = vmax.f32 %v3672_v47, 0.0  ;;  %v3552_v60 = vadd.f32 %v5397_v9, %v7389_v61  ;;  %v5218_v62 = vpop.f32.mrb[165].mxu0  ;;  %v3543_v23 = vpop.f32.mrb[177].mxu1 }
 0x2f2   : > { %v4727_v16 = vpack.c.bf16 %v3701_v53, %v3701_v53  ;;  %v3702_v19 = vmax.f32 %v3670_v14, 0.0  ;;  %v7456_v11 = vadd.f32 %v5218_v62, %v5217_v33  ;;  %v3544_v55 = vadd.f32 %v7357_v51, %v3543_v23  ;;  %v5220_v50 = vpop.f32.mrb[166].mxu0  ;;  %v5398_v41 = vpop.f32.mrb[178].mxu1 }
 0x2f3   : > { %3864 = vst.msk [vmem:[%s7406_s20 + $0x28] sm:$0xf] %vm3853_vm1, %v4729_v58  ;;  %v4730_v21 = vpack.c.bf16 %v3704_v24, %v3704_v24  ;;  %v3636_v43 = vmax.f32 %v7260_v49, %v3552_v60  ;;  %v3555_v25 = vadd.f32 %v5398_v41, %v7395_v54  ;;  %v5221_v61 = vpop.f32.mrb[167].mxu0  ;;  %v3546_v18 = vpop.f32.mrb[179].mxu1 }
 0x2f4   : > { %3862 = vst.msk [vmem:[%s7406_s20 + $0x20] sm:$0xf] %vm3853_vm1, %v4727_v16  ;;  %v4728_v29 = vpack.c.bf16 %v3702_v19, %v3702_v19  ;;  %v3634_v17 = vmax.f32 %v7250_v56, %v3544_v55  ;;  %v7466_v59 = vadd.f32 %v5221_v61, %v5220_v50  ;;  %v3547_v51 = vadd.f32 %v7371_v0, %v3546_v18 }
 0x2f5   : > { %3865 = vst.msk [vmem:[%s7406_s20 + $0x2c] sm:$0xf] %vm3853_vm1, %v4730_v21  ;;  %v3675_v63 = vadd.f32 %v7387_v39, %v3636_v43  ;;  %v3637_v52 = vmax.f32 %v7265_v44, %v3555_v25 }
 0x2f6   : > { %3863 = vst.msk [vmem:[%s7406_s20 + $0x24] sm:$0xf] %vm3853_vm1, %v4728_v29  ;;  %v3673_v49 = vadd.f32 %v7387_v39, %v3634_v17  ;;  %v3635_v54 = vmax.f32 %v7255_v4, %v3547_v51 }
 0x2f7   : > { %v3707_v26 = vmax.f32 %v3675_v63, 0.0  ;;  %v3676_v22 = vadd.f32 %v7387_v39, %v3637_v52 }
 0x2f8   : > { %v3705_v56 = vmax.f32 %v3673_v49, 0.0  ;;  %v3674_v30 = vadd.f32 %v7387_v39, %v3635_v54  ;;  %v5223_v0 = vpop.f32.mrb[168].mxu0  ;;  %v5401_v15 = vpop.f32.mrb[180].mxu1 }
 0x2f9   : > { %v4733_v38 = vpack.c.bf16 %v3707_v26, %v3707_v26  ;;  %v3708_v46 = vmax.f32 %v3676_v22, 0.0  ;;  %v3568_v44 = vadd.f32 %v5401_v15, %v7434_v42  ;;  %v5224_v28 = vpop.f32.mrb[169].mxu0  ;;  %v3559_v1 = vpop.f32.mrb[181].mxu1 }
 0x2fa   : > { %v4731_v7 = vpack.c.bf16 %v3705_v56, %v3705_v56  ;;  %v3706_v45 = vmax.f32 %v3674_v30, 0.0  ;;  %v5225_v4 = vadd.f32 %v5224_v28, %v5223_v0  ;;  %v3560_v36 = vadd.f32 %v7410_v12, %v3559_v1  ;;  %v5226_v37 = vpop.f32.mrb[170].mxu0  ;;  %v5402_v47 = vpop.f32.mrb[182].mxu1 }
 0x2fb   : > { %3868 = vst.msk [vmem:[%s7406_s20 + $0x38] sm:$0xf] %vm3853_vm1, %v4733_v38  ;;  %v4734_v53 = vpack.c.bf16 %v3708_v46, %v3708_v46  ;;  %v3640_v14 = vmax.f32 %v7284_v20, %v3568_v44  ;;  %v3571_v33 = vadd.f32 %v5402_v47, %v5216_v27  ;;  %v5227_v9 = vpop.f32.mrb[171].mxu0  ;;  %v3562_v58 = vpop.f32.mrb[183].mxu1 }
 0x2fc   : > { %3866 = vst.msk [vmem:[%s7406_s20 + $0x30] sm:$0xf] %vm3853_vm1, %v4731_v7  ;;  %v4732_v42 = vpack.c.bf16 %v3706_v45, %v3706_v45  ;;  %v3638_v24 = vmax.f32 %v7270_v48, %v3560_v36  ;;  %v5228_v60 = vadd.f32 %v5227_v9, %v5226_v37  ;;  %v3563_v62 = vadd.f32 %v7420_v6, %v3562_v58 }
 0x2fd   : > { %3869 = vst.msk [vmem:[%s7406_s20 + $0x3c] sm:$0xf] %vm3853_vm1, %v4734_v53  ;;  %v3679_v12 = vadd.f32 %v7387_v39, %v3640_v14  ;;  %v3641_v23 = vmax.f32 %v7289_v3, %v3571_v33 }
 0x2fe   : > { %3867 = vst.msk [vmem:[%s7406_s20 + $0x34] sm:$0xf] %vm3853_vm1, %v4732_v42  ;;  %v3677_v20 = vadd.f32 %v7387_v39, %v3638_v24  ;;  %v3639_v27 = vmax.f32 %v7277_v13, %v3563_v62 }
 0x2ff   : > { %v3711_v16 = vmax.f32 %v3679_v12, 0.0  ;;  %v3680_v19 = vadd.f32 %v7387_v39, %v3641_v23 }
 0x300   : > { %v3709_v48 = vmax.f32 %v3677_v20, 0.0  ;;  %v3678_v55 = vadd.f32 %v7387_v39, %v3639_v27  ;;  %v5229_v6 = vpop.f32.mrb[172].mxu0  ;;  %v5405_v50 = vpop.f32.mrb[184].mxu1 }
 0x301   : > { %v4737_v41 = vpack.c.bf16 %v3711_v16, %v3711_v16  ;;  %v3712_v21 = vmax.f32 %v3680_v19, 0.0  ;;  %v3584_v43 = vadd.f32 %v5405_v50, %v5225_v4  ;;  %v5230_v3 = vpop.f32.mrb[173].mxu0  ;;  %v3575_v25 = vpop.f32.mrb[185].mxu1  ;;  %v7683_v16 = vld [vmem:[#allocation11_spill] sm:$0xff] }
 0x302   : > { %v4735_v61 = vpack.c.bf16 %v3709_v48, %v3709_v48  ;;  %v3710_v18 = vmax.f32 %v3678_v55, 0.0  ;;  %v5231_v29 = vadd.f32 %v5230_v3, %v5229_v6  ;;  %v3576_v13 = vadd.f32 %v7456_v11, %v3575_v25  ;;  %v5232_v17 = vpop.f32.mrb[174].mxu0  ;;  %v5406_v51 = vpop.f32.mrb[186].mxu1  ;;  %v7684_v6 = vld [vmem:[#allocation12_spill] sm:$0xff] }
 0x303   : > { %3872 = vst.msk [vmem:[%s7406_s20 + $0x48] sm:$0xf] %vm3853_vm1, %v4737_v41  ;;  %v4738_v63 = vpack.c.bf16 %v3712_v21, %v3712_v21  ;;  %v3644_v52 = vmax.f32 %v7312_v10, %v3584_v43  ;;  %v3587_v49 = vadd.f32 %v5406_v51, %v5228_v60  ;;  %v5233_v54 = vpop.f32.mrb[175].mxu0  ;;  %v3578_v26 = vpop.f32.mrb[187].mxu1 }
 0x304   : > { %3870 = vst.msk [vmem:[%s7406_s20 + $0x40] sm:$0xf] %vm3853_vm1, %v4735_v61  ;;  %v4736_v22 = vpack.c.bf16 %v3710_v18, %v3710_v18  ;;  %v3642_v56 = vmax.f32 %v7298_v2, %v3576_v13  ;;  %v5234_v30 = vadd.f32 %v5233_v54, %v5232_v17  ;;  %v3579_v0 = vadd.f32 %v7466_v59, %v3578_v26 }
 0x305   : > { %3873 = vst.msk [vmem:[%s7406_s20 + $0x4c] sm:$0xf] %vm3853_vm1, %v4738_v63  ;;  %v3683_v11 = vadd.f32 %v7387_v39, %v3644_v52  ;;  %v3645_v15 = vmax.f32 %v7317_v57, %v3587_v49 }
 0x306   : > { %3871 = vst.msk [vmem:[%s7406_s20 + $0x44] sm:$0xf] %vm3853_vm1, %v4736_v22  ;;  %v3681_v10 = vadd.f32 %v7387_v39, %v3642_v56  ;;  %v3643_v38 = vmax.f32 %v7303_v32, %v3579_v0 }
 0x307   : > { %v3715_v46 = vmax.f32 %v3683_v11, 0.0  ;;  %v3684_v44 = vadd.f32 %v7387_v39, %v3645_v15 }
 0x308   : > { %v3713_v2 = vmax.f32 %v3681_v10, 0.0  ;;  %v3682_v28 = vadd.f32 %v7387_v39, %v3643_v38  ;;  %v5235_v59 = vpop.f32.mrb[176].mxu0  ;;  %v5409_v1 = vpop.f32.mrb[188].mxu1 }
 0x309   : > { %v4741_v7 = vpack.c.bf16 %v3715_v46, %v3715_v46  ;;  %v3716_v45 = vmax.f32 %v3684_v44, 0.0  ;;  %v5236_v4 = vpop.f32.mrb[177].mxu0  ;;  %v3591_v57 = vpop.f32.mrb[189].mxu1 }
 0x30a   : > { %v4739_v36 = vpack.c.bf16 %v3713_v2, %v3713_v2  ;;  %v3714_v37 = vmax.f32 %v3682_v28, 0.0  ;;  %v5237_v47 = vadd.f32 %v5236_v4, %v5235_v59  ;;  %v3592_v32 = vadd.f32 %v5231_v29, %v3591_v57  ;;  %v5238_v53 = vpop.f32.mrb[178].mxu0  ;;  %v5410_v14 = vpop.f32.mrb[190].mxu1 }
 0x30b   : > { %3876 = vst.msk [vmem:[%s7406_s20 + $0x58] sm:$0xf] %vm3853_vm1, %v4741_v7  ;;  %v4742_v33 = vpack.c.bf16 %v3716_v45, %v3716_v45  ;;  %v5239_v9 = vpop.f32.mrb[179].mxu0  ;;  %v3594_v58 = vpop.f32.mrb[191].mxu1 }
 0x30c   : > { %3874 = vst.msk [vmem:[%s7406_s20 + $0x50] sm:$0xf] %vm3853_vm1, %v4739_v36  ;;  %v4740_v42 = vpack.c.bf16 %v3714_v37, %v3714_v37  ;;  %v3600_v24 = vadd.f32 %v5409_v1, %v5237_v47  ;;  %v3646_v60 = vmax.f32 %v7326_v8, %v3592_v32  ;;  %v5240_v62 = vadd.f32 %v5239_v9, %v5238_v53 }
 0x30d   : > { %3877 = vst.msk [vmem:[%s7406_s20 + $0x5c] sm:$0xf] %vm3853_vm1, %v4742_v33  ;;  %v3595_v12 = vadd.f32 %v5234_v30, %v3594_v58 }
 0x30e   : > { %3875 = vst.msk [vmem:[%s7406_s20 + $0x54] sm:$0xf] %vm3853_vm1, %v4740_v42  ;;  %v3648_v23 = vmax.f32 %v7341_v31, %v3600_v24  ;;  %v3685_v20 = vadd.f32 %v7387_v39, %v3646_v60  ;;  %v3603_v27 = vadd.f32 %v5410_v14, %v5240_v62 }
 0x30f   : > { %v3647_v19 = vmax.f32 %v7683_v16, %v3595_v12 }
 0x310   : > { %v3687_v48 = vadd.f32 %v7387_v39, %v3648_v23  ;;  %v3717_v55 = vmax.f32 %v3685_v20, 0.0  ;;  %v3649_v50 = vmax.f32 %v7684_v6, %v3603_v27  ;;  %v5241_v8 = vpop.f32.mrb[180].mxu0  ;;  %v5413_v41 = vpop.f32.mrb[192].mxu1 }
 0x311   : > { %v3686_v21 = vadd.f32 %v7387_v39, %v3647_v19  ;;  %v5242_v43 = vpop.f32.mrb[181].mxu0  ;;  %v3607_v3 = vpop.f32.mrb[193].mxu1 }
 0x312   : > { %v3719_v25 = vmax.f32 %v3687_v48, 0.0  ;;  %v4743_v31 = vpack.c.bf16 %v3717_v55, %v3717_v55  ;;  %v3688_v61 = vadd.f32 %v7387_v39, %v3649_v50  ;;  %v5243_v18 = vadd.f32 %v5242_v43, %v5241_v8  ;;  %v5244_v29 = vpop.f32.mrb[182].mxu0  ;;  %v5414_v13 = vpop.f32.mrb[194].mxu1 }
 0x313   : > { %v3718_v17 = vmax.f32 %v3686_v21, 0.0  ;;  %v5245_v51 = vpop.f32.mrb[183].mxu0  ;;  %v3610_v63 = vpop.f32.mrb[195].mxu1 }
 0x314   : > { %v4745_v52 = vpack.c.bf16 %v3719_v25, %v3719_v25  ;;  %3878 = vst.msk [vmem:[%s7406_s20 + $0x60] sm:$0xf] %vm3853_vm1, %v4743_v31  ;;  %v3720_v49 = vmax.f32 %v3688_v61, 0.0  ;;  %v5246_v54 = vadd.f32 %v5245_v51, %v5244_v29  ;;  %v3608_v26 = vadd.f32 %v5243_v18, %v3607_v3 }
 0x315   : > { %v4744_v22 = vpack.c.bf16 %v3718_v17, %v3718_v17 }
 0x316   : > { %3880 = vst.msk [vmem:[%s7406_s20 + $0x68] sm:$0xf] %vm3853_vm1, %v4745_v52  ;;  %v4746_v56 = vpack.c.bf16 %v3720_v49, %v3720_v49  ;;  %v3650_v30 = vmax.f32 %v7369_v35, %v3608_v26  ;;  %v3611_v0 = vadd.f32 %v5246_v54, %v3610_v63 }
 0x317   : > { %3879 = vst.msk [vmem:[%s7406_s20 + $0x64] sm:$0xf] %vm3853_vm1, %v4744_v22 }
 0x318   : > { %3881 = vst.msk [vmem:[%s7406_s20 + $0x6c] sm:$0xf] %vm3853_vm1, %v4746_v56  ;;  %v3689_v11 = vadd.f32 %v7387_v39, %v3650_v30  ;;  %v3651_v15 = vmax.f32 %v7381_v40, %v3611_v0  ;;  %v5247_v10 = vpop.f32.mrb[184].mxu0 }
 0x319   : > { %v5248_v38 = vpop.f32.mrb[185].mxu0 }
 0x31a   : > { %v3721_v46 = vmax.f32 %v3689_v11, 0.0  ;;  %v3690_v44 = vadd.f32 %v7387_v39, %v3651_v15  ;;  %v5249_v2 = vadd.f32 %v5248_v38, %v5247_v10  ;;  %v5250_v28 = vpop.f32.mrb[186].mxu0 }
 0x31b   : > { %v5251_v59 = vpop.f32.mrb[187].mxu0 }
 0x31c   : > { %v4747_v35 = vpack.c.bf16 %v3721_v46, %v3721_v46  ;;  %v3722_v1 = vmax.f32 %v3690_v44, 0.0  ;;  %v3616_v7 = vadd.f32 %v5413_v41, %v5249_v2  ;;  %v5252_v45 = vadd.f32 %v5251_v59, %v5250_v28 }
 0x31e   : > { %3882 = vst.msk [vmem:[%s7406_s20 + $0x70] sm:$0xf] %vm3853_vm1, %v4747_v35  ;;  %v4748_v4 = vpack.c.bf16 %v3722_v1, %v3722_v1  ;;  %v3652_v40 = vmax.f32 %v7364_v5, %v3616_v7  ;;  %v3619_v57 = vadd.f32 %v5414_v13, %v5252_v45 }
 0x320   : > { %3883 = vst.msk [vmem:[%s7406_s20 + $0x74] sm:$0xf] %vm3853_vm1, %v4748_v4  ;;  %v3691_v36 = vadd.f32 %v7387_v39, %v3652_v40  ;;  %v3653_v37 = vmax.f32 %v7376_v34, %v3619_v57 }
 0x322   : > { %v3723_v47 = vmax.f32 %v3691_v36, 0.0  ;;  %v3692_v32 = vadd.f32 %v7387_v39, %v3653_v37 }
 0x324   : > { %v4749_v53 = vpack.c.bf16 %v3723_v47, %v3723_v47  ;;  %v3724_v14 = vmax.f32 %v3692_v32, 0.0 }
 0x326   : > { %3884 = vst.msk [vmem:[%s7406_s20 + $0x78] sm:$0xf] %vm3853_vm1, %v4749_v53  ;;  %v4750_v33 = vpack.c.bf16 %v3724_v14, %v3724_v14 }
 0x328   : > { %3885 = vst.msk [vmem:[%s7406_s20 + $0x7c] sm:$0xf] %vm3853_vm1, %v4750_v33 }
 0x329 PF: > { %p10_p9 = scmp.ge.s32.totalorder %s5799_s16, 4   ;;  %s7685_s12 = smov %s5756_s13 }
 0x32a   : > { %s7686_s13 = smov %s5808_s19  ;;  %s7687_s14 = smov %s5799_s16 }
 0x32b   :  { %12 = sbr.rel (!%p10_p9) target bundleno = 2 (0x2), region = 102 }

// kernel: simple_cnn_forward.5
= control target key start
LH: loop header
LB: loop body
LE: loop exit
PB: predicated region body
PF: predicated region fallthrough
CT: control target
= control target key end

     0   :  { %s4866_s0 = inlined_call_operand.vmem [shape: bf16[8,4096], index: 0, kind: input, shape index: {}]   ;;  %s4867_s1 = inlined_call_operand.vmem [shape: bf16[4096,128], index: 1, kind: input, shape index: {}]   ;;  %s4868_s2 = inlined_call_operand.vmem [shape: f32[1,128], index: 2, kind: input, shape index: {}]   ;;  %s4869_s3 = inlined_call_operand.vmem [shape: bf16[128,128], index: 3, kind: input, shape index: {}]   ;;  %s4870_s4 = inlined_call_operand.vmem [shape: f32[1,128], index: 4, kind: input, shape index: {}]   ;;  %s4871_s5 = inlined_call_operand.hbm [shape: f32[8,128], index: 5, kind: output, shape index: {}]  }
   0x1   :  { %v3655_v0 = vld [vmem:[%s4867_s1 + $0x40] sm:$0xff]   ;;  %v3659_v4 = vld [vmem:[%s4867_s1 + $0x48] sm:$0xff]   ;;  %v3663_v8 = vld [vmem:[%s4867_s1 + $0x50] sm:$0xff]  }
   0x2   :  { %v3656_v1 = vld [vmem:[%s4867_s1 + $0xc0] sm:$0xff]   ;;  %3271 = vmatprep.subr.bf16.mxu0 %v3655_v0  ;;  %v3660_v5 = vld [vmem:[%s4867_s1 + $0xc8] sm:$0xff]   ;;  %v3664_v9 = vld [vmem:[%s4867_s1 + $0xd0] sm:$0xff]  }
   0x3   :  { %v3657_v2 = vld [vmem:[%s4867_s1] sm:$0xff]   ;;  %3293 = vmatprep.subr.bf16.mxu1 %v3656_v1  ;;  %v3661_v6 = vld [vmem:[%s4867_s1 + $0x8] sm:$0xff]   ;;  %v3665_v10 = vld [vmem:[%s4867_s1 + $0x10] sm:$0xff]  }
   0x4   :  { %v3658_v3 = vld [vmem:[%s4867_s1 + $0x80] sm:$0xff]   ;;  %3272 = vmatpush3.bf16.msra.mxu0 %v3657_v2  ;;  %v3662_v7 = vld [vmem:[%s4867_s1 + $0x88] sm:$0xff]   ;;  %v3666_v11 = vld [vmem:[%s4867_s1 + $0x90] sm:$0xff]  }
   0x5   :  { %3294 = vmatpush3.bf16.msra.mxu1 %v3658_v3  ;;  %3273 = vmatprep.subr.bf16.mxu0 %v3659_v4  ;;  %v3667_v12 = vld [vmem:[%s4867_s1 + $0x58] sm:$0xff]   ;;  %v3671_v16 = vld [vmem:[%s4867_s1 + $0x60] sm:$0xff]   ;;  %v3675_v20 = vld [vmem:[%s4867_s1 + $0x68] sm:$0xff]  }
   0x6   :  { %3295 = vmatprep.subr.bf16.mxu1 %v3660_v5  ;;  %v3668_v13 = vld [vmem:[%s4867_s1 + $0xd8] sm:$0xff]   ;;  %v3672_v17 = vld [vmem:[%s4867_s1 + $0xe0] sm:$0xff]   ;;  %v3676_v21 = vld [vmem:[%s4867_s1 + $0xe8] sm:$0xff]  }
   0x7   :  { %v3669_v14 = vld [vmem:[%s4867_s1 + $0x18] sm:$0xff]   ;;  %v3673_v18 = vld [vmem:[%s4867_s1 + $0x20] sm:$0xff]   ;;  %v3677_v22 = vld [vmem:[%s4867_s1 + $0x28] sm:$0xff]  }
   0x8   :  { %3274 = vmatpush3.bf16.msra.mxu0 %v3661_v6  ;;  %v3670_v15 = vld [vmem:[%s4867_s1 + $0x98] sm:$0xff]   ;;  %v3674_v19 = vld [vmem:[%s4867_s1 + $0xa0] sm:$0xff]   ;;  %v3678_v23 = vld [vmem:[%s4867_s1 + $0xa8] sm:$0xff]  }
   0x9   :  { %3296 = vmatpush3.bf16.msra.mxu1 %v3662_v7  ;;  %3275 = vmatprep.subr.bf16.mxu0 %v3663_v8  ;;  %v3679_v24 = vld [vmem:[%s4867_s1 + $0x70] sm:$0xff]   ;;  %v3683_v28 = vld [vmem:[%s4867_s1 + $0x78] sm:$0xff]   ;;  %v22_v32 = vld [vmem:[%s4866_s0] sm:$0xff] }
   0xa   :  { %3297 = vmatprep.subr.bf16.mxu1 %v3664_v9  ;;  %v3680_v25 = vld [vmem:[%s4867_s1 + $0xf0] sm:$0xff]   ;;  %v3684_v29 = vld [vmem:[%s4867_s1 + $0xf8] sm:$0xff]   ;;  %v23_v33 = vld [vmem:[%s4866_s0 + $0x8] sm:$0xff]  ;;  %v2974_v34 = vcombine.low %v22_v32, %v22_v32  ;;  %v2975_v35 = vcombine.high %v22_v32, %v22_v32 }
   0xb   :  { %v3681_v26 = vld [vmem:[%s4867_s1 + $0x30] sm:$0xff]   ;;  %v3685_v30 = vld [vmem:[%s4867_s1 + $0x38] sm:$0xff]   ;;  %v2976_v36 = vcombine.low %v23_v33, %v23_v33  ;;  %v2977_v37 = vcombine.high %v23_v33, %v23_v33  ;;  %v3691_v38 = vld [vmem:[%s4867_s1 + $0x140] sm:$0xff]  }
   0xc   :  { %3276 = vmatpush3.bf16.msra.mxu0 %v3665_v10  ;;  %v3682_v27 = vld [vmem:[%s4867_s1 + $0xb0] sm:$0xff]   ;;  %v3686_v31 = vld [vmem:[%s4867_s1 + $0xb8] sm:$0xff]   ;;  %v3692_v39 = vld [vmem:[%s4867_s1 + $0x1c0] sm:$0xff]   ;;  %2237 = vmatprep.mubr.bf16.mxu0 %v2975_v35 }
   0xd   :  { %3298 = vmatpush3.bf16.msra.mxu1 %v3666_v11  ;;  %3277 = vmatprep.subr.bf16.mxu0 %v3667_v12  ;;  %v3693_v40 = vld [vmem:[%s4867_s1 + $0x100] sm:$0xff]   ;;  %v3695_v42 = vld [vmem:[%s4867_s1 + $0x148] sm:$0xff]   ;;  %v3699_v46 = vld [vmem:[%s4867_s1 + $0x150] sm:$0xff]  }
   0xe   :  { %3299 = vmatprep.subr.bf16.mxu1 %v3668_v13  ;;  %2277 = vmatprep.mubr.bf16.mxu1 %v2977_v37  ;;  %v3694_v41 = vld [vmem:[%s4867_s1 + $0x180] sm:$0xff]   ;;  %v3696_v43 = vld [vmem:[%s4867_s1 + $0x1c8] sm:$0xff]   ;;  %v3700_v47 = vld [vmem:[%s4867_s1 + $0x1d0] sm:$0xff]  }
   0xf   :  { %v3697_v44 = vld [vmem:[%s4867_s1 + $0x108] sm:$0xff]   ;;  %v3701_v48 = vld [vmem:[%s4867_s1 + $0x110] sm:$0xff]   ;;  %v3703_v50 = vld [vmem:[%s4867_s1 + $0x158] sm:$0xff]  }
  0x10   :  { %3278 = vmatpush3.bf16.msra.mxu0 %v3669_v14  ;;  %v3698_v45 = vld [vmem:[%s4867_s1 + $0x188] sm:$0xff]   ;;  %v3702_v49 = vld [vmem:[%s4867_s1 + $0x190] sm:$0xff]   ;;  %v3704_v51 = vld [vmem:[%s4867_s1 + $0x1d8] sm:$0xff]  }
  0x11   :  { %3300 = vmatpush3.bf16.msra.mxu1 %v3670_v15  ;;  %3279 = vmatprep.subr.bf16.mxu0 %v3671_v16  ;;  %v3705_v52 = vld [vmem:[%s4867_s1 + $0x118] sm:$0xff]   ;;  %v3707_v54 = vld [vmem:[%s4867_s1 + $0x160] sm:$0xff]   ;;  %v3711_v58 = vld [vmem:[%s4867_s1 + $0x168] sm:$0xff]  }
  0x12   :  { %3301 = vmatprep.subr.bf16.mxu1 %v3672_v17  ;;  %v3706_v53 = vld [vmem:[%s4867_s1 + $0x198] sm:$0xff]   ;;  %v3708_v55 = vld [vmem:[%s4867_s1 + $0x1e0] sm:$0xff]   ;;  %v3712_v59 = vld [vmem:[%s4867_s1 + $0x1e8] sm:$0xff]  }
  0x13   :  { %v3709_v56 = vld [vmem:[%s4867_s1 + $0x120] sm:$0xff]   ;;  %v3713_v60 = vld [vmem:[%s4867_s1 + $0x128] sm:$0xff]   ;;  %v3715_v62 = vld [vmem:[%s4867_s1 + $0x170] sm:$0xff]  }
  0x14   :  { %3280 = vmatpush3.bf16.msra.mxu0 %v3673_v18  ;;  %v3710_v57 = vld [vmem:[%s4867_s1 + $0x1a0] sm:$0xff]   ;;  %v3714_v61 = vld [vmem:[%s4867_s1 + $0x1a8] sm:$0xff]   ;;  %v3716_v63 = vld [vmem:[%s4867_s1 + $0x1f0] sm:$0xff]  }
  0x15   :  { %3302 = vmatpush3.bf16.msra.mxu1 %v3674_v19  ;;  %3281 = vmatprep.subr.bf16.mxu0 %v3675_v20  ;;  %v3717_v0 = vld [vmem:[%s4867_s1 + $0x130] sm:$0xff]   ;;  %v3719_v2 = vld [vmem:[%s4867_s1 + $0x178] sm:$0xff]   ;;  %v3727_v12 = vld [vmem:[%s4867_s1 + $0x240] sm:$0xff]  }
  0x16   :  { %3303 = vmatprep.subr.bf16.mxu1 %v3676_v21  ;;  %v3718_v1 = vld [vmem:[%s4867_s1 + $0x1b0] sm:$0xff]   ;;  %v3720_v3 = vld [vmem:[%s4867_s1 + $0x1f8] sm:$0xff]   ;;  %v3728_v13 = vld [vmem:[%s4867_s1 + $0x2c0] sm:$0xff]  }
  0x17   :  { %v3721_v4 = vld [vmem:[%s4867_s1 + $0x138] sm:$0xff]   ;;  %v24_v6 = vld [vmem:[%s4866_s0 + $0x10] sm:$0xff]  ;;  %v3729_v14 = vld [vmem:[%s4867_s1 + $0x200] sm:$0xff]  }
  0x18   :  { %3282 = vmatpush3.bf16.msra.mxu0 %v3677_v22  ;;  %v3722_v5 = vld [vmem:[%s4867_s1 + $0x1b8] sm:$0xff]   ;;  %v2978_v7 = vcombine.low %v24_v6, %v24_v6  ;;  %v2979_v8 = vcombine.high %v24_v6, %v24_v6  ;;  %v3730_v15 = vld [vmem:[%s4867_s1 + $0x280] sm:$0xff]   ;;  %v3731_v16 = vld [vmem:[%s4867_s1 + $0x248] sm:$0xff]  }
  0x19   :  { %3304 = vmatpush3.bf16.msra.mxu1 %v3678_v23  ;;  %3283 = vmatprep.subr.bf16.mxu0 %v3679_v24  ;;  %v25_v9 = vld [vmem:[%s4866_s0 + $0x18] sm:$0xff]  ;;  %v3732_v17 = vld [vmem:[%s4867_s1 + $0x2c8] sm:$0xff]   ;;  %v3735_v20 = vld [vmem:[%s4867_s1 + $0x250] sm:$0xff]  }
  0x1a   :  { %3305 = vmatprep.subr.bf16.mxu1 %v3680_v25  ;;  %v2980_v10 = vcombine.low %v25_v9, %v25_v9  ;;  %v2981_v11 = vcombine.high %v25_v9, %v25_v9  ;;  %v3733_v18 = vld [vmem:[%s4867_s1 + $0x208] sm:$0xff]   ;;  %v3736_v21 = vld [vmem:[%s4867_s1 + $0x2d0] sm:$0xff]   ;;  %v3739_v24 = vld [vmem:[%s4867_s1 + $0x258] sm:$0xff]  }
  0x1b   :  { %v3734_v19 = vld [vmem:[%s4867_s1 + $0x288] sm:$0xff]   ;;  %v3737_v22 = vld [vmem:[%s4867_s1 + $0x210] sm:$0xff]   ;;  %v3740_v25 = vld [vmem:[%s4867_s1 + $0x2d8] sm:$0xff]  }
  0x1c   :  { %3284 = vmatpush3.bf16.msra.mxu0 %v3681_v26  ;;  %v3738_v23 = vld [vmem:[%s4867_s1 + $0x290] sm:$0xff]   ;;  %v3741_v26 = vld [vmem:[%s4867_s1 + $0x218] sm:$0xff]   ;;  %v3747_v32 = vld [vmem:[%s4867_s1 + $0x268] sm:$0xff]  }
  0x1d   :  { %3306 = vmatpush3.bf16.msra.mxu1 %v3682_v27  ;;  %3285 = vmatprep.subr.bf16.mxu0 %v3683_v28  ;;  %v3742_v27 = vld [vmem:[%s4867_s1 + $0x298] sm:$0xff]   ;;  %v3743_v28 = vld [vmem:[%s4867_s1 + $0x260] sm:$0xff]   ;;  %v3748_v33 = vld [vmem:[%s4867_s1 + $0x2e8] sm:$0xff]  }
  0x1e   :  { %3307 = vmatprep.subr.bf16.mxu1 %v3684_v29  ;;  %v3744_v29 = vld [vmem:[%s4867_s1 + $0x2e0] sm:$0xff]   ;;  %v3750_v35 = vld [vmem:[%s4867_s1 + $0x2a8] sm:$0xff]   ;;  %v3752_v37 = vld [vmem:[%s4867_s1 + $0x2f0] sm:$0xff]  }
  0x1f   :  { %v3783_v6 = vld [vmem:[%s4867_s1 + $0x368] sm:$0xff]  }
  0x20   :  { %3286 = vmatpush3.bf16.msra.mxu0 %v3685_v30  ;;  %v3745_v30 = vld [vmem:[%s4867_s1 + $0x220] sm:$0xff]   ;;  %v3786_v9 = vld [vmem:[%s4867_s1 + $0x3a8] sm:$0xff]  }
  0x21   :  { %3308 = vmatpush3.bf16.msra.mxu1 %v3686_v31  ;;  %3315 = vmatprep.subr.bf16.mxu0 %v3691_v38  ;;  %v3746_v31 = vld [vmem:[%s4867_s1 + $0x2a0] sm:$0xff]   ;;  %v3753_v38 = vld [vmem:[%s4867_s1 + $0x230] sm:$0xff]  }
  0x22   :  { %3337 = vmatprep.subr.bf16.mxu1 %v3692_v39  ;;  %v3754_v39 = vld [vmem:[%s4867_s1 + $0x2b0] sm:$0xff]  }
  0x23   :  { %2238 = vmatmul.mubr.bf16.vlgmr.msra.gmra.mrb[0].mxu0 %v2974_v34  ;;  %v3749_v34 = vld [vmem:[%s4867_s1 + $0x228] sm:$0xff]  }
  0x24   :  { %2278 = vmatmul.mubr.bf16.vlgmr.msra.gmra.mrb[0].mxu1 %v2976_v36  ;;  %3316 = vmatpush3.bf16.msra.mxu0 %v3693_v40  ;;  %v3751_v36 = vld [vmem:[%s4867_s1 + $0x270] sm:$0xff]   ;;  %v3755_v40 = vld [vmem:[%s4867_s1 + $0x278] sm:$0xff]  }
  0x25   :  { %3338 = vmatpush3.bf16.msra.mxu1 %v3694_v41  ;;  %3317 = vmatprep.subr.bf16.mxu0 %v3695_v42  ;;  %v3756_v41 = vld [vmem:[%s4867_s1 + $0x2f8] sm:$0xff]  }
  0x26   :  { %3339 = vmatprep.subr.bf16.mxu1 %v3696_v43  ;;  %2317 = vmatprep.mubr.bf16.mxu0 %v2979_v8  ;;  %v3757_v42 = vld [vmem:[%s4867_s1 + $0x238] sm:$0xff]   ;;  %v3785_v8 = vld [vmem:[%s4867_s1 + $0x328] sm:$0xff]  }
  0x27   :  { %2357 = vmatprep.mubr.bf16.mxu1 %v2981_v11  ;;  %v3758_v43 = vld [vmem:[%s4867_s1 + $0x2b8] sm:$0xff]   ;;  %v3788_v11 = vld [vmem:[%s4867_s1 + $0x3f0] sm:$0xff]  }
  0x28   :  { %3318 = vmatpush3.bf16.msra.mxu0 %v3697_v44  ;;  %v26_v44 = vld [vmem:[%s4866_s0 + $0x20] sm:$0xff] }
  0x29   :  { %3340 = vmatpush3.bf16.msra.mxu1 %v3698_v45  ;;  %3319 = vmatprep.subr.bf16.mxu0 %v3699_v46  ;;  %v27_v45 = vld [vmem:[%s4866_s0 + $0x28] sm:$0xff]  ;;  %v2982_v46 = vcombine.low %v26_v44, %v26_v44 }
  0x2a   :  { %3341 = vmatprep.subr.bf16.mxu1 %v3700_v47  ;;  %v2983_v47 = vcombine.high %v26_v44, %v26_v44  ;;  %v3819_v44 = vld [vmem:[%s4867_s1 + $0x468] sm:$0xff]  }
  0x2c   :  { %3320 = vmatpush3.bf16.msra.mxu0 %v3701_v48  ;;  %v2984_v48 = vcombine.low %v27_v45, %v27_v45 }
  0x2d   :  { %3342 = vmatpush3.bf16.msra.mxu1 %v3702_v49  ;;  %3321 = vmatprep.subr.bf16.mxu0 %v3703_v50  ;;  %v2985_v49 = vcombine.high %v27_v45, %v27_v45  ;;  %v3763_v50 = vld [vmem:[%s4867_s1 + $0x340] sm:$0xff]   ;;  %v3820_v45 = vld [vmem:[%s4867_s1 + $0x4e8] sm:$0xff]  }
  0x2e   :  { %3343 = vmatprep.subr.bf16.mxu1 %v3704_v51  ;;  %v3764_v51 = vld [vmem:[%s4867_s1 + $0x3c0] sm:$0xff]  }
  0x30   :  { %3322 = vmatpush3.bf16.msra.mxu0 %v3705_v52  ;;  %v3765_v52 = vld [vmem:[%s4867_s1 + $0x300] sm:$0xff]  }
  0x31   :  { %3344 = vmatpush3.bf16.msra.mxu1 %v3706_v53  ;;  %3323 = vmatprep.subr.bf16.mxu0 %v3707_v54  ;;  %v3766_v53 = vld [vmem:[%s4867_s1 + $0x380] sm:$0xff]   ;;  %v3767_v54 = vld [vmem:[%s4867_s1 + $0x348] sm:$0xff]  }
  0x32   :  { %3345 = vmatprep.subr.bf16.mxu1 %v3708_v55  ;;  %v3768_v55 = vld [vmem:[%s4867_s1 + $0x3c8] sm:$0xff]  }
  0x34   :  { %3324 = vmatpush3.bf16.msra.mxu0 %v3709_v56  ;;  %v3769_v56 = vld [vmem:[%s4867_s1 + $0x308] sm:$0xff]  }
  0x35   :  { %3346 = vmatpush3.bf16.msra.mxu1 %v3710_v57  ;;  %3325 = vmatprep.subr.bf16.mxu0 %v3711_v58  ;;  %v3770_v57 = vld [vmem:[%s4867_s1 + $0x388] sm:$0xff]   ;;  %v3771_v58 = vld [vmem:[%s4867_s1 + $0x350] sm:$0xff]  }
  0x36   :  { %3347 = vmatprep.subr.bf16.mxu1 %v3712_v59  ;;  %v3772_v59 = vld [vmem:[%s4867_s1 + $0x3d0] sm:$0xff]  }
  0x38   :  { %3326 = vmatpush3.bf16.msra.mxu0 %v3713_v60  ;;  %v3773_v60 = vld [vmem:[%s4867_s1 + $0x310] sm:$0xff]  }
  0x39   :  { %3348 = vmatpush3.bf16.msra.mxu1 %v3714_v61  ;;  %3327 = vmatprep.subr.bf16.mxu0 %v3715_v62  ;;  %v3774_v61 = vld [vmem:[%s4867_s1 + $0x390] sm:$0xff]   ;;  %v3775_v62 = vld [vmem:[%s4867_s1 + $0x358] sm:$0xff]  }
  0x3a   :  { %3349 = vmatprep.subr.bf16.mxu1 %v3716_v63  ;;  %v3776_v63 = vld [vmem:[%s4867_s1 + $0x3d8] sm:$0xff]  }
  0x3c   :  { %3328 = vmatpush3.bf16.msra.mxu0 %v3717_v0  ;;  %v3777_v0 = vld [vmem:[%s4867_s1 + $0x318] sm:$0xff]  }
  0x3d   :  { %3350 = vmatpush3.bf16.msra.mxu1 %v3718_v1  ;;  %3329 = vmatprep.subr.bf16.mxu0 %v3719_v2  ;;  %v3778_v1 = vld [vmem:[%s4867_s1 + $0x398] sm:$0xff]   ;;  %v3779_v2 = vld [vmem:[%s4867_s1 + $0x360] sm:$0xff]  }
  0x3e   :  { %3351 = vmatprep.subr.bf16.mxu1 %v3720_v3  ;;  %v3780_v3 = vld [vmem:[%s4867_s1 + $0x3e0] sm:$0xff]  }
  0x40   :  { %3330 = vmatpush3.bf16.msra.mxu0 %v3721_v4  ;;  %v3781_v4 = vld [vmem:[%s4867_s1 + $0x320] sm:$0xff]  }
  0x41   :  { %3352 = vmatpush3.bf16.msra.mxu1 %v3722_v5  ;;  %3359 = vmatprep.subr.bf16.mxu0 %v3727_v12  ;;  %v3782_v5 = vld [vmem:[%s4867_s1 + $0x3a0] sm:$0xff]   ;;  %v3789_v12 = vld [vmem:[%s4867_s1 + $0x330] sm:$0xff]  }
  0x42   :  { %3381 = vmatprep.subr.bf16.mxu1 %v3728_v13  ;;  %v3790_v13 = vld [vmem:[%s4867_s1 + $0x3b0] sm:$0xff]  }
  0x43   :  { %2318 = vmatmul.mubr.bf16.vlgmr.msra.gmra.mrb[4].mxu0 %v2978_v7  ;;  %v3784_v7 = vld [vmem:[%s4867_s1 + $0x3e8] sm:$0xff]  }
  0x44   :  { %2358 = vmatmul.mubr.bf16.vlgmr.msra.gmra.mrb[4].mxu1 %v2980_v10  ;;  %3360 = vmatpush3.bf16.msra.mxu0 %v3729_v14  ;;  %v3787_v10 = vld [vmem:[%s4867_s1 + $0x370] sm:$0xff]   ;;  %v3791_v14 = vld [vmem:[%s4867_s1 + $0x378] sm:$0xff]  }
  0x45   :  { %3382 = vmatpush3.bf16.msra.mxu1 %v3730_v15  ;;  %3361 = vmatprep.subr.bf16.mxu0 %v3731_v16  ;;  %v3792_v15 = vld [vmem:[%s4867_s1 + $0x3f8] sm:$0xff]  }
  0x46   :  { %3383 = vmatprep.subr.bf16.mxu1 %v3732_v17  ;;  %2397 = vmatprep.mubr.bf16.mxu0 %v2983_v47  ;;  %v3793_v16 = vld [vmem:[%s4867_s1 + $0x338] sm:$0xff]   ;;  %v3822_v47 = vld [vmem:[%s4867_s1 + $0x4a8] sm:$0xff]  }
  0x47   :  { %2437 = vmatprep.mubr.bf16.mxu1 %v2985_v49  ;;  %v3794_v17 = vld [vmem:[%s4867_s1 + $0x3b8] sm:$0xff]   ;;  %v3824_v49 = vld [vmem:[%s4867_s1 + $0x4f0] sm:$0xff]  }
  0x48   :  { %3362 = vmatpush3.bf16.msra.mxu0 %v3733_v18  ;;  %v28_v18 = vld [vmem:[%s4866_s0 + $0x30] sm:$0xff] }
  0x49   :  { %3384 = vmatpush3.bf16.msra.mxu1 %v3734_v19  ;;  %3363 = vmatprep.subr.bf16.mxu0 %v3735_v20  ;;  %v29_v19 = vld [vmem:[%s4866_s0 + $0x38] sm:$0xff]  ;;  %v2986_v20 = vcombine.low %v28_v18, %v28_v18 }
  0x4a   :  { %3385 = vmatprep.subr.bf16.mxu1 %v3736_v21  ;;  %v2987_v21 = vcombine.high %v28_v18, %v28_v18  ;;  %v3855_v18 = vld [vmem:[%s4867_s1 + $0x568] sm:$0xff]  }
  0x4c   :  { %3364 = vmatpush3.bf16.msra.mxu0 %v3737_v22  ;;  %v2988_v22 = vcombine.low %v29_v19, %v29_v19 }
  0x4d   :  { %3386 = vmatpush3.bf16.msra.mxu1 %v3738_v23  ;;  %3365 = vmatprep.subr.bf16.mxu0 %v3739_v24  ;;  %v3799_v23 = vld [vmem:[%s4867_s1 + $0x440] sm:$0xff]   ;;  %v2989_v24 = vcombine.high %v29_v19, %v29_v19  ;;  %v3856_v19 = vld [vmem:[%s4867_s1 + $0x5e8] sm:$0xff]  }
  0x4e   :  { %3387 = vmatprep.subr.bf16.mxu1 %v3740_v25  ;;  %v3800_v25 = vld [vmem:[%s4867_s1 + $0x4c0] sm:$0xff]  }
  0x50   :  { %3366 = vmatpush3.bf16.msra.mxu0 %v3741_v26  ;;  %v3801_v26 = vld [vmem:[%s4867_s1 + $0x400] sm:$0xff]  }
  0x51   :  { %3388 = vmatpush3.bf16.msra.mxu1 %v3742_v27  ;;  %3367 = vmatprep.subr.bf16.mxu0 %v3743_v28  ;;  %v3802_v27 = vld [vmem:[%s4867_s1 + $0x480] sm:$0xff]   ;;  %v3803_v28 = vld [vmem:[%s4867_s1 + $0x448] sm:$0xff]  }
  0x52   :  { %3389 = vmatprep.subr.bf16.mxu1 %v3744_v29  ;;  %v3804_v29 = vld [vmem:[%s4867_s1 + $0x4c8] sm:$0xff]  }
  0x54   :  { %3368 = vmatpush3.bf16.msra.mxu0 %v3745_v30  ;;  %v3805_v30 = vld [vmem:[%s4867_s1 + $0x408] sm:$0xff]  }
  0x55   :  { %3390 = vmatpush3.bf16.msra.mxu1 %v3746_v31  ;;  %3369 = vmatprep.subr.bf16.mxu0 %v3747_v32  ;;  %v3806_v31 = vld [vmem:[%s4867_s1 + $0x488] sm:$0xff]   ;;  %v3807_v32 = vld [vmem:[%s4867_s1 + $0x450] sm:$0xff]  }
  0x56   :  { %3391 = vmatprep.subr.bf16.mxu1 %v3748_v33  ;;  %v3808_v33 = vld [vmem:[%s4867_s1 + $0x4d0] sm:$0xff]  }
  0x58   :  { %3370 = vmatpush3.bf16.msra.mxu0 %v3749_v34  ;;  %v3809_v34 = vld [vmem:[%s4867_s1 + $0x410] sm:$0xff]  }
  0x59   :  { %3392 = vmatpush3.bf16.msra.mxu1 %v3750_v35  ;;  %3371 = vmatprep.subr.bf16.mxu0 %v3751_v36  ;;  %v3810_v35 = vld [vmem:[%s4867_s1 + $0x490] sm:$0xff]   ;;  %v3811_v36 = vld [vmem:[%s4867_s1 + $0x458] sm:$0xff]  }
  0x5a   :  { %3393 = vmatprep.subr.bf16.mxu1 %v3752_v37  ;;  %v3812_v37 = vld [vmem:[%s4867_s1 + $0x4d8] sm:$0xff]  }
  0x5c   :  { %3372 = vmatpush3.bf16.msra.mxu0 %v3753_v38  ;;  %v3813_v38 = vld [vmem:[%s4867_s1 + $0x418] sm:$0xff]  }
  0x5d   :  { %3394 = vmatpush3.bf16.msra.mxu1 %v3754_v39  ;;  %3373 = vmatprep.subr.bf16.mxu0 %v3755_v40  ;;  %v3814_v39 = vld [vmem:[%s4867_s1 + $0x498] sm:$0xff]   ;;  %v3815_v40 = vld [vmem:[%s4867_s1 + $0x460] sm:$0xff]  }
  0x5e   :  { %3395 = vmatprep.subr.bf16.mxu1 %v3756_v41  ;;  %v3816_v41 = vld [vmem:[%s4867_s1 + $0x4e0] sm:$0xff]  }
  0x60   :  { %3374 = vmatpush3.bf16.msra.mxu0 %v3757_v42  ;;  %v3817_v42 = vld [vmem:[%s4867_s1 + $0x420] sm:$0xff]  }
  0x61   :  { %3396 = vmatpush3.bf16.msra.mxu1 %v3758_v43  ;;  %3403 = vmatprep.subr.bf16.mxu0 %v3763_v50  ;;  %v3818_v43 = vld [vmem:[%s4867_s1 + $0x4a0] sm:$0xff]   ;;  %v3825_v50 = vld [vmem:[%s4867_s1 + $0x430] sm:$0xff]  }
  0x62   :  { %3425 = vmatprep.subr.bf16.mxu1 %v3764_v51  ;;  %v3826_v51 = vld [vmem:[%s4867_s1 + $0x4b0] sm:$0xff]  }
  0x63   :  { %2398 = vmatmul.mubr.bf16.vlgmr.msra.gmra.mrb[8].mxu0 %v2982_v46  ;;  %v3821_v46 = vld [vmem:[%s4867_s1 + $0x428] sm:$0xff]  }
  0x64   :  { %2438 = vmatmul.mubr.bf16.vlgmr.msra.gmra.mrb[8].mxu1 %v2984_v48  ;;  %3404 = vmatpush3.bf16.msra.mxu0 %v3765_v52  ;;  %v3823_v48 = vld [vmem:[%s4867_s1 + $0x470] sm:$0xff]   ;;  %v3827_v52 = vld [vmem:[%s4867_s1 + $0x478] sm:$0xff]  }
  0x65   :  { %3426 = vmatpush3.bf16.msra.mxu1 %v3766_v53  ;;  %3405 = vmatprep.subr.bf16.mxu0 %v3767_v54  ;;  %v3828_v53 = vld [vmem:[%s4867_s1 + $0x4f8] sm:$0xff]  }
  0x66   :  { %3427 = vmatprep.subr.bf16.mxu1 %v3768_v55  ;;  %2477 = vmatprep.mubr.bf16.mxu0 %v2987_v21  ;;  %v3829_v54 = vld [vmem:[%s4867_s1 + $0x438] sm:$0xff]   ;;  %v3858_v21 = vld [vmem:[%s4867_s1 + $0x5a8] sm:$0xff]  }
  0x67   :  { %2517 = vmatprep.mubr.bf16.mxu1 %v2989_v24  ;;  %v3830_v55 = vld [vmem:[%s4867_s1 + $0x4b8] sm:$0xff]   ;;  %v3861_v24 = vld [vmem:[%s4867_s1 + $0x530] sm:$0xff]  }
  0x68   :  { %3406 = vmatpush3.bf16.msra.mxu0 %v3769_v56  ;;  %v30_v56 = vld [vmem:[%s4866_s0 + $0x40] sm:$0xff] }
  0x69   :  { %3428 = vmatpush3.bf16.msra.mxu1 %v3770_v57  ;;  %3407 = vmatprep.subr.bf16.mxu0 %v3771_v58  ;;  %v2990_v57 = vcombine.low %v30_v56, %v30_v56  ;;  %v2991_v58 = vcombine.high %v30_v56, %v30_v56  ;;  %v3891_v56 = vld [vmem:[%s4867_s1 + $0x668] sm:$0xff]  }
  0x6a   :  { %3429 = vmatprep.subr.bf16.mxu1 %v3772_v59  ;;  %v31_v59 = vld [vmem:[%s4866_s0 + $0x48] sm:$0xff] }
  0x6c   :  { %3408 = vmatpush3.bf16.msra.mxu0 %v3773_v60  ;;  %v2992_v60 = vcombine.low %v31_v59, %v31_v59 }
  0x6d   :  { %3430 = vmatpush3.bf16.msra.mxu1 %v3774_v61  ;;  %3409 = vmatprep.subr.bf16.mxu0 %v3775_v62  ;;  %v2993_v61 = vcombine.high %v31_v59, %v31_v59  ;;  %v3835_v62 = vld [vmem:[%s4867_s1 + $0x540] sm:$0xff]   ;;  %v3894_v59 = vld [vmem:[%s4867_s1 + $0x6a8] sm:$0xff]  }
  0x6e   :  { %3431 = vmatprep.subr.bf16.mxu1 %v3776_v63  ;;  %v3836_v63 = vld [vmem:[%s4867_s1 + $0x5c0] sm:$0xff]  }
  0x70   :  { %3410 = vmatpush3.bf16.msra.mxu0 %v3777_v0  ;;  %v3837_v0 = vld [vmem:[%s4867_s1 + $0x500] sm:$0xff]  }
  0x71   :  { %3432 = vmatpush3.bf16.msra.mxu1 %v3778_v1  ;;  %3411 = vmatprep.subr.bf16.mxu0 %v3779_v2  ;;  %v3838_v1 = vld [vmem:[%s4867_s1 + $0x580] sm:$0xff]   ;;  %v3839_v2 = vld [vmem:[%s4867_s1 + $0x548] sm:$0xff]  }
  0x72   :  { %3433 = vmatprep.subr.bf16.mxu1 %v3780_v3  ;;  %v3840_v3 = vld [vmem:[%s4867_s1 + $0x5c8] sm:$0xff]  }
  0x74   :  { %3412 = vmatpush3.bf16.msra.mxu0 %v3781_v4  ;;  %v3841_v4 = vld [vmem:[%s4867_s1 + $0x508] sm:$0xff]  }
  0x75   :  { %3434 = vmatpush3.bf16.msra.mxu1 %v3782_v5  ;;  %3413 = vmatprep.subr.bf16.mxu0 %v3783_v6  ;;  %v3842_v5 = vld [vmem:[%s4867_s1 + $0x588] sm:$0xff]   ;;  %v3843_v6 = vld [vmem:[%s4867_s1 + $0x550] sm:$0xff]  }
  0x76   :  { %3435 = vmatprep.subr.bf16.mxu1 %v3784_v7  ;;  %v3844_v7 = vld [vmem:[%s4867_s1 + $0x5d0] sm:$0xff]  }
  0x78   :  { %3414 = vmatpush3.bf16.msra.mxu0 %v3785_v8  ;;  %v3845_v8 = vld [vmem:[%s4867_s1 + $0x510] sm:$0xff]  }
  0x79   :  { %3436 = vmatpush3.bf16.msra.mxu1 %v3786_v9  ;;  %3415 = vmatprep.subr.bf16.mxu0 %v3787_v10  ;;  %v3846_v9 = vld [vmem:[%s4867_s1 + $0x590] sm:$0xff]   ;;  %v3847_v10 = vld [vmem:[%s4867_s1 + $0x558] sm:$0xff]  }
  0x7a   :  { %3437 = vmatprep.subr.bf16.mxu1 %v3788_v11  ;;  %v3848_v11 = vld [vmem:[%s4867_s1 + $0x5d8] sm:$0xff]  }
  0x7c   :  { %3416 = vmatpush3.bf16.msra.mxu0 %v3789_v12  ;;  %v3849_v12 = vld [vmem:[%s4867_s1 + $0x518] sm:$0xff]  }
  0x7d   :  { %3438 = vmatpush3.bf16.msra.mxu1 %v3790_v13  ;;  %3417 = vmatprep.subr.bf16.mxu0 %v3791_v14  ;;  %v3850_v13 = vld [vmem:[%s4867_s1 + $0x598] sm:$0xff]   ;;  %v3851_v14 = vld [vmem:[%s4867_s1 + $0x560] sm:$0xff]  }
  0x7e   :  { %3439 = vmatprep.subr.bf16.mxu1 %v3792_v15  ;;  %v3852_v15 = vld [vmem:[%s4867_s1 + $0x5e0] sm:$0xff]  }
  0x80   :  { %3418 = vmatpush3.bf16.msra.mxu0 %v3793_v16  ;;  %v3853_v16 = vld [vmem:[%s4867_s1 + $0x520] sm:$0xff]  }
  0x81   :  { %3440 = vmatpush3.bf16.msra.mxu1 %v3794_v17  ;;  %3447 = vmatprep.subr.bf16.mxu0 %v3799_v23  ;;  %v3854_v17 = vld [vmem:[%s4867_s1 + $0x5a0] sm:$0xff]   ;;  %v3860_v23 = vld [vmem:[%s4867_s1 + $0x5f0] sm:$0xff]  }
  0x82   :  { %3469 = vmatprep.subr.bf16.mxu1 %v3800_v25  ;;  %v3862_v25 = vld [vmem:[%s4867_s1 + $0x5b0] sm:$0xff]  }
  0x83   :  { %2478 = vmatmul.mubr.bf16.vlgmr.msra.gmra.mrb[12].mxu0 %v2986_v20  ;;  %v3857_v20 = vld [vmem:[%s4867_s1 + $0x528] sm:$0xff]  }
  0x84   :  { %2518 = vmatmul.mubr.bf16.vlgmr.msra.gmra.mrb[12].mxu1 %v2988_v22  ;;  %3448 = vmatpush3.bf16.msra.mxu0 %v3801_v26  ;;  %v3859_v22 = vld [vmem:[%s4867_s1 + $0x570] sm:$0xff]   ;;  %v3863_v26 = vld [vmem:[%s4867_s1 + $0x578] sm:$0xff]  }
  0x85   :  { %3470 = vmatpush3.bf16.msra.mxu1 %v3802_v27  ;;  %3449 = vmatprep.subr.bf16.mxu0 %v3803_v28  ;;  %v3864_v27 = vld [vmem:[%s4867_s1 + $0x5f8] sm:$0xff]  }
  0x86   :  { %3471 = vmatprep.subr.bf16.mxu1 %v3804_v29  ;;  %2557 = vmatprep.mubr.bf16.mxu0 %v2991_v58  ;;  %v3865_v28 = vld [vmem:[%s4867_s1 + $0x538] sm:$0xff]   ;;  %v3893_v58 = vld [vmem:[%s4867_s1 + $0x628] sm:$0xff]  }
  0x87   :  { %2597 = vmatprep.mubr.bf16.mxu1 %v2993_v61  ;;  %v3866_v29 = vld [vmem:[%s4867_s1 + $0x5b8] sm:$0xff]   ;;  %v3896_v61 = vld [vmem:[%s4867_s1 + $0x6f0] sm:$0xff]  }
  0x88   :  { %3450 = vmatpush3.bf16.msra.mxu0 %v3805_v30  ;;  %v32_v30 = vld [vmem:[%s4866_s0 + $0x50] sm:$0xff] }
  0x89   :  { %3472 = vmatpush3.bf16.msra.mxu1 %v3806_v31  ;;  %3451 = vmatprep.subr.bf16.mxu0 %v3807_v32  ;;  %v33_v31 = vld [vmem:[%s4866_s0 + $0x58] sm:$0xff]  ;;  %v2994_v32 = vcombine.low %v32_v30, %v32_v30 }
  0x8a   :  { %3473 = vmatprep.subr.bf16.mxu1 %v3808_v33  ;;  %v2995_v33 = vcombine.high %v32_v30, %v32_v30  ;;  %v3926_v30 = vld [vmem:[%s4867_s1 + $0x7a0] sm:$0xff]  }
  0x8c   :  { %3452 = vmatpush3.bf16.msra.mxu0 %v3809_v34  ;;  %v2996_v34 = vcombine.low %v33_v31, %v33_v31 }
  0x8d   :  { %3474 = vmatpush3.bf16.msra.mxu1 %v3810_v35  ;;  %3453 = vmatprep.subr.bf16.mxu0 %v3811_v36  ;;  %v2997_v35 = vcombine.high %v33_v31, %v33_v31  ;;  %v3871_v36 = vld [vmem:[%s4867_s1 + $0x640] sm:$0xff]  }
  0x8e   :  { %3475 = vmatprep.subr.bf16.mxu1 %v3812_v37  ;;  %v3872_v37 = vld [vmem:[%s4867_s1 + $0x6c0] sm:$0xff]  }
  0x90   :  { %3454 = vmatpush3.bf16.msra.mxu0 %v3813_v38  ;;  %v3873_v38 = vld [vmem:[%s4867_s1 + $0x600] sm:$0xff]  }
  0x91   :  { %3476 = vmatpush3.bf16.msra.mxu1 %v3814_v39  ;;  %3455 = vmatprep.subr.bf16.mxu0 %v3815_v40  ;;  %v3874_v39 = vld [vmem:[%s4867_s1 + $0x680] sm:$0xff]   ;;  %v3875_v40 = vld [vmem:[%s4867_s1 + $0x648] sm:$0xff]  }
  0x92   :  { %3477 = vmatprep.subr.bf16.mxu1 %v3816_v41  ;;  %v3876_v41 = vld [vmem:[%s4867_s1 + $0x6c8] sm:$0xff]  }
  0x94   :  { %3456 = vmatpush3.bf16.msra.mxu0 %v3817_v42  ;;  %v3877_v42 = vld [vmem:[%s4867_s1 + $0x608] sm:$0xff]  }
  0x95   :  { %3478 = vmatpush3.bf16.msra.mxu1 %v3818_v43  ;;  %3457 = vmatprep.subr.bf16.mxu0 %v3819_v44  ;;  %v3878_v43 = vld [vmem:[%s4867_s1 + $0x688] sm:$0xff]   ;;  %v3879_v44 = vld [vmem:[%s4867_s1 + $0x650] sm:$0xff]  }
  0x96   :  { %3479 = vmatprep.subr.bf16.mxu1 %v3820_v45  ;;  %v3880_v45 = vld [vmem:[%s4867_s1 + $0x6d0] sm:$0xff]  }
  0x98   :  { %3458 = vmatpush3.bf16.msra.mxu0 %v3821_v46  ;;  %v3881_v46 = vld [vmem:[%s4867_s1 + $0x610] sm:$0xff]  }
  0x99   :  { %3480 = vmatpush3.bf16.msra.mxu1 %v3822_v47  ;;  %3459 = vmatprep.subr.bf16.mxu0 %v3823_v48  ;;  %v3882_v47 = vld [vmem:[%s4867_s1 + $0x690] sm:$0xff]   ;;  %v3883_v48 = vld [vmem:[%s4867_s1 + $0x658] sm:$0xff]  }
  0x9a   :  { %3481 = vmatprep.subr.bf16.mxu1 %v3824_v49  ;;  %v3884_v49 = vld [vmem:[%s4867_s1 + $0x6d8] sm:$0xff]  }
  0x9c   :  { %3460 = vmatpush3.bf16.msra.mxu0 %v3825_v50  ;;  %v3885_v50 = vld [vmem:[%s4867_s1 + $0x618] sm:$0xff]  }
  0x9d   :  { %3482 = vmatpush3.bf16.msra.mxu1 %v3826_v51  ;;  %3461 = vmatprep.subr.bf16.mxu0 %v3827_v52  ;;  %v3886_v51 = vld [vmem:[%s4867_s1 + $0x698] sm:$0xff]   ;;  %v3887_v52 = vld [vmem:[%s4867_s1 + $0x660] sm:$0xff]  }
  0x9e   :  { %3483 = vmatprep.subr.bf16.mxu1 %v3828_v53  ;;  %v3888_v53 = vld [vmem:[%s4867_s1 + $0x6e0] sm:$0xff]  }
  0xa0   :  { %3462 = vmatpush3.bf16.msra.mxu0 %v3829_v54  ;;  %v3889_v54 = vld [vmem:[%s4867_s1 + $0x620] sm:$0xff]  }
  0xa1   :  { %3484 = vmatpush3.bf16.msra.mxu1 %v3830_v55  ;;  %3491 = vmatprep.subr.bf16.mxu0 %v3835_v62  ;;  %v3890_v55 = vld [vmem:[%s4867_s1 + $0x6a0] sm:$0xff]   ;;  %v3897_v62 = vld [vmem:[%s4867_s1 + $0x630] sm:$0xff]  }
  0xa2   :  { %3513 = vmatprep.subr.bf16.mxu1 %v3836_v63  ;;  %v3898_v63 = vld [vmem:[%s4867_s1 + $0x6b0] sm:$0xff]  }
  0xa3   :  { %2558 = vmatmul.mubr.bf16.vlgmr.msra.gmra.mrb[16].mxu0 %v2990_v57  ;;  %v3892_v57 = vld [vmem:[%s4867_s1 + $0x6e8] sm:$0xff]  }
  0xa4   :  { %2598 = vmatmul.mubr.bf16.vlgmr.msra.gmra.mrb[16].mxu1 %v2992_v60  ;;  %3492 = vmatpush3.bf16.msra.mxu0 %v3837_v0  ;;  %v3895_v60 = vld [vmem:[%s4867_s1 + $0x670] sm:$0xff]   ;;  %v3899_v0 = vld [vmem:[%s4867_s1 + $0x678] sm:$0xff]  }
  0xa5   :  { %3514 = vmatpush3.bf16.msra.mxu1 %v3838_v1  ;;  %3493 = vmatprep.subr.bf16.mxu0 %v3839_v2  ;;  %v3900_v1 = vld [vmem:[%s4867_s1 + $0x6f8] sm:$0xff]  }
  0xa6   :  { %3515 = vmatprep.subr.bf16.mxu1 %v3840_v3  ;;  %2637 = vmatprep.mubr.bf16.mxu0 %v2995_v33  ;;  %v3901_v2 = vld [vmem:[%s4867_s1 + $0x638] sm:$0xff]  }
  0xa7   :  { %2677 = vmatprep.mubr.bf16.mxu1 %v2997_v35  ;;  %v3902_v3 = vld [vmem:[%s4867_s1 + $0x6b8] sm:$0xff]  }
  0xa8   :  { %3494 = vmatpush3.bf16.msra.mxu0 %v3841_v4  ;;  %v34_v4 = vld [vmem:[%s4866_s0 + $0x60] sm:$0xff] }
  0xa9   :  { %3516 = vmatpush3.bf16.msra.mxu1 %v3842_v5  ;;  %3495 = vmatprep.subr.bf16.mxu0 %v3843_v6  ;;  %v35_v5 = vld [vmem:[%s4866_s0 + $0x68] sm:$0xff]  ;;  %v2998_v6 = vcombine.low %v34_v4, %v34_v4 }
  0xaa   :  { %3517 = vmatprep.subr.bf16.mxu1 %v3844_v7  ;;  %v2999_v7 = vcombine.high %v34_v4, %v34_v4 }
  0xac   :  { %3496 = vmatpush3.bf16.msra.mxu0 %v3845_v8  ;;  %v3000_v8 = vcombine.low %v35_v5, %v35_v5 }
  0xad   :  { %3518 = vmatpush3.bf16.msra.mxu1 %v3846_v9  ;;  %3497 = vmatprep.subr.bf16.mxu0 %v3847_v10  ;;  %v3907_v9 = vld [vmem:[%s4867_s1 + $0x740] sm:$0xff]   ;;  %v3001_v10 = vcombine.high %v35_v5, %v35_v5 }
  0xae   :  { %3519 = vmatprep.subr.bf16.mxu1 %v3848_v11  ;;  %v3908_v11 = vld [vmem:[%s4867_s1 + $0x7c0] sm:$0xff]  }
  0xb0   :  { %3498 = vmatpush3.bf16.msra.mxu0 %v3849_v12  ;;  %v3909_v12 = vld [vmem:[%s4867_s1 + $0x700] sm:$0xff]  }
  0xb1   :  { %3520 = vmatpush3.bf16.msra.mxu1 %v3850_v13  ;;  %3499 = vmatprep.subr.bf16.mxu0 %v3851_v14  ;;  %v3910_v13 = vld [vmem:[%s4867_s1 + $0x780] sm:$0xff]   ;;  %v3911_v14 = vld [vmem:[%s4867_s1 + $0x748] sm:$0xff]  }
  0xb2   :  { %3521 = vmatprep.subr.bf16.mxu1 %v3852_v15  ;;  %v3912_v15 = vld [vmem:[%s4867_s1 + $0x7c8] sm:$0xff]  }
  0xb4   :  { %3500 = vmatpush3.bf16.msra.mxu0 %v3853_v16  ;;  %v3913_v16 = vld [vmem:[%s4867_s1 + $0x708] sm:$0xff]  }
  0xb5   :  { %3522 = vmatpush3.bf16.msra.mxu1 %v3854_v17  ;;  %3501 = vmatprep.subr.bf16.mxu0 %v3855_v18  ;;  %v3914_v17 = vld [vmem:[%s4867_s1 + $0x788] sm:$0xff]   ;;  %v3915_v18 = vld [vmem:[%s4867_s1 + $0x750] sm:$0xff]  }
  0xb6   :  { %3523 = vmatprep.subr.bf16.mxu1 %v3856_v19  ;;  %v3916_v19 = vld [vmem:[%s4867_s1 + $0x7d0] sm:$0xff]  }
  0xb8   :  { %3502 = vmatpush3.bf16.msra.mxu0 %v3857_v20  ;;  %v3917_v20 = vld [vmem:[%s4867_s1 + $0x710] sm:$0xff]  }
  0xb9   :  { %3524 = vmatpush3.bf16.msra.mxu1 %v3858_v21  ;;  %3503 = vmatprep.subr.bf16.mxu0 %v3859_v22  ;;  %v3918_v21 = vld [vmem:[%s4867_s1 + $0x790] sm:$0xff]   ;;  %v3919_v22 = vld [vmem:[%s4867_s1 + $0x758] sm:$0xff]  }
  0xba   :  { %3525 = vmatprep.subr.bf16.mxu1 %v3860_v23  ;;  %v3920_v23 = vld [vmem:[%s4867_s1 + $0x7d8] sm:$0xff]  }
  0xbc   :  { %3504 = vmatpush3.bf16.msra.mxu0 %v3861_v24  ;;  %v3921_v24 = vld [vmem:[%s4867_s1 + $0x718] sm:$0xff]  }
  0xbd   :  { %3526 = vmatpush3.bf16.msra.mxu1 %v3862_v25  ;;  %3505 = vmatprep.subr.bf16.mxu0 %v3863_v26  ;;  %v3922_v25 = vld [vmem:[%s4867_s1 + $0x798] sm:$0xff]   ;;  %v3923_v26 = vld [vmem:[%s4867_s1 + $0x760] sm:$0xff]  }
  0xbe   :  { %3527 = vmatprep.subr.bf16.mxu1 %v3864_v27  ;;  %v3924_v27 = vld [vmem:[%s4867_s1 + $0x7e0] sm:$0xff]  }
  0xc0   :  { %3506 = vmatpush3.bf16.msra.mxu0 %v3865_v28  ;;  %v3925_v28 = vld [vmem:[%s4867_s1 + $0x720] sm:$0xff]  }
  0xc1   :  { %3528 = vmatpush3.bf16.msra.mxu1 %v3866_v29  ;;  %3535 = vmatprep.subr.bf16.mxu0 %v3871_v36 }
  0xc2   :  { %3557 = vmatprep.subr.bf16.mxu1 %v3872_v37  ;;  %v3927_v37 = vld [vmem:[%s4867_s1 + $0x768] sm:$0xff]  }
  0xc3   :  { %2638 = vmatmul.mubr.bf16.vlgmr.msra.gmra.mrb[20].mxu0 %v2994_v32  ;;  %v2973_v32 = vld [vmem:[%s4868_s2] ss:$0 sm:$0xff] }
  0xc4   :  { %2678 = vmatmul.mubr.bf16.vlgmr.msra.gmra.mrb[20].mxu1 %v2996_v34  ;;  %3536 = vmatpush3.bf16.msra.mxu0 %v3873_v38 }
  0xc5   :  { %3558 = vmatpush3.bf16.msra.mxu1 %v3874_v39  ;;  %3537 = vmatprep.subr.bf16.mxu0 %v3875_v40  ;;  %v3928_v39 = vld [vmem:[%s4867_s1 + $0x7e8] sm:$0xff]  }
  0xc6   :  { %3559 = vmatprep.subr.bf16.mxu1 %v3876_v41  ;;  %2717 = vmatprep.mubr.bf16.mxu0 %v2999_v7 }
  0xc7   :  { %2757 = vmatprep.mubr.bf16.mxu1 %v3001_v10 }
  0xc8   :  { %3538 = vmatpush3.bf16.msra.mxu0 %v3877_v42  ;;  %v3929_v42 = vld [vmem:[%s4867_s1 + $0x728] sm:$0xff]  }
  0xc9   :  { %3560 = vmatpush3.bf16.msra.mxu1 %v3878_v43  ;;  %3539 = vmatprep.subr.bf16.mxu0 %v3879_v44  ;;  %v3930_v44 = vld [vmem:[%s4867_s1 + $0x7a8] sm:$0xff]  }
  0xca   :  { %3561 = vmatprep.subr.bf16.mxu1 %v3880_v45 }
  0xcc   :  { %3540 = vmatpush3.bf16.msra.mxu0 %v3881_v46 }
  0xcd   :  { %3562 = vmatpush3.bf16.msra.mxu1 %v3882_v47  ;;  %3541 = vmatprep.subr.bf16.mxu0 %v3883_v48  ;;  %v3931_v47 = vld [vmem:[%s4867_s1 + $0x770] sm:$0xff]  }
  0xce   :  { %3563 = vmatprep.subr.bf16.mxu1 %v3884_v49  ;;  %v3932_v48 = vld [vmem:[%s4867_s1 + $0x7f0] sm:$0xff]  }
  0xcf   :  { %v3933_v49 = vld [vmem:[%s4867_s1 + $0x730] sm:$0xff]  }
  0xd0   :  { %3542 = vmatpush3.bf16.msra.mxu0 %v3885_v50  ;;  %v3934_v50 = vld [vmem:[%s4867_s1 + $0x7b0] sm:$0xff]  }
  0xd1   :  { %3564 = vmatpush3.bf16.msra.mxu1 %v3886_v51  ;;  %3543 = vmatprep.subr.bf16.mxu0 %v3887_v52  ;;  %v3935_v51 = vld [vmem:[%s4867_s1 + $0x778] sm:$0xff]  }
  0xd2   :  { %3565 = vmatprep.subr.bf16.mxu1 %v3888_v53  ;;  %v3936_v52 = vld [vmem:[%s4867_s1 + $0x7f8] sm:$0xff]  }
  0xd3   :  { %v3937_v53 = vld [vmem:[%s4867_s1 + $0x738] sm:$0xff]  }
  0xd4   :  { %3544 = vmatpush3.bf16.msra.mxu0 %v3889_v54  ;;  %v3938_v54 = vld [vmem:[%s4867_s1 + $0x7b8] sm:$0xff]  }
  0xd5   :  { %3566 = vmatpush3.bf16.msra.mxu1 %v3890_v55  ;;  %3545 = vmatprep.subr.bf16.mxu0 %v3891_v56  ;;  %v36_v55 = vld [vmem:[%s4866_s0 + $0x70] sm:$0xff]  ;;  %v37_v56 = vld [vmem:[%s4866_s0 + $0x78] sm:$0xff] }
  0xd6   :  { %3567 = vmatprep.subr.bf16.mxu1 %v3892_v57  ;;  %v3002_v57 = vcombine.low %v36_v55, %v36_v55 }
  0xd8   :  { %3546 = vmatpush3.bf16.msra.mxu0 %v3893_v58  ;;  %v3003_v58 = vcombine.high %v36_v55, %v36_v55 }
  0xd9   :  { %3568 = vmatpush3.bf16.msra.mxu1 %v3894_v59  ;;  %3547 = vmatprep.subr.bf16.mxu0 %v3895_v60  ;;  %v3004_v59 = vcombine.low %v37_v56, %v37_v56  ;;  %v3005_v60 = vcombine.high %v37_v56, %v37_v56 }
  0xda   :  { %3569 = vmatprep.subr.bf16.mxu1 %v3896_v61 }
  0xdc   :  { %3548 = vmatpush3.bf16.msra.mxu0 %v3897_v62 }
  0xdd   :  { %3570 = vmatpush3.bf16.msra.mxu1 %v3898_v63  ;;  %3549 = vmatprep.subr.bf16.mxu0 %v3899_v0 }
  0xde   :  { %3571 = vmatprep.subr.bf16.mxu1 %v3900_v1 }
  0xe0   :  { %3550 = vmatpush3.bf16.msra.mxu0 %v3901_v2 }
  0xe1   :  { %3572 = vmatpush3.bf16.msra.mxu1 %v3902_v3  ;;  %3579 = vmatprep.subr.bf16.mxu0 %v3907_v9 }
  0xe2   :  { %3601 = vmatprep.subr.bf16.mxu1 %v3908_v11 }
  0xe3   :  { %2718 = vmatmul.mubr.bf16.vlgmr.msra.gmra.mrb[24].mxu0 %v2998_v6 }
  0xe4   :  { %2758 = vmatmul.mubr.bf16.vlgmr.msra.gmra.mrb[24].mxu1 %v3000_v8  ;;  %3580 = vmatpush3.bf16.msra.mxu0 %v3909_v12 }
  0xe5   :  { %3602 = vmatpush3.bf16.msra.mxu1 %v3910_v13  ;;  %3581 = vmatprep.subr.bf16.mxu0 %v3911_v14 }
  0xe6   :  { %3603 = vmatprep.subr.bf16.mxu1 %v3912_v15  ;;  %2797 = vmatprep.mubr.bf16.mxu0 %v3003_v58 }
  0xe7   :  { %2837 = vmatprep.mubr.bf16.mxu1 %v3005_v60 }
  0xe8   :  { %3582 = vmatpush3.bf16.msra.mxu0 %v3913_v16 }
  0xe9   :  { %3604 = vmatpush3.bf16.msra.mxu1 %v3914_v17  ;;  %3583 = vmatprep.subr.bf16.mxu0 %v3915_v18 }
  0xea   :  { %3605 = vmatprep.subr.bf16.mxu1 %v3916_v19 }
  0xec   :  { %3584 = vmatpush3.bf16.msra.mxu0 %v3917_v20 }
  0xed   :  { %3606 = vmatpush3.bf16.msra.mxu1 %v3918_v21  ;;  %3585 = vmatprep.subr.bf16.mxu0 %v3919_v22 }
  0xee   :  { %3607 = vmatprep.subr.bf16.mxu1 %v3920_v23 }
  0xf0   :  { %3586 = vmatpush3.bf16.msra.mxu0 %v3921_v24 }
  0xf1   :  { %3608 = vmatpush3.bf16.msra.mxu1 %v3922_v25  ;;  %3587 = vmatprep.subr.bf16.mxu0 %v3923_v26 }
  0xf2   :  { %3609 = vmatprep.subr.bf16.mxu1 %v3924_v27 }
  0xf4   :  { %3588 = vmatpush3.bf16.msra.mxu0 %v3925_v28 }
  0xf5   :  { %3610 = vmatpush3.bf16.msra.mxu1 %v3926_v30  ;;  %3589 = vmatprep.subr.bf16.mxu0 %v3927_v37 }
  0xf6   :  { %v3287_v29 = vpop.f32.mrb[0].mxu0  ;;  %3611 = vmatprep.subr.bf16.mxu1 %v3928_v39 }
  0xf7   :  { %v3309_v31 = vpop.f32.mrb[0].mxu1  ;;  %v3288_v33 = vpop.f32.mrb[1].mxu0 }
  0xf8   :  { %v3310_v34 = vpop.f32.mrb[1].mxu1  ;;  %v3289_v35 = vadd.f32 %v3288_v33, %v3287_v29  ;;  %v3290_v38 = vpop.f32.mrb[2].mxu0  ;;  %3590 = vmatpush3.bf16.msra.mxu0 %v3929_v42 }
  0xf9   :  { %v3311_v36 = vadd.f32 %v3310_v34, %v3309_v31  ;;  %v3312_v40 = vpop.f32.mrb[2].mxu1  ;;  %v3291_v43 = vpop.f32.mrb[3].mxu0  ;;  %3612 = vmatpush3.bf16.msra.mxu1 %v3930_v44  ;;  %3591 = vmatprep.subr.bf16.mxu0 %v3931_v47 }
  0xfa   :  { %v2240_v41 = vadd.f32 %v3289_v35, %v2973_v32  ;;  %v3313_v45 = vpop.f32.mrb[3].mxu1  ;;  %3613 = vmatprep.subr.bf16.mxu1 %v3932_v48 }
  0xfc   :  { %v2280_v46 = vadd.f32 %v3311_v36, %v2240_v41  ;;  %3592 = vmatpush3.bf16.msra.mxu0 %v3933_v49 }
  0xfd   :  { %3614 = vmatpush3.bf16.msra.mxu1 %v3934_v50  ;;  %3593 = vmatprep.subr.bf16.mxu0 %v3935_v51 }
  0xfe   :  { %3615 = vmatprep.subr.bf16.mxu1 %v3936_v52 }
 0x100   :  { %3594 = vmatpush3.bf16.msra.mxu0 %v3937_v53 }
 0x101   :  { %3616 = vmatpush3.bf16.msra.mxu1 %v3938_v54 }
 0x103   :  { %2798 = vmatmul.mubr.bf16.vlgmr.msra.gmra.mrb[28].mxu0 %v3002_v57 }
 0x104   :  { %2838 = vmatmul.mubr.bf16.vlgmr.msra.gmra.mrb[28].mxu1 %v3004_v59 }
 0x105   :  { %10 = vsyncpa [#allocation3], 0  ;;  %v3943_v21 = vld [vmem:[%s4869_s3] sm:$0xff]   ;;  %v3975_v22 = vmov 0.0   ;;  %v3944_v23 = vld [vmem:[%s4869_s3 + $0x8] sm:$0xff]   ;;  %vm3976_vm0 = vmmov 0  }
 0x106   :  { %3632 = vmatprep.subr.bf16.mxu0 %v3975_v22  ;;  %v3945_v24 = vld [vmem:[%s4869_s3 + $0x10] sm:$0xff]   ;;  %v3946_v25 = vld [vmem:[%s4869_s3 + $0x18] sm:$0xff]   ;;  %v3947_v26 = vld [vmem:[%s4869_s3 + $0x20] sm:$0xff]   ;;  %3648 = vmatprep.mubr.msk.bf16.mxu0 %vm3976_vm0, %v3975_v22  ;;  %s3977_s27 = smov [#allocation2]  }
 0x107   :  { %3633 = vmatpush3.bf16.msra.mxu0 %v3943_v21  ;;  %v3948_v36 = vld [vmem:[%s4869_s3 + $0x28] sm:$0xff]   ;;  %v3949_v40 = vld [vmem:[%s4869_s3 + $0x30] sm:$0xff]   ;;  %v3950_v41 = vld [vmem:[%s4869_s3 + $0x38] sm:$0xff]   ;;  %s2965_s28 = sshll.u32 %s3977_s27, 4  ;;  %s2966_s28 = int_to_ptr.vmem [resolvable:$true] %s2965_s28 }
 0x108   :  { %3634 = vmatprep.subr.bf16.mxu0 %v3975_v22  ;;  %s3951_s29 = scalar_lea.vmem %s2966_s28, 128  ;;  %p3956_p1 = scmp.lt.s32.totalorder %s2966_s28, %s2966_s28 }
 0x109   :  { %p3952_p0 = scmp.ne.s32.totalorder %s2966_s28, %s3951_s29  ;;  %p3957_p2 = scmp.lt.s32.totalorder %s3951_s29, %s3951_s29 }
 0x10b   :  { %3635 = vmatpush3.bf16.msra.mxu0 %v3944_v23  ;;  %p3958_p3 = por %p3957_p2, %p3956_p1 }
 0x10c   :  { %3636 = vmatprep.subr.bf16.mxu0 %v3975_v22 }
 0x10d   :  { %p3959_p4 = pnand %p3958_p3, %p3952_p0 }
 0x10f   :  { %3637 = vmatpush3.bf16.msra.mxu0 %v3945_v24 }
 0x110   :  { %3638 = vmatprep.subr.bf16.mxu0 %v3975_v22 }
 0x113   :  { %3639 = vmatpush3.bf16.msra.mxu0 %v3946_v25 }
 0x114   :  { %3640 = vmatprep.subr.bf16.mxu0 %v3975_v22 }
 0x116   :  { %v3331_v61 = vpop.f32.mrb[4].mxu0 }
 0x117   :  { %v3353_v62 = vpop.f32.mrb[4].mxu1  ;;  %v3332_v63 = vpop.f32.mrb[5].mxu0  ;;  %3641 = vmatpush3.bf16.msra.mxu0 %v3947_v26 }
 0x118   :  { %v3354_v0 = vpop.f32.mrb[5].mxu1  ;;  %v3333_v1 = vadd.f32 %v3332_v63, %v3331_v61  ;;  %v3334_v3 = vpop.f32.mrb[6].mxu0  ;;  %3642 = vmatprep.subr.bf16.mxu0 %v3975_v22 }
 0x119   :  { %v3355_v2 = vadd.f32 %v3354_v0, %v3353_v62  ;;  %v3356_v4 = vpop.f32.mrb[6].mxu1  ;;  %v3335_v5 = vpop.f32.mrb[7].mxu0 }
 0x11a   :  { %v3357_v6 = vpop.f32.mrb[7].mxu1  ;;  %v2320_v7 = vadd.f32 %v3333_v1, %v2280_v46 }
 0x11b   :  { %3643 = vmatpush3.bf16.msra.mxu0 %v3948_v36 }
 0x11c   :  { %v2360_v8 = vadd.f32 %v3355_v2, %v2320_v7  ;;  %3644 = vmatprep.subr.bf16.mxu0 %v3975_v22 }
 0x11f   :  { %3645 = vmatpush3.bf16.msra.mxu0 %v3949_v40 }
 0x120   :  { %3646 = vmatprep.subr.bf16.mxu0 %v3975_v22 }
 0x123   :  { %3647 = vmatpush3.bf16.msra.mxu0 %v3950_v41 }
 0x136   :  { %v3375_v9 = vpop.f32.mrb[8].mxu0 }
 0x137   :  { %v3397_v10 = vpop.f32.mrb[8].mxu1  ;;  %v3376_v11 = vpop.f32.mrb[9].mxu0 }
 0x138   :  { %v3377_v12 = vadd.f32 %v3376_v11, %v3375_v9  ;;  %v3398_v13 = vpop.f32.mrb[9].mxu1  ;;  %v3378_v14 = vpop.f32.mrb[10].mxu0 }
 0x139   :  { %v3399_v15 = vadd.f32 %v3398_v13, %v3397_v10  ;;  %v3400_v16 = vpop.f32.mrb[10].mxu1  ;;  %v3379_v17 = vpop.f32.mrb[11].mxu0 }
 0x13a   :  { %v2400_v18 = vadd.f32 %v3377_v12, %v2360_v8  ;;  %v3401_v19 = vpop.f32.mrb[11].mxu1 }
 0x13c   :  { %v2440_v20 = vadd.f32 %v3399_v15, %v2400_v18 }
 0x156   :  { %v3419_v27 = vpop.f32.mrb[12].mxu0 }
 0x157   :  { %v3441_v28 = vpop.f32.mrb[12].mxu1  ;;  %v3420_v29 = vpop.f32.mrb[13].mxu0 }
 0x158   :  { %v3421_v30 = vadd.f32 %v3420_v29, %v3419_v27  ;;  %v3442_v31 = vpop.f32.mrb[13].mxu1  ;;  %v3422_v32 = vpop.f32.mrb[14].mxu0 }
 0x159   :  { %v3443_v33 = vadd.f32 %v3442_v31, %v3441_v28  ;;  %v3444_v34 = vpop.f32.mrb[14].mxu1  ;;  %v3423_v35 = vpop.f32.mrb[15].mxu0  ;;  %v3262_v28 = vld [vmem:[%s4870_s4] ss:$0 sm:$0xff] }
 0x15a   :  { %v2480_v37 = vadd.f32 %v3421_v30, %v2440_v20  ;;  %v3445_v38 = vpop.f32.mrb[15].mxu1 }
 0x15c   :  { %v2520_v39 = vadd.f32 %v3443_v33, %v2480_v37 }
 0x176   :  { %v3463_v42 = vpop.f32.mrb[16].mxu0 }
 0x177   :  { %v3485_v43 = vpop.f32.mrb[16].mxu1  ;;  %v3464_v44 = vpop.f32.mrb[17].mxu0 }
 0x178   :  { %v3486_v45 = vpop.f32.mrb[17].mxu1  ;;  %v3465_v46 = vadd.f32 %v3464_v44, %v3463_v42  ;;  %v3466_v48 = vpop.f32.mrb[18].mxu0 }
 0x179   :  { %v3487_v47 = vadd.f32 %v3486_v45, %v3485_v43  ;;  %v3488_v49 = vpop.f32.mrb[18].mxu1  ;;  %v3467_v50 = vpop.f32.mrb[19].mxu0 }
 0x17a   :  { %v3489_v51 = vpop.f32.mrb[19].mxu1  ;;  %v2560_v52 = vadd.f32 %v3465_v46, %v2520_v39 }
 0x17c   :  { %v2600_v53 = vadd.f32 %v3487_v47, %v2560_v52 }
 0x196   :  { %v3507_v54 = vpop.f32.mrb[20].mxu0 }
 0x197   :  { %v3529_v55 = vpop.f32.mrb[20].mxu1  ;;  %v3508_v56 = vpop.f32.mrb[21].mxu0 }
 0x198   :  { %v3509_v57 = vadd.f32 %v3508_v56, %v3507_v54  ;;  %v3530_v58 = vpop.f32.mrb[21].mxu1  ;;  %v3510_v59 = vpop.f32.mrb[22].mxu0 }
 0x199   :  { %v3531_v60 = vadd.f32 %v3530_v58, %v3529_v55  ;;  %v3532_v61 = vpop.f32.mrb[22].mxu1  ;;  %v3511_v62 = vpop.f32.mrb[23].mxu0 }
 0x19a   :  { %v2640_v63 = vadd.f32 %v3509_v57, %v2600_v53  ;;  %v3533_v0 = vpop.f32.mrb[23].mxu1 }
 0x19c   :  { %v2680_v1 = vadd.f32 %v3531_v60, %v2640_v63 }
 0x1b6   :  { %v3551_v2 = vpop.f32.mrb[24].mxu0 }
 0x1b7   :  { %v3573_v3 = vpop.f32.mrb[24].mxu1  ;;  %v3552_v4 = vpop.f32.mrb[25].mxu0 }
 0x1b8   :  { %v3553_v5 = vadd.f32 %v3552_v4, %v3551_v2  ;;  %v3574_v6 = vpop.f32.mrb[25].mxu1  ;;  %v3554_v7 = vpop.f32.mrb[26].mxu0 }
 0x1b9   :  { %v3575_v8 = vadd.f32 %v3574_v6, %v3573_v3  ;;  %v3576_v9 = vpop.f32.mrb[26].mxu1  ;;  %v3555_v10 = vpop.f32.mrb[27].mxu0 }
 0x1ba   :  { %v2720_v11 = vadd.f32 %v3553_v5, %v2680_v1  ;;  %v3577_v12 = vpop.f32.mrb[27].mxu1 }
 0x1bc   :  { %v2760_v13 = vadd.f32 %v3575_v8, %v2720_v11 }
 0x1d6   :  { %v3595_v14 = vpop.f32.mrb[28].mxu0 }
 0x1d7   :  { %v3617_v15 = vpop.f32.mrb[28].mxu1  ;;  %v3596_v16 = vpop.f32.mrb[29].mxu0 }
 0x1d8   :  { %v3597_v17 = vadd.f32 %v3596_v16, %v3595_v14  ;;  %v3618_v18 = vpop.f32.mrb[29].mxu1  ;;  %v3598_v19 = vpop.f32.mrb[30].mxu0 }
 0x1d9   :  { %v3619_v20 = vadd.f32 %v3618_v18, %v3617_v15  ;;  %v3620_v21 = vpop.f32.mrb[30].mxu1  ;;  %v3599_v22 = vpop.f32.mrb[31].mxu0 }
 0x1da   :  { %v2800_v23 = vadd.f32 %v3597_v17, %v2760_v13  ;;  %v3621_v24 = vpop.f32.mrb[31].mxu1 }
 0x1dc   :  { %v2840_v25 = vadd.f32 %v3619_v20, %v2800_v23 }
 0x1de   :  { %v2845_v26 = vmax.f32 %v2840_v25, 0.0 }
 0x1e0   :  { %v2846_v27 = vpack.c.bf16 %v2845_v26, %v2845_v26 }
 0x1e2   :  { %3649 = vmatmul.mubr.bf16.vlgmr.msra.gmra.mrb[32].mxu0 %v2846_v27 }
 0x2b5   :  { %v2952_v29 = vpop.f32.mrb[32].mxu0 }
 0x2b6   :  { %v2953_v30 = vadd.f32 %v3262_v28, %v2952_v29  ;;  %v3650_v31 = vpop.f32.mrb[33].mxu0 }
 0x2b7   :  { %v2955_v32 = vpop.f32.mrb[34].mxu0 }
 0x2b8   :  { %2958 = vst [vmem:[#allocation2] sm:$0xff] %v2953_v30  ;;  %v3651_v33 = vpop.f32.mrb[35].mxu0 }
 0x2b9   :  { %3962 = shalt.err (!%p3959_p4)
}
 0x2ba   :  { %s3963_s4 = scalar_lea.hbm %s4871_s5, 128 }
 0x2bb   :  { %p3964_p5 = scmp.ne.s32.totalorder %s4871_s5, %s3963_s4  ;;  %p3967_p6 = scmp.lt.u32.totalorder %s3963_s4, %s4871_s5 }
 0x2bd   :  { %p3969_p7 = pnand %p3967_p6, %p3964_p5 }
 0x2bf   :  { %3972 = shalt.err (!%p3969_p7)
}
 0x2c0   :  { %2968 = dma.vmem_to_hbm [thread:$0]  %s2966_s28, 128, %s4871_s5, [#allocation3]  }
 0x2c1   :  { %3973 = dma.done.wait [#allocation3], 128  }
 0x2c2   :  { %3974 = vsyncadd [#allocation3], 4294967168 }
 0x2c3   :  { %2972 = vsyncpa [#allocation3], 1 }

</bundles_post_ra>
